<compile_context>
chip_gen: v6e
topology: v6e:2x2x1
jax: 0.10.0
libtpu: 0.0.40
codegen_flags: <defaults>
</compile_context>

<pallas_src>
import functools

import jax
import jax.numpy as jnp
from jax.experimental import pallas as pl
from jax.experimental.pallas import tpu as pltpu


# ----------------------------------------------------------------------------
# Kernel
# ----------------------------------------------------------------------------
def _layernorm(x, gamma, beta):
    mu = jnp.mean(x, axis=-1, keepdims=True)
    var = jnp.mean((x - mu) ** 2, axis=-1, keepdims=True)
    return (x - mu) * jax.lax.rsqrt(var + 1e-5) * gamma + beta


def _transformer_layer_kernel(x_ref, vec_ref, wqkv_ref, wout_ref, w1_ref,
                              w2_ref, o_ref, *, heads, dim_head, scale):
    """One grid step = one full transformer layer for the whole batch."""
    layer = pl.program_id(0)
    B, N, D = o_ref.shape
    mlp = w1_ref.shape[2]
    inner = heads * dim_head
    BN = B * N

    # The residual stream lives in the resident f32 output block.  Its block
    # index is constant across the depth grid axis, so it is written back to
    # HBM exactly once, after the last layer.
    @pl.when(layer == 0)
    def _():
        o_ref[...] = x_ref[...].astype(o_ref.dtype)

    x = o_ref[...].reshape(BN, D)                      # (B*N, D) f32

    vp = vec_ref[0]                                    # (8, D + mlp) f32 slab
    ln1_g, ln1_b = vp[0:1, :D], vp[1:2, :D]
    b_attn_out = vp[2:3, :D]
    ln2_g, ln2_b = vp[3:4, :D], vp[4:5, :D]
    b_ff_out = vp[5:6, :D]
    b1 = vp[0:1, D:D + mlp]                            # (1, mlp)

    # ---------------- Attention (pre-LN) ----------------
    xn = _layernorm(x, ln1_g, ln1_b).astype(jnp.bfloat16)
    # (B*N, 3*inner) f32 accumulation, bf16 MXU operands.
    qkv = jnp.dot(xn, wqkv_ref[0], preferred_element_type=jnp.float32)

    def gather_heads(base):
        # (B*N, 3*inner) lane slices -> (heads*B, N, dim_head) via a sublane
        # concat + free leading-dim reshape (no transposes, no 4-D temps).
        parts = [qkv[:, base + h * dim_head: base + (h + 1) * dim_head]
                 for h in range(heads)]
        t = jnp.concatenate(parts, axis=0)             # (heads*B*N, dim_head)
        return t.reshape(heads * B, N, dim_head)

    q = (gather_heads(0) * scale).astype(jnp.bfloat16)   # scale folded into q
    k = gather_heads(inner).astype(jnp.bfloat16)
    v = gather_heads(2 * inner).astype(jnp.bfloat16)

    # scores: contract dim_head, batch over heads*B (no explicit k.T).
    s = jax.lax.dot_general(q, k, (((2,), (2,)), ((0,), (0,))),
                            preferred_element_type=jnp.float32)
    s = s - jnp.max(s, axis=-1, keepdims=True)
    p = jnp.exp(s)
    attn = p * pl.reciprocal(jnp.sum(p, axis=-1, keepdims=True), approx=True)

    # (heads*B, N, dim_head)
    o = jax.lax.dot_general(attn.astype(jnp.bfloat16), v,
                            (((2,), (1,)), ((0,), (0,))),
                            preferred_element_type=jnp.float32)
    # Re-pack heads along lanes -> (B*N, inner), then ONE K=inner projection.
    o2 = o.reshape(heads * BN, dim_head)
    o_cat = jnp.concatenate([o2[h * BN:(h + 1) * BN] for h in range(heads)],
                            axis=-1).astype(jnp.bfloat16)      # (B*N, inner)
    y = jnp.dot(o_cat, wout_ref[0], preferred_element_type=jnp.float32)
    x = x + y + b_attn_out                             # residual + out bias

    # ---------------- FeedForward (pre-LN) ----------------
    xn2 = _layernorm(x, ln2_g, ln2_b).astype(jnp.bfloat16)
    h1 = jnp.dot(xn2, w1_ref[0], preferred_element_type=jnp.float32) + b1
    g = jax.nn.gelu(h1, approximate=True)              # tanh GELU -> EUP
    y2 = jnp.dot(g.astype(jnp.bfloat16), w2_ref[0],
                 preferred_element_type=jnp.float32)
    x = x + y2 + b_ff_out                              # residual + out bias

    o_ref[...] = x.reshape(B, N, D).astype(o_ref.dtype)


# ----------------------------------------------------------------------------
# Wrapper
# ----------------------------------------------------------------------------
def transformer_forward(x, params, *, heads, dim_head):
    """x: (B, N, D) f32.  params: stacked-per-depth dict (see init_params)."""
    B, N, D = x.shape
    depth = params["wqkv"].shape[0]
    inner = heads * dim_head
    mlp = params["w1"].shape[-1]
    scale = dim_head ** -0.5

    kernel = functools.partial(_transformer_layer_kernel, heads=heads,
                               dim_head=dim_head, scale=scale)

    in_specs = [
        pl.BlockSpec((B, N, D), lambda l: (0, 0, 0)),            # x (1 fetch)
        pl.BlockSpec((1, 8, D + mlp), lambda l: (l, 0, 0)),      # packed vecs
        pl.BlockSpec((1, D, 3 * inner), lambda l: (l, 0, 0)),    # W_qkv (bf16)
        pl.BlockSpec((1, inner, D), lambda l: (l, 0, 0)),        # W_out (bf16)
        pl.BlockSpec((1, D, mlp), lambda l: (l, 0, 0)),          # W1 (bf16)
        pl.BlockSpec((1, mlp, D), lambda l: (l, 0, 0)),          # W2 (bf16)
    ]

    return pl.pallas_call(
        kernel,
        out_shape=jax.ShapeDtypeStruct((B, N, D), x.dtype),
        grid=(depth,),
        in_specs=in_specs,
        # Constant block index across depth -> resident residual stream, one
        # HBM writeback at the end of the grid.
        out_specs=pl.BlockSpec((B, N, D), lambda l: (0, 0, 0)),
        compiler_params=pltpu.CompilerParams(
            dimension_semantics=("arbitrary",),
            vmem_limit_bytes=48 * 1024 * 1024),
    )(x, params["vecs"], params["wqkv"], params["wout"], params["w1"],
      params["w2"])


# ----------------------------------------------------------------------------
# Deterministic parameter init (PyTorch-shaped, packed for the kernel)
# ----------------------------------------------------------------------------
def init_params(key, *, dim, depth, heads, dim_head, mlp_dim):
    inner = heads * dim_head
    width = dim + mlp_dim
    vecs, wqkv, wout, w1, w2 = [], [], [], [], []
    for _ in range(depth):
        key, k1, k2, k3, k4, k5, k6, k7, k8, k9, k10, k11 = jax.random.split(
            key, 12)
        a_g = 1.0 + 0.1 * jax.random.normal(k1, (dim,), jnp.float32)
        a_b = 0.01 * jax.random.normal(k2, (dim,), jnp.float32)
        b_attn_out = 0.01 * jax.random.normal(k3, (dim,), jnp.float32)
        f_g = 1.0 + 0.1 * jax.random.normal(k4, (dim,), jnp.float32)
        f_b = 0.01 * jax.random.normal(k5, (dim,), jnp.float32)
        b_ff_out = 0.01 * jax.random.normal(k6, (dim,), jnp.float32)
        b1 = 0.01 * jax.random.normal(k7, (mlp_dim,), jnp.float32)

        slab = jnp.zeros((8, width), jnp.float32)
        slab = slab.at[0, :dim].set(a_g).at[1, :dim].set(a_b)
        slab = slab.at[2, :dim].set(b_attn_out)
        slab = slab.at[3, :dim].set(f_g).at[4, :dim].set(f_b)
        slab = slab.at[5, :dim].set(b_ff_out)
        slab = slab.at[0, dim:dim + mlp_dim].set(b1)
        vecs.append(slab)

        wqkv.append((0.05 * jax.random.normal(k8, (dim, 3 * inner),
                                              jnp.float32)).astype(jnp.bfloat16))
        wout.append((0.05 * jax.random.normal(k9, (inner, dim),
                                              jnp.float32)).astype(jnp.bfloat16))
        w1.append((0.05 * jax.random.normal(k10, (dim, mlp_dim),
                                            jnp.float32)).astype(jnp.bfloat16))
        w2.append((0.05 * jax.random.normal(k11, (mlp_dim, dim),
                                            jnp.float32)).astype(jnp.bfloat16))
    return {
        "vecs": jnp.stack(vecs),      # (depth, 8, dim+mlp) f32 packed params
        "wqkv": jnp.stack(wqkv),      # (depth, dim, 3*inner) bf16
        "wout": jnp.stack(wout),      # (depth, inner, dim) bf16
        "w1": jnp.stack(w1),          # (depth, dim, mlp) bf16
        "w2": jnp.stack(w2),          # (depth, mlp, dim) bf16
    }


# ----------------------------------------------------------------------------
# Pure-JAX reference (f32, weights = bf16 values cast back to f32)
# ----------------------------------------------------------------------------
def reference_forward(x, params, *, heads, dim_head):
    depth = params["wqkv"].shape[0]
    inner = heads * dim_head
    mlp = params["w1"].shape[-1]
    scale = dim_head ** -0.5
    B, N, D = x.shape

    def ln(z, g, b):
        mu = z.mean(-1, keepdims=True)
        var = ((z - mu) ** 2).mean(-1, keepdims=True)
        return (z - mu) / jnp.sqrt(var + 1e-5) * g + b

    for l in range(depth):
        vp = params["vecs"][l]
        wqkv = params["wqkv"][l].astype(jnp.float32)
        woutm = params["wout"][l].astype(jnp.float32)
        w1m = params["w1"][l].astype(jnp.float32)
        w2m = params["w2"][l].astype(jnp.float32)
        g1, b1ln = vp[0, :D], vp[1, :D]
        b_attn_out = vp[2, :D]
        g2, b2ln = vp[3, :D], vp[4, :D]
        b_ff_out = vp[5, :D]
        b1 = vp[0, D:D + mlp]

        xn = ln(x, g1, b1ln)
        qkv = xn @ wqkv
        q, k, v = jnp.split(qkv, 3, axis=-1)

        def sh(t):
            return t.reshape(B, N, heads, dim_head).transpose(0, 2, 1, 3)

        q, k, v = sh(q), sh(k), sh(v)
        s = jnp.einsum("bhqd,bhkd->bhqk", q, k) * scale
        a = jax.nn.softmax(s, axis=-1)
        o = jnp.einsum("bhqk,bhkd->bhqd", a, v)
        o = o.transpose(0, 2, 1, 3).reshape(B, N, inner)
        x = x + o @ woutm + b_attn_out

        xn2 = ln(x, g2, b2ln)
        h = xn2 @ w1m + b1
        h = 0.5 * h * (1.0 + jax.lax.erf(h / jnp.sqrt(2.0)))   # exact GELU
        x = x + h @ w2m + b_ff_out
    return x


if __name__ == "__main__":
    # Small but lane/sublane-dense shapes (seq = 128 keeps softmax lane-dense).
    B, N = 2, 128         # batch, sequence length
    DIM = 128             # model dim (lane-dense)
    DEPTH = 2
    HEADS = 2
    DIM_HEAD = 64         # inner_dim = 128
    MLP_DIM = 256

    key = jax.random.PRNGKey(0)
    kx, kp = jax.random.split(key)
    x = jax.random.normal(kx, (B, N, DIM), jnp.float32)
    params = init_params(kp, dim=DIM, depth=DEPTH, heads=HEADS,
                         dim_head=DIM_HEAD, mlp_dim=MLP_DIM)

    out = transformer_forward(x, params, heads=HEADS, dim_head=DIM_HEAD)
    out = jax.block_until_ready(out)

    ref = reference_forward(x, params, heads=HEADS, dim_head=DIM_HEAD)
    assert out.shape == (B, N, DIM) and out.dtype == jnp.float32
    err = float(jnp.max(jnp.abs(out - ref)))
    assert jnp.allclose(out, ref, atol=5e-2, rtol=5e-2), err
    print("KERNEL_OK")
</pallas_src>

<mosaic_0001>
module attributes {stable_mosaic.version = 11 : i64} {
  func.func @_transformer_layer_kernel(%arg0: i32, %arg1: memref<2x128x128xf32, #tpu.memory_space<vmem>>, %arg2: memref<1x8x384xf32, #tpu.memory_space<vmem>>, %arg3: memref<1x128x384xbf16, #tpu.memory_space<vmem>>, %arg4: memref<1x128x128xbf16, #tpu.memory_space<vmem>>, %arg5: memref<1x128x256xbf16, #tpu.memory_space<vmem>>, %arg6: memref<1x256x128xbf16, #tpu.memory_space<vmem>>, %arg7: memref<2x128x128xf32, #tpu.memory_space<vmem>>) attributes {dimension_semantics = [#tpu.dimension_semantics<arbitrary>], iteration_bounds = array<i64: 2>, scalar_prefetch = 0 : i64, scratch_operands = 0 : i64, tpu.core_type = #tpu.core_type<tc>, window_params = [{pipeline_mode = #tpu.pipeline_mode<synchronous>, transform_indices = @transform_0, window_bounds = array<i64: 2, 128, 128>}, {transform_indices = @transform_1, window_bounds = array<i64: 1, 8, 384>}, {transform_indices = @transform_2, window_bounds = array<i64: 1, 128, 384>}, {transform_indices = @transform_3, window_bounds = array<i64: 1, 128, 128>}, {transform_indices = @transform_4, window_bounds = array<i64: 1, 128, 256>}, {transform_indices = @transform_5, window_bounds = array<i64: 1, 256, 128>}, {pipeline_mode = #tpu.pipeline_mode<synchronous>, transform_indices = @transform_6, window_bounds = array<i64: 2, 128, 128>}]} {
    %c0_i32 = arith.constant 0 : i32
    %0 = arith.cmpi eq, %arg0, %c0_i32 : i32
    %1 = arith.extui %0 : i1 to i32
    %c0_i32_0 = arith.constant 0 : i32
    %2 = arith.cmpi ne, %1, %c0_i32_0 : i32
    scf.if %2 {
      %c0_43 = arith.constant 0 : index
      %c0_44 = arith.constant 0 : index
      %c0_45 = arith.constant 0 : index
      %131 = vector.load %arg1[%c0_43, %c0_44, %c0_45] : memref<2x128x128xf32, #tpu.memory_space<vmem>>, vector<2x128x128xf32>
      %c0_46 = arith.constant 0 : index
      %c0_47 = arith.constant 0 : index
      %c0_48 = arith.constant 0 : index
      %132 = vector.load %arg7[%c0_46, %c0_47, %c0_48] : memref<2x128x128xf32, #tpu.memory_space<vmem>>, vector<2x128x128xf32>
      tpu.vector_store %arg7[%c0_46, %c0_47, %c0_48], %131 {strides = array<i32>} : memref<2x128x128xf32, #tpu.memory_space<vmem>>, vector<2x128x128xf32>,
    } else {
    }
    %c0 = arith.constant 0 : index
    %c0_1 = arith.constant 0 : index
    %c0_2 = arith.constant 0 : index
    %3 = vector.load %arg7[%c0, %c0_1, %c0_2] : memref<2x128x128xf32, #tpu.memory_space<vmem>>, vector<2x128x128xf32>
    %4 = vector.shape_cast %3 : vector<2x128x128xf32> to vector<256x128xf32>
    %c0_3 = arith.constant 0 : index
    %c0_4 = arith.constant 0 : index
    %c0_5 = arith.constant 0 : index
    %5 = vector.load %arg2[%c0_3, %c0_4, %c0_5] : memref<1x8x384xf32, #tpu.memory_space<vmem>>, vector<1x8x384xf32>
    %6 = vector.shape_cast %5 : vector<1x8x384xf32> to vector<8x384xf32>
    %7 = vector.extract_strided_slice %6 {offsets = [0, 0], sizes = [1, 128], strides = [1, 1]} : vector<8x384xf32> to vector<1x128xf32>
    %8 = vector.extract_strided_slice %6 {offsets = [1, 0], sizes = [1, 128], strides = [1, 1]} : vector<8x384xf32> to vector<1x128xf32>
    %9 = vector.extract_strided_slice %6 {offsets = [2, 0], sizes = [1, 128], strides = [1, 1]} : vector<8x384xf32> to vector<1x128xf32>
    %10 = vector.extract_strided_slice %6 {offsets = [3, 0], sizes = [1, 128], strides = [1, 1]} : vector<8x384xf32> to vector<1x128xf32>
    %11 = vector.extract_strided_slice %6 {offsets = [4, 0], sizes = [1, 128], strides = [1, 1]} : vector<8x384xf32> to vector<1x128xf32>
    %12 = vector.extract_strided_slice %6 {offsets = [5, 0], sizes = [1, 128], strides = [1, 1]} : vector<8x384xf32> to vector<1x128xf32>
    %13 = vector.extract_strided_slice %6 {offsets = [0, 128], sizes = [1, 256], strides = [1, 1]} : vector<8x384xf32> to vector<1x256xf32>
    %cst = arith.constant dense<0.000000e+00> : vector<256xf32>
    %14 = vector.multi_reduction <add>, %4, %cst [1] : vector<256x128xf32> to vector<256xf32>
    %15 = vector.shape_cast %14 : vector<256xf32> to vector<256x1xf32>
    %cst_6 = arith.constant 1.280000e+02 : f32
    %16 = vector.broadcast %cst_6 : f32 to vector<256x1xf32>
    %17 = arith.divf %15, %16 : vector<256x1xf32>
    %18 = vector.broadcast %17 : vector<256x1xf32> to vector<256x128xf32>
    %19 = arith.subf %4, %18 : vector<256x128xf32>
    %20 = arith.mulf %19, %19 : vector<256x128xf32>
    %cst_7 = arith.constant dense<0.000000e+00> : vector<256xf32>
    %21 = vector.multi_reduction <add>, %20, %cst_7 [1] : vector<256x128xf32> to vector<256xf32>
    %22 = vector.shape_cast %21 : vector<256xf32> to vector<256x1xf32>
    %cst_8 = arith.constant 1.280000e+02 : f32
    %23 = vector.broadcast %cst_8 : f32 to vector<256x1xf32>
    %24 = arith.divf %22, %23 : vector<256x1xf32>
    %25 = vector.broadcast %17 : vector<256x1xf32> to vector<256x128xf32>
    %26 = arith.subf %4, %25 : vector<256x128xf32>
    %cst_9 = arith.constant 9.99999974E-6 : f32
    %27 = vector.broadcast %cst_9 : f32 to vector<256x1xf32>
    %28 = arith.addf %24, %27 : vector<256x1xf32>
    %29 = math.rsqrt %28 : vector<256x1xf32>
    %30 = vector.broadcast %29 : vector<256x1xf32> to vector<256x128xf32>
    %31 = arith.mulf %26, %30 : vector<256x128xf32>
    %32 = vector.broadcast %7 : vector<1x128xf32> to vector<256x128xf32>
    %33 = arith.mulf %31, %32 : vector<256x128xf32>
    %34 = vector.broadcast %8 : vector<1x128xf32> to vector<256x128xf32>
    %35 = arith.addf %33, %34 : vector<256x128xf32>
    %36 = arith.truncf %35 : vector<256x128xf32> to vector<256x128xbf16>
    %c0_10 = arith.constant 0 : index
    %c0_11 = arith.constant 0 : index
    %c0_12 = arith.constant 0 : index
    %37 = vector.load %arg3[%c0_10, %c0_11, %c0_12] : memref<1x128x384xbf16, #tpu.memory_space<vmem>>, vector<1x128x384xbf16>
    %38 = vector.shape_cast %37 : vector<1x128x384xbf16> to vector<128x384xbf16>
    %cst_13 = arith.constant dense<0.000000e+00> : vector<256x384xf32>
    %39 = tpu.matmul %36, %38, %cst_13 {dimension_numbers = #tpu.dot_dimension_numbers<[1], [0], [0], [1], [0, 0, 1, 1], [], []>} : vector<256x128xbf16>, vector<128x384xbf16>, vector<256x384xf32> -> vector<256x384xf32>
    %40 = vector.extract_strided_slice %39 {offsets = [0, 0], sizes = [256, 64], strides = [1, 1]} : vector<256x384xf32> to vector<256x64xf32>
    %41 = vector.extract_strided_slice %39 {offsets = [0, 64], sizes = [256, 64], strides = [1, 1]} : vector<256x384xf32> to vector<256x64xf32>
    %42 = tpu.concatenate %40, %41 in 0 : vector<256x64xf32>, vector<256x64xf32> -> vector<512x64xf32>
    %43 = vector.shape_cast %42 : vector<512x64xf32> to vector<4x128x64xf32>
    %cst_14 = arith.constant 1.250000e-01 : f32
    %44 = vector.broadcast %cst_14 : f32 to vector<4x128x64xf32>
    %45 = arith.mulf %43, %44 : vector<4x128x64xf32>
    %46 = arith.truncf %45 : vector<4x128x64xf32> to vector<4x128x64xbf16>
    %47 = vector.extract_strided_slice %39 {offsets = [0, 128], sizes = [256, 64], strides = [1, 1]} : vector<256x384xf32> to vector<256x64xf32>
    %48 = vector.extract_strided_slice %39 {offsets = [0, 192], sizes = [256, 64], strides = [1, 1]} : vector<256x384xf32> to vector<256x64xf32>
    %49 = tpu.concatenate %47, %48 in 0 : vector<256x64xf32>, vector<256x64xf32> -> vector<512x64xf32>
    %50 = vector.shape_cast %49 : vector<512x64xf32> to vector<4x128x64xf32>
    %51 = arith.truncf %50 : vector<4x128x64xf32> to vector<4x128x64xbf16>
    %52 = vector.extract_strided_slice %39 {offsets = [0, 256], sizes = [256, 64], strides = [1, 1]} : vector<256x384xf32> to vector<256x64xf32>
    %53 = vector.extract_strided_slice %39 {offsets = [0, 320], sizes = [256, 64], strides = [1, 1]} : vector<256x384xf32> to vector<256x64xf32>
    %54 = tpu.concatenate %52, %53 in 0 : vector<256x64xf32>, vector<256x64xf32> -> vector<512x64xf32>
    %55 = vector.shape_cast %54 : vector<512x64xf32> to vector<4x128x64xf32>
    %56 = arith.truncf %55 : vector<4x128x64xf32> to vector<4x128x64xbf16>
    %cst_15 = arith.constant dense<0.000000e+00> : vector<4x128x128xf32>
    %57 = tpu.matmul %46, %51, %cst_15 {dimension_numbers = #tpu.dot_dimension_numbers<[2], [2], [1], [1], [0, 0, 0, 1, 1, 1], [0], [0]>} : vector<4x128x64xbf16>, vector<4x128x64xbf16>, vector<4x128x128xf32> -> vector<4x128x128xf32>
    %cst_16 = arith.constant dense<0xFF800000> : vector<4x128xf32>
    %58 = vector.multi_reduction <maximumf>, %57, %cst_16 [2] : vector<4x128x128xf32> to vector<4x128xf32>
    %59 = vector.shape_cast %58 : vector<4x128xf32> to vector<4x128x1xf32>
    %60 = vector.broadcast %59 : vector<4x128x1xf32> to vector<4x128x128xf32>
    %61 = arith.subf %57, %60 : vector<4x128x128xf32>
    %62 = math.exp %61 : vector<4x128x128xf32>
    %cst_17 = arith.constant dense<0.000000e+00> : vector<4x128xf32>
    %63 = vector.multi_reduction <add>, %62, %cst_17 [2] : vector<4x128x128xf32> to vector<4x128xf32>
    %64 = vector.shape_cast %63 : vector<4x128xf32> to vector<4x128x1xf32>
    %65 = tpu.reciprocal %64 {approx = true} : vector<4x128x1xf32> -> vector<4x128x1xf32>
    %66 = vector.broadcast %65 : vector<4x128x1xf32> to vector<4x128x128xf32>
    %67 = arith.mulf %62, %66 : vector<4x128x128xf32>
    %68 = arith.truncf %67 : vector<4x128x128xf32> to vector<4x128x128xbf16>
    %cst_18 = arith.constant dense<0.000000e+00> : vector<4x128x64xf32>
    %69 = tpu.matmul %68, %56, %cst_18 {dimension_numbers = #tpu.dot_dimension_numbers<[2], [1], [1], [2], [0, 0, 0, 1, 1, 2], [0], [0]>} : vector<4x128x128xbf16>, vector<4x128x64xbf16>, vector<4x128x64xf32> -> vector<4x128x64xf32>
    %70 = vector.shape_cast %69 : vector<4x128x64xf32> to vector<512x64xf32>
    %71 = vector.extract_strided_slice %70 {offsets = [0, 0], sizes = [256, 64], strides = [1, 1]} : vector<512x64xf32> to vector<256x64xf32>
    %72 = vector.extract_strided_slice %70 {offsets = [256, 0], sizes = [256, 64], strides = [1, 1]} : vector<512x64xf32> to vector<256x64xf32>
    %73 = tpu.concatenate %71, %72 in 1 : vector<256x64xf32>, vector<256x64xf32> -> vector<256x128xf32>
    %74 = arith.truncf %73 : vector<256x128xf32> to vector<256x128xbf16>
    %c0_19 = arith.constant 0 : index
    %c0_20 = arith.constant 0 : index
    %c0_21 = arith.constant 0 : index
    %75 = vector.load %arg4[%c0_19, %c0_20, %c0_21] : memref<1x128x128xbf16, #tpu.memory_space<vmem>>, vector<1x128x128xbf16>
    %76 = vector.shape_cast %75 : vector<1x128x128xbf16> to vector<128x128xbf16>
    %cst_22 = arith.constant dense<0.000000e+00> : vector<256x128xf32>
    %77 = tpu.matmul %74, %76, %cst_22 {dimension_numbers = #tpu.dot_dimension_numbers<[1], [0], [0], [1], [0, 0, 1, 1], [], []>} : vector<256x128xbf16>, vector<128x128xbf16>, vector<256x128xf32> -> vector<256x128xf32>
    %78 = arith.addf %4, %77 : vector<256x128xf32>
    %79 = vector.broadcast %9 : vector<1x128xf32> to vector<256x128xf32>
    %80 = arith.addf %78, %79 : vector<256x128xf32>
    %cst_23 = arith.constant dense<0.000000e+00> : vector<256xf32>
    %81 = vector.multi_reduction <add>, %80, %cst_23 [1] : vector<256x128xf32> to vector<256xf32>
    %82 = vector.shape_cast %81 : vector<256xf32> to vector<256x1xf32>
    %cst_24 = arith.constant 1.280000e+02 : f32
    %83 = vector.broadcast %cst_24 : f32 to vector<256x1xf32>
    %84 = arith.divf %82, %83 : vector<256x1xf32>
    %85 = vector.broadcast %84 : vector<256x1xf32> to vector<256x128xf32>
    %86 = arith.subf %80, %85 : vector<256x128xf32>
    %87 = arith.mulf %86, %86 : vector<256x128xf32>
    %cst_25 = arith.constant dense<0.000000e+00> : vector<256xf32>
    %88 = vector.multi_reduction <add>, %87, %cst_25 [1] : vector<256x128xf32> to vector<256xf32>
    %89 = vector.shape_cast %88 : vector<256xf32> to vector<256x1xf32>
    %cst_26 = arith.constant 1.280000e+02 : f32
    %90 = vector.broadcast %cst_26 : f32 to vector<256x1xf32>
    %91 = arith.divf %89, %90 : vector<256x1xf32>
    %92 = vector.broadcast %84 : vector<256x1xf32> to vector<256x128xf32>
    %93 = arith.subf %80, %92 : vector<256x128xf32>
    %cst_27 = arith.constant 9.99999974E-6 : f32
    %94 = vector.broadcast %cst_27 : f32 to vector<256x1xf32>
    %95 = arith.addf %91, %94 : vector<256x1xf32>
    %96 = math.rsqrt %95 : vector<256x1xf32>
    %97 = vector.broadcast %96 : vector<256x1xf32> to vector<256x128xf32>
    %98 = arith.mulf %93, %97 : vector<256x128xf32>
    %99 = vector.broadcast %10 : vector<1x128xf32> to vector<256x128xf32>
    %100 = arith.mulf %98, %99 : vector<256x128xf32>
    %101 = vector.broadcast %11 : vector<1x128xf32> to vector<256x128xf32>
    %102 = arith.addf %100, %101 : vector<256x128xf32>
    %103 = arith.truncf %102 : vector<256x128xf32> to vector<256x128xbf16>
    %c0_28 = arith.constant 0 : index
    %c0_29 = arith.constant 0 : index
    %c0_30 = arith.constant 0 : index
    %104 = vector.load %arg5[%c0_28, %c0_29, %c0_30] : memref<1x128x256xbf16, #tpu.memory_space<vmem>>, vector<1x128x256xbf16>
    %105 = vector.shape_cast %104 : vector<1x128x256xbf16> to vector<128x256xbf16>
    %cst_31 = arith.constant dense<0.000000e+00> : vector<256x256xf32>
    %106 = tpu.matmul %103, %105, %cst_31 {dimension_numbers = #tpu.dot_dimension_numbers<[1], [0], [0], [1], [0, 0, 1, 1], [], []>} : vector<256x128xbf16>, vector<128x256xbf16>, vector<256x256xf32> -> vector<256x256xf32>
    %107 = vector.broadcast %13 : vector<1x256xf32> to vector<256x256xf32>
    %108 = arith.addf %106, %107 : vector<256x256xf32>
    %109 = arith.mulf %108, %108 : vector<256x256xf32>
    %110 = arith.mulf %108, %109 : vector<256x256xf32>
    %cst_32 = arith.constant 4.471500e-02 : f32
    %111 = vector.broadcast %cst_32 : f32 to vector<256x256xf32>
    %112 = arith.mulf %111, %110 : vector<256x256xf32>
    %113 = arith.addf %108, %112 : vector<256x256xf32>
    %cst_33 = arith.constant 0.797884583 : f32
    %114 = vector.broadcast %cst_33 : f32 to vector<256x256xf32>
    %115 = arith.mulf %114, %113 : vector<256x256xf32>
    %116 = math.tanh %115 : vector<256x256xf32>
    %cst_34 = arith.constant 1.000000e+00 : f32
    %117 = vector.broadcast %cst_34 : f32 to vector<256x256xf32>
    %118 = arith.addf %117, %116 : vector<256x256xf32>
    %cst_35 = arith.constant 5.000000e-01 : f32
    %119 = vector.broadcast %cst_35 : f32 to vector<256x256xf32>
    %120 = arith.mulf %119, %118 : vector<256x256xf32>
    %121 = arith.mulf %108, %120 : vector<256x256xf32>
    %122 = arith.truncf %121 : vector<256x256xf32> to vector<256x256xbf16>
    %c0_36 = arith.constant 0 : index
    %c0_37 = arith.constant 0 : index
    %c0_38 = arith.constant 0 : index
    %123 = vector.load %arg6[%c0_36, %c0_37, %c0_38] : memref<1x256x128xbf16, #tpu.memory_space<vmem>>, vector<1x256x128xbf16>
    %124 = vector.shape_cast %123 : vector<1x256x128xbf16> to vector<256x128xbf16>
    %cst_39 = arith.constant dense<0.000000e+00> : vector<256x128xf32>
    %125 = tpu.matmul %122, %124, %cst_39 {dimension_numbers = #tpu.dot_dimension_numbers<[1], [0], [0], [1], [0, 0, 1, 1], [], []>} : vector<256x256xbf16>, vector<256x128xbf16>, vector<256x128xf32> -> vector<256x128xf32>
    %126 = arith.addf %80, %125 : vector<256x128xf32>
    %127 = vector.broadcast %12 : vector<1x128xf32> to vector<256x128xf32>
    %128 = arith.addf %126, %127 : vector<256x128xf32>
    %129 = vector.shape_cast %128 : vector<256x128xf32> to vector<2x128x128xf32>
    %c0_40 = arith.constant 0 : index
    %c0_41 = arith.constant 0 : index
    %c0_42 = arith.constant 0 : index
    %130 = vector.load %arg7[%c0_40, %c0_41, %c0_42] : memref<2x128x128xf32, #tpu.memory_space<vmem>>, vector<2x128x128xf32>
    tpu.vector_store %arg7[%c0_40, %c0_41, %c0_42], %129 {strides = array<i32>} : memref<2x128x128xf32, #tpu.memory_space<vmem>>, vector<2x128x128xf32>,
    return
  }
  func.func @transform_0(%arg0: i32) -> (i32, i32, i32) {
    %c0_i32 = arith.constant 0 : i32
    %c0_i32_0 = arith.constant 0 : i32
    %c0_i32_1 = arith.constant 0 : i32
    %c0_i32_2 = arith.constant 0 : i32
    return %c0_i32, %c0_i32_0, %c0_i32_1 : i32, i32, i32
  }
  func.func @transform_1(%arg0: i32) -> (i32, i32, i32) {
    %c0_i32 = arith.constant 0 : i32
    %c0_i32_0 = arith.constant 0 : i32
    %c0_i32_1 = arith.constant 0 : i32
    return %arg0, %c0_i32, %c0_i32_0 : i32, i32, i32
  }
  func.func @transform_2(%arg0: i32) -> (i32, i32, i32) {
    %c0_i32 = arith.constant 0 : i32
    %c0_i32_0 = arith.constant 0 : i32
    %c0_i32_1 = arith.constant 0 : i32
    return %arg0, %c0_i32, %c0_i32_0 : i32, i32, i32
  }
  func.func @transform_3(%arg0: i32) -> (i32, i32, i32) {
    %c0_i32 = arith.constant 0 : i32
    %c0_i32_0 = arith.constant 0 : i32
    %c0_i32_1 = arith.constant 0 : i32
    return %arg0, %c0_i32, %c0_i32_0 : i32, i32, i32
  }
  func.func @transform_4(%arg0: i32) -> (i32, i32, i32) {
    %c0_i32 = arith.constant 0 : i32
    %c0_i32_0 = arith.constant 0 : i32
    %c0_i32_1 = arith.constant 0 : i32
    return %arg0, %c0_i32, %c0_i32_0 : i32, i32, i32
  }
  func.func @transform_5(%arg0: i32) -> (i32, i32, i32) {
    %c0_i32 = arith.constant 0 : i32
    %c0_i32_0 = arith.constant 0 : i32
    %c0_i32_1 = arith.constant 0 : i32
    return %arg0, %c0_i32, %c0_i32_0 : i32, i32, i32
  }
  func.func @transform_6(%arg0: i32) -> (i32, i32, i32) {
    %c0_i32 = arith.constant 0 : i32
    %c0_i32_0 = arith.constant 0 : i32
    %c0_i32_1 = arith.constant 0 : i32
    %c0_i32_2 = arith.constant 0 : i32
    return %c0_i32, %c0_i32_0, %c0_i32_1 : i32, i32, i32
  }
}

</mosaic_0001>

<bundles_post_ra>
// kernel: tpu_custom_call.1
= control target key start
LH: loop header
LB: loop body
LE: loop exit
PB: predicated region body
PF: predicated region fallthrough
CT: control target
= control target key end

     0   :  { %s11133_s0 = inlined_call_operand.hbm [shape: f32[2,128,128], index: 0, kind: input, shape index: {}]   ;;  %s11134_s1 = inlined_call_operand.hbm [shape: f32[2,8,384], index: 1, kind: input, shape index: {}]   ;;  %s11135_s2 = inlined_call_operand.hbm [shape: bf16[2,128,384], index: 2, kind: input, shape index: {}]   ;;  %s11136_s3 = inlined_call_operand.hbm [shape: bf16[2,128,128], index: 3, kind: input, shape index: {}]   ;;  %s11137_s4 = inlined_call_operand.hbm [shape: bf16[2,128,256], index: 4, kind: input, shape index: {}]   ;;  %s11138_s5 = inlined_call_operand.hbm [shape: bf16[2,256,128], index: 5, kind: input, shape index: {}]   ;;  %s11139_s6 = inlined_call_operand.hbm [shape: f32[2,128,128], index: 6, kind: output, shape index: {}]  }
   0x1   :  { %11241 = sst [smem:[#allocation78_spill]] %s11134_s1 }
   0x2   :  { %11242 = sst [smem:[#allocation79_spill]] %s11136_s3 }
   0x3   :  { %11 = vsyncpa [#allocation3], 0 }
   0x4   :  { %12 = vsyncpa [#allocation6], 0 }
   0x5   :  { %14 = vsyncpa [#allocation6 + $0x1], 0 }
   0x6   :  { %15 = vsyncpa [#allocation9], 0 }
   0x7   :  { %17 = vsyncpa [#allocation9 + $0x1], 0 }
   0x8   :  { %18 = vsyncpa [#allocation12], 0 }
   0x9   :  { %20 = vsyncpa [#allocation12 + $0x1], 0 }
   0xa   :  { %21 = vsyncpa [#allocation4], 0  ;;  %s8030_s21 = smov 0   ;;  %s8032_s22 = smov 0  }
   0xb   :  { %s8034_s23 = smov 0   ;;  %s8036_s24 = smov 0  }
   0xc LB: > { %11243 = sst [smem:[#allocation19_spill]] %s7972_s23  ;;  %s8051_s25 = sadd.s32 1, %s7976_s24   ;;  %s7976_s24 = sphi %s8036_s24, %s11440_s24   ;;  %s7972_s23 = sphi %s8034_s23, %s11442_s23   ;;  %s7968_s22 = sphi %s8032_s22, %s11444_s22   ;;  %s7964_s21 = sphi %s8030_s21, %s11443_s21  }
   0xd   : > { %11244 = sst [smem:[#allocation20_spill]] %s8051_s25  ;;  %s55_s26 = sadd.s32 1, %s7972_s23 }
   0xe   : > { %s52_s27 = ssub.s32 %s7976_s24, %s8051_s25  ;;  %p62_p0 = scmp.ne.s32.totalorder %s7972_s23, %s7968_s22 }
   0xf   : > { %p53_p1 = scmp.eq.s32.totalorder %s52_s27, 0  ;;  %p63_p2 = scmp.eq.s32.totalorder %s7976_s24, 0 }
  0x10   : > { %p6822_p3 = scmp.lt.s32.totalorder %s7976_s24, 2  ;;  %s230_s29 = sand.u32 1, %s7976_s24  }
  0x11   : > { %s8061_s28 = scalar_select %p53_p1, %s7972_s23, %s55_s26  }
  0x12   : > { %p64_p4 = por %p63_p2, %p62_p0  ;;  %s8065_s30 = sand.u32 1, %s7972_s23  }
  0x13   : > { %11245 = sst [smem:[#allocation21_spill]] %s8061_s28  ;;  %s6777_s7 = smul.u32 24, %s8065_s30 }
  0x14   : > { %p8068_p5 = pnand %p6822_p3, %p64_p4  ;;  %s6778_s9 = smul.u32 384, %s7976_s24 }
  0x15   : > { %s11247_s1 = sld [smem:[#allocation78_spill]]  ;;  %s234_s13 = scalar_lea.vmem [#allocation5], %s6777_s7 }
  0x16   : > { %s242_s14 = sshll.u32 %s234_s13, 4  ;;  %s5971_s15 = sshll.u32 %s8065_s30, 6  ;;  %s243_s14 = int_to_ptr.vmem [resolvable:$true] %s242_s14 }
  0x17   : > { %s8081_s16 = scalar_lea.sflag [#allocation6], %s230_s29  ;;  %p8087_p7 = pneg %p8068_p5 }
  0x1b   : > { %s8076_s12 = scalar_lea.hbm %s11247_s1, %s6778_s9  ;;  %s7741_s26 = scalar_lea.hbm %s11247_s1, 768 }
  0x1c   : > { %s7736_s17 = scalar_lea.hbm %s8076_s12, 384  ;;  %p7742_p10 = scmp.lt.s32.totalorder %s8076_s12, %s11247_s1 }
  0x1d   : > { %p7737_p6 = scmp.ne.s32.totalorder %s8076_s12, %s7736_s17  ;;  %p7743_p11 = scmp.lt.s32.totalorder %s7741_s26, %s7736_s17 }
  0x1f   : > { %p7739_p8 = pnand %p8087_p7, %p7737_p6  ;;  %p7744_p12 = por %p7743_p11, %p7742_p10 }
  0x21   : > { %p7740_p9 = pneg %p7739_p8 }
  0x23   : > { %p7745_p13 = pnand %p7744_p12, %p7740_p9 }
  0x25   : > { %7748 = shalt.err (!%p7745_p13)
}
  0x26   : > { %s7749_s9 = scalar_lea.vmem %s243_s14, 384  ;;  %s7978_s10 = smov [#allocation5]  }
  0x27   : > { %p7750_p0 = scmp.ne.s32.totalorder %s243_s14, %s7749_s9  ;;  %s7754_s11 = sshll.u32 %s7978_s10, 4  ;;  %s7755_s11 = int_to_ptr.vmem [resolvable:$false] %s7754_s11 }
  0x28   : > { %s7756_s13 = scalar_lea.vmem %s7755_s11, 768  ;;  %p7757_p3 = scmp.lt.s32.totalorder %s243_s14, %s7755_s11 }
  0x29   : > { %p7752_p1 = pnand %p7750_p0, %p8087_p7  ;;  %p7758_p4 = scmp.lt.s32.totalorder %s7756_s13, %s7749_s9 }
  0x2b   : > { %p7753_p2 = pneg %p7752_p1  ;;  %p7759_p6 = por %p7758_p4, %p7757_p3 }
  0x2d   : > { %p7760_p8 = pnand %p7759_p6, %p7753_p2 }
  0x2f   : > { %7763 = shalt.err (!%p7760_p8)
}
  0x30   : > { %6808 = dma.hbm_to_vmem [thread:$0]  (!%p8068_p5), %s8076_s12, 384, %s243_s14, %s8081_s16  }
  0x31   : > { %s6086_s17 = sshll.u32 %s7976_s24, 10  ;;  %s11249_s3 = sld [smem:[#allocation79_spill]] }
  0x32   : > { %s274_s27 = scalar_lea.vmem [#allocation8], %s5971_s15  ;;  %s8118_s9 = scalar_lea.sflag [#allocation9], %s230_s29 }
  0x33   : > { %s281_s7 = sshll.u32 %s274_s27, 4  ;;  %s8114_s7 = int_to_ptr.vmem [resolvable:$true] %s281_s7 }
  0x37   : > { %s8110_s26 = scalar_lea.hbm %s11249_s3, %s6086_s17  ;;  %s7769_s11 = scalar_lea.hbm %s11249_s3, 2048 }
  0x38   : > { %s7764_s10 = scalar_lea.hbm %s8110_s26, 1024  ;;  %p7770_p12 = scmp.lt.s32.totalorder %s8110_s26, %s11249_s3 }
  0x39   : > { %p7765_p9 = scmp.ne.s32.totalorder %s8110_s26, %s7764_s10  ;;  %p7771_p13 = scmp.lt.s32.totalorder %s7769_s11, %s7764_s10 }
  0x3b   : > { %p7767_p10 = pnand %p7765_p9, %p8087_p7  ;;  %p7772_p0 = por %p7771_p13, %p7770_p12 }
  0x3d   : > { %p7768_p11 = pneg %p7767_p10 }
  0x3f   : > { %p7773_p1 = pnand %p7772_p0, %p7768_p11 }
  0x41   : > { %7776 = shalt.err (!%p7773_p1)
}
  0x42   : > { %s7777_s29 = scalar_lea.vmem %s8114_s7, 1024  ;;  %s7979_s15 = smov [#allocation8]  }
  0x43   : > { %p7778_p2 = scmp.ne.s32.totalorder %s8114_s7, %s7777_s29  ;;  %s7782_s19 = sshll.u32 %s7979_s15, 4  ;;  %s7783_s19 = int_to_ptr.vmem [resolvable:$false] %s7782_s19 }
  0x44   : > { %s7784_s20 = scalar_lea.vmem %s7783_s19, 2048  ;;  %p7785_p6 = scmp.lt.s32.totalorder %s8114_s7, %s7783_s19 }
  0x45   : > { %p7780_p3 = pnand %p7778_p2, %p8087_p7  ;;  %p7786_p8 = scmp.lt.s32.totalorder %s7784_s20, %s7777_s29 }
  0x47   : > { %p7781_p4 = pneg %p7780_p3  ;;  %p7787_p9 = por %p7786_p8, %p7785_p6 }
  0x49   : > { %p7788_p10 = pnand %p7787_p9, %p7781_p4 }
  0x4b   : > { %7791 = shalt.err (!%p7788_p10)
}
  0x4c   : > { %s11140_s27 = smov 64   ;;  %s11141_s10 = smov 4  }
  0x4d   : > { %6814 = dma.hbm_to_vmem [thread:$0]  (!%p8068_p5), %s8110_s26, 1024, %s8114_s7, %s8118_s9, %s11140_s27, %s11140_s27, %s11141_s10  }
  0x4e   : > { %s8145_s12 = sadd.s32 4294967295, %s7976_s24   ;;  %p68_p11 = scmp.ne.s32.totalorder %s7968_s22, %s7964_s21 }
  0x4f   : > { %p11145_p12 = scmp.eq.s32.totalorder %s8145_s12, 0  ;;  %p5966_p13 = scmp.ge.s32.totalorder %s7976_s24, 1 }
  0x50   : > { %p204_p0 = scmp.lt.s32.totalorder %s7976_s24, 3  ;;  %s7982_s26 = smov [#allocation2]  }
  0x51   : > { %p8154_p1 = por %p11145_p12, %p68_p11  ;;  %s216_s7 = sshll.u32 %s7982_s26, 4  ;;  %s217_s7 = int_to_ptr.vmem [resolvable:$true] %s216_s7 }
  0x52   : > { %p8159_p3 = pnand %p5966_p13, %p204_p0  ;;  %s6779_s21 = smul.u32 192, %s8065_s30 }
  0x53   : > { %s11250_s14 = scalar_select %p8154_p1, 1, 0 }
  0x54   : > { %s11251_s11 = scalar_select %p8159_p3, 1, 0 }
  0x55   : > { %p6801_p4 = pneg %p8159_p3  ;;  %s6780_s17 = smul.u32 3072, %s7976_s24 }
  0x56   : > { %s7803_s20 = scalar_lea.vmem %s217_s7, 4096  ;;  %p7811_p13 = scmp.lt.s32.totalorder %s217_s7, %s217_s7 }
  0x57   : > { %p8168_p6 = pnand %p6801_p4, %p11145_p12  ;;  %s8176_s19 = scalar_lea.hbm %s11135_s2, %s6780_s17 }
  0x58   : > { %p7804_p9 = scmp.ne.s32.totalorder %s217_s7, %s7803_s20  ;;  %p7812_p0 = scmp.lt.s32.totalorder %s7803_s20, %s7803_s20 }
  0x59   : > { %p7794_p8 = pneg %p8168_p6 }
  0x5a   : > { %p7813_p2 = por %p7812_p0, %p7811_p13 }
  0x5b   : > { %p7806_p10 = pnand %p7804_p9, %p7794_p8 }
  0x5d   : > { %p7807_p11 = pneg %p7806_p10 }
  0x5f   : > { %p7814_p4 = pnand %p7813_p2, %p7807_p11 }
  0x61   : > { %7817 = shalt.err (!%p7814_p4)
}
  0x62   : > { %s7983_s26 = smov 128   ;;  %s7984_s17 = smov 8  }
  0x63   : > { %6804 = dma.hbm_to_vmem [thread:$0]  (!%p8168_p6), %s11133_s0, 4096, %s217_s7, [#allocation3], %s7983_s26, %s7983_s26, %s7984_s17  }
  0x64   : > { %s253_s20 = scalar_lea.vmem [#allocation7], %s6779_s21  ;;  %s5974_s10 = sshll.u32 %s8065_s30, 7 }
  0x65   : > { %s260_s27 = sshll.u32 %s253_s20, 4  ;;  %s7818_s1 = scalar_lea.hbm %s8176_s19, 3072  ;;  %s8188_s27 = int_to_ptr.vmem [resolvable:$true] %s260_s27 }
  0x66   : > { %p7819_p2 = scmp.ne.s32.totalorder %s8176_s19, %s7818_s1  ;;  %s7823_s13 = scalar_lea.hbm %s11135_s2, 6144 }
  0x67   : > { %p7824_p10 = scmp.lt.s32.totalorder %s8176_s19, %s11135_s2  ;;  %p7825_p11 = scmp.lt.s32.totalorder %s7823_s13, %s7818_s1 }
  0x68   : > { %p7821_p8 = pnand %p7819_p2, %p8087_p7 }
  0x69   : > { %p7826_p6 = por %p7825_p11, %p7824_p10 }
  0x6a   : > { %p7822_p9 = pneg %p7821_p8 }
  0x6c   : > { %p7827_p13 = pnand %p7826_p6, %p7822_p9 }
  0x6e   : > { %7830 = shalt.err (!%p7827_p13)
}
  0x6f   : > { %s7831_s7 = scalar_lea.vmem %s8188_s27, 3072  ;;  %s7985_s21 = smov [#allocation7]  }
  0x70   : > { %p7832_p0 = scmp.ne.s32.totalorder %s8188_s27, %s7831_s7  ;;  %s7836_s3 = sshll.u32 %s7985_s21, 4  ;;  %s7837_s3 = int_to_ptr.vmem [resolvable:$false] %s7836_s3 }
  0x71   : > { %s7838_s28 = scalar_lea.vmem %s7837_s3, 6144  ;;  %p7839_p8 = scmp.lt.s32.totalorder %s8188_s27, %s7837_s3 }
  0x72   : > { %p7834_p4 = pnand %p7832_p0, %p8087_p7  ;;  %p7840_p12 = scmp.lt.s32.totalorder %s7838_s28, %s7831_s7 }
  0x74   : > { %p7835_p2 = pneg %p7834_p4  ;;  %p7841_p1 = por %p7840_p12, %p7839_p8 }
  0x76   : > { %p7842_p3 = pnand %p7841_p1, %p7835_p2 }
  0x78   : > { %7845 = shalt.err (!%p7842_p3)
}
  0x79   : > { %s7986_s1 = smov 192   ;;  %s7987_s23 = smov 12  }
  0x7a   : > { %6811 = dma.hbm_to_vmem [thread:$0]  (!%p8068_p5), %s8176_s19, 3072, %s8188_s27, %s8081_s16, %s7986_s1, %s7986_s1, %s7987_s23  }
  0x7b   : > { %s6087_s25 = sshll.u32 %s7976_s24, 11  ;;  %s295_s13 = scalar_lea.vmem [#allocation10], %s5974_s10 }
  0x7c   : > { %s8218_s20 = scalar_lea.hbm %s11137_s4, %s6087_s25  ;;  %s302_s7 = sshll.u32 %s295_s13, 4  ;;  %s303_s7 = int_to_ptr.vmem [resolvable:$true] %s302_s7 }
  0x7d   : > { %s7846_s21 = scalar_lea.hbm %s8218_s20, 2048  ;;  %s7851_s19 = scalar_lea.hbm %s11137_s4, 4096 }
  0x7e   : > { %p7847_p12 = scmp.ne.s32.totalorder %s8218_s20, %s7846_s21  ;;  %p7852_p9 = scmp.lt.s32.totalorder %s8218_s20, %s11137_s4 }
  0x7f   : > { %p7853_p10 = scmp.lt.s32.totalorder %s7851_s19, %s7846_s21 }
  0x80   : > { %p7849_p1 = pnand %p7847_p12, %p8087_p7 }
  0x81   : > { %p7854_p11 = por %p7853_p10, %p7852_p9 }
  0x82   : > { %p7850_p3 = pneg %p7849_p1 }
  0x84   : > { %p7855_p6 = pnand %p7854_p11, %p7850_p3 }
  0x86   : > { %7858 = shalt.err (!%p7855_p6)
}
  0x87   : > { %s7859_s1 = scalar_lea.vmem %s303_s7, 2048  ;;  %s7988_s23 = smov [#allocation10]  }
  0x88   : > { %p7860_p13 = scmp.ne.s32.totalorder %s303_s7, %s7859_s1  ;;  %s7864_s29 = sshll.u32 %s7988_s23, 4  ;;  %s7865_s29 = int_to_ptr.vmem [resolvable:$false] %s7864_s29 }
  0x89   : > { %s7866_s15 = scalar_lea.vmem %s7865_s29, 4096  ;;  %p7867_p2 = scmp.lt.s32.totalorder %s303_s7, %s7865_s29 }
  0x8a   : > { %p7862_p0 = pnand %p7860_p13, %p8087_p7  ;;  %p7868_p8 = scmp.lt.s32.totalorder %s7866_s15, %s7859_s1 }
  0x8c   : > { %p7863_p4 = pneg %p7862_p0  ;;  %p7869_p12 = por %p7868_p8, %p7867_p2 }
  0x8e   : > { %p7870_p1 = pnand %p7869_p12, %p7863_p4 }
  0x90   : > { %7873 = shalt.err (!%p7870_p1)
}
  0x91   : > { %6817 = dma.hbm_to_vmem [thread:$0]  (!%p8068_p5), %s8218_s20, 2048, %s303_s7, %s8118_s9, %s7983_s26, %s7983_s26, %s7984_s17  }
  0x92   : > { %s8247_s16 = scalar_lea.hbm %s11138_s5, %s6087_s25  ;;  %s316_s27 = scalar_lea.vmem [#allocation11], %s5974_s10 }
  0x93   : > { %s323_s19 = sshll.u32 %s316_s27, 4  ;;  %s313_s3 = scalar_lea.sflag [#allocation12], %s8065_s30  ;;  %s8251_s19 = int_to_ptr.vmem [resolvable:$true] %s323_s19 }
  0x94   : > { %s7874_s28 = scalar_lea.hbm %s8247_s16, 2048  ;;  %s7879_s26 = scalar_lea.hbm %s11138_s5, 4096 }
  0x95   : > { %p7875_p3 = scmp.ne.s32.totalorder %s8247_s16, %s7874_s28  ;;  %p7880_p11 = scmp.lt.s32.totalorder %s8247_s16, %s11138_s5 }
  0x96   : > { %p7881_p6 = scmp.lt.s32.totalorder %s7879_s26, %s7874_s28 }
  0x97   : > { %p7877_p9 = pnand %p7875_p3, %p8087_p7 }
  0x98   : > { %p7882_p13 = por %p7881_p6, %p7880_p11 }
  0x99   : > { %p7878_p10 = pneg %p7877_p9 }
  0x9b   : > { %p7883_p0 = pnand %p7882_p13, %p7878_p10 }
  0x9d   : > { %7886 = shalt.err (!%p7883_p0)
}
  0x9e   : > { %s7887_s30 = scalar_lea.vmem %s8251_s19, 2048  ;;  %s7989_s10 = smov [#allocation11]  }
  0x9f   : > { %p7888_p4 = scmp.ne.s32.totalorder %s8251_s19, %s7887_s30  ;;  %s7892_s20 = sshll.u32 %s7989_s10, 4  ;;  %s7893_s20 = int_to_ptr.vmem [resolvable:$false] %s7892_s20 }
  0xa0   : > { %s7894_s7 = scalar_lea.vmem %s7893_s20, 4096  ;;  %p7895_p12 = scmp.lt.s32.totalorder %s8251_s19, %s7893_s20 }
  0xa1   : > { %p7890_p2 = pnand %p7888_p4, %p8087_p7  ;;  %p7896_p1 = scmp.lt.s32.totalorder %s7894_s7, %s7887_s30 }
  0xa3   : > { %p7891_p8 = pneg %p7890_p2  ;;  %p7897_p3 = por %p7896_p1, %p7895_p12 }
  0xa5   : > { %p7898_p9 = pnand %p7897_p3, %p7891_p8 }
  0xa7   : > { %7901 = shalt.err (!%p7898_p9)
}
  0xa8   : > { %s11253_s1 = smov 4   ;;  %s11254_s23 = smov 64  }
  0xa9   : > { %6820 = dma.hbm_to_vmem [thread:$0]  (!%p8068_p5), %s8247_s16, 2048, %s8251_s19, %s313_s3, %s11254_s23, %s11254_s23, %s11253_s1  }
  0xaa   : > { %p11255_p7 = scmp.ne.s32.totalorder %s11251_s11, 0 }
  0xac   : > { %335 = sbr.rel (%p11255_p7) target bundleno = 3127 (0xc37), region = 44 }
  0xb1   : > { %p11256_p10 = scmp.eq.s32.totalorder %s8145_s12, 0 }
  0xb3   : > { %7943 = dma.done.wait (%p11256_p10), [#allocation3], 4096   ;;  %p11257_p11 = pmov %p11256_p10 }
  0xb4   : > { %s341_s18 = sand.u32 1, %s8145_s12   ;;  %s343_s8 = sand.u32 1, %s7968_s22  }
  0xb5   : > { %7945 = vsyncadd (%p11257_p11), [#allocation3], 4294963200  ;;  %s6781_s29 = smul.u32 24, %s343_s8  ;;  %s342_s15 = scalar_lea.sflag [#allocation6], %s341_s18 }
  0xb6   : > { %p11258_p6 = scmp.ne.s32.totalorder %s11250_s14, 0 }
  0xb7   : > { %s8285_s13 = scalar_lea.vmem [#allocation5], %s6781_s29 }
  0xb8   : > { %7947 = dma.done.wait (%p11258_p6), %s342_s15, 3456  }
  0xb9   : > { %7949 = vsyncadd (%p11258_p6), %s342_s15, 4294963840  ;;  %s6782_s11 = smul.u32 192, %s343_s8  ;;  %s5982_s21 = sshll.u32 %s343_s8, 6 }
  0xba   : > { %s360_s27 = scalar_lea.sflag [#allocation9], %s341_s18  ;;  %s8293_s19 = scalar_lea.vmem [#allocation8], %s5982_s21 }
  0xbb   : > { %s8291_s16 = scalar_lea.vmem [#allocation7], %s6782_s11 }
  0xbc   : > { %7951 = dma.done.wait (%p11258_p6), %s360_s27, 3072  }
  0xbd   : > { %7953 = vsyncadd (%p11258_p6), %s360_s27, 4294964224  ;;  %s5983_s3 = sshll.u32 %s343_s8, 7  ;;  %s378_s24 = scalar_lea.sflag [#allocation12], %s343_s8 }
  0xbe   : > { %s8299_s28 = scalar_lea.vmem [#allocation10], %s5983_s3  ;;  %s8301_s9 = scalar_lea.vmem [#allocation11], %s5983_s3 }
  0xbf   : > { %7955 = dma.done.wait (%p11258_p6), %s378_s24, 2048  }
  0xc0   : > { %7957 = vsyncadd (%p11258_p6), %s378_s24, 4294965248  ;;  %p11259_p5 = scmp.ne.s32.totalorder %s8145_s12, 0 }
  0xc2   : > { %429 = sbr.rel (%p11259_p5) target bundleno = 216 (0xd8), region = 72 }
  0xc7   : > { %v430_v0 = vld [vmem:[#allocation2] sm:$0xff]  ;;  %v431_v1 = vld [vmem:[#allocation2 + $0x8] sm:$0xff]  ;;  %v432_v2 = vld [vmem:[#allocation2 + $0x10] sm:$0xff] }
  0xc8   : > { %462 = vst [vmem:[#allocation13] sm:$0xff] %v430_v0  ;;  %463 = vst [vmem:[#allocation13 + $0x8] sm:$0xff] %v431_v1  ;;  %v433_v3 = vld [vmem:[#allocation2 + $0x18] sm:$0xff]  ;;  %v434_v4 = vld [vmem:[#allocation2 + $0x20] sm:$0xff] }
  0xc9   : > { %464 = vst [vmem:[#allocation13 + $0x10] sm:$0xff] %v432_v2  ;;  %v435_v5 = vld [vmem:[#allocation2 + $0x28] sm:$0xff]  ;;  %465 = vst [vmem:[#allocation13 + $0x18] sm:$0xff] %v433_v3  ;;  %v436_v6 = vld [vmem:[#allocation2 + $0x30] sm:$0xff] }
  0xca   : > { %466 = vst [vmem:[#allocation13 + $0x20] sm:$0xff] %v434_v4  ;;  %467 = vst [vmem:[#allocation13 + $0x28] sm:$0xff] %v435_v5  ;;  %v437_v7 = vld [vmem:[#allocation2 + $0x38] sm:$0xff]  ;;  %v438_v8 = vld [vmem:[#allocation2 + $0x40] sm:$0xff] }
  0xcb   : > { %468 = vst [vmem:[#allocation13 + $0x30] sm:$0xff] %v436_v6  ;;  %469 = vst [vmem:[#allocation13 + $0x38] sm:$0xff] %v437_v7  ;;  %v439_v9 = vld [vmem:[#allocation2 + $0x48] sm:$0xff]  ;;  %v440_v10 = vld [vmem:[#allocation2 + $0x50] sm:$0xff] }
  0xcc   : > { %470 = vst [vmem:[#allocation13 + $0x40] sm:$0xff] %v438_v8  ;;  %v441_v11 = vld [vmem:[#allocation2 + $0x58] sm:$0xff]  ;;  %471 = vst [vmem:[#allocation13 + $0x48] sm:$0xff] %v439_v9  ;;  %v442_v12 = vld [vmem:[#allocation2 + $0x60] sm:$0xff] }
  0xcd   : > { %472 = vst [vmem:[#allocation13 + $0x50] sm:$0xff] %v440_v10  ;;  %473 = vst [vmem:[#allocation13 + $0x58] sm:$0xff] %v441_v11  ;;  %v443_v13 = vld [vmem:[#allocation2 + $0x68] sm:$0xff]  ;;  %v444_v14 = vld [vmem:[#allocation2 + $0x70] sm:$0xff] }
  0xce   : > { %474 = vst [vmem:[#allocation13 + $0x60] sm:$0xff] %v442_v12  ;;  %475 = vst [vmem:[#allocation13 + $0x68] sm:$0xff] %v443_v13  ;;  %v445_v15 = vld [vmem:[#allocation2 + $0x78] sm:$0xff]  ;;  %v446_v16 = vld [vmem:[#allocation2 + $0x80] sm:$0xff] }
  0xcf   : > { %476 = vst [vmem:[#allocation13 + $0x70] sm:$0xff] %v444_v14  ;;  %v447_v17 = vld [vmem:[#allocation2 + $0x88] sm:$0xff]  ;;  %477 = vst [vmem:[#allocation13 + $0x78] sm:$0xff] %v445_v15  ;;  %v448_v18 = vld [vmem:[#allocation2 + $0x90] sm:$0xff] }
  0xd0   : > { %478 = vst [vmem:[#allocation13 + $0x80] sm:$0xff] %v446_v16  ;;  %479 = vst [vmem:[#allocation13 + $0x88] sm:$0xff] %v447_v17  ;;  %v449_v19 = vld [vmem:[#allocation2 + $0x98] sm:$0xff]  ;;  %v450_v20 = vld [vmem:[#allocation2 + $0xa0] sm:$0xff] }
  0xd1   : > { %480 = vst [vmem:[#allocation13 + $0x90] sm:$0xff] %v448_v18  ;;  %481 = vst [vmem:[#allocation13 + $0x98] sm:$0xff] %v449_v19  ;;  %v451_v21 = vld [vmem:[#allocation2 + $0xa8] sm:$0xff]  ;;  %v452_v22 = vld [vmem:[#allocation2 + $0xb0] sm:$0xff] }
  0xd2   : > { %482 = vst [vmem:[#allocation13 + $0xa0] sm:$0xff] %v450_v20  ;;  %v453_v23 = vld [vmem:[#allocation2 + $0xb8] sm:$0xff]  ;;  %483 = vst [vmem:[#allocation13 + $0xa8] sm:$0xff] %v451_v21  ;;  %v454_v24 = vld [vmem:[#allocation2 + $0xc0] sm:$0xff] }
  0xd3   : > { %484 = vst [vmem:[#allocation13 + $0xb0] sm:$0xff] %v452_v22  ;;  %485 = vst [vmem:[#allocation13 + $0xb8] sm:$0xff] %v453_v23  ;;  %v455_v25 = vld [vmem:[#allocation2 + $0xc8] sm:$0xff]  ;;  %v456_v26 = vld [vmem:[#allocation2 + $0xd0] sm:$0xff] }
  0xd4   : > { %486 = vst [vmem:[#allocation13 + $0xc0] sm:$0xff] %v454_v24  ;;  %487 = vst [vmem:[#allocation13 + $0xc8] sm:$0xff] %v455_v25  ;;  %v457_v27 = vld [vmem:[#allocation2 + $0xd8] sm:$0xff]  ;;  %v458_v28 = vld [vmem:[#allocation2 + $0xe0] sm:$0xff] }
  0xd5   : > { %488 = vst [vmem:[#allocation13 + $0xd0] sm:$0xff] %v456_v26  ;;  %v459_v29 = vld [vmem:[#allocation2 + $0xe8] sm:$0xff]  ;;  %489 = vst [vmem:[#allocation13 + $0xd8] sm:$0xff] %v457_v27  ;;  %v460_v30 = vld [vmem:[#allocation2 + $0xf0] sm:$0xff] }
  0xd6   : > { %490 = vst [vmem:[#allocation13 + $0xe0] sm:$0xff] %v458_v28  ;;  %491 = vst [vmem:[#allocation13 + $0xe8] sm:$0xff] %v459_v29  ;;  %v461_v31 = vld [vmem:[#allocation2 + $0xf8] sm:$0xff] }
  0xd7   : > { %492 = vst [vmem:[#allocation13 + $0xf0] sm:$0xff] %v460_v30  ;;  %493 = vst [vmem:[#allocation13 + $0xf8] sm:$0xff] %v461_v31 }
  0xd8 PF: > { %v494_v32 = vld [vmem:[#allocation13] sm:$0xff]  ;;  %v496_v33 = vld [vmem:[#allocation13 + $0x10] sm:$0xff]  ;;  %v495_v34 = vld [vmem:[#allocation13 + $0x8] sm:$0xff]  ;;  %vm2028_vm0 = vcmask 523264   ;;  %s7991_s14 = smov 64   ;;  %s7992_s26 = smov [#allocation13]  }
  0xd9   : > { %529 = vadd.xlane.f32.xlu0 %v494_v32  ;;  %533 = vadd.xlane.f32.xlu1 %v496_v33  ;;  %v497_v35 = vld [vmem:[#allocation13 + $0x18] sm:$0xff]  ;;  %v498_v36 = vld [vmem:[#allocation13 + $0x20] sm:$0xff]  ;;  %v499_v37 = vld [vmem:[#allocation13 + $0x28] sm:$0xff]  ;;  %s5814_s17 = sshll.u32 %s7992_s26, 4  ;;  %p6824_p13 = scmp.eq.s32.totalorder %s8145_s12, 1  ;;  %s5815_s17 = int_to_ptr.vmem [resolvable:$true] %s5814_s17 }
  0xda   : > { %v500_v38 = vld [vmem:[#allocation13 + $0x30] sm:$0xff]  ;;  %v8309_v39 = vld [vmem:[#allocation13 + $0x38] sm:$0xff]  ;;  %v8311_v40 = vld [vmem:[#allocation13 + $0x40] sm:$0xff]  ;;  %s7902_s25 = scalar_lea.vmem %s5815_s17, 4096  ;;  %p7909_p8 = scmp.lt.s32.totalorder %s5815_s17, %s5815_s17 }
  0xdb   : > { %v8313_v41 = vld [vmem:[#allocation13 + $0x48] sm:$0xff]  ;;  %v8316_v42 = vld [vmem:[#allocation13 + $0x50] sm:$0xff]  ;;  %v8318_v43 = vld [vmem:[#allocation13 + $0x58] sm:$0xff]  ;;  %p7903_p0 = scmp.ne.s32.totalorder %s5815_s17, %s7902_s25  ;;  %p7910_p12 = scmp.lt.s32.totalorder %s7902_s25, %s7902_s25 }
  0xdc   : > { %v8322_v44 = vld [vmem:[#allocation13 + $0x60] sm:$0xff]  ;;  %v8324_v45 = vld [vmem:[#allocation13 + $0x68] sm:$0xff]  ;;  %v8328_v46 = vld [vmem:[#allocation13 + $0x70] sm:$0xff] }
  0xdd   : > { %531 = vadd.xlane.f32.xlu0 %v495_v34  ;;  %535 = vadd.xlane.f32.xlu1 %v497_v35  ;;  %v8330_v47 = vld [vmem:[#allocation13 + $0x78] sm:$0xff]  ;;  %v7112_v49 = vld [vmem:[%s8291_s16 + $0xa8] ss:$12 sps:$4 sm:$0xff]   ;;  %v8364_v15 = vld [vmem:[#allocation13 + $0xc0] sm:$0xff]  ;;  %p7904_p4 = pnand %p7903_p0, %p6824_p13  ;;  %p7911_p1 = por %p7910_p12, %p7909_p8 }
  0xde   : > { %v7110_v48 = vld [vmem:[%s8291_s16 + $0xac] ss:$12 sps:$4 sm:$0xff]   ;;  %v7113_v17 = vld [vmem:[%s8291_s16 + $0x94] ss:$12 sps:$4 sm:$0xff]   ;;  %v7115_v18 = vld [vmem:[%s8291_s16 + $0x90] ss:$12 sps:$4 sm:$0xff]  }
  0xdf   : > { %1130 = vmatprep.subr.bf16.mxu0 %v7110_v48  ;;  %6729 = vmatprep.subr.bf16.mxu1 %v7110_v48  ;;  %v8374_v22 = vld [vmem:[#allocation13 + $0xc8] sm:$0xff]  ;;  %v7118_v28 = vld [vmem:[%s8291_s16 + $0x78] ss:$12 sps:$4 sm:$0xff]   ;;  %v8384_v29 = vld [vmem:[#allocation13 + $0xd0] sm:$0xff]  ;;  %p7905_p2 = pneg %p7904_p4 }
  0xe0   : > { %1131 = vmatpush1.bf16.msra.mxu0 %v7112_v49  ;;  %6737 = vmatpush1.bf16.msra.mxu1 %v7112_v49  ;;  %v7116_v24 = vld [vmem:[%s8291_s16 + $0x7c] ss:$12 sps:$4 sm:$0xff]   ;;  %v7119_v31 = vld [vmem:[%s8291_s16 + $0x64] ss:$12 sps:$4 sm:$0xff]  }
  0xe1   : > { %537 = vadd.xlane.f32.xlu0 %v498_v36  ;;  %539 = vadd.xlane.f32.xlu1 %v499_v37  ;;  %v7124_v48 = vld [vmem:[%s8291_s16 + $0x48] ss:$12 sps:$4 sm:$0xff]   ;;  %v8404_v49 = vld [vmem:[#allocation13 + $0xe0] sm:$0xff]  ;;  %p7912_p3 = pnand %p7911_p1, %p7905_p2 }
  0xe2   : > { %1132 = vmatprep.subr.bf16.mxu0 %v7113_v17  ;;  %6730 = vmatprep.subr.bf16.mxu1 %v7113_v17 }
  0xe4   : > { %1133 = vmatpush1.bf16.msra.mxu0 %v7115_v18  ;;  %6738 = vmatpush1.bf16.msra.mxu1 %v7115_v18 }
  0xe5   : > { %541 = vadd.xlane.f32.xlu0 %v500_v38  ;;  %543 = vadd.xlane.f32.xlu1 %v8309_v39 }
  0xe6   : > { %1134 = vmatprep.subr.bf16.mxu0 %v7116_v24  ;;  %6731 = vmatprep.subr.bf16.mxu1 %v7116_v24  ;;  %v8462_v24 = vld [vmem:[#allocation13 + $0xa0] sm:$0xff] }
  0xe8   : > { %1135 = vmatpush1.bf16.msra.mxu0 %v7118_v28  ;;  %6739 = vmatpush1.bf16.msra.mxu1 %v7118_v28 }
  0xe9   : > { %545 = vadd.xlane.f32.xlu0 %v8311_v40  ;;  %547 = vadd.xlane.f32.xlu1 %v8313_v41 }
  0xea   : > { %1136 = vmatprep.subr.bf16.mxu0 %v7119_v31  ;;  %6732 = vmatprep.subr.bf16.mxu1 %v7119_v31 }
  0xed   : > { %549 = vadd.xlane.f32.xlu0 %v8316_v42  ;;  %551 = vadd.xlane.f32.xlu1 %v8318_v43 }
  0xf1   : > { %553 = vadd.xlane.f32.xlu0 %v8322_v44  ;;  %555 = vadd.xlane.f32.xlu1 %v8324_v45 }
  0xf5   : > { %557 = vadd.xlane.f32.xlu0 %v8328_v46  ;;  %559 = vadd.xlane.f32.xlu1 %v8330_v47 }
 0x162   : > { %v530_v50 = vpop.xlane.xlu0 %529  ;;  %v534_v51 = vpop.xlane.xlu1 %533 }
 0x163   : > { %v594_v52 = vmul.f32 0.0078125, %v530_v50  ;;  %v596_v53 = vmul.f32 0.0078125, %v534_v51  ;;  %v7125_v51 = vld [vmem:[%s8291_s16 + $0x34] ss:$12 sps:$4 sm:$0xff]  }
 0x165   : > { %v8338_v54 = vsub.f32 %v494_v32, %v594_v52  ;;  %v8340_v55 = vsub.f32 %v496_v33, %v596_v53 }
 0x166   : > { %v532_v56 = vpop.xlane.xlu0 %531  ;;  %v536_v57 = vpop.xlane.xlu1 %535 }
 0x167   : > { %v595_v58 = vmul.f32 0.0078125, %v532_v56  ;;  %v658_v59 = vmul.f32 %v8338_v54, %v8338_v54  ;;  %v597_v60 = vmul.f32 0.0078125, %v536_v57  ;;  %v660_v61 = vmul.f32 %v8340_v55, %v8340_v55  ;;  %v7127_v56 = vld [vmem:[%s8291_s16 + $0x30] ss:$12 sps:$4 sm:$0xff]   ;;  %v8414_v57 = vld [vmem:[#allocation13 + $0xe8] sm:$0xff] }
 0x169   : > { %690 = vadd.xlane.f32.xlu0 %v658_v59  ;;  %v8346_v62 = vsub.f32 %v495_v34, %v595_v58  ;;  %v8348_v63 = vsub.f32 %v497_v35, %v597_v60  ;;  %v7121_v35 = vld [vmem:[%s8291_s16 + $0x60] ss:$12 sps:$4 sm:$0xff]   ;;  %v7128_v59 = vld [vmem:[%s8291_s16 + $0x1c] ss:$12 sps:$4 sm:$0xff]  }
 0x16a   : > { %v538_v0 = vpop.xlane.xlu0 %537  ;;  %v540_v1 = vpop.xlane.xlu1 %539  ;;  %1137 = vmatpush1.bf16.msra.mxu0 %v7121_v35  ;;  %6740 = vmatpush1.bf16.msra.mxu1 %v7121_v35 }
 0x16b   : > { %v598_v2 = vmul.f32 0.0078125, %v538_v0  ;;  %v659_v3 = vmul.f32 %v8346_v62, %v8346_v62  ;;  %v599_v4 = vmul.f32 0.0078125, %v540_v1  ;;  %v661_v5 = vmul.f32 %v8348_v63, %v8348_v63  ;;  %v7130_v0 = vld [vmem:[%s8291_s16 + $0x18] ss:$12 sps:$4 sm:$0xff]   ;;  %v8424_v1 = vld [vmem:[#allocation13 + $0xf0] sm:$0xff] }
 0x16d   : > { %694 = vadd.xlane.f32.xlu0 %v660_v61  ;;  %692 = vadd.xlane.f32.xlu1 %v659_v3  ;;  %v8354_v6 = vsub.f32 %v498_v36, %v598_v2  ;;  %v8356_v7 = vsub.f32 %v499_v37, %v599_v4  ;;  %v8394_v36 = vld [vmem:[#allocation13 + $0xd8] sm:$0xff]  ;;  %v7131_v3 = vld [vmem:[%s8291_s16 + $0x4] ss:$12 sps:$4 sm:$0xff]  }
 0x16e   : > { %v542_v8 = vpop.xlane.xlu0 %541  ;;  %v544_v9 = vpop.xlane.xlu1 %543 }
 0x16f   : > { %v662_v10 = vmul.f32 %v8354_v6, %v8354_v6  ;;  %v600_v11 = vmul.f32 0.0078125, %v542_v8  ;;  %v663_v12 = vmul.f32 %v8356_v7, %v8356_v7  ;;  %v601_v13 = vmul.f32 0.0078125, %v544_v9  ;;  %v8434_v9 = vld [vmem:[#allocation13 + $0xf8] sm:$0xff] }
 0x171   : > { %696 = vadd.xlane.f32.xlu1 %v661_v5  ;;  %698 = vadd.xlane.f32.xlu0 %v662_v10  ;;  %v8362_v14 = vsub.f32 %v500_v38, %v600_v11  ;;  %v8372_v21 = vsub.f32 %v8309_v39, %v601_v13  ;;  %v7122_v38 = vld [vmem:[%s8291_s16 + $0x4c] ss:$12 sps:$4 sm:$0xff]  }
 0x172   : > { %v546_v16 = vpop.xlane.xlu0 %545  ;;  %v548_v23 = vpop.xlane.xlu1 %547  ;;  %1138 = vmatprep.subr.bf16.mxu0 %v7122_v38  ;;  %6733 = vmatprep.subr.bf16.mxu1 %v7122_v38 }
 0x173   : > { %v664_v19 = vmul.f32 %v8362_v14, %v8362_v14  ;;  %v602_v20 = vmul.f32 0.0078125, %v546_v16  ;;  %v665_v25 = vmul.f32 %v8372_v21, %v8372_v21  ;;  %v603_v26 = vmul.f32 0.0078125, %v548_v23  ;;  %1139 = vmatpush1.bf16.msra.mxu0 %v7124_v48  ;;  %6741 = vmatpush1.bf16.msra.mxu1 %v7124_v48  ;;  %v8460_v23 = vld [vmem:[#allocation13 + $0x98] sm:$0xff] }
 0x174   : > { %1140 = vmatprep.subr.bf16.mxu0 %v7125_v51  ;;  %6734 = vmatprep.subr.bf16.mxu1 %v7125_v51  ;;  %v11148_v16 = vmov 0  }
 0x175   : > { %700 = vadd.xlane.f32.xlu1 %v663_v12  ;;  %577 = vadd.xlane.f32.xlu0 %v8364_v15  ;;  %v8381_v27 = vsub.f32 %v8311_v40, %v602_v20  ;;  %v8391_v34 = vsub.f32 %v8313_v41, %v603_v26  ;;  %v8457_v20 = vld [vmem:[#allocation13 + $0x90] sm:$0xff]  ;;  %v8472_v26 = vld [vmem:[#allocation13 + $0xb8] sm:$0xff] }
 0x176   : > { %v550_v30 = vpop.xlane.xlu0 %549  ;;  %v552_v37 = vpop.xlane.xlu1 %551  ;;  %1162 = vmatprep.mubr.bf16.mxu0 %v11148_v16  ;;  %1282 = vmatprep.mubr.bf16.mxu1 %v11148_v16 }
 0x177   : > { %v666_v32 = vmul.f32 %v8381_v27, %v8381_v27  ;;  %v604_v33 = vmul.f32 0.0078125, %v550_v30  ;;  %v667_v39 = vmul.f32 %v8391_v34, %v8391_v34  ;;  %v605_v40 = vmul.f32 0.0078125, %v552_v37  ;;  %1141 = vmatpush1.bf16.msra.mxu0 %v7127_v56  ;;  %6742 = vmatpush1.bf16.msra.mxu1 %v7127_v56 }
 0x178   : > { %1142 = vmatprep.subr.bf16.mxu0 %v7128_v59  ;;  %6735 = vmatprep.subr.bf16.mxu1 %v7128_v59 }
 0x179   : > { %579 = vadd.xlane.f32.xlu1 %v8374_v22  ;;  %702 = vadd.xlane.f32.xlu0 %v664_v19  ;;  %v8401_v41 = vsub.f32 %v8316_v42, %v604_v33  ;;  %v8411_v42 = vsub.f32 %v8318_v43, %v605_v40  ;;  %v8452_v19 = vld [vmem:[#allocation13 + $0x88] sm:$0xff] }
 0x17a   : > { %v554_v50 = vpop.xlane.xlu0 %553  ;;  %v556_v58 = vpop.xlane.xlu1 %555 }
 0x17b   : > { %v668_v52 = vmul.f32 %v8401_v41, %v8401_v41  ;;  %v606_v53 = vmul.f32 0.0078125, %v554_v50  ;;  %v669_v60 = vmul.f32 %v8411_v42, %v8411_v42  ;;  %v607_v61 = vmul.f32 0.0078125, %v556_v58  ;;  %1143 = vmatpush1.bf16.msra.mxu0 %v7130_v0  ;;  %6743 = vmatpush1.bf16.msra.mxu1 %v7130_v0 }
 0x17c   : > { %1144 = vmatprep.subr.bf16.mxu0 %v7131_v3  ;;  %6736 = vmatprep.subr.bf16.mxu1 %v7131_v3  ;;  %v882_v50 = vlaneseq }
 0x17d   : > { %704 = vadd.xlane.f32.xlu1 %v665_v25  ;;  %581 = vadd.xlane.f32.xlu0 %v8384_v29  ;;  %v8421_v43 = vsub.f32 %v8322_v44, %v606_v53  ;;  %v8431_v8 = vsub.f32 %v8324_v45, %v607_v61  ;;  %v7133_v44 = vld [vmem:[%s8291_s16] ss:$12 sps:$4 sm:$0xff]   ;;  %v8468_v25 = vld [vmem:[#allocation13 + $0xb0] sm:$0xff] }
 0x17e   : > { %v558_v2 = vpop.xlane.xlu0 %557  ;;  %v560_v10 = vpop.xlane.xlu1 %559  ;;  %v8442_v45 = vld [vmem:[#allocation13 + $0x80] sm:$0xff]  ;;  %v8475_v59 = vshrl.u32 %v882_v50, 7 }
 0x17f   : > { %v670_v4 = vmul.f32 %v8421_v43, %v8421_v43  ;;  %v608_v5 = vmul.f32 0.0078125, %v558_v2  ;;  %1145 = vmatpush1.bf16.msra.mxu0 %v7133_v44  ;;  %6744 = vmatpush1.bf16.msra.mxu1 %v7133_v44  ;;  %v671_v11 = vmul.f32 %v8431_v8, %v8431_v8  ;;  %v609_v12 = vmul.f32 0.0078125, %v560_v10 }
 0x180   : > { %11260 = vst [vmem:[#allocation22_spill] sm:$0xff] %v8475_v59  ;;  %v8481_v44 = vsub.s32 0, %v8475_v59 }
 0x181   : > { %583 = vadd.xlane.f32.xlu1 %v8394_v36  ;;  %706 = vadd.xlane.f32.xlu0 %v666_v32  ;;  %v8440_v13 = vsub.f32 %v8328_v46, %v608_v5  ;;  %v8450_v18 = vsub.f32 %v8330_v47, %v609_v12  ;;  %v8466_v47 = vld [vmem:[#allocation13 + $0xa8] sm:$0xff] }
 0x182   : > { %11261 = vst [vmem:[#allocation23_spill] sm:$0xff] %v8481_v44  ;;  %v526_v12 = vld [vmem:[%s8285_s13] sm:$0xff] }
 0x183   : > { %v672_v17 = vmul.f32 %v8440_v13, %v8440_v13  ;;  %v673_v46 = vmul.f32 %v8450_v18, %v8450_v18 }
 0x185   : > { %708 = vadd.xlane.f32.xlu1 %v667_v39  ;;  %585 = vadd.xlane.f32.xlu0 %v8404_v49 }
 0x189   : > { %587 = vadd.xlane.f32.xlu1 %v8414_v57  ;;  %710 = vadd.xlane.f32.xlu0 %v668_v52 }
 0x18d   : > { %712 = vadd.xlane.f32.xlu1 %v669_v60  ;;  %589 = vadd.xlane.f32.xlu0 %v8424_v1 }
 0x191   : > { %591 = vadd.xlane.f32.xlu1 %v8434_v9  ;;  %714 = vadd.xlane.f32.xlu0 %v670_v4 }
 0x195   : > { %716 = vadd.xlane.f32.xlu1 %v671_v11  ;;  %561 = vadd.xlane.f32.xlu0 %v8442_v45 }
 0x199   : > { %563 = vadd.xlane.f32.xlu1 %v8452_v19  ;;  %718 = vadd.xlane.f32.xlu0 %v672_v17 }
 0x19d   : > { %720 = vadd.xlane.f32.xlu1 %v673_v46  ;;  %565 = vadd.xlane.f32.xlu0 %v8457_v20 }
 0x1a1   : > { %567 = vadd.xlane.f32.xlu1 %v8460_v23  ;;  %569 = vadd.xlane.f32.xlu0 %v8462_v24 }
 0x1a5   : > { %571 = vadd.xlane.f32.xlu1 %v8466_v47  ;;  %573 = vadd.xlane.f32.xlu0 %v8468_v25 }
 0x1a9   : > { %575 = vadd.xlane.f32.xlu1 %v8472_v26 }
 0x1f2   : > { %v691_v28 = vpop.xlane.xlu0 %690 }
 0x1f3   : > { %v754_v30 = vmul.f32 0.0078125, %v691_v28 }
 0x1f5   : > { %v786_v31 = vadd.f32 1e-05, %v754_v30 }
 0x1f6   : > { %v693_v32 = vpop.xlane.xlu1 %692  ;;  %v695_v33 = vpop.xlane.xlu0 %694 }
 0x1f7   : > { %7190 = vrsqrt.f32 %v786_v31  ;;  %v755_v35 = vmul.f32 0.0078125, %v693_v32  ;;  %v756_v37 = vmul.f32 0.0078125, %v695_v33  ;;  %v8491_v32 = vrot.slane %v526_v12, %v8481_v44 }
 0x1f8   : > { %v920_v33 = vsub.s32 1, %v8475_v59 }
 0x1f9   : > { %v787_v38 = vadd.f32 1e-05, %v755_v35  ;;  %v788_v39 = vadd.f32 1e-05, %v756_v37 }
 0x1fa   : > { %v697_v40 = vpop.xlane.xlu1 %696  ;;  %v699_v48 = vpop.xlane.xlu0 %698 }
 0x1fb   : > { %7192 = vrsqrt.f32 %v787_v38  ;;  %v757_v51 = vmul.f32 0.0078125, %v697_v40  ;;  %v758_v53 = vmul.f32 0.0078125, %v699_v48 }
 0x1fc   : > { %7194 = vrsqrt.f32 %v788_v39 }
 0x1fd   : > { %v789_v52 = vadd.f32 1e-05, %v757_v51  ;;  %v790_v3 = vadd.f32 1e-05, %v758_v53  ;;  %v8501_v53 = vrot.slane %v526_v12, %v920_v33 }
 0x1fe   : > { %v701_v56 = vpop.xlane.xlu1 %700  ;;  %v578_v58 = vpop.xlane.xlu0 %577 }
 0x1ff   : > { %7196 = vrsqrt.f32 %v789_v52  ;;  %v759_v60 = vmul.f32 0.0078125, %v701_v56  ;;  %v618_v61 = vmul.f32 0.0078125, %v578_v58 }
 0x201   : > { %v791_v0 = vadd.f32 1e-05, %v759_v60  ;;  %v8478_v2 = vsub.f32 %v8364_v15, %v618_v61 }
 0x202   : > { %v580_v4 = vpop.xlane.xlu1 %579  ;;  %v703_v5 = vpop.xlane.xlu0 %702 }
 0x203   : > { %v619_v10 = vmul.f32 0.0078125, %v580_v4  ;;  %v682_v11 = vmul.f32 %v8478_v2, %v8478_v2  ;;  %7198 = vrsqrt.f32 %v791_v0  ;;  %v760_v46 = vmul.f32 0.0078125, %v703_v5 }
 0x204   : > { %v7191_v17 = vpop.eup %7190  ;;  %7200 = vrsqrt.f32 %v790_v3 }
 0x205   : > { %738 = vadd.xlane.f32.xlu0 %v682_v11  ;;  %v8487_v28 = vsub.f32 %v8374_v22, %v619_v10  ;;  %v850_v31 = vmul.f32 %v7191_v17, %v8338_v54  ;;  %v792_v40 = vadd.f32 1e-05, %v760_v46 }
 0x206   : > { %v705_v15 = vpop.xlane.xlu1 %704  ;;  %v582_v30 = vpop.xlane.xlu0 %581 }
 0x207   : > { %v761_v35 = vmul.f32 0.0078125, %v705_v15  ;;  %v620_v37 = vmul.f32 0.0078125, %v582_v30  ;;  %v683_v38 = vmul.f32 %v8487_v28, %v8487_v28  ;;  %v886_v52 = vmul.f32 %v8491_v32, %v850_v31 }
 0x208   : > { %v7193_v39 = vpop.eup %7192 }
 0x209   : > { %v793_v48 = vadd.f32 1e-05, %v761_v35  ;;  %740 = vadd.xlane.f32.xlu1 %v683_v38  ;;  %v8497_v22 = vsub.f32 %v8384_v29, %v620_v37  ;;  %v851_v50 = vmul.f32 %v7193_v39, %v8346_v62  ;;  %v7195_v56 = vpop.eup %7194  ;;  %v922_v10 = vadd.f32 %v8501_v53, %v886_v52 }
 0x20a   : > { %v584_v54 = vpop.xlane.xlu1 %583  ;;  %v707_v51 = vpop.xlane.xlu0 %706  ;;  %v852_v12 = vmul.f32 %v7195_v56, %v8340_v55 }
 0x20b   : > { %v621_v58 = vmul.f32 0.0078125, %v584_v54  ;;  %v684_v60 = vmul.f32 %v8497_v22, %v8497_v22  ;;  %7202 = vrsqrt.f32 %v793_v48  ;;  %v887_v0 = vmul.f32 %v8491_v32, %v851_v50 }
 0x20c   : > { %v7197_v61 = vpop.eup %7196  ;;  %7204 = vrsqrt.f32 %v792_v40  ;;  %v762_v3 = vmul.f32 0.0078125, %v707_v51  ;;  %v888_v38 = vmul.f32 %v8491_v32, %v852_v12 }
 0x20d   : > { %742 = vadd.xlane.f32.xlu0 %v684_v60  ;;  %v8507_v29 = vsub.f32 %v8394_v36, %v621_v58  ;;  %v853_v62 = vmul.f32 %v7197_v61, %v8348_v63  ;;  %v923_v11 = vadd.f32 %v8501_v53, %v887_v0 }
 0x20e   : > { %v709_v4 = vpop.xlane.xlu1 %708  ;;  %v586_v5 = vpop.xlane.xlu0 %585  ;;  %v794_v35 = vadd.f32 1e-05, %v762_v3  ;;  %v924_v58 = vadd.f32 %v8501_v53, %v888_v38 }
 0x20f   : > { %v763_v17 = vmul.f32 0.0078125, %v709_v4  ;;  %v622_v46 = vmul.f32 0.0078125, %v586_v5  ;;  %v685_v15 = vmul.f32 %v8507_v29, %v8507_v29  ;;  %v8515_v30 = vpack.c.bf16 %v923_v11, %v922_v10 }
 0x210   : > { %v889_v36 = vmul.f32 %v8491_v32, %v853_v62  ;;  %v7199_v31 = vpop.eup %7198 }
 0x211   : > { %v795_v63 = vadd.f32 1e-05, %v763_v17  ;;  %744 = vadd.xlane.f32.xlu1 %v685_v15  ;;  %v8519_v33 = vsub.f32 %v8404_v49, %v622_v46  ;;  %1163 = vmatmul.mubr.bf16.vlgmr.msra.gmra.mxu0 %v8515_v30  ;;  %v7201_v39 = vpop.eup %7200  ;;  %v855_v49 = vmul.f32 %v7199_v31, %v8356_v7 }
 0x212   : > { %v588_v37 = vpop.xlane.xlu1 %587  ;;  %v711_v55 = vpop.xlane.xlu0 %710  ;;  %1172 = vmatprep.mubr.bf16.mxu0 %v11148_v16  ;;  %v925_v50 = vadd.f32 %v8501_v53, %v889_v36  ;;  %v854_v60 = vmul.f32 %v7201_v39, %v8354_v6 }
 0x213   : > { %v623_v40 = vmul.f32 0.0078125, %v588_v37  ;;  %v686_v48 = vmul.f32 %v8519_v33, %v8519_v33  ;;  %7206 = vrsqrt.f32 %v795_v63  ;;  %v764_v51 = vmul.f32 0.0078125, %v711_v55 }
 0x214   : > { %7208 = vrsqrt.f32 %v794_v35  ;;  %v8535_v3 = vpack.c.bf16 %v925_v50, %v924_v58  ;;  %v891_v7 = vmul.f32 %v8491_v32, %v855_v49  ;;  %v890_v17 = vmul.f32 %v8491_v32, %v854_v60 }
 0x215   : > { %746 = vadd.xlane.f32.xlu0 %v686_v48  ;;  %v8529_v54 = vsub.f32 %v8414_v57, %v623_v40  ;;  %v796_v11 = vadd.f32 1e-05, %v764_v51 }
 0x216   : > { %v713_v52 = vpop.xlane.xlu1 %712  ;;  %v590_v56 = vpop.xlane.xlu0 %589  ;;  %v927_v36 = vadd.f32 %v8501_v53, %v891_v7  ;;  %v926_v55 = vadd.f32 %v8501_v53, %v890_v17 }
 0x217   : > { %v765_v61 = vmul.f32 0.0078125, %v713_v52  ;;  %v624_v0 = vmul.f32 0.0078125, %v590_v56  ;;  %v687_v62 = vmul.f32 %v8529_v54, %v8529_v54 }
 0x218   : > { %v7203_v4 = vpop.eup %7202  ;;  %v8555_v50 = vpack.c.bf16 %v927_v36, %v926_v55 }
 0x219   : > { %v797_v57 = vadd.f32 1e-05, %v765_v61  ;;  %748 = vadd.xlane.f32.xlu1 %v687_v62  ;;  %v8539_v5 = vsub.f32 %v8424_v1, %v624_v0  ;;  %v7205_v10 = vpop.eup %7204  ;;  %1173 = vmatmul.mubr.bf16.gmra.mxu0 %v8535_v3  ;;  %v857_v1 = vmul.f32 %v7203_v4, %v8372_v21 }
 0x21a   : > { %v592_v6 = vpop.xlane.xlu1 %591  ;;  %v715_v12 = vpop.xlane.xlu0 %714  ;;  %1182 = vmatprep.mubr.bf16.mxu0 %v11148_v16  ;;  %v856_v38 = vmul.f32 %v7205_v10, %v8362_v14 }
 0x21b   : > { %v625_v46 = vmul.f32 0.0078125, %v592_v6  ;;  %v688_v15 = vmul.f32 %v8539_v5, %v8539_v5  ;;  %7210 = vrsqrt.f32 %v797_v57  ;;  %v766_v63 = vmul.f32 0.0078125, %v715_v12 }
 0x21c   : > { %7212 = vrsqrt.f32 %v796_v11  ;;  %v893_v21 = vmul.f32 %v8491_v32, %v857_v1  ;;  %v892_v58 = vmul.f32 %v8491_v32, %v856_v38 }
 0x21d   : > { %750 = vadd.xlane.f32.xlu0 %v688_v15  ;;  %v8549_v31 = vsub.f32 %v8434_v9, %v625_v46  ;;  %v798_v52 = vadd.f32 1e-05, %v766_v63 }
 0x21e   : > { %v717_v35 = vpop.xlane.xlu1 %716  ;;  %v562_v37 = vpop.xlane.xlu0 %561  ;;  %v929_v62 = vadd.f32 %v8501_v53, %v893_v21  ;;  %v928_v11 = vadd.f32 %v8501_v53, %v892_v58  ;;  %v8589_v21 = vld [vmem:[%s8291_s16 + $0xb0] ss:$12 sps:$4 sm:$0xff]  }
 0x21f   : > { %v767_v39 = vmul.f32 0.0078125, %v717_v35  ;;  %v610_v40 = vmul.f32 0.0078125, %v562_v37  ;;  %v689_v48 = vmul.f32 %v8549_v31, %v8549_v31  ;;  %6377 = vmatprep.subr.bf16.mxu1 %v8589_v21 }
 0x220   : > { %v7207_v49 = vpop.eup %7206  ;;  %v8575_v15 = vpack.c.bf16 %v929_v62, %v928_v11 }
 0x221   : > { %v799_v9 = vadd.f32 1e-05, %v767_v39  ;;  %752 = vadd.xlane.f32.xlu1 %v689_v48  ;;  %v8559_v51 = vsub.f32 %v8442_v45, %v610_v40  ;;  %1183 = vmatmul.mubr.bf16.gmra.mxu0 %v8555_v50  ;;  %v7209_v60 = vpop.eup %7208  ;;  %v859_v45 = vmul.f32 %v7207_v49, %v8391_v34 }
 0x222   : > { %v564_v56 = vpop.xlane.xlu1 %563  ;;  %v719_v14 = vpop.xlane.xlu0 %718  ;;  %1192 = vmatprep.mubr.bf16.mxu0 %v11148_v16  ;;  %v858_v6 = vmul.f32 %v7209_v60, %v8381_v27 }
 0x223   : > { %v611_v61 = vmul.f32 0.0078125, %v564_v56  ;;  %v674_v0 = vmul.f32 %v8559_v51, %v8559_v51  ;;  %7214 = vrsqrt.f32 %v799_v9  ;;  %v768_v4 = vmul.f32 0.0078125, %v719_v14 }
 0x224   : > { %7216 = vrsqrt.f32 %v798_v52  ;;  %v895_v34 = vmul.f32 %v8491_v32, %v859_v45  ;;  %v894_v37 = vmul.f32 %v8491_v32, %v858_v6 }
 0x225   : > { %722 = vadd.xlane.f32.xlu0 %v674_v0  ;;  %v8569_v7 = vsub.f32 %v8452_v19, %v611_v61  ;;  %v800_v63 = vadd.f32 1e-05, %v768_v4 }
 0x226   : > { %v721_v57 = vpop.xlane.xlu1 %720  ;;  %v566_v10 = vpop.xlane.xlu0 %565  ;;  %v931_v48 = vadd.f32 %v8501_v53, %v895_v34  ;;  %v930_v14 = vadd.f32 %v8501_v53, %v894_v37 }
 0x227   : > { %v769_v12 = vmul.f32 0.0078125, %v721_v57  ;;  %v612_v17 = vmul.f32 0.0078125, %v566_v10  ;;  %v675_v46 = vmul.f32 %v8569_v7, %v8569_v7 }
 0x228   : > { %v7211_v36 = vpop.eup %7210  ;;  %v8604_v0 = vpack.c.bf16 %v931_v48, %v930_v14 }
 0x229   : > { %v801_v19 = vadd.f32 1e-05, %v769_v12  ;;  %724 = vadd.xlane.f32.xlu1 %v675_v46  ;;  %v8579_v1 = vsub.f32 %v8457_v20, %v612_v17  ;;  %1193 = vmatmul.mubr.bf16.gmra.mxu0 %v8575_v15  ;;  %v7213_v55 = vpop.eup %7212  ;;  %v861_v20 = vmul.f32 %v7211_v36, %v8411_v42 }
 0x22a   : > { %v568_v27 = vpop.xlane.xlu1 %567  ;;  %v570_v35 = vpop.xlane.xlu0 %569  ;;  %1202 = vmatprep.mubr.bf16.mxu0 %v11148_v16  ;;  %v860_v58 = vmul.f32 %v7213_v55, %v8401_v41 }
 0x22b   : > { %v613_v38 = vmul.f32 0.0078125, %v568_v27  ;;  %v614_v39 = vmul.f32 0.0078125, %v570_v35  ;;  %v676_v40 = vmul.f32 %v8579_v1, %v8579_v1  ;;  %7218 = vrsqrt.f32 %v801_v19 }
 0x22c   : > { %7220 = vrsqrt.f32 %v800_v63  ;;  %v896_v57 = vmul.f32 %v8491_v32, %v860_v58 }
 0x22d   : > { %726 = vadd.xlane.f32.xlu0 %v676_v40  ;;  %v8592_v49 = vsub.f32 %v8460_v23, %v613_v38  ;;  %v8595_v9 = vsub.f32 %v8462_v24, %v614_v39  ;;  %v897_v24 = vmul.f32 %v8491_v32, %v861_v20 }
 0x22e   : > { %v572_v52 = vpop.xlane.xlu1 %571  ;;  %v574_v56 = vpop.xlane.xlu0 %573  ;;  %v932_v46 = vadd.f32 %v8501_v53, %v896_v57 }
 0x22f   : > { %v615_v60 = vmul.f32 0.0078125, %v572_v52  ;;  %v616_v42 = vmul.f32 0.0078125, %v574_v56  ;;  %v677_v61 = vmul.f32 %v8592_v49, %v8592_v49  ;;  %v678_v23 = vmul.f32 %v8595_v9, %v8595_v9 }
 0x230   : > { %v7215_v62 = vpop.eup %7214 }
 0x231   : > { %728 = vadd.xlane.f32.xlu1 %v677_v61  ;;  %730 = vadd.xlane.f32.xlu0 %v678_v23  ;;  %v8608_v45 = vsub.f32 %v8466_v47, %v615_v60  ;;  %v8611_v41 = vsub.f32 %v8468_v25, %v616_v42  ;;  %v7217_v10 = vpop.eup %7216  ;;  %v933_v47 = vadd.f32 %v8501_v53, %v897_v24 }
 0x232   : > { %1203 = vmatmul.mubr.bf16.gmra.mxu0 %v8604_v0  ;;  %v576_v4 = vpop.xlane.xlu1 %575  ;;  %v863_v25 = vmul.f32 %v7215_v62, %v8431_v8  ;;  %v862_v34 = vmul.f32 %v7217_v10, %v8421_v43 }
 0x233   : > { %v617_v11 = vmul.f32 0.0078125, %v576_v4  ;;  %v679_v6 = vmul.f32 %v8608_v45, %v8608_v45  ;;  %v680_v12 = vmul.f32 %v8611_v41, %v8611_v41  ;;  %1212 = vmatprep.mubr.bf16.mxu0 %v11148_v16  ;;  %v8629_v19 = vpack.c.bf16 %v933_v47, %v932_v46 }
 0x234   : > { %v899_v63 = vmul.f32 %v8491_v32, %v863_v25  ;;  %v898_v8 = vmul.f32 %v8491_v32, %v862_v34 }
 0x235   : > { %732 = vadd.xlane.f32.xlu1 %v679_v6  ;;  %734 = vadd.xlane.f32.xlu0 %v680_v12  ;;  %v8623_v17 = vsub.f32 %v8472_v26, %v617_v11 }
 0x236   : > { %v935_v26 = vadd.f32 %v8501_v53, %v899_v63  ;;  %v934_v37 = vadd.f32 %v8501_v53, %v898_v8 }
 0x237   : > { %v681_v36 = vmul.f32 %v8623_v17, %v8623_v17 }
 0x238   : > { %v7219_v27 = vpop.eup %7218  ;;  %v8639_v38 = vpack.c.bf16 %v935_v26, %v934_v37 }
 0x239   : > { %736 = vadd.xlane.f32.xlu1 %v681_v36  ;;  %v7221_v35 = vpop.eup %7220  ;;  %v865_v43 = vmul.f32 %v7219_v27, %v8450_v18 }
 0x23a   : > { %1213 = vmatmul.mubr.bf16.gmra.mxu0 %v8629_v19  ;;  %v864_v55 = vmul.f32 %v7221_v35, %v8440_v13 }
 0x23b   : > { %1222 = vmatprep.mubr.bf16.mxu0 %v11148_v16  ;;  %v901_v39 = vmul.f32 %v8491_v32, %v865_v43 }
 0x23c   : > { %v900_v40 = vmul.f32 %v8491_v32, %v864_v55 }
 0x23d   : > { %v937_v48 = vadd.f32 %v8501_v53, %v901_v39 }
 0x23e   : > { %v936_v20 = vadd.f32 %v8501_v53, %v900_v40 }
 0x240   : > { %v8647_v52 = vpack.c.bf16 %v937_v48, %v936_v20  ;;  %v7135_v48 = vld [vmem:[%s8291_s16 + $0x98] ss:$12 sps:$4 sm:$0xff]  }
 0x242   : > { %1223 = vmatmul.mubr.bf16.gmra.mxu0 %v8639_v38 }
 0x243   : > { %1232 = vmatprep.mubr.bf16.mxu0 %v11148_v16 }
 0x24a   : > { %1233 = vmatmul.mubr.bf16.gmra.mxu0 %v8647_v52 }
 0x24b   : > { %1242 = vmatprep.mubr.bf16.mxu0 %v11148_v16 }
 0x28e   : > { %v739_v13 = vpop.xlane.xlu0 %738 }
 0x28f   : > { %v778_v18 = vmul.f32 0.0078125, %v739_v13 }
 0x291   : > { %v810_v56 = vadd.f32 1e-05, %v778_v18 }
 0x292   : > { %v741_v14 = vpop.xlane.xlu1 %740 }
 0x293   : > { %7222 = vrsqrt.f32 %v810_v56  ;;  %v779_v58 = vmul.f32 0.0078125, %v741_v14 }
 0x295   : > { %v811_v60 = vadd.f32 1e-05, %v779_v58 }
 0x296   : > { %v743_v42 = vpop.xlane.xlu0 %742 }
 0x297   : > { %7224 = vrsqrt.f32 %v811_v60  ;;  %v780_v61 = vmul.f32 0.0078125, %v743_v42  ;;  %v7136_v60 = vld [vmem:[%s8291_s16 + $0x80] ss:$12 sps:$4 sm:$0xff]  }
 0x299   : > { %v812_v23 = vadd.f32 1e-05, %v780_v61 }
 0x29a   : > { %v745_v24 = vpop.xlane.xlu1 %744 }
 0x29b   : > { %7226 = vrsqrt.f32 %v812_v23  ;;  %v781_v62 = vmul.f32 0.0078125, %v745_v24 }
 0x29d   : > { %v813_v4 = vadd.f32 1e-05, %v781_v62 }
 0x29e   : > { %v747_v57 = vpop.xlane.xlu0 %746 }
 0x29f   : > { %7228 = vrsqrt.f32 %v813_v4  ;;  %v782_v10 = vmul.f32 0.0078125, %v747_v57  ;;  %v7137_v57 = vld [vmem:[%s8291_s16 + $0x68] ss:$12 sps:$4 sm:$0xff]  }
 0x2a0   : > { %v7223_v11 = vpop.eup %7222 }
 0x2a1   : > { %v814_v6 = vadd.f32 1e-05, %v782_v10  ;;  %v874_v12 = vmul.f32 %v7223_v11, %v8478_v2 }
 0x2a2   : > { %v749_v47 = vpop.xlane.xlu1 %748 }
 0x2a3   : > { %7230 = vrsqrt.f32 %v814_v6  ;;  %v783_v25 = vmul.f32 0.0078125, %v749_v47  ;;  %v910_v63 = vmul.f32 %v8491_v32, %v874_v12 }
 0x2a4   : > { %v7225_v46 = vpop.eup %7224 }
 0x2a5   : > { %v815_v34 = vadd.f32 1e-05, %v783_v25  ;;  %v875_v36 = vmul.f32 %v7225_v46, %v8487_v28  ;;  %v946_v37 = vadd.f32 %v8501_v53, %v910_v63  ;;  %v7138_v46 = vld [vmem:[%s8291_s16 + $0x50] ss:$12 sps:$4 sm:$0xff]  }
 0x2a6   : > { %v751_v27 = vpop.xlane.xlu0 %750 }
 0x2a7   : > { %7232 = vrsqrt.f32 %v815_v34  ;;  %v784_v8 = vmul.f32 0.0078125, %v751_v27  ;;  %v911_v35 = vmul.f32 %v8491_v32, %v875_v36 }
 0x2a8   : > { %v7227_v26 = vpop.eup %7226 }
 0x2a9   : > { %v816_v43 = vadd.f32 1e-05, %v784_v8  ;;  %v947_v2 = vadd.f32 %v8501_v53, %v911_v35  ;;  %v876_v55 = vmul.f32 %v7227_v26, %v8497_v22 }
 0x2aa   : > { %v753_v39 = vpop.xlane.xlu1 %752 }
 0x2ab   : > { %7234 = vrsqrt.f32 %v816_v43  ;;  %v785_v40 = vmul.f32 0.0078125, %v753_v39  ;;  %v8658_v28 = vpack.c.bf16 %v947_v2, %v946_v37  ;;  %v912_v56 = vmul.f32 %v8491_v32, %v876_v55  ;;  %v7139_v2 = vld [vmem:[%s8291_s16 + $0x38] ss:$12 sps:$4 sm:$0xff]  }
 0x2ac   : > { %v7229_v20 = vpop.eup %7228 }
 0x2ad   : > { %v817_v13 = vadd.f32 1e-05, %v785_v40  ;;  %1283 = vmatmul.mubr.bf16.vlgmr.msra.gmra.mxu1 %v8658_v28  ;;  %v877_v18 = vmul.f32 %v7229_v20, %v8507_v29  ;;  %v948_v23 = vadd.f32 %v8501_v53, %v912_v56 }
 0x2ae   : > { %6378 = vmatpush3.bf16.msra.mxu1 %v8589_v21  ;;  %v723_v14 = vpop.xlane.xlu0 %722  ;;  %1292 = vmatprep.mubr.bf16.mxu1 %v11148_v16 }
 0x2af   : > { %7236 = vrsqrt.f32 %v817_v13  ;;  %v770_v22 = vmul.f32 0.0078125, %v723_v14  ;;  %6379 = vmatprep.subr.bf16.mxu1 %v7135_v48  ;;  %v913_v58 = vmul.f32 %v8491_v32, %v877_v18  ;;  %v7140_v14 = vld [vmem:[%s8291_s16 + $0x20] ss:$12 sps:$4 sm:$0xff]  }
 0x2b0   : > { %v7231_v42 = vpop.eup %7230 }
 0x2b1   : > { %v802_v61 = vadd.f32 1e-05, %v770_v22  ;;  %v949_v29 = vadd.f32 %v8501_v53, %v913_v58  ;;  %v878_v24 = vmul.f32 %v7231_v42, %v8519_v33 }
 0x2b2   : > { %v725_v62 = vpop.xlane.xlu1 %724  ;;  %6380 = vmatpush3.bf16.msra.mxu1 %v7135_v48 }
 0x2b3   : > { %7238 = vrsqrt.f32 %v802_v61  ;;  %v771_v21 = vmul.f32 0.0078125, %v725_v62  ;;  %v8671_v4 = vpack.c.bf16 %v949_v29, %v948_v23  ;;  %6381 = vmatprep.subr.bf16.mxu1 %v7136_v60  ;;  %v914_v12 = vmul.f32 %v8491_v32, %v878_v24  ;;  %v7141_v62 = vld [vmem:[%s8291_s16 + $0x8] ss:$12 sps:$4 sm:$0xff]  }
 0x2b4   : > { %v7233_v10 = vpop.eup %7232 }
 0x2b5   : > { %v803_v11 = vadd.f32 1e-05, %v771_v21  ;;  %1293 = vmatmul.mubr.bf16.gmra.mxu1 %v8671_v4  ;;  %v879_v6 = vmul.f32 %v7233_v10, %v8529_v54  ;;  %v950_v63 = vadd.f32 %v8501_v53, %v914_v12 }
 0x2b6   : > { %6382 = vmatpush3.bf16.msra.mxu1 %v7136_v60  ;;  %v727_v47 = vpop.xlane.xlu0 %726  ;;  %1302 = vmatprep.mubr.bf16.mxu1 %v11148_v16 }
 0x2b7   : > { %7240 = vrsqrt.f32 %v803_v11  ;;  %v772_v33 = vmul.f32 0.0078125, %v727_v47  ;;  %6383 = vmatprep.subr.bf16.mxu1 %v7137_v57  ;;  %v915_v25 = vmul.f32 %v8491_v32, %v879_v6 }
 0x2b8   : > { %v7235_v34 = vpop.eup %7234 }
 0x2b9   : > { %v804_v36 = vadd.f32 1e-05, %v772_v33  ;;  %v951_v27 = vadd.f32 %v8501_v53, %v915_v25  ;;  %v880_v54 = vmul.f32 %v7235_v34, %v8539_v5 }
 0x2ba   : > { %v729_v8 = vpop.xlane.xlu1 %728  ;;  %6384 = vmatpush3.bf16.msra.mxu1 %v7137_v57  ;;  %v731_v35 = vpop.xlane.xlu0 %730 }
 0x2bb   : > { %7242 = vrsqrt.f32 %v804_v36  ;;  %v773_v26 = vmul.f32 0.0078125, %v729_v8  ;;  %v774_v43 = vmul.f32 0.0078125, %v731_v35  ;;  %v8683_v37 = vpack.c.bf16 %v951_v27, %v950_v63  ;;  %6385 = vmatprep.subr.bf16.mxu1 %v7138_v46 }
 0x2bc   : > { %v7237_v55 = vpop.eup %7236  ;;  %v916_v39 = vmul.f32 %v8491_v32, %v880_v54 }
 0x2bd   : > { %v805_v40 = vadd.f32 1e-05, %v773_v26  ;;  %v806_v48 = vadd.f32 1e-05, %v774_v43  ;;  %1303 = vmatmul.mubr.bf16.gmra.mxu1 %v8683_v37  ;;  %v881_v5 = vmul.f32 %v7237_v55, %v8549_v31 }
 0x2be   : > { %v733_v20 = vpop.xlane.xlu1 %732  ;;  %6386 = vmatpush3.bf16.msra.mxu1 %v7138_v46  ;;  %v735_v13 = vpop.xlane.xlu0 %734  ;;  %1312 = vmatprep.mubr.bf16.mxu1 %v11148_v16  ;;  %v952_v60 = vadd.f32 %v8501_v53, %v916_v39 }
 0x2bf   : > { %7244 = vrsqrt.f32 %v805_v40  ;;  %v775_v18 = vmul.f32 0.0078125, %v733_v20  ;;  %6387 = vmatprep.subr.bf16.mxu1 %v7139_v2  ;;  %v917_v56 = vmul.f32 %v8491_v32, %v881_v5  ;;  %v776_v58 = vmul.f32 0.0078125, %v735_v13 }
 0x2c0   : > { %v7239_v22 = vpop.eup %7238  ;;  %7246 = vrsqrt.f32 %v806_v48 }
 0x2c1   : > { %v807_v42 = vadd.f32 1e-05, %v775_v18  ;;  %v953_v31 = vadd.f32 %v8501_v53, %v917_v56  ;;  %v866_v61 = vmul.f32 %v7239_v22, %v8559_v51  ;;  %v808_v57 = vadd.f32 1e-05, %v776_v58 }
 0x2c2   : > { %v737_v23 = vpop.xlane.xlu1 %736  ;;  %6388 = vmatpush3.bf16.msra.mxu1 %v7139_v2 }
 0x2c3   : > { %7248 = vrsqrt.f32 %v807_v42  ;;  %v777_v29 = vmul.f32 0.0078125, %v737_v23  ;;  %v8695_v24 = vpack.c.bf16 %v953_v31, %v952_v60  ;;  %6389 = vmatprep.subr.bf16.mxu1 %v7140_v14  ;;  %v902_v6 = vmul.f32 %v8491_v32, %v866_v61 }
 0x2c4   : > { %v7241_v21 = vpop.eup %7240 }
 0x2c5   : > { %v809_v10 = vadd.f32 1e-05, %v777_v29  ;;  %1313 = vmatmul.mubr.bf16.gmra.mxu1 %v8695_v24  ;;  %v867_v11 = vmul.f32 %v7241_v21, %v8569_v7  ;;  %v938_v47 = vadd.f32 %v8501_v53, %v902_v6 }
 0x2c6   : > { %6390 = vmatpush3.bf16.msra.mxu1 %v7140_v14  ;;  %6393 = vmatprep.mubr.bf16.mxu1 %v8515_v30 }
 0x2c7   : > { %7250 = vrsqrt.f32 %v809_v10  ;;  %6391 = vmatprep.subr.bf16.mxu1 %v7141_v62  ;;  %v903_v51 = vmul.f32 %v8491_v32, %v867_v11 }
 0x2c8   : > { %v7243_v12 = vpop.eup %7242  ;;  %7252 = vrsqrt.f32 %v808_v57 }
 0x2c9   : > { %v939_v33 = vadd.f32 %v8501_v53, %v903_v51  ;;  %v868_v25 = vmul.f32 %v7243_v12, %v8579_v1 }
 0x2ca   : > { %6392 = vmatpush3.bf16.msra.mxu1 %v7141_v62 }
 0x2cb   : > { %v962_v46 = vpack.c.bf16 %v939_v33, %v938_v47  ;;  %v904_v34 = vmul.f32 %v8491_v32, %v868_v25 }
 0x2cc   : > { %v7245_v7 = vpop.eup %7244 }
 0x2cd   : > { %1243 = vmatmul.mubr.bf16.gmra.mxu0 %v962_v46  ;;  %6394 = vmatmul.mubr.bf16.vlgmr.msra.gmra.mxu1 %v8535_v3  ;;  %v869_v30 = vmul.f32 %v7245_v7, %v8592_v49  ;;  %v7247_v36 = vpop.eup %7246  ;;  %v940_v1 = vadd.f32 %v8501_v53, %v904_v34 }
 0x2ce   : > { %6397 = vmatprep.mubr.bf16.mxu1 %v8555_v50  ;;  %1252 = vmatprep.mubr.bf16.mxu0 %v11148_v16  ;;  %v870_v8 = vmul.f32 %v7247_v36, %v8595_v9 }
 0x2cf   : > { %v905_v63 = vmul.f32 %v8491_v32, %v869_v30 }
 0x2d0   : > { %v7249_v27 = vpop.eup %7248  ;;  %v906_v2 = vmul.f32 %v8491_v32, %v870_v8 }
 0x2d1   : > { %v941_v54 = vadd.f32 %v8501_v53, %v905_v63  ;;  %v871_v3 = vmul.f32 %v7249_v27, %v8608_v45  ;;  %v8716_v35 = vpop.f32.mrf.mxu0 }
 0x2d2   : > { %v942_v48 = vadd.f32 %v8501_v53, %v906_v2  ;;  %v1612_v6 = vmul.f32 0.125, %v8716_v35 }
 0x2d3   : > { %v963_v49 = vpack.c.bf16 %v941_v54, %v940_v1  ;;  %v907_v26 = vmul.f32 %v8491_v32, %v871_v3  ;;  %v8719_v50 = vpop.f32.mrf.mxu0 }
 0x2d4   : > { %v7251_v43 = vpop.eup %7250 }
 0x2d5   : > { %1253 = vmatmul.mubr.bf16.gmra.mxu0 %v963_v49  ;;  %6398 = vmatmul.mubr.bf16.gmra.mxu1 %v8575_v15  ;;  %v7253_v55 = vpop.eup %7252  ;;  %v8723_v39 = vpop.f32.mrf.mxu0  ;;  %v943_v9 = vadd.f32 %v8501_v53, %v907_v26  ;;  %v873_v45 = vmul.f32 %v7251_v43, %v8623_v17 }
 0x2d6   : > { %6401 = vmatprep.mubr.bf16.mxu1 %v8604_v0  ;;  %1262 = vmatprep.mubr.bf16.mxu0 %v11148_v16  ;;  %v872_v5 = vmul.f32 %v7253_v55, %v8611_v41  ;;  %v1613_v10 = vmul.f32 0.125, %v8723_v39 }
 0x2d7   : > { %v8729_v40 = vpop.f32.mrf.mxu0  ;;  %v964_v20 = vpack.c.bf16 %v943_v9, %v942_v48  ;;  %v909_v13 = vmul.f32 %v8491_v32, %v873_v45 }
 0x2d8   : > { %v908_v0 = vmul.f32 %v8491_v32, %v872_v5  ;;  %v1676_v12 = vpack.c.bf16 %v1613_v10, %v1612_v6  ;;  %v6905_v8 = vpack.i.bf16 %v8729_v40, %v8719_v50  ;;  %v1836_v5 = vpack.c.bf16 %v8729_v40, %v8719_v50 }
 0x2d9   : > { %v8733_v15 = vpop.f32.mrf.mxu0  ;;  %v945_v41 = vadd.f32 %v8501_v53, %v909_v13 }
 0x2da   : > { %v944_v14 = vadd.f32 %v8501_v53, %v908_v0  ;;  %v2054_v13 = vsel %vm2028_vm0, %v1836_v5, 0 }
 0x2db   : > { %v8736_v18 = vpop.f32.mrf.mxu0 }
 0x2dc   : > { %v965_v58 = vpack.c.bf16 %v945_v41, %v944_v14  ;;  %v1614_v41 = vmul.f32 0.125, %v8733_v15 }
 0x2dd   : > { %1263 = vmatmul.mubr.bf16.gmra.mxu0 %v964_v20  ;;  %6402 = vmatmul.mubr.bf16.gmra.mxu1 %v8629_v19  ;;  %v8740_v56 = vpop.f32.mrf.mxu0 }
 0x2de   : > { %6405 = vmatprep.mubr.bf16.mxu1 %v8639_v38  ;;  %1272 = vmatprep.mubr.bf16.mxu0 %v11148_v16  ;;  %v1615_v0 = vmul.f32 0.125, %v8740_v56 }
 0x2df   : > { %v8745_v17 = vpop.f32.mrf.mxu0 }
 0x2e0   : > { %v6900_v3 = vpack.i.bf16 %v8745_v17, %v8736_v18  ;;  %v1837_v45 = vpack.c.bf16 %v8745_v17, %v8736_v18  ;;  %v1677_v14 = vpack.c.bf16 %v1615_v0, %v1614_v41 }
 0x2e1   : > { %v8748_v22 = vpop.f32.mrf.mxu0 }
 0x2e2   : > { %v1616_v17 = vmul.f32 0.125, %v8748_v22 }
 0x2e3   : > { %v8750_v60 = vpop.f32.mrf.mxu0 }
 0x2e5   : > { %1273 = vmatmul.mubr.bf16.gmra.mxu0 %v965_v58  ;;  %6406 = vmatmul.mubr.bf16.gmra.mxu1 %v8647_v52  ;;  %v8753_v32 = vpop.f32.mrf.mxu0 }
 0x2e6   : > { %6409 = vmatprep.mubr.bf16.mxu1 %v962_v46  ;;  %v1617_v18 = vmul.f32 0.125, %v8753_v32 }
 0x2e7   : > { %v8755_v19 = vpop.f32.mrf.mxu0 }
 0x2e8   : > { %v6895_v1 = vpack.i.bf16 %v8755_v19, %v8750_v60 }
 0x2e9   : > { %v8757_v38 = vpop.f32.mrf.mxu0 }
 0x2eb   : > { %v8759_v42 = vpop.f32.mrf.mxu0 }
 0x2ed   : > { %6410 = vmatmul.mubr.bf16.gmra.mxu1 %v963_v49  ;;  %v8761_v31 = vpop.f32.mrf.mxu0 }
 0x2ee   : > { %6413 = vmatprep.mubr.bf16.mxu1 %v964_v20  ;;  %v2057_v20 = vsel %vm2028_vm0, %v1837_v45, 0  ;;  %v1619_v50 = vmul.f32 0.125, %v8761_v31 }
 0x2ef   : > { %v1200_v53 = vpop.f32.mrf.mxu0 }
 0x2f0   : > { %v6890_v54 = vpack.i.bf16 %v1200_v53, %v8759_v42  ;;  %v1839_v55 = vpack.c.bf16 %v1200_v53, %v8759_v42 }
 0x2f2   : > { %v8763_v61 = vpop.f32.mrf.mxu0 }
 0x2f4   : > { %v1206_v23 = vpop.f32.mrf.mxu0 }
 0x2f5   : > { %6414 = vmatmul.mubr.bf16.gmra.mxu1 %v965_v58  ;;  %v1678_v58 = vpack.c.bf16 %v1617_v18, %v1616_v17 }
 0x2f6   : > { %v8765_v29 = vpop.f32.mrf.mxu0  ;;  %6417 = vmatprep.mubr.bf16.mxu1 %v8658_v28 }
 0x2f7   : > { %v1621_v40 = vmul.f32 0.125, %v8765_v29 }
 0x2f8   : > { %v1210_v52 = vpop.f32.mrf.mxu0 }
 0x2f9   : > { %v1840_v43 = vpack.c.bf16 %v1210_v52, %v1206_v23 }
 0x2fa   : > { %v8768_v62 = vpop.f32.mrf.mxu0 }
 0x2fb   : > { %v2066_v9 = vsel %vm2028_vm0, %v1840_v43, 0 }
 0x2fc   : > { %v1216_v21 = vpop.f32.mrf.mxu0 }
 0x2fd   : > { %6418 = vmatmul.mubr.bf16.gmra.mxu1 %v8671_v4 }
 0x2fe   : > { %v8771_v57 = vpop.f32.mrf.mxu0  ;;  %6421 = vmatprep.mubr.bf16.mxu1 %v8683_v37 }
 0x300   : > { %v1220_v11 = vpop.f32.mrf.mxu0 }
 0x301   : > { %v6880_v46 = vpack.i.bf16 %v1220_v11, %v1216_v21  ;;  %v1841_v49 = vpack.c.bf16 %v1220_v11, %v1216_v21 }
 0x302   : > { %v8776_v51 = vpop.f32.mrf.mxu0 }
 0x303   : > { %v2069_v2 = vsel %vm2028_vm0, %v1841_v49, 0 }
 0x304   : > { %v1226_v47 = vpop.f32.mrf.mxu0 }
 0x305   : > { %6422 = vmatmul.mubr.bf16.gmra.mxu1 %v8695_v24  ;;  %v6885_v24 = vpack.i.bf16 %v1210_v52, %v1206_v23  ;;  %v1622_v23 = vmul.f32 0.125, %v8768_v62  ;;  %v1624_v52 = vmul.f32 0.125, %v8776_v51 }
 0x306   : > { %v8779_v28 = vpop.f32.mrf.mxu0  ;;  %6441 = vmatprep.mubr.msk.bf16.mxu1 %vm2028_vm0, %v1676_v12 }
 0x307   : > { %v1625_v53 = vmul.f32 0.125, %v8779_v28 }
 0x308   : > { %v1230_v4 = vpop.f32.mrf.mxu0 }
 0x309   : > { %v6875_v33 = vpack.i.bf16 %v1230_v4, %v1226_v47  ;;  %v1842_v27 = vpack.c.bf16 %v1230_v4, %v1226_v47  ;;  %v1682_v10 = vpack.c.bf16 %v1625_v53, %v1624_v52 }
 0x30a   : > { %v8782_v25 = vpop.f32.mrf.mxu0 }
 0x30b   : > { %6876 = vrot.lane.b32.xlu1 %v6875_v33, %s7991_s14  ;;  %v2072_v26 = vsel %vm2028_vm0, %v1842_v27, 0  ;;  %v1626_v6 = vmul.f32 0.125, %v8782_v25 }
 0x30c   : > { %v1236_v37 = vpop.f32.mrf.mxu0 }
 0x30e   : > { %v8785_v7 = vpop.f32.mrf.mxu0 }
 0x30f   : > { %6881 = vrot.lane.b32.xlu1 %v6880_v46, %s7991_s14  ;;  %v1627_v11 = vmul.f32 0.125, %v8785_v7 }
 0x310   : > { %v1240_v30 = vpop.f32.mrf.mxu0 }
 0x311   : > { %v6870_v34 = vpack.i.bf16 %v1240_v30, %v1236_v37  ;;  %v1843_v36 = vpack.c.bf16 %v1240_v30, %v1236_v37  ;;  %v1683_v12 = vpack.c.bf16 %v1627_v11, %v1626_v6 }
 0x313   : > { %6886 = vrot.lane.b32.xlu1 %v6885_v24, %s7991_s14  ;;  %6871 = vrot.lane.b32.xlu0 %v6870_v34, %s7991_s14  ;;  %v2075_v63 = vsel %vm2028_vm0, %v1843_v36, 0 }
 0x314   : > { %6745 = vmatprep.subr.msk.bf16.mxu1 %vm2028_vm0, %v1843_v36 }
 0x315   : > { %6426 = vmatpush3.bf16.xpose.msra.mxu1 %v2075_v63 }
 0x316   : > { %6746 = vmatprep.subr.msk.bf16.mxu1 %vm2028_vm0, %v1842_v27 }
 0x317   : > { %6896 = vrot.lane.b32.xlu1 %v6895_v1, %s7991_s14  ;;  %6891 = vrot.lane.b32.xlu0 %v6890_v54, %s7991_s14 }
 0x31b   : > { %6906 = vrot.lane.b32.xlu1 %v6905_v8, %s7991_s14  ;;  %6901 = vrot.lane.b32.xlu0 %v6900_v3, %s7991_s14 }
 0x31d   : > { %6428 = vmatpush3.bf16.xpose.msra.mxu1 %v2072_v26 }
 0x31e   : > { %6747 = vmatprep.subr.msk.bf16.mxu1 %vm2028_vm0, %v1841_v49 }
 0x31f   : > { %1518 = vrot.lane.b32.xlu1 %v8723_v39, %s7991_s14  ;;  %1516 = vrot.lane.b32.xlu0 %v8716_v35, %s7991_s14  ;;  %v1838_v35 = vpack.c.bf16 %v8755_v19, %v8750_v60  ;;  %v2063_v39 = vsel %vm2028_vm0, %v1839_v55, 0  ;;  %v1618_v60 = vmul.f32 0.125, %v8757_v38 }
 0x321   : > { %v2060_v48 = vsel %vm2028_vm0, %v1838_v35, 0  ;;  %v1679_v19 = vpack.c.bf16 %v1619_v50, %v1618_v60 }
 0x323   : > { %1522 = vrot.lane.b32.xlu1 %v8740_v56, %s7991_s14  ;;  %1520 = vrot.lane.b32.xlu0 %v8733_v15, %s7991_s14  ;;  %v1620_v56 = vmul.f32 0.125, %v8763_v61  ;;  %v1623_v15 = vmul.f32 0.125, %v8771_v57 }
 0x325   : > { %6430 = vmatpush3.bf16.xpose.msra.mxu1 %v2069_v2  ;;  %v1680_v42 = vpack.c.bf16 %v1621_v40, %v1620_v56  ;;  %v1681_v21 = vpack.c.bf16 %v1623_v15, %v1622_v23 }
 0x326   : > { %6748 = vmatprep.subr.msk.bf16.mxu1 %vm2028_vm0, %v1840_v43 }
 0x32d   : > { %6432 = vmatpush3.bf16.xpose.msra.mxu1 %v2066_v9 }
 0x32e   : > { %6749 = vmatprep.subr.msk.bf16.mxu1 %vm2028_vm0, %v1839_v55 }
 0x335   : > { %6434 = vmatpush3.bf16.xpose.msra.mxu1 %v2063_v39 }
 0x336   : > { %6750 = vmatprep.subr.msk.bf16.mxu1 %vm2028_vm0, %v1838_v35 }
 0x33d   : > { %6436 = vmatpush3.bf16.xpose.msra.mxu1 %v2060_v48 }
 0x33e   : > { %6751 = vmatprep.subr.msk.bf16.mxu1 %vm2028_vm0, %v1837_v45 }
 0x345   : > { %6438 = vmatpush3.bf16.xpose.msra.mxu1 %v2057_v20 }
 0x346   : > { %6752 = vmatprep.subr.msk.bf16.mxu1 %vm2028_vm0, %v1836_v5 }
 0x34d   : > { %6440 = vmatpush3.bf16.xpose.msra.mxu1 %v2054_v13 }
 0x354   : > { %6442 = vmatmul.mubr.msk.bf16.vlgmr.msra.gmra.mxu1 %vm2028_vm0, %v1677_v14 }
 0x355   : > { %6445 = vmatprep.mubr.msk.bf16.mxu1 %vm2028_vm0, %v1678_v58 }
 0x35c   : > { %6446 = vmatmul.mubr.msk.bf16.gmra.mxu1 %vm2028_vm0, %v1679_v19 }
 0x35d   : > { %6449 = vmatprep.mubr.msk.bf16.mxu1 %vm2028_vm0, %v1680_v42 }
 0x364   : > { %6450 = vmatmul.mubr.msk.bf16.gmra.mxu1 %vm2028_vm0, %v1681_v21 }
 0x365   : > { %6453 = vmatprep.mubr.msk.bf16.mxu1 %vm2028_vm0, %v1682_v10 }
 0x36c   : > { %6454 = vmatmul.mubr.msk.bf16.gmra.mxu1 %vm2028_vm0, %v1683_v12 }
 0x36d   : > { %v8853_v47 = vpop.f32.mrf.mxu1 }
 0x36f   : > { %v8855_v4 = vpop.f32.mrf.mxu1 }
 0x371   : > { %v8857_v33 = vpop.f32.mrf.mxu1 }
 0x373   : > { %v8859_v37 = vpop.f32.mrf.mxu1 }
 0x374   : > { %v6925_v42 = vpack.i.bf16 %v8859_v37, %v8855_v4 }
 0x375   : > { %v8861_v46 = vpop.f32.mrf.mxu1 }
 0x377   : > { %v8863_v30 = vpop.f32.mrf.mxu1 }
 0x379   : > { %v8865_v24 = vpop.f32.mrf.mxu1 }
 0x37b   : > { %v8867_v34 = vpop.f32.mrf.mxu1 }
 0x37d   : > { %v6877_v36 = vpop.permute.xlu1 %6876  ;;  %v8869_v63 = vpop.f32.mrf.mxu1 }
 0x37e   : > { %v6879_v9 = vunpack.i.h.bf16 %v6877_v36  ;;  %v6878_v35 = vunpack.i.l.bf16 %v6877_v36 }
 0x37f   : > { %v1306_v27 = vpop.f32.mrf.mxu1 }
 0x380   : > { %v1858_v13 = vpack.c.bf16 %v6879_v9, %v6878_v35 }
 0x381   : > { %v6882_v1 = vpop.permute.xlu1 %6881  ;;  %v8871_v54 = vpop.f32.mrf.mxu1 }
 0x382   : > { %v6883_v60 = vunpack.i.l.bf16 %v6882_v1 }
 0x383   : > { %v1310_v8 = vpop.f32.mrf.mxu1 }
 0x384   : > { %v6915_v3 = vpack.i.bf16 %v1310_v8, %v1306_v27  ;;  %v1850_v56 = vpack.c.bf16 %v1310_v8, %v1306_v27  ;;  %v2362_v27 = vsel %vm2028_vm0, %v1858_v13, 0 }
 0x385   : > { %v8873_v49 = vpop.permute.xlu1 %6886  ;;  %v6872_v26 = vpop.permute.xlu0 %6871 }
 0x386   : > { %v6874_v43 = vunpack.i.h.bf16 %v6872_v26  ;;  %v6873_v2 = vunpack.i.l.bf16 %v6872_v26  ;;  %v8875_v55 = vpop.f32.mrf.mxu1  ;;  %6916 = vrot.lane.b32.xlu1 %v6915_v3, %s7991_s14  ;;  %v6889_v9 = vunpack.i.h.bf16 %v8873_v49  ;;  %v6888_v35 = vunpack.i.l.bf16 %v8873_v49 }
 0x388   : > { %v1859_v39 = vpack.c.bf16 %v6874_v43, %v6873_v2  ;;  %v1316_v45 = vpop.f32.mrf.mxu1 }
 0x389   : > { %v8878_v48 = vpop.permute.xlu1 %6896  ;;  %v8880_v5 = vpop.permute.xlu0 %6891 }
 0x38a   : > { %v8882_v20 = vpop.f32.mrf.mxu1  ;;  %6761 = vmatprep.subr.msk.bf16.mxu1 %vm2028_vm0, %v1859_v39  ;;  %1526 = vrot.lane.b32.xlu1 %v8753_v32, %s7991_s14  ;;  %v2365_v0 = vsel %vm2028_vm0, %v1859_v39, 0  ;;  %v6884_v32 = vunpack.i.h.bf16 %v6882_v1  ;;  %v2217_v39 = vsel %vm2028_vm0, %v1850_v56, 0 }
 0x38b   : > { %6490 = vmatpush3.bf16.xpose.msra.mxu1 %v2365_v0 }
 0x38c   : > { %v1320_v18 = vpop.f32.mrf.mxu1  ;;  %6762 = vmatprep.subr.msk.bf16.mxu1 %vm2028_vm0, %v1858_v13  ;;  %v1857_v6 = vpack.c.bf16 %v6884_v32, %v6883_v60  ;;  %v1848_v32 = vpack.c.bf16 %v8859_v37, %v8855_v4  ;;  %v6893_v60 = vunpack.i.l.bf16 %v8880_v5 }
 0x38d   : > { %v6910_v41 = vpack.i.bf16 %v1320_v18, %v1316_v45  ;;  %v1851_v17 = vpack.c.bf16 %v1320_v18, %v1316_v45  ;;  %v8889_v14 = vpop.permute.xlu1 %6906  ;;  %v8891_v58 = vpop.permute.xlu0 %6901 }
 0x38e   : > { %v8893_v50 = vpop.f32.mrf.mxu0  ;;  %v8895_v40 = vpop.f32.mrf.mxu1  ;;  %1530 = vrot.lane.b32.xlu1 %v8761_v31, %s7991_s14  ;;  %v2359_v18 = vsel %vm2028_vm0, %v1857_v6, 0 }
 0x38f   : > { %6911 = vrot.lane.b32.xlu0 %v6910_v41, %s7991_s14  ;;  %6753 = vmatprep.subr.msk.bf16.mxu0 %vm2028_vm0, %v1851_v17  ;;  %v2220_v19 = vsel %vm2028_vm0, %v1851_v17, 0  ;;  %v1628_v12 = vmul.f32 0.125, %v8893_v50 }
 0x390   : > { %v8904_v15 = vpop.f32.mrf.mxu0  ;;  %v8906_v53 = vpop.f32.mrf.mxu1  ;;  %6458 = vmatpush3.bf16.xpose.msra.mxu0 %v2220_v19 }
 0x391   : > { %v1519_v23 = vpop.permute.xlu1 %1518  ;;  %6754 = vmatprep.subr.msk.bf16.mxu0 %vm2028_vm0, %v1850_v56  ;;  %v1517_v31 = vpop.permute.xlu0 %1516 }
 0x392   : > { %v1645_v52 = vmul.f32 0.125, %v1519_v23  ;;  %v1644_v21 = vmul.f32 0.125, %v1517_v31  ;;  %v8909_v10 = vpop.f32.mrf.mxu0  ;;  %v8911_v11 = vpop.f32.mrf.mxu1  ;;  %6926 = vrot.lane.b32.xlu1 %v6925_v42, %s7991_s14 }
 0x393   : > { %v1629_v36 = vmul.f32 0.125, %v8909_v10  ;;  %1524 = vrot.lane.b32.xlu0 %v8748_v22, %s7991_s14  ;;  %6492 = vmatpush3.bf16.xpose.msra.mxu1 %v2362_v27  ;;  %v1849_v22 = vpack.c.bf16 %v8867_v34, %v8863_v30 }
 0x394   : > { %v1692_v1 = vpack.c.bf16 %v1645_v52, %v1644_v21  ;;  %v8919_v8 = vpop.f32.mrf.mxu0  ;;  %v8921_v3 = vpop.f32.mrf.mxu1  ;;  %6763 = vmatprep.subr.msk.bf16.mxu1 %vm2028_vm0, %v1857_v6 }
 0x395   : > { %v1684_v26 = vpack.c.bf16 %v1629_v36, %v1628_v12  ;;  %v2214_v56 = vsel %vm2028_vm0, %v1849_v22, 0  ;;  %v6899_v12 = vunpack.i.h.bf16 %v8878_v48  ;;  %v6898_v36 = vunpack.i.l.bf16 %v8878_v48 }
 0x396   : > { %v8924_v43 = vpop.f32.mrf.mxu0  ;;  %v8926_v2 = vpop.f32.mrf.mxu1  ;;  %6505 = vmatprep.mubr.msk.bf16.mxu1 %vm2028_vm0, %v1692_v1  ;;  %1534 = vrot.lane.b32.xlu1 %v8765_v29, %s7991_s14  ;;  %v6920_v29 = vpack.i.bf16 %v8867_v34, %v8863_v30 }
 0x397   : > { %1528 = vrot.lane.b32.xlu0 %v8757_v38, %s7991_s14  ;;  %6473 = vmatprep.mubr.msk.bf16.mxu0 %vm2028_vm0, %v1684_v26  ;;  %v1856_v38 = vpack.c.bf16 %v6889_v9, %v6888_v35  ;;  %v1854_v9 = vpack.c.bf16 %v6899_v12, %v6898_v36  ;;  %v6909_v36 = vunpack.i.h.bf16 %v8889_v14 }
 0x398   : > { %v8939_v45 = vpop.f32.mrf.mxu0  ;;  %v8941_v13 = vpop.f32.mrf.mxu1  ;;  %6460 = vmatpush3.bf16.xpose.msra.mxu0 %v2217_v39 }
 0x399   : > { %6755 = vmatprep.subr.msk.bf16.mxu0 %vm2028_vm0, %v1849_v22  ;;  %v2356_v37 = vsel %vm2028_vm0, %v1856_v38, 0 }
 0x39a   : > { %v8946_v0 = vpop.f32.mrf.mxu0  ;;  %v8948_v49 = vpop.f32.mrf.mxu1  ;;  %1538 = vrot.lane.b32.xlu1 %v8771_v57, %s7991_s14  ;;  %v6894_v57 = vunpack.i.h.bf16 %v8880_v5 }
 0x39b   : > { %6921 = vrot.lane.b32.xlu0 %v6920_v29, %s7991_s14  ;;  %6494 = vmatpush3.bf16.xpose.msra.mxu1 %v2359_v18 }
 0x39c   : > { %v8954_v41 = vpop.f32.mrf.mxu0  ;;  %v8956_v17 = vpop.f32.mrf.mxu1  ;;  %6764 = vmatprep.subr.msk.bf16.mxu1 %vm2028_vm0, %v1856_v38  ;;  %v1855_v4 = vpack.c.bf16 %v6894_v57, %v6893_v60  ;;  %v6903_v57 = vunpack.i.l.bf16 %v8891_v58 }
 0x39e   : > { %v8959_v30 = vpop.f32.mrf.mxu0  ;;  %v8961_v34 = vpop.f32.mrf.mxu1  ;;  %v2353_v35 = vsel %vm2028_vm0, %v1855_v4, 0 }
 0x39f   : > { %1532 = vrot.lane.b32.xlu0 %v8763_v61, %s7991_s14 }
 0x3a0   : > { %v1266_v19 = vpop.f32.mrf.mxu0  ;;  %v8970_v42 = vpop.f32.mrf.mxu1  ;;  %6462 = vmatpush3.bf16.xpose.msra.mxu0 %v2214_v56 }
 0x3a1   : > { %6756 = vmatprep.subr.msk.bf16.mxu0 %vm2028_vm0, %v1848_v32 }
 0x3a2   : > { %v8973_v23 = vpop.f32.mrf.mxu0  ;;  %v8975_v31 = vpop.f32.mrf.mxu1 }
 0x3a3   : > { %1536 = vrot.lane.b32.xlu0 %v8768_v62, %s7991_s14  ;;  %6496 = vmatpush3.bf16.xpose.msra.mxu1 %v2356_v37  ;;  %v2211_v62 = vsel %vm2028_vm0, %v1848_v32, 0  ;;  %v6904_v32 = vunpack.i.h.bf16 %v8891_v58 }
 0x3a4   : > { %v1270_v61 = vpop.f32.mrf.mxu0  ;;  %v8980_v5 = vpop.f32.mrf.mxu1  ;;  %6765 = vmatprep.subr.msk.bf16.mxu1 %vm2028_vm0, %v1855_v4  ;;  %v6945_v4 = vpack.i.bf16 %v8919_v8, %v8904_v15 }
 0x3a5   : > { %v6930_v52 = vpack.i.bf16 %v1270_v61, %v1266_v19  ;;  %v1846_v60 = vpack.c.bf16 %v1270_v61, %v1266_v19  ;;  %v1853_v58 = vpack.c.bf16 %v6904_v32, %v6903_v57  ;;  %v2350_v19 = vsel %vm2028_vm0, %v1854_v9, 0  ;;  %v1523_v57 = vpop.permute.xlu1 %1522 }
 0x3a6   : > { %v8983_v21 = vpop.f32.mrf.mxu0  ;;  %v8985_v6 = vpop.f32.mrf.mxu1 }
 0x3a7   : > { %6931 = vrot.lane.b32.xlu1 %v6930_v52, %s7991_s14 }
 0x3a8   : > { %v1276_v27 = vpop.f32.mrf.mxu0  ;;  %v8991_v1 = vpop.f32.mrf.mxu1  ;;  %6464 = vmatpush3.bf16.xpose.msra.mxu0 %v2211_v62  ;;  %v6908_v62 = vunpack.i.l.bf16 %v8889_v14 }
 0x3aa   : > { %v8993_v26 = vpop.f32.mrf.mxu0  ;;  %v8995_v22 = vpop.f32.mrf.mxu1 }
 0x3ab   : > { %1542 = vrot.lane.b32.xlu1 %v8779_v28, %s7991_s14  ;;  %6498 = vmatpush3.bf16.xpose.msra.mxu1 %v2353_v35  ;;  %v6940_v35 = vpack.i.bf16 %v8954_v41, %v8939_v45 }
 0x3ac   : > { %v1280_v48 = vpop.f32.mrf.mxu0  ;;  %v9000_v39 = vpop.f32.mrf.mxu1  ;;  %6766 = vmatprep.subr.msk.bf16.mxu1 %vm2028_vm0, %v1854_v9  ;;  %v2205_v9 = vsel %vm2028_vm0, %v1846_v60, 0 }
 0x3ad   : > { %v6935_v29 = vpack.i.bf16 %v1280_v48, %v1276_v27  ;;  %v1847_v38 = vpack.c.bf16 %v1280_v48, %v1276_v27  ;;  %v1852_v48 = vpack.c.bf16 %v6909_v36, %v6908_v62  ;;  %v1631_v62 = vmul.f32 0.125, %v8946_v0 }
 0x3ae   : > { %v9003_v18 = vpop.f32.mrf.mxu1 }
 0x3af   : > { %11262 = vst [vmem:[#allocation24_spill] sm:$0xff] %v9003_v18  ;;  %1546 = vrot.lane.b32.xlu1 %v8785_v7, %s7991_s14  ;;  %6936 = vrot.lane.b32.xlu0 %v6935_v29, %s7991_s14  ;;  %v2208_v28 = vsel %vm2028_vm0, %v1847_v38, 0 }
 0x3b0   : > { %6757 = vmatprep.subr.msk.bf16.mxu0 %vm2028_vm0, %v1847_v38  ;;  %v9012_v56 = vpop.f32.mrf.mxu1 }
 0x3b1   : > { %11263 = vst [vmem:[#allocation25_spill] sm:$0xff] %v9012_v56  ;;  %6466 = vmatpush3.bf16.xpose.msra.mxu0 %v2208_v28  ;;  %v1521_v28 = vpop.permute.xlu0 %1520 }
 0x3b2   : > { %6758 = vmatprep.subr.msk.bf16.mxu0 %vm2028_vm0, %v1846_v60  ;;  %v9017_v37 = vpop.f32.mrf.mxu1 }
 0x3b3   : > { %11264 = vst [vmem:[#allocation26_spill] sm:$0xff] %v9017_v37  ;;  %v9023_v52 = vpack.c.bf16 %v9017_v37, %v9003_v18  ;;  %6946 = vrot.lane.b32.xlu1 %v6945_v4, %s7991_s14  ;;  %1540 = vrot.lane.b32.xlu0 %v8776_v51, %s7991_s14  ;;  %v1845_v51 = vpack.c.bf16 %v8954_v41, %v8939_v45 }
 0x3b4   : > { %6500 = vmatpush3.bf16.xpose.msra.mxu1 %v2350_v19  ;;  %v9029_v61 = vpop.f32.mrf.mxu1  ;;  %v1844_v41 = vpack.c.bf16 %v8919_v8, %v8904_v15  ;;  %v2003_v4 = vpack.c.bf16 %v8995_v22, %v8985_v6  ;;  %v2344_v15 = vsel %vm2028_vm0, %v1852_v48, 0  ;;  %v1647_v8 = vmul.f32 0.125, %v1523_v57 }
 0x3b5   : > { %11265 = vst [vmem:[#allocation27_spill] sm:$0xff] %v9023_v52  ;;  %11266 = vst [vmem:[#allocation28_spill] sm:$0xff] %v9029_v61  ;;  %6767 = vmatprep.subr.msk.bf16.mxu1 %vm2028_vm0, %v1853_v58  ;;  %v2202_v32 = vsel %vm2028_vm0, %v1845_v51, 0  ;;  %v1634_v57 = vmul.f32 0.125, %v8983_v21 }
 0x3b6   : > { %v9032_v12 = vpop.f32.mrf.mxu1  ;;  %v2199_v19 = vsel %vm2028_vm0, %v1844_v41, 0 }
 0x3b7   : > { %1550 = vrot.lane.b32.xlu1 %v8909_v10, %s7991_s14  ;;  %1544 = vrot.lane.b32.xlu0 %v8782_v25, %s7991_s14  ;;  %v2347_v25 = vsel %vm2028_vm0, %v1853_v58, 0  ;;  %v1646_v58 = vmul.f32 0.125, %v1521_v28  ;;  %v1636_v28 = vmul.f32 0.125, %v8853_v47 }
 0x3b8   : > { %v9042_v27 = vpop.f32.mrf.mxu1 }
 0x3b9   : > { %11267 = vst [vmem:[#allocation29_spill] sm:$0xff] %v9042_v27  ;;  %6468 = vmatpush3.bf16.xpose.msra.mxu0 %v2205_v9  ;;  %v1693_v36 = vpack.c.bf16 %v1647_v8, %v1646_v58  ;;  %v2002_v9 = vpack.c.bf16 %v9000_v39, %v8991_v1  ;;  %v1999_v8 = vpack.c.bf16 %v8948_v49, %v8926_v2  ;;  %v1638_v58 = vmul.f32 0.125, %v8861_v46 }
 0x3ba   : > { %6759 = vmatprep.subr.msk.bf16.mxu0 %vm2028_vm0, %v1845_v51  ;;  %v9048_v14 = vpop.f32.mrf.mxu1  ;;  %v1633_v51 = vmul.f32 0.125, %v8973_v23 }
 0x3bb   : > { %v9052_v10 = vpack.c.bf16 %v9048_v14, %v9032_v12  ;;  %1554 = vrot.lane.b32.xlu1 %v8946_v0, %s7991_s14  ;;  %6941 = vrot.lane.b32.xlu0 %v6940_v35, %s7991_s14  ;;  %v1630_v35 = vmul.f32 0.125, %v8924_v43 }
 0x3bc   : > { %6502 = vmatpush3.bf16.xpose.msra.mxu1 %v2347_v25  ;;  %v9058_v29 = vpop.f32.mrf.mxu1 }
 0x3bd   : > { %11268 = vst [vmem:[#allocation30_spill] sm:$0xff] %v9052_v10  ;;  %11269 = vst [vmem:[#allocation31_spill] sm:$0xff] %v9058_v29  ;;  %6768 = vmatprep.subr.msk.bf16.mxu1 %vm2028_vm0, %v1852_v48  ;;  %v1632_v48 = vmul.f32 0.125, %v8959_v30  ;;  %v1685_v0 = vpack.c.bf16 %v1631_v62, %v1630_v35 }
 0x3be   : > { %v9061_v45 = vpop.f32.mrf.mxu1 }
 0x3bf   : > { %1558 = vrot.lane.b32.xlu1 %v8973_v23, %s7991_s14  ;;  %1548 = vrot.lane.b32.xlu0 %v8893_v50, %s7991_s14  ;;  %v1686_v25 = vpack.c.bf16 %v1633_v51, %v1632_v48  ;;  %v2001_v23 = vpack.c.bf16 %v8975_v31, %v8961_v34 }
 0x3c0   : > { %v9069_v38 = vpop.f32.mrf.mxu1 }
 0x3c1   : > { %11270 = vst [vmem:[#allocation32_spill] sm:$0xff] %v9069_v38  ;;  %6470 = vmatpush3.bf16.xpose.msra.mxu0 %v2202_v32  ;;  %v2000_v32 = vpack.c.bf16 %v8980_v5, %v8970_v42 }
 0x3c2   : > { %6760 = vmatprep.subr.msk.bf16.mxu0 %vm2028_vm0, %v1844_v41  ;;  %v9073_v60 = vpop.f32.mrf.mxu1  ;;  %v1637_v41 = vmul.f32 0.125, %v8857_v33 }
 0x3c3   : > { %v9079_v50 = vpack.c.bf16 %v9073_v60, %v9061_v45  ;;  %1562 = vrot.lane.b32.xlu1 %v8993_v26, %s7991_s14  ;;  %1552 = vrot.lane.b32.xlu0 %v8924_v43, %s7991_s14  ;;  %v1635_v43 = vmul.f32 0.125, %v8993_v26  ;;  %v6955_v26 = vpack.i.bf16 %v9000_v39, %v8991_v1  ;;  %v1641_v39 = vmul.f32 0.125, %v8871_v54 }
 0x3c4   : > { %6504 = vmatpush3.bf16.xpose.msra.mxu1 %v2344_v15  ;;  %v6995_v35 = vpack.i.bf16 %v9073_v60, %v9061_v45 }
 0x3c5   : > { %11271 = vst [vmem:[#allocation33_spill] sm:$0xff] %v9079_v50  ;;  %6553 = vmatprep.subr.bf16.mxu1 %v2003_v4 }
 0x3c7   : > { %1566 = vrot.lane.b32.xlu1 %v8857_v33, %s7991_s14  ;;  %1556 = vrot.lane.b32.xlu0 %v8959_v30, %s7991_s14  ;;  %v9111_v30 = vpop.f32.mrf.mxu1  ;;  %v1688_v33 = vpack.c.bf16 %v1637_v41, %v1636_v28 }
 0x3c8   : > { %11272 = vst [vmem:[#allocation34_spill] sm:$0xff] %v9111_v30 }
 0x3c9   : > { %6472 = vmatpush3.bf16.xpose.msra.mxu0 %v2199_v19  ;;  %v6423_v15 = vpop.f32.mrf.mxu1  ;;  %v1998_v19 = vpack.c.bf16 %v8956_v17, %v8941_v13 }
 0x3cb   : > { %6506 = vmatmul.mubr.msk.bf16.vlgmr.msra.gmra.mxu1 %vm2028_vm0, %v1693_v36  ;;  %1570 = vrot.lane.b32.xlu1 %v8865_v24, %s7991_s14  ;;  %v9134_v1 = vpop.f32.mrf.mxu1 }
 0x3cc   : > { %1560 = vrot.lane.b32.xlu0 %v8983_v21, %s7991_s14  ;;  %6554 = vmatpush3.bf16.msra.mxu1 %v2003_v4  ;;  %v1687_v4 = vpack.c.bf16 %v1635_v43, %v1634_v57  ;;  %v1639_v21 = vmul.f32 0.125, %v8865_v24  ;;  %11273 = vst [vmem:[#allocation35_spill] sm:$0xff] %v9134_v1  ;;  %v6980_v24 = vpack.i.bf16 %v8911_v11, %v8895_v40 }
 0x3cd   : > { %6555 = vmatprep.subr.bf16.mxu1 %v2002_v9  ;;  %v6424_v36 = vpop.f32.mrf.mxu1 }
 0x3cf   : > { %1574 = vrot.lane.b32.xlu1 %v8871_v54, %s7991_s14  ;;  %v6950_v54 = vpack.i.bf16 %v8995_v22, %v8985_v6  ;;  %v1643_v6 = vmul.f32 0.125, %v8882_v20  ;;  %v6960_v22 = vpack.i.bf16 %v8975_v31, %v8961_v34  ;;  %v9159_v51 = vpop.f32.mrf.mxu1  ;;  %v6965_v34 = vpack.i.bf16 %v8980_v5, %v8970_v42 }
 0x3d0   : > { %1564 = vrot.lane.b32.xlu0 %v8853_v47, %s7991_s14  ;;  %6474 = vmatmul.mubr.msk.bf16.vlgmr.msra.gmra.mxu0 %vm2028_vm0, %v1685_v0  ;;  %v6970_v47 = vpack.i.bf16 %v8948_v49, %v8926_v2  ;;  %v1640_v2 = vmul.f32 0.125, %v8869_v63  ;;  %v1689_v49 = vpack.c.bf16 %v1639_v21, %v1638_v58  ;;  %11274 = vst [vmem:[#allocation36_spill] sm:$0xff] %v9159_v51 }
 0x3d1   : > { %6556 = vmatpush3.bf16.msra.mxu1 %v2002_v9  ;;  %6477 = vmatprep.mubr.msk.bf16.mxu0 %vm2028_vm0, %v1686_v25  ;;  %v7010_v9 = vpack.i.bf16 %v9159_v51, %v9134_v1  ;;  %v9171_v31 = vpack.c.bf16 %v6424_v36, %v6423_v15  ;;  %v6985_v42 = vpack.i.bf16 %v8921_v3, %v8906_v53 }
 0x3d2   : > { %6557 = vmatprep.subr.bf16.mxu1 %v2001_v23  ;;  %v1690_v62 = vpack.c.bf16 %v1641_v39, %v1640_v2  ;;  %v6990_v5 = vpack.i.bf16 %v6424_v36, %v6423_v15 }
 0x3d3   : > { %1578 = vrot.lane.b32.xlu1 %v8882_v20, %s7991_s14  ;;  %11275 = vst [vmem:[#allocation37_spill] sm:$0xff] %v9171_v31 }
 0x3d4   : > { %1568 = vrot.lane.b32.xlu0 %v8861_v46, %s7991_s14  ;;  %v1997_v46 = vpack.c.bf16 %v8911_v11, %v8895_v40  ;;  %v1642_v40 = vmul.f32 0.125, %v8875_v55  ;;  %v1996_v11 = vpack.c.bf16 %v8921_v3, %v8906_v53 }
 0x3d5   : > { %6558 = vmatpush3.bf16.msra.mxu1 %v2001_v23 }
 0x3d6   : > { %6559 = vmatprep.subr.bf16.mxu1 %v2000_v32  ;;  %v1691_v20 = vpack.c.bf16 %v1643_v6, %v1642_v40 }
 0x3d7   : > { %6956 = vrot.lane.b32.xlu1 %v6955_v26, %s7991_s14 }
 0x3d8   : > { %1572 = vrot.lane.b32.xlu0 %v8869_v63, %s7991_s14  ;;  %6478 = vmatmul.mubr.msk.bf16.gmra.mxu0 %vm2028_vm0, %v1687_v4  ;;  %v7000_v63 = vpack.i.bf16 %v9111_v30, %v9069_v38 }
 0x3d9   : > { %6560 = vmatpush3.bf16.msra.mxu1 %v2000_v32  ;;  %6481 = vmatprep.mubr.msk.bf16.mxu0 %vm2028_vm0, %v1688_v33 }
 0x3da   : > { %6561 = vmatprep.subr.bf16.mxu1 %v1999_v8 }
 0x3db   : > { %6971 = vrot.lane.b32.xlu1 %v6970_v47, %s7991_s14 }
 0x3dc   : > { %1576 = vrot.lane.b32.xlu0 %v8875_v55, %s7991_s14  ;;  %v6975_v55 = vpack.i.bf16 %v8956_v17, %v8941_v13  ;;  %v7005_v13 = vpack.i.bf16 %v9048_v14, %v9032_v12 }
 0x3dd   : > { %6562 = vmatpush3.bf16.msra.mxu1 %v1999_v8 }
 0x3de   : > { %6563 = vmatprep.subr.bf16.mxu1 %v1998_v19 }
 0x3df   : > { %6981 = vrot.lane.b32.xlu1 %v6980_v24, %s7991_s14 }
 0x3e0   : > { %6951 = vrot.lane.b32.xlu0 %v6950_v54, %s7991_s14  ;;  %6482 = vmatmul.mubr.msk.bf16.gmra.mxu0 %vm2028_vm0, %v1689_v49 }
 0x3e1   : > { %6564 = vmatpush3.bf16.msra.mxu1 %v1998_v19  ;;  %6485 = vmatprep.mubr.msk.bf16.mxu0 %vm2028_vm0, %v1690_v62 }
 0x3e2   : > { %6565 = vmatprep.subr.bf16.mxu1 %v1997_v46 }
 0x3e3   : > { %7001 = vrot.lane.b32.xlu1 %v7000_v63, %s7991_s14 }
 0x3e4   : > { %6961 = vrot.lane.b32.xlu0 %v6960_v22, %s7991_s14 }
 0x3e5   : > { %6566 = vmatpush3.bf16.msra.mxu1 %v1997_v46 }
 0x3e6   : > { %6567 = vmatprep.subr.bf16.mxu1 %v1996_v11 }
 0x3e7   : > { %7011 = vrot.lane.b32.xlu1 %v7010_v9, %s7991_s14 }
 0x3e8   : > { %6966 = vrot.lane.b32.xlu0 %v6965_v34, %s7991_s14  ;;  %6486 = vmatmul.mubr.msk.bf16.gmra.mxu0 %vm2028_vm0, %v1691_v20 }
 0x3e9   : > { %6568 = vmatpush3.bf16.msra.mxu1 %v1996_v11 }
 0x3ea   : > { %6585 = vmatprep.subr.bf16.mxu1 %v9171_v31 }
 0x3ec   : > { %6976 = vrot.lane.b32.xlu0 %v6975_v55, %s7991_s14 }
 0x3f0   : > { %6986 = vrot.lane.b32.xlu0 %v6985_v42, %s7991_s14 }
 0x3f4   : > { %6991 = vrot.lane.b32.xlu0 %v6990_v5, %s7991_s14 }
 0x3f8   : > { %6996 = vrot.lane.b32.xlu0 %v6995_v35, %s7991_s14  ;;  %v6917_v48 = vpop.permute.xlu1 %6916 }
 0x3f9   : > { %v6919_v53 = vunpack.i.h.bf16 %v6917_v48  ;;  %v6918_v3 = vunpack.i.l.bf16 %v6917_v48 }
 0x3fb   : > { %v1866_v57 = vpack.c.bf16 %v6919_v53, %v6918_v3 }
 0x3fc   : > { %7006 = vrot.lane.b32.xlu0 %v7005_v13, %s7991_s14  ;;  %v1527_v17 = vpop.permute.xlu1 %1526 }
 0x3fd   : > { %v1649_v28 = vmul.f32 0.125, %v1527_v17  ;;  %v2507_v58 = vsel %vm2028_vm0, %v1866_v57, 0 }
 0x400   : > { %v1531_v0 = vpop.permute.xlu1 %1530 }
 0x401   : > { %v6912_v25 = vpop.permute.xlu0 %6911  ;;  %v1651_v4 = vmul.f32 0.125, %v1531_v0 }
 0x402   : > { %v6914_v23 = vunpack.i.h.bf16 %v6912_v25  ;;  %v6913_v43 = vunpack.i.l.bf16 %v6912_v25 }
 0x404   : > { %v1867_v41 = vpack.c.bf16 %v6914_v23, %v6913_v43  ;;  %v6927_v26 = vpop.permute.xlu1 %6926 }
 0x405   : > { %v1525_v32 = vpop.permute.xlu0 %1524  ;;  %v6929_v24 = vunpack.i.h.bf16 %v6927_v26  ;;  %v6928_v49 = vunpack.i.l.bf16 %v6927_v26 }
 0x406   : > { %v1648_v45 = vmul.f32 0.125, %v1525_v32  ;;  %6769 = vmatprep.subr.msk.bf16.mxu0 %vm2028_vm0, %v1867_v41  ;;  %v2510_v60 = vsel %vm2028_vm0, %v1867_v41, 0 }
 0x407   : > { %6522 = vmatpush3.bf16.xpose.msra.mxu0 %v2510_v60  ;;  %v1864_v22 = vpack.c.bf16 %v6929_v24, %v6928_v49 }
 0x408   : > { %v1694_v12 = vpack.c.bf16 %v1649_v28, %v1648_v45  ;;  %6770 = vmatprep.subr.msk.bf16.mxu0 %vm2028_vm0, %v1866_v57  ;;  %v1535_v8 = vpop.permute.xlu1 %1534 }
 0x409   : > { %v1529_v14 = vpop.permute.xlu0 %1528  ;;  %v1653_v54 = vmul.f32 0.125, %v1535_v8  ;;  %v2501_v35 = vsel %vm2028_vm0, %v1864_v22, 0 }
 0x40a   : > { %v1650_v15 = vmul.f32 0.125, %v1529_v14  ;;  %6509 = vmatprep.mubr.msk.bf16.mxu1 %vm2028_vm0, %v1694_v12 }
 0x40c   : > { %v1695_v33 = vpack.c.bf16 %v1651_v4, %v1650_v15  ;;  %v1539_v62 = vpop.permute.xlu1 %1538 }
 0x40d   : > { %v6922_v47 = vpop.permute.xlu0 %6921  ;;  %v1655_v40 = vmul.f32 0.125, %v1539_v62 }
 0x40e   : > { %v6924_v21 = vunpack.i.h.bf16 %v6922_v47  ;;  %v6923_v39 = vunpack.i.l.bf16 %v6922_v47  ;;  %6510 = vmatmul.mubr.msk.bf16.gmra.mxu1 %vm2028_vm0, %v1695_v33 }
 0x40f   : > { %6524 = vmatpush3.bf16.xpose.msra.mxu0 %v2507_v58 }
 0x410   : > { %v1865_v19 = vpack.c.bf16 %v6924_v21, %v6923_v39 }
 0x411   : > { %v1533_v2 = vpop.permute.xlu0 %1532 }
 0x412   : > { %v1652_v36 = vmul.f32 0.125, %v1533_v2  ;;  %6771 = vmatprep.subr.msk.bf16.mxu0 %vm2028_vm0, %v1865_v19  ;;  %v2504_v20 = vsel %vm2028_vm0, %v1865_v19, 0 }
 0x414   : > { %v1696_v46 = vpack.c.bf16 %v1653_v54, %v1652_v36  ;;  %v9196_v63 = vpop.f32.mrf.mxu1 }
 0x415   : > { %v1537_v6 = vpop.permute.xlu0 %1536 }
 0x416   : > { %v9198_v11 = vpop.f32.mrf.mxu1  ;;  %v1654_v9 = vmul.f32 0.125, %v1537_v6  ;;  %6513 = vmatprep.mubr.msk.bf16.mxu1 %vm2028_vm0, %v1696_v46 }
 0x417   : > { %6526 = vmatpush3.bf16.xpose.msra.mxu0 %v2504_v20 }
 0x418   : > { %v1697_v34 = vpack.c.bf16 %v1655_v40, %v1654_v9  ;;  %v9202_v55 = vpop.f32.mrf.mxu1  ;;  %6772 = vmatprep.subr.msk.bf16.mxu0 %vm2028_vm0, %v1864_v22 }
 0x419   : > { %2615 = vmax.xlane.f32.xlu1 %v9202_v55  ;;  %v6932_v42 = vpop.permute.xlu1 %6931 }
 0x41a   : > { %6514 = vmatmul.mubr.msk.bf16.gmra.mxu1 %vm2028_vm0, %v1697_v34  ;;  %v6934_v17 = vunpack.i.h.bf16 %v6932_v42  ;;  %v6933_v0 = vunpack.i.l.bf16 %v6932_v42 }
 0x41b   : > { %2613 = vmax.xlane.f32.xlu0 %v9196_v63 }
 0x41c   : > { %v1862_v41 = vpack.c.bf16 %v6934_v17, %v6933_v0 }
 0x41d   : > { %v1543_v5 = vpop.permute.xlu1 %1542 }
 0x41e   : > { %v1657_v32 = vmul.f32 0.125, %v1543_v5  ;;  %v2495_v21 = vsel %vm2028_vm0, %v1862_v41, 0 }
 0x41f   : > { %6528 = vmatpush3.bf16.xpose.msra.mxu0 %v2501_v35 }
 0x421   : > { %v1547_v48 = vpop.permute.xlu1 %1546  ;;  %v6937_v13 = vpop.permute.xlu0 %6936 }
 0x422   : > { %v6939_v25 = vunpack.i.h.bf16 %v6937_v13  ;;  %v6938_v53 = vunpack.i.l.bf16 %v6937_v13  ;;  %v1659_v12 = vmul.f32 0.125, %v1547_v48 }
 0x424   : > { %v1863_v3 = vpack.c.bf16 %v6939_v25, %v6938_v53 }
 0x425   : > { %v6947_v23 = vpop.permute.xlu1 %6946  ;;  %v1541_v43 = vpop.permute.xlu0 %1540 }
 0x426   : > { %v1656_v57 = vmul.f32 0.125, %v1541_v43  ;;  %6773 = vmatprep.subr.msk.bf16.mxu0 %vm2028_vm0, %v1863_v3  ;;  %v2498_v28 = vsel %vm2028_vm0, %v1863_v3, 0  ;;  %v6949_v2 = vunpack.i.h.bf16 %v6947_v23  ;;  %v6948_v24 = vunpack.i.l.bf16 %v6947_v23 }
 0x427   : > { %6530 = vmatpush3.bf16.xpose.msra.mxu0 %v2498_v28 }
 0x428   : > { %v1698_v45 = vpack.c.bf16 %v1657_v32, %v1656_v57  ;;  %6774 = vmatprep.subr.msk.bf16.mxu0 %vm2028_vm0, %v1862_v41  ;;  %v1860_v6 = vpack.c.bf16 %v6949_v2, %v6948_v24 }
 0x429   : > { %v1551_v60 = vpop.permute.xlu1 %1550  ;;  %v1545_v26 = vpop.permute.xlu0 %1544 }
 0x42a   : > { %v1658_v14 = vmul.f32 0.125, %v1545_v26  ;;  %6517 = vmatprep.mubr.msk.bf16.mxu1 %vm2028_vm0, %v1698_v45  ;;  %v1661_v49 = vmul.f32 0.125, %v1551_v60  ;;  %v2489_v42 = vsel %vm2028_vm0, %v1860_v6, 0 }
 0x42c   : > { %v1699_v4 = vpack.c.bf16 %v1659_v12, %v1658_v14 }
 0x42d   : > { %v1555_v15 = vpop.permute.xlu1 %1554  ;;  %v6942_v33 = vpop.permute.xlu0 %6941 }
 0x42e   : > { %v6944_v8 = vunpack.i.h.bf16 %v6942_v33  ;;  %v6943_v47 = vunpack.i.l.bf16 %v6942_v33  ;;  %6518 = vmatmul.mubr.msk.bf16.gmra.mxu1 %vm2028_vm0, %v1699_v4  ;;  %v1663_v48 = vmul.f32 0.125, %v1555_v15 }
 0x42f   : > { %6532 = vmatpush3.bf16.xpose.msra.mxu0 %v2495_v21 }
 0x430   : > { %v1861_v39 = vpack.c.bf16 %v6944_v8, %v6943_v47 }
 0x431   : > { %v1559_v58 = vpop.permute.xlu1 %1558  ;;  %v1549_v19 = vpop.permute.xlu0 %1548 }
 0x432   : > { %v1660_v54 = vmul.f32 0.125, %v1549_v19  ;;  %6775 = vmatprep.subr.msk.bf16.mxu0 %vm2028_vm0, %v1861_v39  ;;  %v2492_v22 = vsel %vm2028_vm0, %v1861_v39, 0  ;;  %v1665_v17 = vmul.f32 0.125, %v1559_v58 }
 0x434   : > { %v1700_v36 = vpack.c.bf16 %v1661_v49, %v1660_v54 }
 0x435   : > { %v1563_v62 = vpop.permute.xlu1 %1562  ;;  %v1553_v46 = vpop.permute.xlu0 %1552 }
 0x436   : > { %6537 = vmatprep.mubr.msk.bf16.mxu0 %vm2028_vm0, %v1700_v36  ;;  %v1662_v5 = vmul.f32 0.125, %v1553_v46  ;;  %v1667_v41 = vmul.f32 0.125, %v1563_v62 }
 0x437   : > { %6534 = vmatpush3.bf16.xpose.msra.mxu0 %v2492_v22 }
 0x438   : > { %6776 = vmatprep.subr.msk.bf16.mxu0 %vm2028_vm0, %v1860_v6  ;;  %v1701_v0 = vpack.c.bf16 %v1663_v48, %v1662_v5 }
 0x439   : > { %v1567_v40 = vpop.permute.xlu1 %1566  ;;  %v1557_v9 = vpop.permute.xlu0 %1556 }
 0x43a   : > { %v1664_v35 = vmul.f32 0.125, %v1557_v9  ;;  %v1669_v28 = vmul.f32 0.125, %v1567_v40 }
 0x43c   : > { %v1702_v53 = vpack.c.bf16 %v1665_v17, %v1664_v35 }
 0x43d   : > { %v1571_v20 = vpop.permute.xlu1 %1570 }
 0x43e   : > { %v1561_v34 = vpop.permute.xlu0 %1560  ;;  %v1671_v15 = vmul.f32 0.125, %v1571_v20 }
 0x43f   : > { %6536 = vmatpush3.bf16.xpose.msra.mxu0 %v2489_v42  ;;  %v1666_v23 = vmul.f32 0.125, %v1561_v34 }
 0x441   : > { %v1575_v25 = vpop.permute.xlu1 %1574  ;;  %v1703_v45 = vpack.c.bf16 %v1667_v41, %v1666_v23 }
 0x442   : > { %v1565_v13 = vpop.permute.xlu0 %1564  ;;  %v1673_v33 = vmul.f32 0.125, %v1575_v25 }
 0x443   : > { %v1668_v43 = vmul.f32 0.125, %v1565_v13 }
 0x445   : > { %v1579_v32 = vpop.permute.xlu1 %1578  ;;  %v1704_v60 = vpack.c.bf16 %v1669_v28, %v1668_v43 }
 0x446   : > { %v1569_v3 = vpop.permute.xlu0 %1568  ;;  %6538 = vmatmul.mubr.msk.bf16.vlgmr.msra.gmra.mxu0 %vm2028_vm0, %v1701_v0  ;;  %v1675_v6 = vmul.f32 0.125, %v1579_v32 }
 0x447   : > { %6541 = vmatprep.mubr.msk.bf16.mxu0 %vm2028_vm0, %v1702_v53  ;;  %v1670_v12 = vmul.f32 0.125, %v1569_v3 }
 0x449   : > { %v6957_v14 = vpop.permute.xlu1 %6956  ;;  %v1705_v19 = vpack.c.bf16 %v1671_v15, %v1670_v12  ;;  %v9232_v12 = vpop.f32.mrf.mxu1 }
 0x44a   : > { %v1573_v57 = vpop.permute.xlu0 %1572  ;;  %v6959_v47 = vunpack.i.h.bf16 %v6957_v14  ;;  %v6958_v21 = vunpack.i.l.bf16 %v6957_v14 }
 0x44b   : > { %v1672_v4 = vmul.f32 0.125, %v1573_v57 }
 0x44c   : > { %v2018_v62 = vpack.c.bf16 %v6959_v47, %v6958_v21 }
 0x44d   : > { %v1706_v2 = vpack.c.bf16 %v1673_v33, %v1672_v4  ;;  %v6972_v34 = vpop.permute.xlu1 %6971  ;;  %v9238_v4 = vpop.f32.mrf.mxu1 }
 0x44e   : > { %v1577_v26 = vpop.permute.xlu0 %1576  ;;  %6542 = vmatmul.mubr.msk.bf16.gmra.mxu0 %vm2028_vm0, %v1703_v45  ;;  %v6974_v5 = vunpack.i.h.bf16 %v6972_v34  ;;  %v6973_v35 = vunpack.i.l.bf16 %v6972_v34 }
 0x44f   : > { %6545 = vmatprep.mubr.msk.bf16.mxu0 %vm2028_vm0, %v1704_v60  ;;  %v1674_v46 = vmul.f32 0.125, %v1577_v26  ;;  %v9244_v33 = vpop.f32.mrf.mxu1 }
 0x450   : > { %v2015_v25 = vpack.c.bf16 %v6974_v5, %v6973_v35 }
 0x451   : > { %v1707_v42 = vpack.c.bf16 %v1675_v6, %v1674_v46  ;;  %v6982_v53 = vpop.permute.xlu1 %6981  ;;  %v9250_v47 = vpop.f32.mrf.mxu1 }
 0x452   : > { %v6952_v8 = vpop.permute.xlu0 %6951  ;;  %v6984_v3 = vunpack.i.h.bf16 %v6982_v53  ;;  %v6983_v23 = vunpack.i.l.bf16 %v6982_v53 }
 0x453   : > { %v6954_v39 = vunpack.i.h.bf16 %v6952_v8  ;;  %v6953_v58 = vunpack.i.l.bf16 %v6952_v8 }
 0x454   : > { %v2013_v28 = vpack.c.bf16 %v6984_v3, %v6983_v23 }
 0x455   : > { %v2019_v24 = vpack.c.bf16 %v6954_v39, %v6953_v58  ;;  %v9256_v39 = vpop.f32.mrf.mxu1 }
 0x456   : > { %v6962_v49 = vpop.permute.xlu0 %6961  ;;  %6546 = vmatmul.mubr.msk.bf16.gmra.mxu0 %vm2028_vm0, %v1705_v19 }
 0x457   : > { %v6964_v54 = vunpack.i.h.bf16 %v6962_v49  ;;  %v6963_v36 = vunpack.i.l.bf16 %v6962_v49  ;;  %6617 = vmatprep.subr.bf16.mxu0 %v2019_v24  ;;  %6549 = vmatprep.mubr.msk.bf16.mxu0 %vm2028_vm0, %v1706_v2  ;;  %v9262_v19 = vpop.f32.mrf.mxu1 }
 0x458   : > { %6618 = vmatpush3.bf16.msra.mxu0 %v2019_v24 }
 0x459   : > { %6619 = vmatprep.subr.bf16.mxu0 %v2018_v62  ;;  %v2017_v20 = vpack.c.bf16 %v6964_v54, %v6963_v36  ;;  %v9268_v24 = vpop.f32.mrf.mxu1 }
 0x45a   : > { %v6967_v22 = vpop.permute.xlu0 %6966 }
 0x45b   : > { %v6969_v40 = vunpack.i.h.bf16 %v6967_v22  ;;  %v6968_v9 = vunpack.i.l.bf16 %v6967_v22  ;;  %v9274_v54 = vpop.f32.mrf.mxu1 }
 0x45c   : > { %6620 = vmatpush3.bf16.msra.mxu0 %v2018_v62 }
 0x45d   : > { %6621 = vmatprep.subr.bf16.mxu0 %v2017_v20  ;;  %v2016_v48 = vpack.c.bf16 %v6969_v40, %v6968_v9  ;;  %v9280_v62 = vpop.f32.mrf.mxu1 }
 0x45e   : > { %6550 = vmatmul.mubr.msk.bf16.gmra.mxu0 %vm2028_vm0, %v1707_v42  ;;  %v6977_v13 = vpop.permute.xlu0 %6976 }
 0x45f   : > { %v6979_v17 = vunpack.i.h.bf16 %v6977_v13  ;;  %v6978_v0 = vunpack.i.l.bf16 %v6977_v13  ;;  %v9286_v6 = vpop.f32.mrf.mxu1 }
 0x460   : > { %6622 = vmatpush3.bf16.msra.mxu0 %v2017_v20 }
 0x461   : > { %6623 = vmatprep.subr.bf16.mxu0 %v2016_v48  ;;  %v2014_v43 = vpack.c.bf16 %v6979_v17, %v6978_v0  ;;  %v9292_v40 = vpop.f32.mrf.mxu1 }
 0x462   : > { %v6987_v41 = vpop.permute.xlu0 %6986 }
 0x463   : > { %v6989_v32 = vunpack.i.h.bf16 %v6987_v41  ;;  %v6988_v57 = vunpack.i.l.bf16 %v6987_v41  ;;  %v9298_v20 = vpop.f32.mrf.mxu1 }
 0x464   : > { %6624 = vmatpush3.bf16.msra.mxu0 %v2016_v48 }
 0x465   : > { %6625 = vmatprep.subr.bf16.mxu0 %v2015_v25  ;;  %v2012_v45 = vpack.c.bf16 %v6989_v32, %v6988_v57  ;;  %v9308_v5 = vpop.f32.mrf.mxu1 }
 0x466   : > { %v9323_v0 = vpop.permute.xlu0 %6991 }
 0x467   : > { %11276 = vst [vmem:[#allocation38_spill] sm:$0xff] %v9323_v0 }
 0x468   : > { %6626 = vmatpush3.bf16.msra.mxu0 %v2015_v25 }
 0x469   : > { %6627 = vmatprep.subr.bf16.mxu0 %v2014_v43 }
 0x46a   : > { %v9336_v41 = vpop.permute.xlu0 %6996 }
 0x46b   : > { %11278 = vst [vmem:[#allocation40_spill] sm:$0xff] %v9336_v41 }
 0x46c   : > { %6628 = vmatpush3.bf16.msra.mxu0 %v2014_v43 }
 0x46d   : > { %6629 = vmatprep.subr.bf16.mxu0 %v2013_v28 }
 0x46e   : > { %v9350_v16 = vpop.permute.xlu0 %7006 }
 0x46f   : > { %11282 = vst [vmem:[#allocation44_spill] sm:$0xff] %v9350_v16 }
 0x470   : > { %6630 = vmatpush3.bf16.msra.mxu0 %v2013_v28 }
 0x471   : > { %6631 = vmatprep.subr.bf16.mxu0 %v2012_v45 }
 0x474   : > { %6632 = vmatpush3.bf16.msra.mxu0 %v2012_v45  ;;  %v9346_v45 = vpop.permute.xlu1 %7001 }
 0x475   : > { %11281 = vst [vmem:[#allocation43_spill] sm:$0xff] %v9346_v45 }
 0x478   : > { %v9358_v59 = vpop.permute.xlu1 %7011 }
 0x479   : > { %11285 = vst [vmem:[#allocation47_spill] sm:$0xff] %v9358_v59 }
 0x48b   : > { %v9310_v35 = vpop.f32.mrf.mxu1 }
 0x48d   : > { %v9314_v48 = vpop.f32.mrf.mxu1 }
 0x48f   : > { %v9320_v17 = vpop.f32.mrf.mxu1 }
 0x490   : > { %v9227_v60 = vpop.f32.mrf.mxu0 }
 0x491   : > { %2645 = vmax.xlane.f32.xlu0 %v9227_v60  ;;  %v9328_v53 = vpop.f32.mrf.mxu1 }
 0x492   : > { %v9230_v26 = vpop.f32.mrf.mxu0 }
 0x494   : > { %v9234_v14 = vpop.f32.mrf.mxu0 }
 0x495   : > { %2609 = vmax.xlane.f32.xlu0 %v9198_v11  ;;  %2647 = vmax.xlane.f32.xlu1 %v9234_v14 }
 0x496   : > { %v9240_v15 = vpop.f32.mrf.mxu0 }
 0x498   : > { %v9246_v8 = vpop.f32.mrf.mxu0 }
 0x499   : > { %2641 = vmax.xlane.f32.xlu0 %v9230_v26  ;;  %2611 = vmax.xlane.f32.xlu1 %v9232_v12 }
 0x49a   : > { %v9252_v21 = vpop.f32.mrf.mxu0 }
 0x49c   : > { %v9258_v58 = vpop.f32.mrf.mxu0 }
 0x49d   : > { %2621 = vmax.xlane.f32.xlu0 %v9238_v4  ;;  %2643 = vmax.xlane.f32.xlu1 %v9240_v15 }
 0x49e   : > { %v9264_v2 = vpop.f32.mrf.mxu0 }
 0x4a0   : > { %v9270_v49 = vpop.f32.mrf.mxu0 }
 0x4a1   : > { %2623 = vmax.xlane.f32.xlu1 %v9250_v47  ;;  %2653 = vmax.xlane.f32.xlu0 %v9246_v8 }
 0x4a2   : > { %v9276_v36 = vpop.f32.mrf.mxu0  ;;  %v9364_v45 = vpop.xlane.xlu1 %2615 }
 0x4a4   : > { %v9282_v46 = vpop.f32.mrf.mxu0  ;;  %v2614_v41 = vpop.xlane.xlu0 %2613 }
 0x4a5   : > { %2617 = vmax.xlane.f32.xlu0 %v9244_v33  ;;  %2655 = vmax.xlane.f32.xlu1 %v9258_v58 }
 0x4a6   : > { %v9288_v22 = vpop.f32.mrf.mxu0 }
 0x4a8   : > { %v9294_v9 = vpop.f32.mrf.mxu0 }
 0x4a9   : > { %2649 = vmax.xlane.f32.xlu0 %v9252_v21  ;;  %2619 = vmax.xlane.f32.xlu1 %v9256_v39 }
 0x4aa   : > { %v9300_v34 = vpop.f32.mrf.mxu0 }
 0x4ac   : > { %v9304_v42 = vpop.f32.mrf.mxu0 }
 0x4ad   : > { %2629 = vmax.xlane.f32.xlu0 %v9262_v19  ;;  %2651 = vmax.xlane.f32.xlu1 %v9264_v2 }
 0x4ae   : > { %v9316_v13 = vpop.f32.mrf.mxu0 }
 0x4b1   : > { %2631 = vmax.xlane.f32.xlu1 %v9274_v54  ;;  %2661 = vmax.xlane.f32.xlu0 %v9270_v49 }
 0x4b5   : > { %2625 = vmax.xlane.f32.xlu0 %v9268_v24  ;;  %2663 = vmax.xlane.f32.xlu1 %v9282_v46 }
 0x4b9   : > { %2657 = vmax.xlane.f32.xlu0 %v9276_v36  ;;  %2627 = vmax.xlane.f32.xlu1 %v9280_v62 }
 0x4bd   : > { %2637 = vmax.xlane.f32.xlu0 %v9286_v6  ;;  %2659 = vmax.xlane.f32.xlu1 %v9288_v22 }
 0x4c1   : > { %2639 = vmax.xlane.f32.xlu1 %v9298_v20  ;;  %2669 = vmax.xlane.f32.xlu0 %v9294_v9 }
 0x4c5   : > { %2633 = vmax.xlane.f32.xlu0 %v9292_v40  ;;  %2671 = vmax.xlane.f32.xlu1 %v9304_v42 }
 0x4c9   : > { %2665 = vmax.xlane.f32.xlu0 %v9300_v34  ;;  %2635 = vmax.xlane.f32.xlu1 %v9308_v5 }
 0x4cd   : > { %2667 = vmax.xlane.f32.xlu1 %v9316_v13  ;;  %2677 = vmax.xlane.f32.xlu0 %v9310_v35 }
 0x4ce   : > { %v9332_v23 = vpop.f32.mrf.mxu1 }
 0x4cf   : > { %11277 = vst [vmem:[#allocation39_spill] sm:$0xff] %v9332_v23 }
 0x4d0   : > { %v9342_v57 = vpop.f32.mrf.mxu1 }
 0x4d1   : > { %2679 = vmax.xlane.f32.xlu1 %v9320_v17  ;;  %11279 = vst [vmem:[#allocation41_spill] sm:$0xff] %v9342_v57 }
 0x4d2   : > { %v9352_v7 = vpop.f32.mrf.mxu1 }
 0x4d3   : > { %11283 = vst [vmem:[#allocation45_spill] sm:$0xff] %v9352_v7 }
 0x4d4   : > { %v9366_v16 = vpop.f32.mrf.mxu1 }
 0x4d5   : > { %11287 = vst [vmem:[#allocation49_spill] sm:$0xff] %v9366_v16 }
 0x4da   : > { %v9376_v10 = vpop.f32.mrf.mxu1 }
 0x4db   : > { %11289 = vst [vmem:[#allocation51_spill] sm:$0xff] %v9376_v10 }
 0x4dc   : > { %v9384_v31 = vpop.f32.mrf.mxu1 }
 0x4dd   : > { %11291 = vst [vmem:[#allocation53_spill] sm:$0xff] %v9384_v31 }
 0x4de   : > { %v9394_v37 = vpop.f32.mrf.mxu1 }
 0x4df   : > { %11293 = vst [vmem:[#allocation55_spill] sm:$0xff] %v9394_v37 }
 0x506   : > { %v9325_v25 = vpop.f32.mrf.mxu0 }
 0x507   : > { %2709 = vmax.xlane.f32.xlu0 %v9325_v25 }
 0x508   : > { %v9330_v3 = vpop.f32.mrf.mxu0 }
 0x50a   : > { %v9334_v43 = vpop.f32.mrf.mxu0 }
 0x50b   : > { %2673 = vmax.xlane.f32.xlu0 %v9314_v48  ;;  %2711 = vmax.xlane.f32.xlu1 %v9334_v43 }
 0x50c   : > { %v9340_v32 = vpop.f32.mrf.mxu0 }
 0x50e   : > { %v9344_v28 = vpop.f32.mrf.mxu0 }
 0x50f   : > { %11280 = vst [vmem:[#allocation42_spill] sm:$0xff] %v9344_v28  ;;  %2705 = vmax.xlane.f32.xlu0 %v9330_v3  ;;  %2707 = vmax.xlane.f32.xlu1 %v9340_v32 }
 0x510   : > { %v9354_v44 = vpop.f32.mrf.mxu0 }
 0x511   : > { %11284 = vst [vmem:[#allocation46_spill] sm:$0xff] %v9354_v44 }
 0x512   : > { %v9360_v0 = vpop.f32.mrf.mxu0 }
 0x513   : > { %2675 = vmax.xlane.f32.xlu0 %v9328_v53  ;;  %2687 = vmax.xlane.f32.xlu1 %v9352_v7  ;;  %11286 = vst [vmem:[#allocation48_spill] sm:$0xff] %v9360_v0 }
 0x514   : > { %v9370_v56 = vpop.f32.mrf.mxu0 }
 0x515   : > { %11288 = vst [vmem:[#allocation50_spill] sm:$0xff] %v9370_v56 }
 0x516   : > { %v9378_v30 = vpop.f32.mrf.mxu0 }
 0x517   : > { %2685 = vmax.xlane.f32.xlu0 %v9332_v23  ;;  %2719 = vmax.xlane.f32.xlu1 %v9360_v0  ;;  %11290 = vst [vmem:[#allocation52_spill] sm:$0xff] %v9378_v30 }
 0x518   : > { %v9386_v51 = vpop.f32.mrf.mxu0 }
 0x519   : > { %11292 = vst [vmem:[#allocation54_spill] sm:$0xff] %v9386_v51 }
 0x51a   : > { %v2646_v61 = vpop.xlane.xlu0 %2645  ;;  %v9396_v29 = vpop.f32.mrf.mxu0 }
 0x51b   : > { %2717 = vmax.xlane.f32.xlu0 %v9344_v28  ;;  %2683 = vmax.xlane.f32.xlu1 %v9366_v16  ;;  %11294 = vst [vmem:[#allocation56_spill] sm:$0xff] %v9396_v29  ;;  %v2755_v16 = vsub.f32 %v9227_v60, %v2646_v61 }
 0x51d   : > { %v2837_v7 = vmul.f32 1.442695, %v2755_v16 }
 0x51e   : > { %v9372_v52 = vpop.xlane.xlu1 %2647  ;;  %v2610_v59 = vpop.xlane.xlu0 %2609 }
 0x51f   : > { %2681 = vmax.xlane.f32.xlu0 %v9342_v57  ;;  %2715 = vmax.xlane.f32.xlu1 %v9370_v56  ;;  %v9403_v56 = vpop.f32.mrf.mxu1 }
 0x520   : > { %11295 = vst [vmem:[#allocation57_spill] sm:$0xff] %v9403_v56 }
 0x522   : > { %v9380_v38 = vpop.xlane.xlu1 %2611  ;;  %v2642_v50 = vpop.xlane.xlu0 %2641 }
 0x523   : > { %2713 = vmax.xlane.f32.xlu0 %v9354_v44  ;;  %2725 = vmax.xlane.f32.xlu1 %v9378_v30  ;;  %v2739_v30 = vsub.f32 %v9196_v63, %v2614_v41  ;;  %v9405_v44 = vpop.f32.mrf.mxu0 }
 0x525   : > { %v2805_v28 = vmul.f32 1.442695, %v2739_v30 }
 0x526   : > { %v9388_v1 = vpop.xlane.xlu1 %2643  ;;  %v9390_v18 = vpop.xlane.xlu0 %2621 }
 0x527   : > { %2721 = vmax.xlane.f32.xlu1 %v9386_v51  ;;  %2693 = vmax.xlane.f32.xlu0 %v9376_v10  ;;  %7254 = vpow2.f32 %v2805_v28 }
 0x528   : > { %7256 = vpow2.f32 %v2837_v7  ;;  %v2740_v7 = vsub.f32 %v9202_v55, %v9364_v45  ;;  %v2756_v55 = vsub.f32 %v9234_v14, %v9372_v52  ;;  %v2738_v52 = vsub.f32 %v9232_v12, %v9380_v38 }
 0x529   : > { %v2754_v38 = vsub.f32 %v9240_v15, %v9388_v1  ;;  %v2743_v1 = vsub.f32 %v9238_v4, %v9390_v18 }
 0x52a   : > { %v9398_v27 = vpop.xlane.xlu1 %2623  ;;  %v2654_v0 = vpop.xlane.xlu0 %2653 }
 0x52b   : > { %2689 = vmax.xlane.f32.xlu0 %v9384_v31  ;;  %2695 = vmax.xlane.f32.xlu1 %v9394_v37  ;;  %v9414_v31 = vpop.f32.mrf.mxu1  ;;  %v9416_v37 = vpop.f32.mrf.mxu0  ;;  %v2759_v63 = vsub.f32 %v9246_v8, %v2654_v0 }
 0x52c   : > { %11296 = vst [vmem:[#allocation58_spill] sm:$0xff] %v9416_v37 }
 0x52d   : > { %v9426_v61 = vpop.f32.mrf.mxu0  ;;  %v2845_v30 = vmul.f32 1.442695, %v2759_v63 }
 0x52e   : > { %v9407_v51 = vpop.xlane.xlu1 %2655  ;;  %v9409_v10 = vpop.xlane.xlu0 %2617  ;;  %11297 = vst [vmem:[#allocation59_spill] sm:$0xff] %v9426_v61 }
 0x52f   : > { %2727 = vmax.xlane.f32.xlu0 %v9396_v29  ;;  %2691 = vmax.xlane.f32.xlu1 %v9403_v56  ;;  %v2737_v29 = vsub.f32 %v9198_v11, %v2610_v59  ;;  %v9424_v56 = vpop.f32.mrf.mxu1  ;;  %v2753_v59 = vsub.f32 %v9230_v26, %v2642_v50  ;;  %v9436_v11 = vpop.f32.mrf.mxu0  ;;  %7258 = vpow2.f32 %v2845_v30 }
 0x531   : > { %v2801_v16 = vmul.f32 1.442695, %v2737_v29  ;;  %v9443_v29 = vpop.f32.mrf.mxu1  ;;  %v9445_v50 = vpop.f32.mrf.mxu0 }
 0x532   : > { %v9419_v41 = vpop.xlane.xlu1 %2619  ;;  %v2650_v57 = vpop.xlane.xlu0 %2649 }
 0x533   : > { %2723 = vmax.xlane.f32.xlu1 %v9405_v44  ;;  %2701 = vmax.xlane.f32.xlu0 %v9414_v31  ;;  %v2757_v60 = vsub.f32 %v9252_v21, %v2650_v57  ;;  %7260 = vpow2.f32 %v2801_v16  ;;  %v2833_v57 = vmul.f32 1.442695, %v2753_v59  ;;  %v9453_v16 = vpop.f32.mrf.mxu1 }
 0x534   : > { %v9457_v45 = vpop.eup %7254 }
 0x535   : > { %v2841_v0 = vmul.f32 1.442695, %v2757_v60 }
 0x536   : > { %v9429_v23 = vpop.xlane.xlu1 %2651  ;;  %v9431_v8 = vpop.xlane.xlu0 %2629 }
 0x537   : > { %2733 = vmax.xlane.f32.xlu1 %v9416_v37  ;;  %2697 = vmax.xlane.f32.xlu0 %v9424_v56  ;;  %7262 = vpow2.f32 %v2841_v0 }
 0x538   : > { %7264 = vpow2.f32 %v2833_v57  ;;  %v9463_v57 = vpop.eup %7256 }
 0x53a   : > { %v2632_v28 = vpop.xlane.xlu1 %2631  ;;  %v2662_v63 = vpop.xlane.xlu0 %2661 }
 0x53b   : > { %v2763_v21 = vsub.f32 %v9270_v49, %v2662_v63  ;;  %2729 = vmax.xlane.f32.xlu1 %v9426_v61  ;;  %2735 = vmax.xlane.f32.xlu0 %v9436_v11  ;;  %v2807_v49 = vmul.f32 1.442695, %v2740_v7  ;;  %v2839_v7 = vmul.f32 1.442695, %v2756_v55 }
 0x53d   : > { %v2853_v26 = vmul.f32 1.442695, %v2763_v21  ;;  %v2748_v21 = vsub.f32 %v9274_v54, %v2632_v28 }
 0x53e   : > { %v9447_v30 = vpop.xlane.xlu1 %2663  ;;  %v9449_v60 = vpop.xlane.xlu0 %2625 }
 0x53f   : > { %2731 = vmax.xlane.f32.xlu0 %v9445_v50  ;;  %2703 = vmax.xlane.f32.xlu1 %v9443_v29  ;;  %7266 = vpow2.f32 %v2853_v26  ;;  %v9467_v26 = vpop.eup %7258 }
 0x540   : > { %7268 = vpow2.f32 %v2807_v49  ;;  %11298 = vst [vmem:[#allocation60_spill] sm:$0xff] %v9467_v26  ;;  %v9476_v28 = vpop.eup %7260  ;;  %v2803_v49 = vmul.f32 1.442695, %v2738_v52 }
 0x542   : > { %v2628_v59 = vpop.xlane.xlu1 %2627  ;;  %v2658_v0 = vpop.xlane.xlu0 %2657 }
 0x543   : > { %v2761_v63 = vsub.f32 %v9276_v36, %v2658_v0  ;;  %2933 = vadd.xlane.f32.xlu0 %v9457_v45  ;;  %2699 = vmax.xlane.f32.xlu1 %v9453_v16  ;;  %v2823_v36 = vmul.f32 1.442695, %v2748_v21  ;;  %v2746_v54 = vsub.f32 %v9280_v62, %v2628_v59  ;;  %v2835_v21 = vmul.f32 1.442695, %v2754_v38 }
 0x544   : > { %v9480_v12 = vpop.eup %7262 }
 0x545   : > { %v2849_v14 = vmul.f32 1.442695, %v2761_v63  ;;  %v2819_v63 = vmul.f32 1.442695, %v2746_v54  ;;  %v9487_v59 = vpop.eup %7264  ;;  %v2741_v54 = vsub.f32 %v9244_v33, %v9409_v10 }
 0x546   : > { %v9469_v37 = vpop.xlane.xlu1 %2659  ;;  %v9471_v61 = vpop.xlane.xlu0 %2637 }
 0x547   : > { %2973 = vadd.xlane.f32.xlu0 %v9467_v26  ;;  %2965 = vadd.xlane.f32.xlu1 %v9463_v57  ;;  %7270 = vpow2.f32 %v2849_v14 }
 0x548   : > { %7272 = vpow2.f32 %v2839_v7 }
 0x549   : > { %7274 = vpow2.f32 %v2823_v36  ;;  %v2813_v36 = vmul.f32 1.442695, %v2743_v1 }
 0x54a   : > { %v9482_v55 = vpop.xlane.xlu1 %2639  ;;  %v2670_v0 = vpop.xlane.xlu0 %2669  ;;  %7276 = vpow2.f32 %v2803_v49 }
 0x54b   : > { %2969 = vadd.xlane.f32.xlu0 %v9480_v12  ;;  %2929 = vadd.xlane.f32.xlu1 %v9476_v28  ;;  %v2767_v62 = vsub.f32 %v9294_v9, %v2670_v0  ;;  %7278 = vpow2.f32 %v2819_v63  ;;  %v2809_v63 = vmul.f32 1.442695, %v2741_v54  ;;  %v2742_v54 = vsub.f32 %v9256_v39, %v9419_v41 }
 0x54c   : > { %v9491_v15 = vpop.eup %7266  ;;  %7280 = vpow2.f32 %v2835_v21 }
 0x54d   : > { %11299 = vst [vmem:[#allocation61_spill] sm:$0xff] %v9491_v15  ;;  %v2861_v14 = vmul.f32 1.442695, %v2767_v62  ;;  %v9500_v49 = vpop.eup %7268 }
 0x54e   : > { %v2634_v7 = vpop.xlane.xlu0 %2633  ;;  %v9493_v52 = vpop.xlane.xlu1 %2671 }
 0x54f   : > { %2981 = vadd.xlane.f32.xlu0 %v9491_v15  ;;  %2961 = vadd.xlane.f32.xlu1 %v9487_v59  ;;  %v2749_v9 = vsub.f32 %v9292_v40, %v2634_v7  ;;  %7282 = vpow2.f32 %v2861_v14  ;;  %v2744_v40 = vsub.f32 %v9250_v47, %v9398_v27  ;;  %v2760_v7 = vsub.f32 %v9258_v58, %v9407_v51 }
 0x550   : > { %7284 = vpow2.f32 %v2813_v36 }
 0x551   : > { %v2825_v4 = vmul.f32 1.442695, %v2749_v9  ;;  %v2847_v36 = vmul.f32 1.442695, %v2760_v7  ;;  %v2762_v7 = vsub.f32 %v9288_v22, %v9469_v37  ;;  %v2752_v37 = vsub.f32 %v9298_v20, %v9482_v55 }
 0x552   : > { %v2666_v18 = vpop.xlane.xlu0 %2665  ;;  %v2636_v62 = vpop.xlane.xlu1 %2635 }
 0x553   : > { %2935 = vadd.xlane.f32.xlu1 %v9500_v49  ;;  %v2765_v38 = vsub.f32 %v9300_v34, %v2666_v18  ;;  %7286 = vpow2.f32 %v2825_v4  ;;  %v2750_v10 = vsub.f32 %v9308_v5, %v2636_v62  ;;  %v2815_v34 = vmul.f32 1.442695, %v2744_v40 }
 0x554   : > { %v9504_v0 = vpop.eup %7270  ;;  %7288 = vpow2.f32 %v2809_v63  ;;  %v2811_v4 = vmul.f32 1.442695, %v2742_v54  ;;  %v2747_v40 = vsub.f32 %v9262_v19, %v9431_v8  ;;  %v2745_v62 = vsub.f32 %v9268_v24, %v9449_v60 }
 0x555   : > { %11300 = vst [vmem:[#allocation62_spill] sm:$0xff] %v9504_v0  ;;  %v9508_v21 = vpop.eup %7272  ;;  %2977 = vadd.xlane.f32.xlu0 %v9504_v0  ;;  %v2857_v33 = vmul.f32 1.442695, %v2765_v38  ;;  %v2827_v14 = vmul.f32 1.442695, %v2750_v10  ;;  %v2764_v8 = vsub.f32 %v9282_v46, %v9447_v30  ;;  %v2751_v30 = vsub.f32 %v9286_v6, %v9471_v61 }
 0x556   : > { %v9513_v1 = vpop.eup %7274  ;;  %v2678_v27 = vpop.xlane.xlu0 %2677  ;;  %v2851_v46 = vmul.f32 1.442695, %v2762_v7  ;;  %v2768_v54 = vsub.f32 %v9304_v42, %v9493_v52 }
 0x557   : > { %2967 = vadd.xlane.f32.xlu1 %v9508_v21  ;;  %v9517_v47 = vpop.eup %7276  ;;  %7290 = vpow2.f32 %v2857_v33  ;;  %v2771_v9 = vsub.f32 %v9310_v35, %v2678_v27  ;;  %v2758_v35 = vsub.f32 %v9264_v2, %v9429_v23  ;;  %v2821_v23 = vmul.f32 1.442695, %v2747_v40  ;;  %v2668_v6 = vpop.xlane.xlu1 %2667 }
 0x558   : > { %v9522_v5 = vpop.eup %7278  ;;  %7292 = vpow2.f32 %v2815_v34  ;;  %v2817_v33 = vmul.f32 1.442695, %v2745_v62  ;;  %v2855_v60 = vmul.f32 1.442695, %v2764_v8  ;;  %v2863_v61 = vmul.f32 1.442695, %v2768_v54 }
 0x559   : > { %2951 = vadd.xlane.f32.xlu0 %v9513_v1  ;;  %v9526_v51 = vpop.eup %7280  ;;  %7294 = vpow2.f32 %v2827_v14  ;;  %v2869_v58 = vmul.f32 1.442695, %v2771_v9  ;;  %v2843_v41 = vmul.f32 1.442695, %v2758_v35  ;;  %v2829_v9 = vmul.f32 1.442695, %v2751_v30 }
 0x55a   : > { %7296 = vpow2.f32 %v2847_v36  ;;  %v2831_v36 = vmul.f32 1.442695, %v2752_v37 }
 0x55b   : > { %2931 = vadd.xlane.f32.xlu1 %v9517_v47  ;;  %7298 = vpow2.f32 %v2869_v58  ;;  %v2680_v52 = vpop.xlane.xlu1 %2679 }
 0x55c   : > { %v9530_v18 = vpop.eup %7282  ;;  %7300 = vpow2.f32 %v2811_v4  ;;  %v2766_v4 = vsub.f32 %v9316_v13, %v2668_v6  ;;  %v2772_v13 = vsub.f32 %v9320_v17, %v2680_v52 }
 0x55d   : > { %2947 = vadd.xlane.f32.xlu0 %v9522_v5  ;;  %11301 = vst [vmem:[#allocation63_spill] sm:$0xff] %v9530_v18  ;;  %v9534_v38 = vpop.eup %7284  ;;  %7302 = vpow2.f32 %v2843_v41 }
 0x55e   : > { %7304 = vpow2.f32 %v2821_v23  ;;  %v2859_v20 = vmul.f32 1.442695, %v2766_v4 }
 0x55f   : > { %2963 = vadd.xlane.f32.xlu1 %v9526_v51  ;;  %7306 = vpow2.f32 %v2817_v33  ;;  %v2871_v33 = vmul.f32 1.442695, %v2772_v13 }
 0x560   : > { %v9538_v39 = vpop.eup %7286  ;;  %7308 = vpow2.f32 %v2855_v60 }
 0x561   : > { %2989 = vadd.xlane.f32.xlu0 %v9530_v18  ;;  %v9542_v63 = vpop.eup %7288  ;;  %7310 = vpow2.f32 %v2851_v46 }
 0x562   : > { %7312 = vpow2.f32 %v2829_v9 }
 0x563   : > { %2941 = vadd.xlane.f32.xlu1 %v9534_v38  ;;  %7314 = vpow2.f32 %v2831_v36 }
 0x564   : > { %v9546_v2 = vpop.eup %7290  ;;  %7316 = vpow2.f32 %v2863_v61 }
 0x565   : > { %2953 = vadd.xlane.f32.xlu0 %v9538_v39  ;;  %11302 = vst [vmem:[#allocation64_spill] sm:$0xff] %v9546_v2  ;;  %v9550_v10 = vpop.eup %7292  ;;  %7318 = vpow2.f32 %v2859_v20 }
 0x566   : > { %v9554_v19 = vpop.eup %7294 }
 0x567   : > { %2937 = vadd.xlane.f32.xlu1 %v9542_v63  ;;  %v9558_v34 = vpop.eup %7296 }
 0x568   : > { %11303 = vst [vmem:[#allocation65_spill] sm:$0xff] %v9558_v34  ;;  %v9562_v24 = vpop.eup %7298 }
 0x569   : > { %2985 = vadd.xlane.f32.xlu0 %v9546_v2  ;;  %11304 = vst [vmem:[#allocation66_spill] sm:$0xff] %v9562_v24  ;;  %v9566_v27 = vpop.eup %7300 }
 0x56a   : > { %v9572_v14 = vpop.eup %7302 }
 0x56b   : > { %2943 = vadd.xlane.f32.xlu1 %v9550_v10  ;;  %v9577_v22 = vpop.eup %7304 }
 0x56c   : > { %v9582_v58 = vpop.eup %7306 }
 0x56d   : > { %2955 = vadd.xlane.f32.xlu0 %v9554_v19  ;;  %v9586_v35 = vpop.eup %7308 }
 0x56e   : > { %11305 = vst [vmem:[#allocation67_spill] sm:$0xff] %v9586_v35  ;;  %v9589_v55 = vpop.eup %7310 }
 0x56f   : > { %2975 = vadd.xlane.f32.xlu1 %v9558_v34  ;;  %11306 = vst [vmem:[#allocation68_spill] sm:$0xff] %v9589_v55  ;;  %v9592_v42 = vpop.eup %7312 }
 0x570   : > { %v9595_v41 = vpop.eup %7314 }
 0x571   : > { %2997 = vadd.xlane.f32.xlu0 %v9562_v24  ;;  %v9600_v62 = vpop.eup %7316 }
 0x572   : > { %11307 = vst [vmem:[#allocation69_spill] sm:$0xff] %v9600_v62  ;;  %v9604_v30 = vpop.eup %7318 }
 0x573   : > { %2939 = vadd.xlane.f32.xlu1 %v9566_v27  ;;  %11308 = vst [vmem:[#allocation70_spill] sm:$0xff] %v9604_v30 }
 0x577   : > { %2971 = vadd.xlane.f32.xlu1 %v9572_v14 }
 0x57b   : > { %2949 = vadd.xlane.f32.xlu1 %v9577_v22 }
 0x57f   : > { %2945 = vadd.xlane.f32.xlu1 %v9582_v58 }
 0x583   : > { %2983 = vadd.xlane.f32.xlu1 %v9586_v35 }
 0x587   : > { %2979 = vadd.xlane.f32.xlu1 %v9589_v55 }
 0x58b   : > { %2957 = vadd.xlane.f32.xlu1 %v9592_v42 }
 0x58f   : > { %2959 = vadd.xlane.f32.xlu1 %v9595_v41 }
 0x590   : > { %v2710_v40 = vpop.xlane.xlu0 %2709 }
 0x591   : > { %v2787_v23 = vsub.f32 %v9325_v25, %v2710_v40 }
 0x593   : > { %v2901_v8 = vmul.f32 1.442695, %v2787_v23  ;;  %2991 = vadd.xlane.f32.xlu1 %v9600_v62 }
 0x594   : > { %v2674_v60 = vpop.xlane.xlu0 %2673  ;;  %v2712_v7 = vpop.xlane.xlu1 %2711 }
 0x595   : > { %7320 = vpow2.f32 %v2901_v8  ;;  %v2769_v46 = vsub.f32 %v9314_v48, %v2674_v60  ;;  %v2788_v25 = vsub.f32 %v9334_v43, %v2712_v7  ;;  %v11310_v43 = vld [vmem:[#allocation39_spill] sm:$0xff] }
 0x596   : > { %7322 = vpow2.f32 %v2871_v33 }
 0x597   : > { %v2865_v9 = vmul.f32 1.442695, %v2769_v46  ;;  %2987 = vadd.xlane.f32.xlu1 %v9604_v30  ;;  %v2903_v4 = vmul.f32 1.442695, %v2788_v25  ;;  %v11314_v25 = vld [vmem:[#allocation41_spill] sm:$0xff] }
 0x598   : > { %v2706_v17 = vpop.xlane.xlu0 %2705  ;;  %v2708_v37 = vpop.xlane.xlu1 %2707 }
 0x599   : > { %7324 = vpow2.f32 %v2865_v9  ;;  %v2785_v36 = vsub.f32 %v9330_v3, %v2706_v17  ;;  %v2786_v13 = vsub.f32 %v9340_v32, %v2708_v37  ;;  %v11313_v32 = vld [vmem:[#allocation45_spill] sm:$0xff] }
 0x59b   : > { %v2897_v54 = vmul.f32 1.442695, %v2785_v36  ;;  %v2899_v7 = vmul.f32 1.442695, %v2786_v13 }
 0x59c   : > { %v2676_v6 = vpop.xlane.xlu0 %2675  ;;  %v2688_v61 = vpop.xlane.xlu1 %2687 }
 0x59d   : > { %7326 = vpow2.f32 %v2897_v54  ;;  %v2770_v48 = vsub.f32 %v9328_v53, %v2676_v6  ;;  %v2776_v46 = vsub.f32 %v11313_v32, %v2688_v61 }
 0x59e   : > { %7328 = vpow2.f32 %v2903_v4 }
 0x59f   : > { %v2867_v40 = vmul.f32 1.442695, %v2770_v48  ;;  %v2879_v4 = vmul.f32 1.442695, %v2776_v46  ;;  %v11316_v48 = vld [vmem:[#allocation42_spill] sm:$0xff] }
 0x5a0   : > { %v2686_v20 = vpop.xlane.xlu0 %2685  ;;  %v9610_v52 = vpop.xlane.xlu1 %2719 }
 0x5a1   : > { %v2775_v3 = vsub.f32 %v11310_v43, %v2686_v20  ;;  %7330 = vpow2.f32 %v2867_v40  ;;  %v11317_v43 = vld [vmem:[#allocation49_spill] sm:$0xff] }
 0x5a2   : > { %v9613_v23 = vpop.eup %7320  ;;  %7332 = vpow2.f32 %v2899_v7 }
 0x5a3   : > { %11309 = vst [vmem:[#allocation71_spill] sm:$0xff] %v9613_v23  ;;  %3029 = vadd.xlane.f32.xlu0 %v9613_v23  ;;  %v9617_v60 = vpop.eup %7322  ;;  %v2877_v9 = vmul.f32 1.442695, %v2775_v3  ;;  %v11318_v3 = vld [vmem:[#allocation46_spill] sm:$0xff] }
 0x5a4   : > { %v2718_v8 = vpop.xlane.xlu0 %2717  ;;  %v2684_v33 = vpop.xlane.xlu1 %2683  ;;  %11311 = vst [vmem:[#allocation39_spill] sm:$0xff] %v9617_v60 }
 0x5a5   : > { %7334 = vpow2.f32 %v2877_v9  ;;  %v2791_v20 = vsub.f32 %v11316_v48, %v2718_v8  ;;  %v2774_v61 = vsub.f32 %v11317_v43, %v2684_v33  ;;  %v11320_v9 = vld [vmem:[#allocation50_spill] sm:$0xff]  ;;  %v11322_v43 = vld [vmem:[#allocation53_spill] sm:$0xff] }
 0x5a6   : > { %v9619_v53 = vpop.eup %7324 }
 0x5a7   : > { %11312 = vst [vmem:[#allocation72_spill] sm:$0xff] %v9619_v53  ;;  %2999 = vadd.xlane.f32.xlu0 %v9617_v60  ;;  %2993 = vadd.xlane.f32.xlu1 %v9619_v53  ;;  %v2875_v8 = vmul.f32 1.442695, %v2774_v61 }
 0x5a8   : > { %v2682_v17 = vpop.xlane.xlu0 %2681  ;;  %v2716_v37 = vpop.xlane.xlu1 %2715 }
 0x5a9   : > { %v2773_v36 = vsub.f32 %v11314_v25, %v2682_v17  ;;  %v2909_v25 = vmul.f32 1.442695, %v2791_v20  ;;  %v2790_v48 = vsub.f32 %v11320_v9, %v2716_v37 }
 0x5aa   : > { %v9625_v54 = vpop.eup %7326 }
 0x5ab   : > { %11315 = vst [vmem:[#allocation45_spill] sm:$0xff] %v9625_v54  ;;  %v2873_v6 = vmul.f32 1.442695, %v2773_v36  ;;  %3025 = vadd.xlane.f32.xlu1 %v9625_v54  ;;  %v9633_v7 = vpop.eup %7328 }
 0x5ac   : > { %v2714_v13 = vpop.xlane.xlu0 %2713  ;;  %v9629_v40 = vpop.xlane.xlu1 %2725  ;;  %11319 = vst [vmem:[#allocation41_spill] sm:$0xff] %v9633_v7 }
 0x5ad   : > { %7336 = vpow2.f32 %v2873_v6  ;;  %v2789_v32 = vsub.f32 %v11318_v3, %v2714_v13  ;;  %v2907_v13 = vmul.f32 1.442695, %v2790_v48 }
 0x5ae   : > { %7338 = vpow2.f32 %v2879_v4  ;;  %v9641_v23 = vpop.eup %7330 }
 0x5af   : > { %v2905_v17 = vmul.f32 1.442695, %v2789_v32  ;;  %3031 = vadd.xlane.f32.xlu1 %v9633_v7  ;;  %11321 = vst [vmem:[#allocation42_spill] sm:$0xff] %v9641_v23  ;;  %v9645_v20 = vpop.eup %7332  ;;  %v11328_v7 = vld [vmem:[#allocation57_spill] sm:$0xff] }
 0x5b0   : > { %v9636_v36 = vpop.xlane.xlu1 %2721  ;;  %v9638_v46 = vpop.xlane.xlu0 %2693  ;;  %11323 = vst [vmem:[#allocation49_spill] sm:$0xff] %v9645_v20 }
 0x5b1   : > { %7340 = vpow2.f32 %v2905_v17  ;;  %v11325_v17 = vld [vmem:[#allocation55_spill] sm:$0xff] }
 0x5b2   : > { %7342 = vpow2.f32 %v2909_v25  ;;  %v9650_v37 = vpop.eup %7334 }
 0x5b3   : > { %2995 = vadd.xlane.f32.xlu1 %v9641_v23  ;;  %7344 = vpow2.f32 %v2875_v8  ;;  %11324 = vst [vmem:[#allocation46_spill] sm:$0xff] %v9650_v37 }
 0x5b4   : > { %v2690_v33 = vpop.xlane.xlu0 %2689  ;;  %v2696_v6 = vpop.xlane.xlu1 %2695  ;;  %7346 = vpow2.f32 %v2907_v13 }
 0x5b5   : > { %v2777_v4 = vsub.f32 %v11322_v43, %v2690_v33  ;;  %v2780_v9 = vsub.f32 %v11325_v17, %v2696_v6 }
 0x5b7   : > { %3027 = vadd.xlane.f32.xlu1 %v9645_v20  ;;  %v2881_v32 = vmul.f32 1.442695, %v2777_v4  ;;  %v2887_v43 = vmul.f32 1.442695, %v2780_v9 }
 0x5b8   : > { %v9648_v3 = vpop.xlane.xlu0 %2727  ;;  %v2692_v61 = vpop.xlane.xlu1 %2691 }
 0x5b9   : > { %7348 = vpow2.f32 %v2881_v32  ;;  %v2778_v20 = vsub.f32 %v11328_v7, %v2692_v61 }
 0x5ba   : > { %v9653_v25 = vpop.eup %7336  ;;  %7350 = vpow2.f32 %v2887_v43 }
 0x5bb   : > { %11326 = vst [vmem:[#allocation50_spill] sm:$0xff] %v9653_v25  ;;  %3001 = vadd.xlane.f32.xlu0 %v9653_v25  ;;  %3005 = vadd.xlane.f32.xlu1 %v9650_v37  ;;  %v9661_v33 = vpop.eup %7338  ;;  %v11331_v37 = vld [vmem:[#allocation48_spill] sm:$0xff]  ;;  %v2883_v32 = vmul.f32 1.442695, %v2778_v20 }
 0x5bc   : > { %v9657_v8 = vpop.xlane.xlu1 %2723  ;;  %v9659_v48 = vpop.xlane.xlu0 %2701  ;;  %11327 = vst [vmem:[#allocation53_spill] sm:$0xff] %v9661_v33  ;;  %v2792_v25 = vsub.f32 %v11331_v37, %v9610_v52 }
 0x5bd   : > { %7352 = vpow2.f32 %v2883_v32 }
 0x5be   : > { %v9664_v13 = vpop.eup %7340 }
 0x5bf   : > { %11329 = vst [vmem:[#allocation55_spill] sm:$0xff] %v9664_v13  ;;  %3033 = vadd.xlane.f32.xlu0 %v9664_v13  ;;  %3007 = vadd.xlane.f32.xlu1 %v9661_v33  ;;  %v9672_v17 = vpop.eup %7342  ;;  %v2911_v13 = vmul.f32 1.442695, %v2792_v25 }
 0x5c0   : > { %v9668_v6 = vpop.xlane.xlu1 %2733  ;;  %v9670_v4 = vpop.xlane.xlu0 %2697  ;;  %11330 = vst [vmem:[#allocation57_spill] sm:$0xff] %v9672_v17 }
 0x5c1   : > { %v9676_v9 = vpop.eup %7344  ;;  %7354 = vpow2.f32 %v2911_v13 }
 0x5c2   : > { %11332 = vst [vmem:[#allocation48_spill] sm:$0xff] %v9676_v9  ;;  %v9684_v33 = vpop.eup %7346 }
 0x5c3   : > { %3003 = vadd.xlane.f32.xlu0 %v9676_v9  ;;  %3037 = vadd.xlane.f32.xlu1 %v9672_v17  ;;  %11333 = vst [vmem:[#allocation73_spill] sm:$0xff] %v9684_v33 }
 0x5c4   : > { %v9680_v7 = vpop.xlane.xlu1 %2729  ;;  %v9682_v61 = vpop.xlane.xlu0 %2735 }
 0x5c6   : > { %v9690_v37 = vpop.eup %7348 }
 0x5c7   : > { %3035 = vadd.xlane.f32.xlu1 %v9684_v33  ;;  %11334 = vst [vmem:[#allocation74_spill] sm:$0xff] %v9690_v37  ;;  %v9694_v32 = vpop.eup %7350 }
 0x5c8   : > { %v9687_v54 = vpop.xlane.xlu0 %2731  ;;  %v2704_v52 = vpop.xlane.xlu1 %2703  ;;  %11335 = vst [vmem:[#allocation75_spill] sm:$0xff] %v9694_v32 }
 0x5c9   : > { %v2784_v20 = vsub.f32 %v9443_v29, %v2704_v52 }
 0x5ca   : > { %v9701_v29 = vpop.eup %7352 }
 0x5cb   : > { %v2895_v43 = vmul.f32 1.442695, %v2784_v20  ;;  %3009 = vadd.xlane.f32.xlu1 %v9690_v37  ;;  %11336 = vst [vmem:[#allocation76_spill] sm:$0xff] %v9701_v29 }
 0x5cc   : > { %v2934_v17 = vpop.xlane.xlu0 %2933  ;;  %v2700_v9 = vpop.xlane.xlu1 %2699 }
 0x5cd   : > { %v2782_v25 = vsub.f32 %v9453_v16, %v2700_v9  ;;  %7356 = vpow2.f32 %v2895_v43  ;;  %v11338_v16 = vld [vmem:[#allocation29_spill] sm:$0xff]  ;;  %v11339_v9 = vld [vmem:[#allocation31_spill] sm:$0xff] }
 0x5ce   : > { %v9706_v37 = vpop.eup %7354  ;;  %v7015_v43 = vpack.i.bf16 %v11339_v9, %v11338_v16 }
 0x5cf   : > { %v2891_v24 = vmul.f32 1.442695, %v2782_v25  ;;  %3015 = vadd.xlane.f32.xlu1 %v9694_v32  ;;  %11337 = vst [vmem:[#allocation77_spill] sm:$0xff] %v9706_v37 }
 0x5d0   : > { %v9697_v33 = vpop.xlane.xlu0 %2973  ;;  %v9699_v13 = vpop.xlane.xlu1 %2965 }
 0x5d1   : > { %7358 = vpow2.f32 %v2891_v24 }
 0x5d3   : > { %3011 = vadd.xlane.f32.xlu1 %v9701_v29 }
 0x5d4   : > { %v9704_v52 = vpop.xlane.xlu0 %2969  ;;  %v2930_v20 = vpop.xlane.xlu1 %2929 }
 0x5d7   : > { %3039 = vadd.xlane.f32.xlu1 %v9706_v37  ;;  %v11342_v37 = vld [vmem:[#allocation51_spill] sm:$0xff] }
 0x5d8   : > { %v9711_v25 = vpop.xlane.xlu1 %2961  ;;  %v9714_v32 = vpop.xlane.xlu0 %2981  ;;  %v2779_v18 = vsub.f32 %v11342_v37, %v9638_v46 }
 0x5d9   : > { %7016 = vrot.lane.b32.xlu0 %v7015_v43, %s7991_s14 }
 0x5da   : > { %v9716_v24 = vpop.eup %7356  ;;  %v2885_v62 = vmul.f32 1.442695, %v2779_v18  ;;  %v11343_v18 = vld [vmem:[#allocation26_spill] sm:$0xff] }
 0x5db   : > { %11340 = vst [vmem:[#allocation29_spill] sm:$0xff] %v9716_v24  ;;  %3023 = vadd.xlane.f32.xlu1 %v9716_v24  ;;  %v2783_v24 = vsub.f32 %v9414_v31, %v9659_v48 }
 0x5dc   : > { %v2936_v29 = vpop.xlane.xlu1 %2935 }
 0x5dd   : > { %7360 = vrcp.f32 %v2936_v29  ;;  %v2893_v30 = vmul.f32 1.442695, %v2783_v24 }
 0x5de   : > { %v9719_v23 = vpop.eup %7358  ;;  %v9721_v53 = vpop.xlane.xlu0 %2977  ;;  %7362 = vrcp.f32 %v2930_v20 }
 0x5df   : > { %11341 = vst [vmem:[#allocation31_spill] sm:$0xff] %v9719_v23  ;;  %3019 = vadd.xlane.f32.xlu1 %v9719_v23  ;;  %7364 = vrcp.f32 %v2934_v17  ;;  %v2781_v23 = vsub.f32 %v9424_v56, %v9670_v4 }
 0x5e0   : > { %v9724_v60 = vpop.xlane.xlu1 %2967 }
 0x5e1   : > { %v2889_v46 = vmul.f32 1.442695, %v2781_v23 }
 0x5e2   : > { %v2952_v2 = vpop.xlane.xlu0 %2951 }
 0x5e4   : > { %v2932_v43 = vpop.xlane.xlu1 %2931 }
 0x5e5   : > { %7366 = vrcp.f32 %v2932_v43  ;;  %v11344_v43 = vld [vmem:[#allocation24_spill] sm:$0xff] }
 0x5e6   : > { %7368 = vpow2.f32 %v2885_v62  ;;  %v2948_v35 = vpop.xlane.xlu0 %2947  ;;  %v11345_v31 = vpack.i.bf16 %v11343_v18, %v11344_v43  ;;  %v11346_v18 = vld [vmem:[#allocation35_spill] sm:$0xff]  ;;  %v11347_v43 = vld [vmem:[#allocation36_spill] sm:$0xff] }
 0x5e7   : > { %7370 = vpow2.f32 %v2893_v30 }
 0x5e8   : > { %v9730_v15 = vpop.xlane.xlu1 %2963  ;;  %7372 = vpow2.f32 %v2889_v46 }
 0x5ea   : > { %v7361_v37 = vpop.eup %7360  ;;  %v9738_v62 = vpop.xlane.xlu0 %2989 }
 0x5eb   : > { %v7363_v17 = vpop.eup %7362  ;;  %v3124_v24 = vmul.f32 %v7361_v37, %v9500_v49 }
 0x5ec   : > { %v2942_v0 = vpop.xlane.xlu1 %2941  ;;  %v7365_v20 = vpop.eup %7364  ;;  %v3121_v56 = vmul.f32 %v7363_v17, %v9476_v28  ;;  %v11348_v28 = vld [vmem:[#allocation37_spill] sm:$0xff] }
 0x5ed   : > { %v3123_v4 = vmul.f32 %v7365_v20, %v9457_v45  ;;  %v2794_v45 = vsub.f32 %v9405_v44, %v9657_v8 }
 0x5ee   : > { %v2954_v46 = vpop.xlane.xlu0 %2953 }
 0x5ef   : > { %v3186_v55 = vpack.c.bf16 %v3124_v24, %v3123_v4  ;;  %v2915_v20 = vmul.f32 1.442695, %v2794_v45  ;;  %v11351_v24 = vld [vmem:[#allocation34_spill] sm:$0xff]  ;;  %v2800_v4 = vsub.f32 %v9436_v11, %v9682_v61 }
 0x5f0   : > { %v2938_v29 = vpop.xlane.xlu1 %2937  ;;  %7021 = vrot.lane.b32.xlu1 %v11345_v31, %s7991_s14  ;;  %v2010_v31 = vpack.c.bf16 %v11347_v43, %v11346_v18 }
 0x5f2   : > { %v7367_v48 = vpop.eup %7366  ;;  %v9757_v37 = vpop.xlane.xlu0 %2985 }
 0x5f3   : > { %v3122_v30 = vmul.f32 %v7367_v48, %v9517_v47  ;;  %v9744_v34 = vpop.eup %7368  ;;  %v11350_v48 = vld [vmem:[#allocation32_spill] sm:$0xff] }
 0x5f4   : > { %v2944_v23 = vpop.xlane.xlu1 %2943  ;;  %v9752_v47 = vpop.eup %7370 }
 0x5f5   : > { %v3185_v26 = vpack.c.bf16 %v3122_v30, %v3121_v56  ;;  %7374 = vrcp.f32 %v2944_v23  ;;  %v9760_v17 = vpop.eup %7372  ;;  %v2008_v56 = vpack.c.bf16 %v11351_v24, %v11350_v48  ;;  %v11352_v30 = vld [vmem:[#allocation30_spill] sm:$0xff] }
 0x5f6   : > { %7376 = vrcp.f32 %v2938_v29  ;;  %v2956_v8 = vpop.xlane.xlu0 %2955  ;;  %v11356_v24 = vld [vmem:[#allocation38_spill] sm:$0xff] }
 0x5f7   : > { %6569 = vmatprep.mubr.bf16.mxu1 %v3185_v26  ;;  %7378 = vrcp.f32 %v2942_v0  ;;  %v2798_v0 = vsub.f32 %v9445_v50, %v9687_v54 }
 0x5f8   : > { %3013 = vadd.xlane.f32.xlu0 %v9744_v34  ;;  %6570 = vmatmul.mubr.bf16.vlgmr.msra.gmra.mxu1 %v3186_v55  ;;  %v9749_v49 = vpop.xlane.xlu1 %2975  ;;  %v11349_v55 = vld [vmem:[#allocation33_spill] sm:$0xff] }
 0x5f9   : > { %6586 = vmatpush3.bf16.msra.mxu1 %v11348_v28  ;;  %v2923_v18 = vmul.f32 1.442695, %v2798_v0  ;;  %v2927_v28 = vmul.f32 1.442695, %v2800_v4 }
 0x5fa   : > { %6587 = vmatprep.subr.bf16.mxu1 %v2010_v31 }
 0x5fc   : > { %3021 = vadd.xlane.f32.xlu0 %v9752_v47  ;;  %v2940_v26 = vpop.xlane.xlu1 %2939 }
 0x5fd   : > { %6588 = vmatpush3.bf16.msra.mxu1 %v2010_v31  ;;  %7380 = vrcp.f32 %v2940_v26  ;;  %v2006_v31 = vpack.c.bf16 %v11339_v9, %v11338_v16 }
 0x5fe   : > { %6589 = vmatprep.subr.bf16.mxu1 %v11349_v55  ;;  %7382 = vpow2.f32 %v2915_v20  ;;  %v11355_v20 = vld [vmem:[#allocation28_spill] sm:$0xff] }
 0x5ff   : > { %7384 = vrcp.f32 %v2952_v2 }
 0x600   : > { %3017 = vadd.xlane.f32.xlu0 %v9760_v17  ;;  %v9765_v44 = vpop.xlane.xlu1 %2971  ;;  %7386 = vrcp.f32 %v2948_v35 }
 0x601   : > { %6590 = vmatpush3.bf16.msra.mxu1 %v11349_v55 }
 0x602   : > { %6591 = vmatprep.subr.bf16.mxu1 %v2008_v56  ;;  %v7375_v23 = vpop.eup %7374 }
 0x603   : > { %v7377_v43 = vpop.eup %7376  ;;  %v3128_v54 = vmul.f32 %v7375_v23, %v9550_v10  ;;  %v11354_v10 = vld [vmem:[#allocation25_spill] sm:$0xff] }
 0x604   : > { %v2950_v29 = vpop.xlane.xlu1 %2949  ;;  %v7379_v2 = vpop.eup %7378  ;;  %v3125_v11 = vmul.f32 %v7377_v43, %v9542_v63  ;;  %v2004_v48 = vpack.c.bf16 %v11355_v20, %v11354_v10  ;;  %v6994_v63 = vunpack.i.h.bf16 %v11356_v24 }
 0x605   : > { %6592 = vmatpush3.bf16.msra.mxu1 %v2008_v56  ;;  %7388 = vrcp.f32 %v2950_v29  ;;  %v3127_v16 = vmul.f32 %v7379_v2, %v9534_v38 }
 0x606   : > { %6593 = vmatprep.subr.bf16.mxu1 %v11352_v30  ;;  %7390 = vrcp.f32 %v2956_v8 }
 0x607   : > { %7392 = vrcp.f32 %v2954_v46  ;;  %v11353_v46 = vld [vmem:[#allocation27_spill] sm:$0xff]  ;;  %v3188_v26 = vpack.c.bf16 %v3128_v54, %v3127_v16 }
 0x608   : > { %v2946_v50 = vpop.xlane.xlu1 %2945 }
 0x609   : > { %6594 = vmatpush3.bf16.msra.mxu1 %v11352_v30  ;;  %7394 = vrcp.f32 %v2946_v50  ;;  %v7025_v30 = vpack.i.bf16 %v11355_v20, %v11354_v10 }
 0x60a   : > { %v7381_v35 = vpop.eup %7380  ;;  %6595 = vmatprep.subr.bf16.mxu1 %v2006_v31  ;;  %7396 = vpow2.f32 %v2923_v18 }
 0x60b   : > { %v3126_v61 = vmul.f32 %v7381_v35, %v9566_v27  ;;  %7398 = vpow2.f32 %v2927_v28  ;;  %v9783_v55 = vpop.eup %7382  ;;  %v6993_v27 = vunpack.i.l.bf16 %v11356_v24 }
 0x60c   : > { %v9779_v45 = vpop.xlane.xlu1 %2983  ;;  %v7385_v0 = vpop.eup %7384  ;;  %7400 = vrcp.f32 %v9730_v15 }
 0x60d   : > { %6596 = vmatpush3.bf16.msra.mxu1 %v2006_v31  ;;  %v3187_v9 = vpack.c.bf16 %v3126_v61, %v3125_v11  ;;  %v7387_v38 = vpop.eup %7386  ;;  %v9792_v4 = vpack.c.bf16 %v6994_v63, %v6993_v27  ;;  %v3132_v15 = vmul.f32 %v7385_v0, %v9513_v1 }
 0x60e   : > { %6597 = vmatprep.subr.bf16.mxu1 %v11353_v46  ;;  %v3130_v2 = vmul.f32 %v7387_v38, %v9522_v5  ;;  %v11357_v5 = vld [vmem:[#allocation54_spill] sm:$0xff] }
 0x60f   : > { %6573 = vmatprep.mubr.bf16.mxu1 %v3187_v9 }
 0x610   : > { %6574 = vmatmul.mubr.bf16.gmra.mxu1 %v3188_v26  ;;  %v2980_v56 = vpop.xlane.xlu1 %2979 }
 0x611   : > { %6598 = vmatpush3.bf16.msra.mxu1 %v11353_v46 }
 0x612   : > { %6599 = vmatprep.subr.bf16.mxu1 %v2004_v48  ;;  %v7389_v8 = vpop.eup %7388 }
 0x613   : > { %v7391_v29 = vpop.eup %7390  ;;  %v3131_v31 = vmul.f32 %v7389_v8, %v9577_v22  ;;  %v11362_v8 = vld [vmem:[#allocation58_spill] sm:$0xff] }
 0x614   : > { %v2958_v23 = vpop.xlane.xlu1 %2957  ;;  %v7393_v18 = vpop.eup %7392  ;;  %3043 = vadd.xlane.f32.xlu1 %v9783_v55  ;;  %v3134_v35 = vmul.f32 %v7391_v29, %v9554_v19  ;;  %v2793_v19 = vsub.f32 %v11357_v5, %v9636_v36  ;;  %v11359_v36 = vld [vmem:[#allocation56_spill] sm:$0xff]  ;;  %v2799_v29 = vsub.f32 %v11362_v8, %v9668_v6 }
 0x615   : > { %6600 = vmatpush3.bf16.msra.mxu1 %v2004_v48  ;;  %7402 = vrcp.f32 %v2958_v23  ;;  %v3133_v22 = vmul.f32 %v7393_v18, %v9538_v39  ;;  %v3190_v61 = vpack.c.bf16 %v3132_v15, %v3131_v31  ;;  %v2796_v26 = vsub.f32 %v11359_v36, %v9648_v3  ;;  %v11373_v8 = vld [vmem:[#allocation64_spill] sm:$0xff] }
 0x616   : > { %v7395_v43 = vpop.eup %7394  ;;  %6649 = vmatprep.subr.bf16.mxu1 %v9792_v4  ;;  %7026 = vrot.lane.b32.xlu0 %v7025_v30, %s7991_s14  ;;  %7404 = vrcp.f32 %v9711_v25  ;;  %v2913_v1 = vmul.f32 1.442695, %v2793_v19  ;;  %v11358_v25 = vld [vmem:[#allocation52_spill] sm:$0xff] }
 0x617   : > { %v3129_v50 = vmul.f32 %v7395_v43, %v9582_v58  ;;  %v9802_v54 = vpop.eup %7396  ;;  %v3191_v58 = vpack.c.bf16 %v3134_v35, %v3133_v22  ;;  %v2795_v9 = vsub.f32 %v11358_v25, %v9629_v40  ;;  %v2919_v48 = vmul.f32 1.442695, %v2796_v26  ;;  %v11364_v22 = vld [vmem:[#allocation65_spill] sm:$0xff]  ;;  %v11366_v19 = vld [vmem:[#allocation68_spill] sm:$0xff] }
 0x618   : > { %v2960_v28 = vpop.xlane.xlu1 %2959  ;;  %3051 = vadd.xlane.f32.xlu1 %v9802_v54  ;;  %v9808_v16 = vpop.eup %7398 }
 0x619   : > { %7406 = vrcp.f32 %v2960_v28  ;;  %v3189_v11 = vpack.c.bf16 %v3130_v2, %v3129_v50  ;;  %v7401_v39 = vpop.eup %7400  ;;  %v2925_v2 = vmul.f32 1.442695, %v2799_v29  ;;  %v11363_v28 = vld [vmem:[#allocation40_spill] sm:$0xff] }
 0x61a   : > { %7408 = vrcp.f32 %v9724_v60  ;;  %v6999_v15 = vunpack.i.h.bf16 %v11363_v28 }
 0x61b   : > { %6577 = vmatprep.mubr.bf16.mxu1 %v3189_v11  ;;  %7410 = vrcp.f32 %v9765_v44  ;;  %v2917_v44 = vmul.f32 1.442695, %v2795_v9  ;;  %v11367_v9 = vld [vmem:[#allocation60_spill] sm:$0xff] }
 0x61c   : > { %6578 = vmatmul.mubr.bf16.gmra.mxu1 %v3190_v61  ;;  %3055 = vadd.xlane.f32.xlu1 %v9808_v16  ;;  %7412 = vrcp.f32 %v9699_v13  ;;  %v2992_v10 = vpop.xlane.xlu1 %2991  ;;  %v3138_v13 = vmul.f32 %v7401_v39, %v9526_v51 }
 0x61d   : > { %6581 = vmatprep.mubr.bf16.mxu1 %v3191_v58  ;;  %7414 = vrcp.f32 %v9704_v52  ;;  %v11365_v58 = vld [vmem:[#allocation43_spill] sm:$0xff] }
 0x61e   : > { %7416 = vpow2.f32 %v2913_v1  ;;  %v7004_v5 = vunpack.i.h.bf16 %v11365_v58  ;;  %v7003_v39 = vunpack.i.l.bf16 %v11365_v58  ;;  %v11377_v58 = vld [vmem:[#allocation72_spill] sm:$0xff] }
 0x61f   : > { %7418 = vrcp.f32 %v9749_v49 }
 0x620   : > { %7420 = vrcp.f32 %v2980_v56  ;;  %v11360_v56 = vld [vmem:[#allocation59_spill] sm:$0xff]  ;;  %v2988_v0 = vpop.xlane.xlu1 %2987 }
 0x621   : > { %7422 = vrcp.f32 %v9697_v33  ;;  %v2797_v51 = vsub.f32 %v11360_v56, %v9680_v7  ;;  %v11370_v56 = vld [vmem:[#allocation67_spill] sm:$0xff] }
 0x622   : > { %v7403_v46 = vpop.eup %7402  ;;  %7424 = vrcp.f32 %v9721_v53 }
 0x623   : > { %v7405_v60 = vpop.eup %7404  ;;  %v3135_v52 = vmul.f32 %v7403_v46, %v9592_v42  ;;  %7426 = vpow2.f32 %v2917_v44  ;;  %v2921_v23 = vmul.f32 1.442695, %v2797_v51 }
 0x624   : > { %v3137_v3 = vmul.f32 %v7405_v60, %v9487_v59  ;;  %7428 = vpow2.f32 %v2919_v48  ;;  %v11361_v59 = vld [vmem:[#allocation47_spill] sm:$0xff]  ;;  %v11368_v60 = vld [vmem:[#allocation62_spill] sm:$0xff] }
 0x625   : > { %7430 = vrcp.f32 %v9779_v45  ;;  %v7014_v38 = vunpack.i.h.bf16 %v11361_v59  ;;  %v7013_v7 = vunpack.i.l.bf16 %v11361_v59 }
 0x626   : > { %v7407_v20 = vpop.eup %7406  ;;  %v3193_v49 = vpack.c.bf16 %v3138_v13, %v3137_v3  ;;  %7432 = vrcp.f32 %v2988_v0  ;;  %v11371_v0 = vld [vmem:[#allocation70_spill] sm:$0xff] }
 0x627   : > { %v3136_v40 = vmul.f32 %v7407_v20, %v9595_v41  ;;  %v7409_v63 = vpop.eup %7408  ;;  %v2998_v41 = vpop.xlane.xlu0 %2997  ;;  %7434 = vrcp.f32 %v9714_v32  ;;  %v6998_v32 = vunpack.i.l.bf16 %v11363_v28 }
 0x628   : > { %v7411_v27 = vpop.eup %7410  ;;  %v3140_v53 = vmul.f32 %v7409_v63, %v9508_v21  ;;  %7436 = vrcp.f32 %v9757_v37 }
 0x629   : > { %v3192_v24 = vpack.c.bf16 %v3136_v40, %v3135_v52  ;;  %v7413_v33 = vpop.eup %7412  ;;  %v3142_v30 = vmul.f32 %v7411_v27, %v9572_v14  ;;  %7438 = vpow2.f32 %v2921_v23  ;;  %v11369_v40 = vld [vmem:[#allocation44_spill] sm:$0xff] }
 0x62a   : > { %v7415_v42 = vpop.eup %7414  ;;  %v3139_v18 = vmul.f32 %v7413_v33, %v9463_v57  ;;  %v2026_v57 = vpack.c.bf16 %v7014_v38, %v7013_v7  ;;  %7440 = vrcp.f32 %v2992_v10  ;;  %v7009_v48 = vunpack.i.h.bf16 %v11369_v40 }
 0x62b   : > { %6582 = vmatmul.mubr.bf16.gmra.mxu1 %v3192_v24  ;;  %v3141_v21 = vmul.f32 %v7415_v42, %v9480_v12  ;;  %v9841_v43 = vpop.eup %7416  ;;  %7442 = vpow2.f32 %v2925_v2  ;;  %v7008_v3 = vunpack.i.l.bf16 %v11369_v40  ;;  %v2024_v24 = vpack.c.bf16 %v7004_v5, %v7003_v39 }
 0x62c   : > { %6601 = vmatprep.mubr.bf16.mxu1 %v3193_v49  ;;  %v9843_v31 = vpop.xlane.xlu0 %3029  ;;  %v3194_v6 = vpack.c.bf16 %v3140_v53, %v3139_v18  ;;  %v7419_v50 = vpop.eup %7418  ;;  %7444 = vrcp.f32 %v9738_v62  ;;  %v11372_v53 = vld [vmem:[#allocation61_spill] sm:$0xff] }
 0x62d   : > { %v3195_v14 = vpack.c.bf16 %v3142_v30, %v3141_v21  ;;  %v7421_v35 = vpop.eup %7420  ;;  %v3144_v61 = vmul.f32 %v7419_v50, %v11364_v22  ;;  %v2023_v42 = vpack.c.bf16 %v7009_v48, %v7008_v3  ;;  %v11374_v50 = vld [vmem:[#allocation69_spill] sm:$0xff]  ;;  %v11376_v22 = vld [vmem:[#allocation39_spill] sm:$0xff] }
 0x62e   : > { %v7423_v37 = vpop.eup %7422  ;;  %v3146_v1 = vmul.f32 %v7421_v35, %v11366_v19  ;;  %v11375_v35 = vld [vmem:[#allocation63_spill] sm:$0xff]  ;;  %v11378_v19 = vld [vmem:[#allocation42_spill] sm:$0xff] }
 0x62f   : > { %v7425_v11 = vpop.eup %7424  ;;  %v3143_v46 = vmul.f32 %v7423_v37, %v11367_v9  ;;  %v11379_v9 = vld [vmem:[#allocation66_spill] sm:$0xff] }
 0x630   : > { %v2994_v45 = vpop.xlane.xlu1 %2993  ;;  %v3000_v25 = vpop.xlane.xlu0 %2999  ;;  %v3145_v10 = vmul.f32 %v7425_v11, %v11368_v60 }
 0x631   : > { %v9855_v36 = vpop.eup %7426  ;;  %v3196_v13 = vpack.c.bf16 %v3144_v61, %v3143_v46  ;;  %7446 = vrcp.f32 %v3000_v25 }
 0x632   : > { %v9860_v20 = vpop.eup %7428  ;;  %v3197_v62 = vpack.c.bf16 %v3146_v1, %v3145_v10  ;;  %7448 = vrcp.f32 %v2994_v45 }
 0x633   : > { %6602 = vmatmul.mubr.bf16.vlgmr.msra.gmra.mxu1 %v3194_v6  ;;  %v7431_v44 = vpop.eup %7430  ;;  %7450 = vrcp.f32 %v2998_v41 }
 0x634   : > { %6650 = vmatpush3.bf16.msra.mxu1 %v9792_v4  ;;  %6605 = vmatprep.mubr.bf16.mxu1 %v3195_v14  ;;  %v3026_v12 = vpop.xlane.xlu1 %3025  ;;  %v2025_v4 = vpack.c.bf16 %v6999_v15, %v6998_v32  ;;  %v7433_v52 = vpop.eup %7432  ;;  %v3148_v51 = vmul.f32 %v7431_v44, %v11370_v56  ;;  %v11380_v44 = vld [vmem:[#allocation45_spill] sm:$0xff] }
 0x635   : > { %6651 = vmatprep.subr.bf16.mxu1 %v2026_v57  ;;  %3041 = vadd.xlane.f32.xlu0 %v9841_v43  ;;  %v7435_v63 = vpop.eup %7434  ;;  %v3150_v33 = vmul.f32 %v7433_v52, %v11371_v0  ;;  %v11381_v52 = vld [vmem:[#allocation49_spill] sm:$0xff] }
 0x636   : > { %v7437_v27 = vpop.eup %7436  ;;  %v3147_v59 = vmul.f32 %v7435_v63, %v11372_v53 }
 0x637   : > { %v9869_v38 = vpop.eup %7438  ;;  %v3149_v29 = vmul.f32 %v7437_v27, %v11373_v8  ;;  %v11383_v8 = vld [vmem:[#allocation50_spill] sm:$0xff] }
 0x638   : > { %6652 = vmatpush3.bf16.msra.mxu1 %v2026_v57  ;;  %v9857_v26 = vpop.xlane.xlu1 %3031  ;;  %v3198_v30 = vpack.c.bf16 %v3148_v51, %v3147_v59  ;;  %v7441_v7 = vpop.eup %7440  ;;  %v11382_v59 = vld [vmem:[#allocation53_spill] sm:$0xff] }
 0x639   : > { %6653 = vmatprep.subr.bf16.mxu1 %v2025_v4  ;;  %3045 = vadd.xlane.f32.xlu0 %v9855_v36  ;;  %v3199_v23 = vpack.c.bf16 %v3150_v33, %v3149_v29  ;;  %v9873_v18 = vpop.eup %7442  ;;  %v3152_v2 = vmul.f32 %v7441_v7, %v11374_v50 }
 0x63a   : > { %v7445_v45 = vpop.eup %7444 }
 0x63b   : > { %6606 = vmatmul.mubr.bf16.gmra.mxu1 %v3196_v13  ;;  %v3151_v28 = vmul.f32 %v7445_v45, %v11375_v35  ;;  %v11385_v45 = vld [vmem:[#allocation46_spill] sm:$0xff] }
 0x63c   : > { %6654 = vmatpush3.bf16.msra.mxu1 %v2025_v4  ;;  %6609 = vmatprep.mubr.bf16.mxu1 %v3197_v62  ;;  %v2996_v49 = vpop.xlane.xlu1 %2995 }
 0x63d   : > { %6655 = vmatprep.subr.bf16.mxu1 %v2024_v24  ;;  %7452 = vrcp.f32 %v2996_v49  ;;  %3047 = vadd.xlane.f32.xlu0 %v9860_v20 }
 0x63e   : > { %7454 = vrcp.f32 %v3026_v12  ;;  %v7447_v14 = vpop.eup %7446  ;;  %v3200_v12 = vpack.c.bf16 %v3152_v2, %v3151_v28 }
 0x63f   : > { %v7449_v15 = vpop.eup %7448  ;;  %v3156_v61 = vmul.f32 %v7447_v14, %v11376_v22 }
 0x640   : > { %6656 = vmatpush3.bf16.msra.mxu1 %v2024_v24  ;;  %v3028_v41 = vpop.xlane.xlu1 %3027  ;;  %v7451_v37 = vpop.eup %7450  ;;  %v3153_v5 = vmul.f32 %v7449_v15, %v11377_v58 }
 0x641   : > { %6657 = vmatprep.subr.bf16.mxu1 %v2023_v42  ;;  %7456 = vrcp.f32 %v3028_v41  ;;  %3049 = vadd.xlane.f32.xlu0 %v9869_v38  ;;  %v3155_v46 = vmul.f32 %v7451_v37, %v11379_v9 }
 0x643   : > { %6610 = vmatmul.mubr.bf16.gmra.mxu1 %v3198_v30  ;;  %v3202_v13 = vpack.c.bf16 %v3156_v61, %v3155_v46  ;;  %v11384_v30 = vld [vmem:[#allocation48_spill] sm:$0xff] }
 0x644   : > { %6658 = vmatpush3.bf16.msra.mxu1 %v2023_v42  ;;  %v3002_v21 = vpop.xlane.xlu0 %3001  ;;  %6613 = vmatprep.mubr.bf16.mxu1 %v3199_v23  ;;  %v3006_v6 = vpop.xlane.xlu1 %3005 }
 0x645   : > { %3053 = vadd.xlane.f32.xlu0 %v9873_v18 }
 0x648   : > { %v9878_v32 = vpop.xlane.xlu0 %3033  ;;  %v3008_v57 = vpop.xlane.xlu1 %3007 }
 0x649   : > { %7458 = vrcp.f32 %v3008_v57  ;;  %v11386_v57 = vld [vmem:[#allocation74_spill] sm:$0xff] }
 0x64a   : > { %v7453_v11 = vpop.eup %7452  ;;  %7460 = vrcp.f32 %v3002_v21 }
 0x64b   : > { %6614 = vmatmul.mubr.bf16.gmra.mxu1 %v3200_v12  ;;  %v3154_v1 = vmul.f32 %v7453_v11, %v11378_v19  ;;  %v7455_v39 = vpop.eup %7454  ;;  %7462 = vrcp.f32 %v3006_v6  ;;  %v11387_v12 = vld [vmem:[#allocation76_spill] sm:$0xff] }
 0x64c   : > { %v3004_v25 = vpop.xlane.xlu0 %3003  ;;  %v3038_v4 = vpop.xlane.xlu1 %3037  ;;  %v3169_v62 = vmul.f32 %v7455_v39, %v11380_v44 }
 0x64d   : > { %7464 = vrcp.f32 %v3004_v25  ;;  %v3201_v60 = vpack.c.bf16 %v3154_v1, %v3153_v5 }
 0x64e   : > { %v7457_v10 = vpop.eup %7456 }
 0x64f   : > { %6633 = vmatprep.mubr.bf16.mxu0 %v3201_v60  ;;  %v3170_v40 = vmul.f32 %v7457_v10, %v11381_v52  ;;  %v11388_v52 = vld [vmem:[#allocation41_spill] sm:$0xff] }
 0x650   : > { %v7017_v48 = vpop.permute.xlu0 %7016  ;;  %6634 = vmatmul.mubr.bf16.vlgmr.msra.gmra.mxu0 %v3202_v13  ;;  %v3036_v3 = vpop.xlane.xlu1 %3035 }
 0x651   : > { %v7019_v24 = vunpack.i.h.bf16 %v7017_v48  ;;  %v7018_v63 = vunpack.i.l.bf16 %v7017_v48  ;;  %v3209_v49 = vpack.c.bf16 %v3170_v40, %v3169_v62  ;;  %v11389_v48 = vld [vmem:[#allocation75_spill] sm:$0xff] }
 0x653   : > { %6665 = vmatprep.mubr.bf16.mxu1 %v3209_v49  ;;  %v2022_v27 = vpack.c.bf16 %v7019_v24, %v7018_v63  ;;  %v11390_v24 = vld [vmem:[#allocation73_spill] sm:$0xff] }
 0x654   : > { %v3010_v56 = vpop.xlane.xlu1 %3009 }
 0x655   : > { %6659 = vmatprep.subr.bf16.mxu1 %v2022_v27  ;;  %7466 = vrcp.f32 %v3010_v56 }
 0x656   : > { %6660 = vmatpush3.bf16.msra.mxu1 %v2022_v27  ;;  %v7459_v51 = vpop.eup %7458  ;;  %v11391_v27 = vld [vmem:[#allocation71_spill] sm:$0xff] }
 0x657   : > { %v7461_v0 = vpop.eup %7460  ;;  %v3160_v41 = vmul.f32 %v7459_v51, %v11382_v59 }
 0x658   : > { %v3016_v33 = vpop.xlane.xlu1 %3015  ;;  %v7463_v42 = vpop.eup %7462  ;;  %v3157_v29 = vmul.f32 %v7461_v0, %v11383_v8 }
 0x659   : > { %v3159_v21 = vmul.f32 %v7463_v42, %v11385_v45 }
 0x65a   : > { %v7465_v53 = vpop.eup %7464 }
 0x65b   : > { %v3158_v7 = vmul.f32 %v7465_v53, %v11384_v30  ;;  %v3204_v50 = vpack.c.bf16 %v3160_v41, %v3159_v21  ;;  %v11394_v21 = vld [vmem:[#allocation77_spill] sm:$0xff] }
 0x65c   : > { %v3012_v23 = vpop.xlane.xlu1 %3011 }
 0x65d   : > { %7468 = vrcp.f32 %v3012_v23  ;;  %v3203_v6 = vpack.c.bf16 %v3158_v7, %v3157_v29  ;;  %v11393_v23 = vld [vmem:[#allocation31_spill] sm:$0xff] }
 0x65e   : > { %7470 = vrcp.f32 %v9843_v31 }
 0x65f   : > { %6637 = vmatprep.mubr.bf16.mxu0 %v3203_v6  ;;  %7472 = vrcp.f32 %v9857_v26 }
 0x660   : > { %6638 = vmatmul.mubr.bf16.gmra.mxu0 %v3204_v50  ;;  %v3040_v2 = vpop.xlane.xlu1 %3039  ;;  %7474 = vrcp.f32 %v3016_v33  ;;  %v11392_v33 = vld [vmem:[#allocation55_spill] sm:$0xff]  ;;  %v11395_v50 = vld [vmem:[#allocation29_spill] sm:$0xff] }
 0x661   : > { %7476 = vrcp.f32 %v3036_v3 }
 0x662   : > { %v7467_v35 = vpop.eup %7466 }
 0x663   : > { %v3161_v37 = vmul.f32 %v7467_v35, %v11386_v57  ;;  %v11396_v35 = vld [vmem:[#allocation57_spill] sm:$0xff] }
 0x664   : > { %v3024_v14 = vpop.xlane.xlu1 %3023 }
 0x668   : > { %v3020_v28 = vpop.xlane.xlu1 %3019 }
 0x66a   : > { %v7469_v15 = vpop.eup %7468 }
 0x66b   : > { %v3162_v11 = vmul.f32 %v7469_v15, %v11387_v12  ;;  %v7471_v9 = vpop.eup %7470 }
 0x66c   : > { %v7022_v22 = vpop.permute.xlu1 %7021  ;;  %v7473_v46 = vpop.eup %7472  ;;  %v3171_v56 = vmul.f32 %v7471_v9, %v11391_v27  ;;  %v7145_v27 = vld [vmem:[%s8293_s19 + $0x20] sm:$0xff]  }
 0x66d   : > { %v3205_v61 = vpack.c.bf16 %v3162_v11, %v3161_v37  ;;  %v7024_v58 = vunpack.i.h.bf16 %v7022_v22  ;;  %v7023_v5 = vunpack.i.l.bf16 %v7022_v22  ;;  %v7475_v60 = vpop.eup %7474  ;;  %v3172_v40 = vmul.f32 %v7473_v46, %v11388_v52 }
 0x66e   : > { %v7477_v10 = vpop.eup %7476  ;;  %v3164_v3 = vmul.f32 %v7475_v60, %v11389_v48 }
 0x66f   : > { %6641 = vmatprep.mubr.bf16.mxu0 %v3205_v61  ;;  %v2021_v19 = vpack.c.bf16 %v7024_v58, %v7023_v5  ;;  %v3174_v63 = vmul.f32 %v7477_v10, %v11390_v24  ;;  %v3210_v59 = vpack.c.bf16 %v3172_v40, %v3171_v56  ;;  %v7143_v24 = vld [vmem:[%s8293_s19 + $0x30] sm:$0xff]  }
 0x671   : > { %6661 = vmatprep.subr.bf16.mxu1 %v2021_v19 }
 0x672   : > { %6662 = vmatpush3.bf16.msra.mxu1 %v2021_v19 }
 0x681   : > { %v3014_v1 = vpop.xlane.xlu0 %3013 }
 0x682   : > { %7478 = vrcp.f32 %v3014_v1 }
 0x683   : > { %7480 = vrcp.f32 %v9878_v32 }
 0x684   : > { %7482 = vrcp.f32 %v3038_v4 }
 0x685   : > { %v3022_v39 = vpop.xlane.xlu0 %3021  ;;  %7484 = vrcp.f32 %v3040_v2 }
 0x686   : > { %7486 = vrcp.f32 %v3022_v39 }
 0x687   : > { %7488 = vrcp.f32 %v3020_v28 }
 0x688   : > { %7490 = vrcp.f32 %v3024_v14 }
 0x689   : > { %v3018_v25 = vpop.xlane.xlu0 %3017 }
 0x68a   : > { %7492 = vrcp.f32 %v3018_v25 }
 0x68d   : > { %v7027_v31 = vpop.permute.xlu0 %7026 }
 0x68e   : > { %v7029_v26 = vunpack.i.h.bf16 %v7027_v31  ;;  %v7028_v13 = vunpack.i.l.bf16 %v7027_v31 }
 0x68f   : > { %v7479_v44 = vpop.eup %7478 }
 0x690   : > { %v7481_v62 = vpop.eup %7480  ;;  %v2020_v32 = vpack.c.bf16 %v7029_v26, %v7028_v13  ;;  %v3163_v4 = vmul.f32 %v7479_v44, %v9744_v34 }
 0x691   : > { %v7483_v49 = vpop.eup %7482  ;;  %v3173_v42 = vmul.f32 %v7481_v62, %v11392_v33 }
 0x692   : > { %6663 = vmatprep.subr.bf16.mxu1 %v2020_v32  ;;  %v3206_v51 = vpack.c.bf16 %v3164_v3, %v3163_v4  ;;  %v7485_v0 = vpop.eup %7484  ;;  %v3175_v28 = vmul.f32 %v7483_v49, %v11396_v35 }
 0x693   : > { %6664 = vmatpush3.bf16.msra.mxu1 %v2020_v32  ;;  %v7487_v53 = vpop.eup %7486  ;;  %v3211_v8 = vpack.c.bf16 %v3174_v63, %v3173_v42  ;;  %v3176_v6 = vmul.f32 %v7485_v0, %v11394_v21  ;;  %v7146_v0 = vld [vmem:[%s8293_s19 + $0x18] sm:$0xff]   ;;  %v7147_v42 = vld [vmem:[%s8293_s19 + $0x10] sm:$0xff]  }
 0x694   : > { %6642 = vmatmul.mubr.bf16.gmra.mxu0 %v3206_v51  ;;  %v7489_v41 = vpop.eup %7488  ;;  %v3167_v30 = vmul.f32 %v7487_v53, %v9752_v47 }
 0x695   : > { %v7491_v29 = vpop.eup %7490  ;;  %v3166_v45 = vmul.f32 %v7489_v41, %v11393_v23  ;;  %v3212_v57 = vpack.c.bf16 %v3176_v6, %v3175_v28 }
 0x696   : > { %6666 = vmatmul.mubr.bf16.vlgmr.msra.gmra.mxu1 %v3210_v59  ;;  %v3168_v2 = vmul.f32 %v7491_v29, %v11395_v50 }
 0x697   : > { %v7493_v34 = vpop.eup %7492  ;;  %6669 = vmatprep.mubr.bf16.mxu1 %v3211_v8  ;;  %v7148_v8 = vld [vmem:[%s8293_s19 + $0x8] sm:$0xff]  }
 0x698   : > { %v3165_v7 = vmul.f32 %v7493_v34, %v9760_v17  ;;  %v3208_v15 = vpack.c.bf16 %v3168_v2, %v3167_v30  ;;  %v7149_v34 = vld [vmem:[%s8293_s19] sm:$0xff]  }
 0x69a   : > { %v3207_v14 = vpack.c.bf16 %v3166_v45, %v3165_v7 }
 0x69c   : > { %6645 = vmatprep.mubr.bf16.mxu0 %v3207_v14 }
 0x69d   : > { %6646 = vmatmul.mubr.bf16.gmra.mxu0 %v3208_v15  ;;  %v3044_v37 = vpop.xlane.xlu1 %3043 }
 0x69e   : > { %6670 = vmatmul.mubr.bf16.gmra.mxu1 %v3212_v57  ;;  %7494 = vrcp.f32 %v3044_v37 }
 0x6a1   : > { %v3052_v17 = vpop.xlane.xlu1 %3051 }
 0x6a5   : > { %v3056_v61 = vpop.xlane.xlu1 %3055 }
 0x6ab   : > { %v7495_v22 = vpop.eup %7494 }
 0x6ac   : > { %v3178_v1 = vmul.f32 %v7495_v22, %v9783_v55 }
 0x6be   : > { %v3042_v12 = vpop.xlane.xlu0 %3041 }
 0x6bf   : > { %7496 = vrcp.f32 %v3042_v12 }
 0x6c2   : > { %v3046_v47 = vpop.xlane.xlu0 %3045 }
 0x6c3   : > { %7498 = vrcp.f32 %v3046_v47 }
 0x6c6   : > { %v3048_v11 = vpop.xlane.xlu0 %3047 }
 0x6c7   : > { %7500 = vrcp.f32 %v3048_v11 }
 0x6c8   : > { %7502 = vrcp.f32 %v3052_v17 }
 0x6ca   : > { %v3050_v58 = vpop.xlane.xlu0 %3049 }
 0x6cb   : > { %7504 = vrcp.f32 %v3050_v58 }
 0x6cc   : > { %v7497_v5 = vpop.eup %7496  ;;  %7506 = vrcp.f32 %v3056_v61 }
 0x6cd   : > { %v3177_v19 = vmul.f32 %v7497_v5, %v9841_v43 }
 0x6ce   : > { %v3054_v39 = vpop.xlane.xlu0 %3053 }
 0x6cf   : > { %7508 = vrcp.f32 %v3054_v39  ;;  %v3213_v25 = vpack.c.bf16 %v3178_v1, %v3177_v19 }
 0x6d0   : > { %v7499_v9 = vpop.eup %7498 }
 0x6d1   : > { %6673 = vmatprep.mubr.bf16.mxu1 %v3213_v25  ;;  %v3179_v60 = vmul.f32 %v7499_v9, %v9855_v36 }
 0x6d4   : > { %v7501_v46 = vpop.eup %7500 }
 0x6d5   : > { %v3180_v31 = vmul.f32 %v7501_v46, %v9860_v20  ;;  %v7503_v10 = vpop.eup %7502  ;;  %v9915_v20 = vpop.f32.mrf.mxu1 }
 0x6d6   : > { %v3182_v43 = vmul.f32 %v7503_v10, %v9802_v54 }
 0x6d7   : > { %v3214_v26 = vpack.c.bf16 %v3180_v31, %v3179_v60  ;;  %v9917_v4 = vpop.f32.mrf.mxu1 }
 0x6d8   : > { %v7505_v13 = vpop.eup %7504 }
 0x6d9   : > { %6674 = vmatmul.mubr.bf16.gmra.mxu1 %v3214_v26  ;;  %v3181_v44 = vmul.f32 %v7505_v13, %v9869_v38  ;;  %v7507_v55 = vpop.eup %7506  ;;  %v11397_v38 = vmov 0   ;;  %v9920_v54 = vpop.f32.mrf.mxu1 }
 0x6da   : > { %v3184_v36 = vmul.f32 %v7507_v55, %v9808_v16  ;;  %v7144_v16 = vld [vmem:[%s8293_s19 + $0x28] sm:$0xff]  }
 0x6db   : > { %v3215_v62 = vpack.c.bf16 %v3182_v43, %v3181_v44  ;;  %v9922_v48 = vpop.f32.mrf.mxu1 }
 0x6dc   : > { %v7509_v52 = vpop.eup %7508 }
 0x6dd   : > { %6677 = vmatprep.mubr.bf16.mxu1 %v3215_v62  ;;  %v3183_v40 = vmul.f32 %v7509_v52, %v9873_v18  ;;  %v9924_v3 = vpop.f32.mrf.mxu1  ;;  %v7142_v18 = vld [vmem:[%s8293_s19 + $0x38] sm:$0xff]  }
 0x6de   : > { %6681 = vmatprep.subr.bf16.mxu0 %v7142_v18 }
 0x6df   : > { %v3216_v32 = vpack.c.bf16 %v3184_v36, %v3183_v40  ;;  %v9928_v63 = vpop.f32.mrf.mxu1  ;;  %6682 = vmatpush3.bf16.msra.mxu0 %v7142_v18 }
 0x6e0   : > { %6683 = vmatprep.subr.bf16.mxu0 %v7143_v24 }
 0x6e1   : > { %6678 = vmatmul.mubr.bf16.gmra.mxu1 %v3216_v32  ;;  %v9931_v49 = vpop.f32.mrf.mxu1 }
 0x6e2   : > { %4650 = vmatprep.mubr.bf16.mxu1 %v11397_v38 }
 0x6e3   : > { %6684 = vmatpush3.bf16.msra.mxu0 %v7143_v24  ;;  %v9934_v56 = vpop.f32.mrf.mxu1 }
 0x6e4   : > { %6685 = vmatprep.subr.bf16.mxu0 %v7144_v16 }
 0x6e5   : > { %v9936_v51 = vpop.f32.mrf.mxu1 }
 0x6e7   : > { %6686 = vmatpush3.bf16.msra.mxu0 %v7144_v16  ;;  %v9939_v33 = vpop.f32.mrf.mxu1 }
 0x6e8   : > { %6687 = vmatprep.subr.bf16.mxu0 %v7145_v27 }
 0x6e9   : > { %v9942_v53 = vpop.f32.mrf.mxu1 }
 0x6eb   : > { %6688 = vmatpush3.bf16.msra.mxu0 %v7145_v27  ;;  %v9944_v59 = vpop.f32.mrf.mxu1 }
 0x6ec   : > { %6689 = vmatprep.subr.bf16.mxu0 %v7146_v0 }
 0x6ed   : > { %v9946_v41 = vpop.f32.mrf.mxu1 }
 0x6ef   : > { %6690 = vmatpush3.bf16.msra.mxu0 %v7146_v0  ;;  %v9949_v29 = vpop.f32.mrf.mxu1 }
 0x6f0   : > { %6691 = vmatprep.subr.bf16.mxu0 %v7147_v42 }
 0x6f1   : > { %v9952_v30 = vpop.f32.mrf.mxu1 }
 0x6f3   : > { %6692 = vmatpush3.bf16.msra.mxu0 %v7147_v42  ;;  %v9954_v45 = vpop.f32.mrf.mxu1 }
 0x6f4   : > { %6693 = vmatprep.subr.bf16.mxu0 %v7148_v8 }
 0x6f5   : > { %v9957_v14 = vpop.f32.mrf.mxu1 }
 0x6f7   : > { %6694 = vmatpush3.bf16.msra.mxu0 %v7148_v8  ;;  %v9960_v35 = vpop.f32.mrf.mxu1 }
 0x6f8   : > { %6695 = vmatprep.subr.bf16.mxu0 %v7149_v34 }
 0x6f9   : > { %v9962_v28 = vpop.f32.mrf.mxu1 }
 0x6fb   : > { %6696 = vmatpush3.bf16.msra.mxu0 %v7149_v34  ;;  %v9964_v37 = vpop.f32.mrf.mxu1 }
 0x6fd   : > { %v9967_v22 = vpop.f32.mrf.mxu1 }
 0x6ff   : > { %v9970_v61 = vpop.f32.mrf.mxu1 }
 0x701   : > { %v9972_v58 = vpop.f32.mrf.mxu1 }
 0x703   : > { %v9974_v5 = vpop.f32.mrf.mxu1 }
 0x705   : > { %v9976_v19 = vpop.f32.mrf.mxu1 }
 0x707   : > { %v9978_v1 = vpop.f32.mrf.mxu1 }
 0x709   : > { %v9980_v39 = vpop.f32.mrf.mxu1 }
 0x70b   : > { %v9982_v25 = vpop.f32.mrf.mxu1 }
 0x70d   : > { %v9984_v9 = vpop.f32.mrf.mxu1 }
 0x70f   : > { %v9986_v46 = vpop.f32.mrf.mxu1 }
 0x710   : > { %v6635_v7 = vpop.f32.mrf.mxu0 }
 0x711   : > { %v9988_v60 = vpop.f32.mrf.mxu1 }
 0x712   : > { %v3445_v23 = vpop.f32.mrf.mxu0 }
 0x713   : > { %v9990_v31 = vpop.f32.mrf.mxu1 }
 0x714   : > { %v6636_v21 = vpop.f32.mrf.mxu0 }
 0x715   : > { %v7035_v6 = vpack.i.bf16 %v6636_v21, %v6635_v7 }
 0x716   : > { %v3448_v50 = vpop.f32.mrf.mxu0 }
 0x717   : > { %v7030_v2 = vpack.i.bf16 %v3448_v50, %v3445_v23  ;;  %7036 = vrot.lane.b32.xlu1 %v7035_v6, %s7991_s14 }
 0x719   : > { %7031 = vrot.lane.b32.xlu0 %v7030_v2, %s7991_s14 }
 0x720   : > { %v6639_v15 = vpop.f32.mrf.mxu0 }
 0x722   : > { %v3461_v57 = vpop.f32.mrf.mxu0 }
 0x724   : > { %v6640_v12 = vpop.f32.mrf.mxu0 }
 0x725   : > { %v7045_v47 = vpack.i.bf16 %v6640_v12, %v6639_v15 }
 0x726   : > { %v3464_v17 = vpop.f32.mrf.mxu0 }
 0x727   : > { %v7040_v11 = vpack.i.bf16 %v3464_v17, %v3461_v57  ;;  %7046 = vrot.lane.b32.xlu0 %v7045_v47, %s7991_s14 }
 0x729   : > { %7041 = vrot.lane.b32.xlu1 %v7040_v11, %s7991_s14 }
 0x754   : > { %v6643_v10 = vpop.f32.mrf.mxu0 }
 0x756   : > { %v3477_v26 = vpop.f32.mrf.mxu0  ;;  %v6667_v13 = vpop.f32.mrf.mxu1 }
 0x758   : > { %v6644_v44 = vpop.f32.mrf.mxu0  ;;  %v3542_v43 = vpop.f32.mrf.mxu1 }
 0x759   : > { %v7055_v55 = vpack.i.bf16 %v6644_v44, %v6643_v10 }
 0x75a   : > { %v3480_v62 = vpop.f32.mrf.mxu0  ;;  %v6668_v52 = vpop.f32.mrf.mxu1 }
 0x75b   : > { %v7050_v40 = vpack.i.bf16 %v3480_v62, %v3477_v26  ;;  %7056 = vrot.lane.b32.xlu0 %v7055_v55, %s7991_s14  ;;  %v7075_v7 = vpack.i.bf16 %v6668_v52, %v6667_v13 }
 0x75c   : > { %v3545_v36 = vpop.f32.mrf.mxu1 }
 0x75d   : > { %7051 = vrot.lane.b32.xlu1 %v7050_v40, %s7991_s14  ;;  %v6647_v32 = vpop.f32.mrf.mxu0  ;;  %v7070_v23 = vpack.i.bf16 %v3545_v36, %v3542_v43 }
 0x75e   : > { %v6671_v18 = vpop.f32.mrf.mxu1 }
 0x75f   : > { %v3493_v24 = vpop.f32.mrf.mxu0 }
 0x760   : > { %v3558_v16 = vpop.f32.mrf.mxu1 }
 0x761   : > { %v6648_v27 = vpop.f32.mrf.mxu0 }
 0x762   : > { %v7065_v0 = vpack.i.bf16 %v6648_v27, %v6647_v32  ;;  %v6672_v34 = vpop.f32.mrf.mxu1 }
 0x763   : > { %v3496_v42 = vpop.f32.mrf.mxu0  ;;  %v7085_v6 = vpack.i.bf16 %v6672_v34, %v6671_v18 }
 0x764   : > { %v7060_v8 = vpack.i.bf16 %v3496_v42, %v3493_v24  ;;  %7066 = vrot.lane.b32.xlu0 %v7065_v0, %s7991_s14  ;;  %v3561_v21 = vpop.f32.mrf.mxu1 }
 0x765   : > { %v7080_v50 = vpack.i.bf16 %v3561_v21, %v3558_v16 }
 0x766   : > { %7061 = vrot.lane.b32.xlu1 %v7060_v8, %s7991_s14 }
 0x768   : > { %7076 = vrot.lane.b32.xlu0 %v7075_v7, %s7991_s14 }
 0x76a   : > { %7071 = vrot.lane.b32.xlu1 %v7070_v23, %s7991_s14 }
 0x76c   : > { %7086 = vrot.lane.b32.xlu0 %v7085_v6, %s7991_s14 }
 0x76e   : > { %7081 = vrot.lane.b32.xlu1 %v7080_v50, %s7991_s14 }
 0x789   : > { %v7037_v2 = vpop.permute.xlu1 %7036 }
 0x78a   : > { %v7039_v15 = vunpack.i.h.bf16 %v7037_v2  ;;  %v7038_v57 = vunpack.i.l.bf16 %v7037_v2 }
 0x78b   : > { %v7032_v12 = vpop.permute.xlu0 %7031 }
 0x78c   : > { %v7034_v47 = vunpack.i.h.bf16 %v7032_v12  ;;  %v7033_v17 = vunpack.i.l.bf16 %v7032_v12  ;;  %v3736_v11 = vsel %vm2028_vm0, %v9920_v54, %v7039_v15  ;;  %v3735_v10 = vsel %vm2028_vm0, %v9915_v20, %v7038_v57 }
 0x78d   : > { %v3766_v43 = vpack.c.bf16 %v3736_v11, %v3735_v10 }
 0x78e   : > { %v3733_v26 = vsel %vm2028_vm0, %v9917_v4, %v7033_v17  ;;  %v3734_v13 = vsel %vm2028_vm0, %v9922_v48, %v7034_v47 }
 0x78f   : > { %v3765_v44 = vpack.c.bf16 %v3734_v13, %v3733_v26 }
 0x791   : > { %6697 = vmatprep.mubr.bf16.mxu0 %v3765_v44 }
 0x792   : > { %6698 = vmatmul.mubr.bf16.vlgmr.msra.gmra.mxu0 %v3766_v43 }
 0x799   : > { %v7047_v55 = vpop.permute.xlu0 %7046  ;;  %v6675_v62 = vpop.f32.mrf.mxu1 }
 0x79a   : > { %v7049_v52 = vunpack.i.h.bf16 %v7047_v55  ;;  %v7048_v40 = vunpack.i.l.bf16 %v7047_v55 }
 0x79b   : > { %v7042_v36 = vpop.permute.xlu1 %7041  ;;  %v3574_v32 = vpop.f32.mrf.mxu1 }
 0x79c   : > { %v7044_v54 = vunpack.i.h.bf16 %v7042_v36  ;;  %v7043_v18 = vunpack.i.l.bf16 %v7042_v36  ;;  %v3739_v20 = vsel %vm2028_vm0, %v9924_v3, %v7048_v40  ;;  %v3740_v4 = vsel %vm2028_vm0, %v9931_v49, %v7049_v52 }
 0x79d   : > { %v6676_v24 = vpop.f32.mrf.mxu1  ;;  %v3768_v34 = vpack.c.bf16 %v3740_v4, %v3739_v20 }
 0x79e   : > { %v7095_v48 = vpack.i.bf16 %v6676_v24, %v6675_v62  ;;  %v3737_v16 = vsel %vm2028_vm0, %v9928_v63, %v7043_v18  ;;  %v3738_v27 = vsel %vm2028_vm0, %v9934_v56, %v7044_v54 }
 0x79f   : > { %v3577_v0 = vpop.f32.mrf.mxu1  ;;  %v3767_v42 = vpack.c.bf16 %v3738_v27, %v3737_v16 }
 0x7a0   : > { %v7090_v8 = vpack.i.bf16 %v3577_v0, %v3574_v32  ;;  %7096 = vrot.lane.b32.xlu0 %v7095_v48, %s7991_s14 }
 0x7a1   : > { %v6679_v7 = vpop.f32.mrf.mxu1  ;;  %6701 = vmatprep.mubr.bf16.mxu0 %v3767_v42 }
 0x7a2   : > { %6702 = vmatmul.mubr.bf16.gmra.mxu0 %v3768_v34  ;;  %7091 = vrot.lane.b32.xlu1 %v7090_v8, %s7991_s14 }
 0x7a3   : > { %v3590_v3 = vpop.f32.mrf.mxu1 }
 0x7a5   : > { %v6680_v49 = vpop.f32.mrf.mxu1 }
 0x7a6   : > { %v7105_v23 = vpack.i.bf16 %v6680_v49, %v6679_v7 }
 0x7a7   : > { %v3593_v21 = vpop.f32.mrf.mxu1 }
 0x7a8   : > { %v7100_v6 = vpack.i.bf16 %v3593_v21, %v3590_v3  ;;  %7106 = vrot.lane.b32.xlu0 %v7105_v23, %s7991_s14 }
 0x7aa   : > { %7101 = vrot.lane.b32.xlu1 %v7100_v6, %s7991_s14 }
 0x7cd   : > { %v7057_v63 = vpop.permute.xlu0 %7056 }
 0x7ce   : > { %v7059_v56 = vunpack.i.h.bf16 %v7057_v63  ;;  %v7058_v50 = vunpack.i.l.bf16 %v7057_v63 }
 0x7cf   : > { %v7052_v2 = vpop.permute.xlu1 %7051 }
 0x7d0   : > { %v7054_v15 = vunpack.i.h.bf16 %v7052_v2  ;;  %v7053_v57 = vunpack.i.l.bf16 %v7052_v2  ;;  %v3743_v12 = vsel %vm2028_vm0, %v9936_v51, %v7058_v50  ;;  %v3744_v47 = vsel %vm2028_vm0, %v9942_v53, %v7059_v56 }
 0x7d1   : > { %v3770_v26 = vpack.c.bf16 %v3744_v47, %v3743_v12 }
 0x7d2   : > { %v3741_v17 = vsel %vm2028_vm0, %v9939_v33, %v7053_v57  ;;  %v3742_v11 = vsel %vm2028_vm0, %v9944_v59, %v7054_v15 }
 0x7d3   : > { %v3769_v10 = vpack.c.bf16 %v3742_v11, %v3741_v17 }
 0x7d5   : > { %6705 = vmatprep.mubr.bf16.mxu0 %v3769_v10 }
 0x7d6   : > { %v7067_v13 = vpop.permute.xlu0 %7066  ;;  %6706 = vmatmul.mubr.bf16.gmra.mxu0 %v3770_v26 }
 0x7d7   : > { %v7069_v44 = vunpack.i.h.bf16 %v7067_v13  ;;  %v7068_v43 = vunpack.i.l.bf16 %v7067_v13 }
 0x7d8   : > { %v7062_v55 = vpop.permute.xlu1 %7061 }
 0x7d9   : > { %v7064_v62 = vunpack.i.h.bf16 %v7062_v55  ;;  %v7063_v52 = vunpack.i.l.bf16 %v7062_v55  ;;  %v3747_v51 = vsel %vm2028_vm0, %v9946_v41, %v7068_v43  ;;  %v3748_v53 = vsel %vm2028_vm0, %v9952_v30, %v7069_v44  ;;  %v11398_v44 = vld [vmem:[#allocation22_spill] sm:$0xff] }
 0x7da   : > { %v7077_v33 = vpop.permute.xlu0 %7076  ;;  %v3772_v24 = vpack.c.bf16 %v3748_v53, %v3747_v51  ;;  %v4040_v43 = vsub.s32 2, %v11398_v44 }
 0x7db   : > { %v3745_v59 = vsel %vm2028_vm0, %v9949_v29, %v7063_v52  ;;  %v3746_v40 = vsel %vm2028_vm0, %v9954_v45, %v7064_v62  ;;  %v7079_v20 = vunpack.i.h.bf16 %v7077_v33  ;;  %v7078_v4 = vunpack.i.l.bf16 %v7077_v33  ;;  %v10070_v52 = vld [vmem:[%s8285_s13] sm:$0xff] }
 0x7dc   : > { %v7072_v36 = vpop.permute.xlu1 %7071  ;;  %v3771_v32 = vpack.c.bf16 %v3746_v40, %v3745_v59  ;;  %v7705_v40 = vld [vmem:[#allocation13 + $0x8] sm:$0xff] }
 0x7dd   : > { %v7074_v54 = vunpack.i.h.bf16 %v7072_v36  ;;  %v7073_v18 = vunpack.i.l.bf16 %v7072_v36  ;;  %v3752_v45 = vsel %vm2028_vm0, %v9962_v28, %v7079_v20  ;;  %v3751_v0 = vsel %vm2028_vm0, %v9957_v14, %v7078_v4 }
 0x7de   : > { %6709 = vmatprep.mubr.bf16.mxu0 %v3771_v32  ;;  %v7087_v42 = vpop.permute.xlu0 %7086  ;;  %v3774_v34 = vpack.c.bf16 %v3752_v45, %v3751_v0  ;;  %v7706_v32 = vld [vmem:[#allocation13 + $0x10] sm:$0xff] }
 0x7df   : > { %6710 = vmatmul.mubr.bf16.gmra.mxu0 %v3772_v24  ;;  %v3749_v41 = vsel %vm2028_vm0, %v9960_v35, %v7073_v18  ;;  %v3750_v30 = vsel %vm2028_vm0, %v9964_v37, %v7074_v54  ;;  %v7089_v37 = vunpack.i.h.bf16 %v7087_v42  ;;  %v7088_v7 = vunpack.i.l.bf16 %v7087_v42  ;;  %v7709_v42 = vld [vmem:[#allocation13 + $0x28] sm:$0xff] }
 0x7e0   : > { %v7082_v48 = vpop.permute.xlu1 %7081  ;;  %v3773_v29 = vpack.c.bf16 %v3750_v30, %v3749_v41  ;;  %v7707_v30 = vld [vmem:[#allocation13 + $0x20] sm:$0xff] }
 0x7e1   : > { %v7084_v16 = vunpack.i.h.bf16 %v7082_v48  ;;  %v7083_v27 = vunpack.i.l.bf16 %v7082_v48  ;;  %v3756_v28 = vsel %vm2028_vm0, %v9972_v58, %v7089_v37  ;;  %v3755_v14 = vsel %vm2028_vm0, %v9967_v22, %v7088_v7 }
 0x7e2   : > { %6713 = vmatprep.mubr.bf16.mxu0 %v3773_v29  ;;  %v3776_v49 = vpack.c.bf16 %v3756_v28, %v3755_v14 }
 0x7e3   : > { %v3753_v8 = vsel %vm2028_vm0, %v9970_v61, %v7083_v27  ;;  %v3754_v35 = vsel %vm2028_vm0, %v9974_v5, %v7084_v16  ;;  %v7708_v16 = vld [vmem:[#allocation13 + $0x30] sm:$0xff] }
 0x7e4   : > { %v3775_v3 = vpack.c.bf16 %v3754_v35, %v3753_v8 }
 0x7e7   : > { %6714 = vmatmul.mubr.bf16.gmra.mxu0 %v3774_v34  ;;  %v7710_v34 = vld [vmem:[#allocation13 + $0x38] sm:$0xff] }
 0x7e8   : > { %6717 = vmatprep.mubr.bf16.mxu0 %v3775_v3 }
 0x7ef   : > { %6718 = vmatmul.mubr.bf16.gmra.mxu0 %v3776_v49  ;;  %v7711_v49 = vld [vmem:[#allocation13 + $0x40] sm:$0xff] }
 0x812   : > { %v7097_v23 = vpop.permute.xlu0 %7096 }
 0x813   : > { %v7099_v21 = vunpack.i.h.bf16 %v7097_v23  ;;  %v7098_v61 = vunpack.i.l.bf16 %v7097_v23 }
 0x814   : > { %v7092_v6 = vpop.permute.xlu1 %7091 }
 0x815   : > { %v7094_v63 = vunpack.i.h.bf16 %v7092_v6  ;;  %v7093_v5 = vunpack.i.l.bf16 %v7092_v6  ;;  %v3760_v56 = vsel %vm2028_vm0, %v9980_v39, %v7099_v21  ;;  %v3759_v50 = vsel %vm2028_vm0, %v9976_v19, %v7098_v61  ;;  %v7712_v61 = vld [vmem:[#allocation13 + $0x50] sm:$0xff] }
 0x816   : > { %v3778_v15 = vpack.c.bf16 %v3760_v56, %v3759_v50  ;;  %v7713_v56 = vld [vmem:[#allocation13 + $0x48] sm:$0xff] }
 0x817   : > { %v3757_v58 = vsel %vm2028_vm0, %v9978_v1, %v7093_v5  ;;  %v3758_v22 = vsel %vm2028_vm0, %v9982_v25, %v7094_v63 }
 0x818   : > { %v3777_v2 = vpack.c.bf16 %v3758_v22, %v3757_v58  ;;  %v7714_v22 = vld [vmem:[#allocation13 + $0x58] sm:$0xff] }
 0x81a   : > { %6721 = vmatprep.mubr.bf16.mxu0 %v3777_v2  ;;  %v7107_v57 = vpop.permute.xlu0 %7106 }
 0x81b   : > { %v7109_v12 = vunpack.i.h.bf16 %v7107_v57  ;;  %v7108_v47 = vunpack.i.l.bf16 %v7107_v57  ;;  %6722 = vmatmul.mubr.bf16.gmra.mxu0 %v3778_v15 }
 0x81c   : > { %v7102_v17 = vpop.permute.xlu1 %7101 }
 0x81d   : > { %v7104_v11 = vunpack.i.h.bf16 %v7102_v17  ;;  %v7103_v39 = vunpack.i.l.bf16 %v7102_v17  ;;  %v3764_v19 = vsel %vm2028_vm0, %v9988_v60, %v7109_v12  ;;  %v3763_v1 = vsel %vm2028_vm0, %v9984_v9, %v7108_v47  ;;  %v7703_v9 = vld [vmem:[#allocation13] sm:$0xff] }
 0x81e   : > { %v3780_v13 = vpack.c.bf16 %v3764_v19, %v3763_v1  ;;  %v10073_v60 = vrot.slane %v10070_v52, %v4040_v43  ;;  %v7715_v47 = vld [vmem:[#allocation13 + $0x60] sm:$0xff]  ;;  %v7716_v19 = vld [vmem:[#allocation13 + $0x70] sm:$0xff] }
 0x81f   : > { %v3761_v25 = vsel %vm2028_vm0, %v9986_v46, %v7103_v39  ;;  %v3762_v10 = vsel %vm2028_vm0, %v9990_v31, %v7104_v11  ;;  %v7704_v31 = vld [vmem:[#allocation13 + $0x18] sm:$0xff] }
 0x820   : > { %v3779_v26 = vpack.c.bf16 %v3762_v10, %v3761_v25 }
 0x822   : > { %6725 = vmatprep.mubr.bf16.mxu0 %v3779_v26  ;;  %v7717_v26 = vld [vmem:[#allocation13 + $0x68] sm:$0xff] }
 0x823   : > { %6726 = vmatmul.mubr.bf16.gmra.mxu0 %v3780_v13 }
 0x852   : > { %v6699_v55 = vpop.f32.mrf.mxu0 }
 0x853   : > { %v4008_v54 = vadd.f32 %v7706_v32, %v6699_v55 }
 0x854   : > { %v3879_v62 = vpop.f32.mrf.mxu0 }
 0x855   : > { %v4006_v51 = vadd.f32 %v7703_v9, %v3879_v62  ;;  %v10088_v20 = vadd.f32 %v10073_v60, %v4008_v54  ;;  %v7718_v62 = vld [vmem:[#allocation13 + $0x78] sm:$0xff] }
 0x856   : > { %v6700_v53 = vpop.f32.mrf.mxu0 }
 0x857   : > { %v10076_v46 = vadd.f32 %v10073_v60, %v4006_v51  ;;  %v4009_v33 = vadd.f32 %v7704_v31, %v6700_v53  ;;  %v7719_v31 = vld [vmem:[#allocation13 + $0x80] sm:$0xff] }
 0x858   : > { %v3882_v59 = vpop.f32.mrf.mxu0 }
 0x859   : > { %v4007_v36 = vadd.f32 %v7705_v40, %v3882_v59  ;;  %4074 = vadd.xlane.f32.xlu1 %v10076_v46  ;;  %v10080_v18 = vadd.f32 %v10073_v60, %v4009_v33 }
 0x85b   : > { %v10083_v24 = vadd.f32 %v10073_v60, %v4007_v36  ;;  %v7720_v36 = vld [vmem:[#allocation13 + $0x90] sm:$0xff] }
 0x85d   : > { %4076 = vadd.xlane.f32.xlu0 %v10083_v24  ;;  %4080 = vadd.xlane.f32.xlu1 %v10080_v18 }
 0x861   : > { %4078 = vadd.xlane.f32.xlu0 %v10088_v20 }
 0x862   : > { %v6703_v4 = vpop.f32.mrf.mxu0 }
 0x863   : > { %v4012_v27 = vadd.f32 %v7708_v16, %v6703_v4 }
 0x864   : > { %v3895_v41 = vpop.f32.mrf.mxu0 }
 0x865   : > { %v4010_v48 = vadd.f32 %v7707_v30, %v3895_v41  ;;  %v10096_v35 = vadd.f32 %v10073_v60, %v4012_v27  ;;  %v7721_v41 = vld [vmem:[#allocation13 + $0x88] sm:$0xff] }
 0x866   : > { %v6704_v29 = vpop.f32.mrf.mxu0 }
 0x867   : > { %v10092_v45 = vadd.f32 %v10073_v60, %v4010_v48  ;;  %v4013_v37 = vadd.f32 %v7710_v34, %v6704_v29  ;;  %v7722_v29 = vld [vmem:[#allocation13 + $0x98] sm:$0xff] }
 0x868   : > { %v3898_v0 = vpop.f32.mrf.mxu0 }
 0x869   : > { %v4011_v8 = vadd.f32 %v7709_v42, %v3898_v0  ;;  %4082 = vadd.xlane.f32.xlu0 %v10092_v45  ;;  %v10104_v3 = vadd.f32 %v10073_v60, %v4013_v37  ;;  %v7150_v42 = vld [vmem:[%s8299_s28 + $0x70] ss:$8 sps:$4 sm:$0xff]  }
 0x86b   : > { %v10099_v7 = vadd.f32 %v10073_v60, %v4011_v8  ;;  %v7152_v8 = vld [vmem:[%s8299_s28 + $0x74] ss:$8 sps:$4 sm:$0xff]  }
 0x86c   : > { %4618 = vmatprep.subr.bf16.mxu1 %v7152_v8 }
 0x86d   : > { %4086 = vadd.xlane.f32.xlu0 %v10096_v35  ;;  %4084 = vadd.xlane.f32.xlu1 %v10099_v7 }
 0x86e   : > { %4619 = vmatpush1.bf16.msra.mxu1 %v7150_v42  ;;  %v7727_v42 = vld [vmem:[#allocation13 + $0xc0] sm:$0xff] }
 0x871   : > { %4088 = vadd.xlane.f32.xlu1 %v10104_v3 }
 0x896   : > { %v6707_v28 = vpop.f32.mrf.mxu0 }
 0x897   : > { %v4016_v6 = vadd.f32 %v7712_v61, %v6707_v28 }
 0x898   : > { %v3911_v14 = vpop.f32.mrf.mxu0 }
 0x899   : > { %v4014_v23 = vadd.f32 %v7711_v49, %v3911_v14  ;;  %v10112_v58 = vadd.f32 %v10073_v60, %v4016_v6 }
 0x89a   : > { %v6708_v21 = vpop.f32.mrf.mxu0 }
 0x89b   : > { %v10108_v63 = vadd.f32 %v10073_v60, %v4014_v23  ;;  %v4017_v2 = vadd.f32 %v7714_v22, %v6708_v21  ;;  %v7723_v21 = vld [vmem:[#allocation13 + $0xa0] sm:$0xff] }
 0x89c   : > { %v3914_v5 = vpop.f32.mrf.mxu0 }
 0x89d   : > { %v4015_v50 = vadd.f32 %v7713_v56, %v3914_v5  ;;  %4090 = vadd.xlane.f32.xlu0 %v10108_v63  ;;  %v10120_v11 = vadd.f32 %v10073_v60, %v4017_v2 }
 0x89f   : > { %v10115_v15 = vadd.f32 %v10073_v60, %v4015_v50  ;;  %v6711_v57 = vpop.f32.mrf.mxu0 }
 0x8a0   : > { %v4020_v1 = vadd.f32 %v7716_v19, %v6711_v57 }
 0x8a1   : > { %v3927_v12 = vpop.f32.mrf.mxu0  ;;  %4094 = vadd.xlane.f32.xlu0 %v10112_v58  ;;  %4092 = vadd.xlane.f32.xlu1 %v10115_v15 }
 0x8a2   : > { %v4018_v17 = vadd.f32 %v7715_v47, %v3927_v12  ;;  %v10128_v55 = vadd.f32 %v10073_v60, %v4020_v1  ;;  %v7724_v47 = vld [vmem:[#allocation13 + $0xa8] sm:$0xff] }
 0x8a3   : > { %v6712_v39 = vpop.f32.mrf.mxu0 }
 0x8a4   : > { %v10123_v25 = vadd.f32 %v10073_v60, %v4018_v17  ;;  %11400 = vst [vmem:[#allocation26_spill] sm:$0xff] %v10128_v55  ;;  %v4021_v9 = vadd.f32 %v7718_v62, %v6712_v39 }
 0x8a5   : > { %v3930_v10 = vpop.f32.mrf.mxu0  ;;  %4096 = vadd.xlane.f32.xlu1 %v10120_v11 }
 0x8a6   : > { %11399 = vst [vmem:[#allocation51_spill] sm:$0xff] %v10123_v25  ;;  %v4019_v13 = vadd.f32 %v7717_v26, %v3930_v10  ;;  %4098 = vadd.xlane.f32.xlu0 %v10123_v25  ;;  %v10136_v40 = vadd.f32 %v10073_v60, %v4021_v9 }
 0x8a7   : > { %v6715_v43 = vpop.f32.mrf.mxu0 }
 0x8a8   : > { %v10131_v51 = vadd.f32 %v10073_v60, %v4019_v13  ;;  %11402 = vst [vmem:[#allocation35_spill] sm:$0xff] %v10136_v40  ;;  %v4024_v32 = vadd.f32 %v7720_v36, %v6715_v43  ;;  %v7725_v13 = vld [vmem:[#allocation13 + $0xb0] sm:$0xff]  ;;  %v7726_v36 = vld [vmem:[#allocation13 + $0xb8] sm:$0xff] }
 0x8a9   : > { %v3943_v53 = vpop.f32.mrf.mxu0 }
 0x8aa   : > { %11401 = vst [vmem:[#allocation24_spill] sm:$0xff] %v10131_v51  ;;  %v4022_v33 = vadd.f32 %v7719_v31, %v3943_v53  ;;  %4102 = vadd.xlane.f32.xlu0 %v10128_v55  ;;  %4100 = vadd.xlane.f32.xlu1 %v10131_v51  ;;  %v10144_v48 = vadd.f32 %v10073_v60, %v4024_v32 }
 0x8ab   : > { %v6716_v59 = vpop.f32.mrf.mxu0 }
 0x8ac   : > { %v10139_v54 = vadd.f32 %v10073_v60, %v4022_v33  ;;  %11404 = vst [vmem:[#allocation37_spill] sm:$0xff] %v10144_v48  ;;  %v4025_v16 = vadd.f32 %v7722_v29, %v6716_v59 }
 0x8ad   : > { %v3946_v4 = vpop.f32.mrf.mxu0 }
 0x8ae   : > { %11403 = vst [vmem:[#allocation36_spill] sm:$0xff] %v10139_v54  ;;  %v4023_v30 = vadd.f32 %v7721_v41, %v3946_v4  ;;  %4106 = vadd.xlane.f32.xlu0 %v10139_v54  ;;  %4104 = vadd.xlane.f32.xlu1 %v10136_v40  ;;  %v10152_v0 = vadd.f32 %v10073_v60, %v4025_v16  ;;  %v7155_v16 = vld [vmem:[%s8299_s28 + $0x64] ss:$8 sps:$4 sm:$0xff]  }
 0x8af   : > { %v6719_v34 = vpop.f32.mrf.mxu0  ;;  %4620 = vmatprep.subr.bf16.mxu1 %v7155_v16  ;;  %v7730_v16 = vld [vmem:[#allocation13 + $0xd8] sm:$0xff] }
 0x8b0   : > { %v10147_v27 = vadd.f32 %v10073_v60, %v4023_v30  ;;  %11406 = vst [vmem:[#allocation32_spill] sm:$0xff] %v10152_v0  ;;  %v4028_v43 = vadd.f32 %v7725_v13, %v6719_v34  ;;  %v7161_v13 = vld [vmem:[%s8299_s28 + $0x44] ss:$8 sps:$4 sm:$0xff]  }
 0x8b1   : > { %v3959_v37 = vpop.f32.mrf.mxu0 }
 0x8b2   : > { %11405 = vst [vmem:[#allocation33_spill] sm:$0xff] %v10147_v27  ;;  %4110 = vadd.xlane.f32.xlu0 %v10144_v48  ;;  %4108 = vadd.xlane.f32.xlu1 %v10147_v27  ;;  %v4026_v61 = vadd.f32 %v7723_v21, %v3959_v37  ;;  %v10184_v59 = vadd.f32 %v10073_v60, %v4028_v43  ;;  %v7159_v43 = vld [vmem:[%s8299_s28 + $0x40] ss:$8 sps:$4 sm:$0xff]  }
 0x8b3   : > { %v6720_v49 = vpop.f32.mrf.mxu0 }
 0x8b4   : > { %v10166_v57 = vadd.f32 %v10073_v60, %v4026_v61  ;;  %11409 = vst [vmem:[#allocation27_spill] sm:$0xff] %v10184_v59  ;;  %v4029_v32 = vadd.f32 %v7726_v36, %v6720_v49 }
 0x8b5   : > { %v3962_v50 = vpop.f32.mrf.mxu0 }
 0x8b6   : > { %4112 = vadd.xlane.f32.xlu1 %v10152_v0  ;;  %11407 = vst [vmem:[#allocation34_spill] sm:$0xff] %v10166_v57  ;;  %v4027_v17 = vadd.f32 %v7724_v47, %v3962_v50  ;;  %v7728_v47 = vld [vmem:[#allocation13 + $0xc8] sm:$0xff] }
 0x8b8   : > { %v10175_v62 = vadd.f32 %v10073_v60, %v4027_v17 }
 0x8ba   : > { %11408 = vst [vmem:[#allocation30_spill] sm:$0xff] %v10175_v62 }
 0x8db   : > { %v6723_v10 = vpop.f32.mrf.mxu0 }
 0x8dd   : > { %v3975_v31 = vpop.f32.mrf.mxu0 }
 0x8de   : > { %v4030_v8 = vadd.f32 %v7727_v42, %v3975_v31 }
 0x8df   : > { %v6724_v30 = vpop.f32.mrf.mxu0 }
 0x8e0   : > { %v10205_v50 = vadd.f32 %v10073_v60, %v4030_v8  ;;  %v4033_v42 = vadd.f32 %v7730_v16, %v6724_v30  ;;  %v7170_v30 = vld [vmem:[%s8299_s28 + $0x14] ss:$8 sps:$4 sm:$0xff]  }
 0x8e2   : > { %v4075_v28 = vpop.xlane.xlu1 %4074  ;;  %11411 = vst [vmem:[#allocation28_spill] sm:$0xff] %v10205_v50 }
 0x8e3   : > { %v4138_v14 = vmul.f32 0.0078125, %v4075_v28  ;;  %v7153_v28 = vld [vmem:[%s8299_s28 + $0x60] ss:$8 sps:$4 sm:$0xff]  }
 0x8e4   : > { %4621 = vmatpush1.bf16.msra.mxu1 %v7153_v28  ;;  %v10236_v28 = vadd.f32 %v10073_v60, %v4033_v42 }
 0x8e5   : > { %v10158_v23 = vsub.f32 %v10076_v46, %v4138_v14  ;;  %v10195_v14 = vadd.f32 %v10073_v60, %v4029_v32 }
 0x8e6   : > { %v4077_v6 = vpop.xlane.xlu0 %4076  ;;  %v4081_v22 = vpop.xlane.xlu1 %4080  ;;  %11414 = vst [vmem:[#allocation52_spill] sm:$0xff] %v10236_v28 }
 0x8e7   : > { %v4139_v5 = vmul.f32 0.0078125, %v4077_v6  ;;  %v4202_v56 = vmul.f32 %v10158_v23, %v10158_v23  ;;  %v4141_v39 = vmul.f32 0.0078125, %v4081_v22  ;;  %11410 = vst [vmem:[#allocation25_spill] sm:$0xff] %v10195_v14  ;;  %v3978_v6 = vpop.f32.mrf.mxu0 }
 0x8e8   : > { %v4031_v17 = vadd.f32 %v7728_v47, %v3978_v6 }
 0x8e9   : > { %v10163_v2 = vsub.f32 %v10083_v24, %v4139_v5  ;;  %4234 = vadd.xlane.f32.xlu0 %v4202_v56  ;;  %v10178_v9 = vsub.f32 %v10080_v18, %v4141_v39  ;;  %v7158_v56 = vld [vmem:[%s8299_s28 + $0x54] ss:$8 sps:$4 sm:$0xff]   ;;  %v6727_v6 = vpop.f32.mrf.mxu0 }
 0x8ea   : > { %v4079_v12 = vpop.xlane.xlu0 %4078  ;;  %4622 = vmatprep.subr.bf16.mxu1 %v7158_v56 }
 0x8eb   : > { %v4140_v19 = vmul.f32 0.0078125, %v4079_v12  ;;  %v4203_v1 = vmul.f32 %v10163_v2, %v10163_v2  ;;  %v4205_v41 = vmul.f32 %v10178_v9, %v10178_v9  ;;  %v7156_v12 = vld [vmem:[%s8299_s28 + $0x50] ss:$8 sps:$4 sm:$0xff]   ;;  %v3991_v56 = vpop.f32.mrf.mxu0 }
 0x8ec   : > { %4623 = vmatpush1.bf16.msra.mxu1 %v7156_v12 }
 0x8ed   : > { %v10171_v26 = vsub.f32 %v10088_v20, %v4140_v19  ;;  %4236 = vadd.xlane.f32.xlu1 %v4203_v1  ;;  %4114 = vadd.xlane.f32.xlu0 %v10166_v57  ;;  %v6728_v47 = vpop.f32.mrf.mxu0 }
 0x8ee   : > { %4624 = vmatprep.subr.bf16.mxu1 %v7161_v13 }
 0x8ef   : > { %v4204_v53 = vmul.f32 %v10171_v26, %v10171_v26 }
 0x8f0   : > { %4625 = vmatpush1.bf16.msra.mxu1 %v7159_v43 }
 0x8f1   : > { %4116 = vadd.xlane.f32.xlu1 %v10175_v62  ;;  %4238 = vadd.xlane.f32.xlu0 %v4204_v53  ;;  %v7729_v53 = vld [vmem:[#allocation13 + $0xd0] sm:$0xff] }
 0x8f2   : > { %v4083_v33 = vpop.xlane.xlu0 %4082  ;;  %v4032_v31 = vadd.f32 %v7729_v53, %v6723_v10 }
 0x8f3   : > { %v4142_v4 = vmul.f32 0.0078125, %v4083_v33  ;;  %v10217_v33 = vadd.f32 %v10073_v60, %v4031_v17 }
 0x8f4   : > { %v10228_v10 = vadd.f32 %v10073_v60, %v4032_v31 }
 0x8f5   : > { %v10189_v29 = vsub.f32 %v10092_v45, %v4142_v4  ;;  %4118 = vadd.xlane.f32.xlu0 %v10184_v59  ;;  %4240 = vadd.xlane.f32.xlu1 %v4205_v41  ;;  %11412 = vst [vmem:[#allocation38_spill] sm:$0xff] %v10217_v33  ;;  %v7164_v4 = vld [vmem:[%s8299_s28 + $0x34] ss:$8 sps:$4 sm:$0xff]   ;;  %v7162_v41 = vld [vmem:[%s8299_s28 + $0x30] ss:$8 sps:$4 sm:$0xff]  }
 0x8f6   : > { %v4087_v34 = vpop.xlane.xlu0 %4086  ;;  %v4085_v37 = vpop.xlane.xlu1 %4084  ;;  %11413 = vst [vmem:[#allocation54_spill] sm:$0xff] %v10228_v10  ;;  %4626 = vmatprep.subr.bf16.mxu1 %v7164_v4 }
 0x8f7   : > { %v4144_v49 = vmul.f32 0.0078125, %v4087_v34  ;;  %v4143_v21 = vmul.f32 0.0078125, %v4085_v37  ;;  %v4206_v61 = vmul.f32 %v10189_v29, %v10189_v29  ;;  %4627 = vmatpush1.bf16.msra.mxu1 %v7162_v41  ;;  %v7167_v34 = vld [vmem:[%s8299_s28 + $0x24] ss:$8 sps:$4 sm:$0xff]   ;;  %v7165_v37 = vld [vmem:[%s8299_s28 + $0x20] ss:$8 sps:$4 sm:$0xff]   ;;  %v3994_v4 = vpop.f32.mrf.mxu0 }
 0x8f8   : > { %4628 = vmatprep.subr.bf16.mxu1 %v7167_v34 }
 0x8f9   : > { %v10200_v5 = vsub.f32 %v10099_v7, %v4143_v21  ;;  %4242 = vadd.xlane.f32.xlu0 %v4206_v61  ;;  %4120 = vadd.xlane.f32.xlu1 %v10195_v14  ;;  %v10209_v39 = vsub.f32 %v10096_v35, %v4144_v49  ;;  %v7168_v49 = vld [vmem:[%s8299_s28 + $0x10] ss:$8 sps:$4 sm:$0xff]   ;;  %v7173_v21 = vld [vmem:[%s8299_s28 + $0x4] ss:$8 sps:$4 sm:$0xff]   ;;  %v7171_v61 = vld [vmem:[%s8299_s28] ss:$8 sps:$4 sm:$0xff]  }
 0x8fa   : > { %v4089_v22 = vpop.xlane.xlu1 %4088 }
 0x8fb   : > { %v4145_v19 = vmul.f32 0.0078125, %v4089_v22  ;;  %v4207_v1 = vmul.f32 %v10200_v5, %v10200_v5  ;;  %v4208_v32 = vmul.f32 %v10209_v39, %v10209_v39  ;;  %4629 = vmatpush1.bf16.msra.mxu1 %v7165_v37 }
 0x8fc   : > { %4630 = vmatprep.subr.bf16.mxu1 %v7170_v30 }
 0x8fd   : > { %4122 = vadd.xlane.f32.xlu0 %v10205_v50  ;;  %4244 = vadd.xlane.f32.xlu1 %v4207_v1  ;;  %v10220_v36 = vsub.f32 %v10104_v3, %v4145_v19  ;;  %v7731_v19 = vld [vmem:[#allocation13 + $0xe0] sm:$0xff] }
 0x8fe   : > { %v4034_v1 = vadd.f32 %v7731_v19, %v3991_v56 }
 0x8ff   : > { %v4209_v8 = vmul.f32 %v10220_v36, %v10220_v36  ;;  %4631 = vmatpush1.bf16.msra.mxu1 %v7168_v49 }
 0x900   : > { %4632 = vmatprep.subr.bf16.mxu1 %v7173_v21  ;;  %v10252_v16 = vadd.f32 %v10073_v60, %v4034_v1 }
 0x901   : > { %4246 = vadd.xlane.f32.xlu0 %v4208_v32  ;;  %4124 = vadd.xlane.f32.xlu1 %v10217_v33 }
 0x902   : > { %11415 = vst [vmem:[#allocation56_spill] sm:$0xff] %v10252_v16 }
 0x903   : > { %4633 = vmatpush1.bf16.msra.mxu1 %v7171_v61  ;;  %v7733_v61 = vld [vmem:[#allocation13 + $0xf0] sm:$0xff] }
 0x904   : > { %v4036_v56 = vadd.f32 %v7733_v61, %v6727_v6  ;;  %v7734_v6 = vld [vmem:[#allocation13 + $0xf8] sm:$0xff] }
 0x905   : > { %4126 = vadd.xlane.f32.xlu0 %v10228_v10  ;;  %4248 = vadd.xlane.f32.xlu1 %v4209_v8  ;;  %v7732_v8 = vld [vmem:[#allocation13 + $0xe8] sm:$0xff] }
 0x906   : > { %v4035_v34 = vadd.f32 %v7732_v8, %v3994_v4 }
 0x909   : > { %4128 = vadd.xlane.f32.xlu1 %v10236_v28 }
 0x926   : > { %v4091_v22 = vpop.xlane.xlu0 %4090 }
 0x927   : > { %v4146_v12 = vmul.f32 0.0078125, %v4091_v22  ;;  %v10261_v22 = vadd.f32 %v10073_v60, %v4035_v34 }
 0x929   : > { %v10244_v17 = vsub.f32 %v10108_v63, %v4146_v12  ;;  %11416 = vst [vmem:[#allocation59_spill] sm:$0xff] %v10261_v22 }
 0x92a   : > { %v4095_v13 = vpop.xlane.xlu0 %4094  ;;  %v4093_v43 = vpop.xlane.xlu1 %4092 }
 0x92b   : > { %v4148_v53 = vmul.f32 0.0078125, %v4095_v13  ;;  %v4147_v31 = vmul.f32 0.0078125, %v4093_v43  ;;  %v4210_v32 = vmul.f32 %v10244_v17, %v10244_v17 }
 0x92d   : > { %v10249_v41 = vsub.f32 %v10115_v15, %v4147_v31  ;;  %4250 = vadd.xlane.f32.xlu0 %v4210_v32  ;;  %v10255_v37 = vsub.f32 %v10112_v58, %v4148_v53  ;;  %v10270_v53 = vadd.f32 %v10073_v60, %v4036_v56  ;;  %v4037_v32 = vadd.f32 %v7734_v6, %v6728_v47 }
 0x92e   : > { %v4097_v42 = vpop.xlane.xlu1 %4096 }
 0x92f   : > { %v4149_v30 = vmul.f32 0.0078125, %v4097_v42  ;;  %v4099_v49 = vpop.xlane.xlu0 %4098  ;;  %v4211_v21 = vmul.f32 %v10249_v41, %v10249_v41  ;;  %v4212_v43 = vmul.f32 %v10255_v37, %v10255_v37  ;;  %11417 = vst [vmem:[#allocation47_spill] sm:$0xff] %v10270_v53  ;;  %v10282_v61 = vadd.f32 %v10073_v60, %v4037_v32 }
 0x930   : > { %v4150_v19 = vmul.f32 0.0078125, %v4099_v49 }
 0x931   : > { %4252 = vadd.xlane.f32.xlu1 %v4211_v21  ;;  %4130 = vadd.xlane.f32.xlu0 %v10252_v16  ;;  %v10264_v12 = vsub.f32 %v10120_v11, %v4149_v30  ;;  %11418 = vst [vmem:[#allocation58_spill] sm:$0xff] %v10282_v61 }
 0x932   : > { %v10273_v4 = vsub.f32 %v10123_v25, %v4150_v19 }
 0x933   : > { %v4103_v1 = vpop.xlane.xlu0 %4102  ;;  %v4101_v13 = vpop.xlane.xlu1 %4100  ;;  %v4213_v30 = vmul.f32 %v10264_v12, %v10264_v12 }
 0x934   : > { %v4152_v31 = vmul.f32 0.0078125, %v4103_v1  ;;  %v4151_v42 = vmul.f32 0.0078125, %v4101_v13  ;;  %v4214_v1 = vmul.f32 %v10273_v4, %v10273_v4 }
 0x935   : > { %4254 = vadd.xlane.f32.xlu0 %v4212_v43  ;;  %4132 = vadd.xlane.f32.xlu1 %v10261_v22 }
 0x936   : > { %v10279_v49 = vsub.f32 %v10128_v55, %v4152_v31  ;;  %v10285_v47 = vsub.f32 %v10131_v51, %v4151_v42 }
 0x937   : > { %v4107_v8 = vpop.xlane.xlu0 %4106  ;;  %v4105_v34 = vpop.xlane.xlu1 %4104 }
 0x938   : > { %v4154_v21 = vmul.f32 0.0078125, %v4107_v8  ;;  %v4153_v56 = vmul.f32 0.0078125, %v4105_v34  ;;  %v4216_v31 = vmul.f32 %v10279_v49, %v10279_v49  ;;  %v4215_v42 = vmul.f32 %v10285_v47, %v10285_v47 }
 0x939   : > { %4134 = vadd.xlane.f32.xlu0 %v10270_v53  ;;  %4256 = vadd.xlane.f32.xlu1 %v4213_v30 }
 0x93a   : > { %v10291_v43 = vsub.f32 %v10139_v54, %v4154_v21  ;;  %v10296_v60 = vsub.f32 %v10136_v40, %v4153_v56 }
 0x93b   : > { %v4109_v19 = vpop.xlane.xlu1 %4108  ;;  %v4111_v13 = vpop.xlane.xlu0 %4110 }
 0x93c   : > { %v4156_v6 = vmul.f32 0.0078125, %v4111_v13  ;;  %v4155_v32 = vmul.f32 0.0078125, %v4109_v19  ;;  %v4218_v34 = vmul.f32 %v10291_v43, %v10291_v43  ;;  %v4217_v56 = vmul.f32 %v10296_v60, %v10296_v60 }
 0x93d   : > { %4258 = vadd.xlane.f32.xlu0 %v4214_v1  ;;  %4136 = vadd.xlane.f32.xlu1 %v10282_v61 }
 0x93e   : > { %v10303_v30 = vsub.f32 %v10144_v48, %v4156_v6  ;;  %v10306_v21 = vsub.f32 %v10147_v27, %v4155_v32 }
 0x93f   : > { %v4113_v8 = vpop.xlane.xlu1 %4112 }
 0x940   : > { %v4157_v1 = vmul.f32 0.0078125, %v4113_v8  ;;  %v4220_v13 = vmul.f32 %v10303_v30, %v10303_v30 }
 0x941   : > { %4262 = vadd.xlane.f32.xlu0 %v4216_v31  ;;  %4260 = vadd.xlane.f32.xlu1 %v4215_v42  ;;  %v4219_v31 = vmul.f32 %v10306_v21, %v10306_v21 }
 0x942   : > { %v10311_v19 = vsub.f32 %v10152_v0, %v4157_v1 }
 0x944   : > { %v4221_v6 = vmul.f32 %v10311_v19, %v10311_v19 }
 0x945   : > { %4266 = vadd.xlane.f32.xlu0 %v4218_v34  ;;  %4264 = vadd.xlane.f32.xlu1 %v4217_v56 }
 0x949   : > { %4270 = vadd.xlane.f32.xlu0 %v4220_v13  ;;  %4268 = vadd.xlane.f32.xlu1 %v4219_v31 }
 0x94d   : > { %4272 = vadd.xlane.f32.xlu1 %v4221_v6 }
 0x972   : > { %v4235_v32 = vpop.xlane.xlu0 %4234 }
 0x973   : > { %v4298_v42 = vmul.f32 0.0078125, %v4235_v32 }
 0x975   : > { %v4330_v8 = vadd.f32 1e-05, %v4298_v42 }
 0x976   : > { %v4115_v34 = vpop.xlane.xlu0 %4114  ;;  %v4237_v56 = vpop.xlane.xlu1 %4236 }
 0x977   : > { %7510 = vrsqrt.f32 %v4330_v8  ;;  %v4158_v1 = vmul.f32 0.0078125, %v4115_v34  ;;  %v4299_v0 = vmul.f32 0.0078125, %v4237_v56 }
 0x979   : > { %v10320_v48 = vsub.f32 %v10166_v57, %v4158_v1  ;;  %v4331_v27 = vadd.f32 1e-05, %v4299_v0 }
 0x97a   : > { %v4239_v54 = vpop.xlane.xlu0 %4238  ;;  %v4117_v40 = vpop.xlane.xlu1 %4116 }
 0x97b   : > { %7512 = vrsqrt.f32 %v4331_v27  ;;  %v4300_v13 = vmul.f32 0.0078125, %v4239_v54  ;;  %v4159_v31 = vmul.f32 0.0078125, %v4117_v40  ;;  %v4222_v6 = vmul.f32 %v10320_v48, %v10320_v48 }
 0x97c   : > { %v4428_v27 = vsub.s32 3, %v11398_v44 }
 0x97d   : > { %v4332_v55 = vadd.f32 1e-05, %v4300_v13  ;;  %v10325_v32 = vsub.f32 %v10175_v62, %v4159_v31  ;;  %4274 = vadd.xlane.f32.xlu0 %v4222_v6  ;;  %v4464_v62 = vsub.s32 4, %v11398_v44 }
 0x97e   : > { %v4119_v42 = vpop.xlane.xlu0 %4118  ;;  %v4241_v8 = vpop.xlane.xlu1 %4240 }
 0x97f   : > { %7514 = vrsqrt.f32 %v4332_v55  ;;  %v4160_v34 = vmul.f32 0.0078125, %v4119_v42  ;;  %v4301_v56 = vmul.f32 0.0078125, %v4241_v8  ;;  %v4223_v0 = vmul.f32 %v10325_v32, %v10325_v32 }
 0x980   : > { %v10336_v8 = vrot.slane %v10070_v52, %v4428_v27  ;;  %v10347_v25 = vrot.slane %v10070_v52, %v4464_v62 }
 0x981   : > { %v10331_v40 = vsub.f32 %v10184_v59, %v4160_v34  ;;  %v4333_v54 = vadd.f32 1e-05, %v4301_v56  ;;  %4276 = vadd.xlane.f32.xlu1 %v4223_v0 }
 0x982   : > { %v4243_v1 = vpop.xlane.xlu0 %4242  ;;  %v4121_v13 = vpop.xlane.xlu1 %4120 }
 0x983   : > { %7516 = vrsqrt.f32 %v4333_v54  ;;  %v4302_v31 = vmul.f32 0.0078125, %v4243_v1  ;;  %v4161_v6 = vmul.f32 0.0078125, %v4121_v13  ;;  %v4224_v55 = vmul.f32 %v10331_v40, %v10331_v40 }
 0x984   : > { %v7511_v42 = vpop.eup %7510 }
 0x985   : > { %v4394_v57 = vmul.f32 %v7511_v42, %v10158_v23  ;;  %v4334_v34 = vadd.f32 1e-05, %v4302_v31  ;;  %v10341_v56 = vsub.f32 %v10195_v14, %v4161_v6  ;;  %4278 = vadd.xlane.f32.xlu0 %v4224_v55 }
 0x986   : > { %v4123_v0 = vpop.xlane.xlu0 %4122  ;;  %v4245_v54 = vpop.xlane.xlu1 %4244 }
 0x987   : > { %7518 = vrsqrt.f32 %v4334_v34  ;;  %v4162_v1 = vmul.f32 0.0078125, %v4123_v0  ;;  %v4303_v13 = vmul.f32 0.0078125, %v4245_v54  ;;  %v4430_v51 = vmul.f32 %v10336_v8, %v4394_v57 }
 0x988   : > { %v7513_v59 = vpop.eup %7512  ;;  %v4225_v27 = vmul.f32 %v10341_v56, %v10341_v56 }
 0x989   : > { %v4395_v23 = vmul.f32 %v7513_v59, %v10163_v2  ;;  %v10351_v31 = vsub.f32 %v10205_v50, %v4162_v1  ;;  %v4335_v6 = vadd.f32 1e-05, %v4303_v13  ;;  %v4466_v52 = vadd.f32 %v10347_v25, %v4430_v51 }
 0x98a   : > { %4280 = vadd.xlane.f32.xlu1 %v4225_v27  ;;  %v4247_v55 = vpop.xlane.xlu0 %4246  ;;  %v4125_v42 = vpop.xlane.xlu1 %4124 }
 0x98b   : > { %v4431_v34 = vmul.f32 %v10336_v8, %v4395_v23  ;;  %7520 = vrsqrt.f32 %v4335_v6  ;;  %v4304_v0 = vmul.f32 0.0078125, %v4247_v55  ;;  %v4163_v57 = vmul.f32 0.0078125, %v4125_v42 }
 0x98c   : > { %v7515_v54 = vpop.eup %7514  ;;  %v4226_v14 = vmul.f32 %v10351_v31, %v10351_v31 }
 0x98d   : > { %v4336_v62 = vadd.f32 1e-05, %v4304_v0  ;;  %v10358_v2 = vsub.f32 %v10217_v33, %v4163_v57  ;;  %v4467_v59 = vadd.f32 %v10347_v25, %v4431_v34  ;;  %v4396_v1 = vmul.f32 %v7515_v54, %v10171_v26 }
 0x98e   : > { %4282 = vadd.xlane.f32.xlu0 %v4226_v14  ;;  %v4127_v13 = vpop.xlane.xlu0 %4126  ;;  %v4249_v27 = vpop.xlane.xlu1 %4248 }
 0x98f   : > { %7522 = vrsqrt.f32 %v4336_v62  ;;  %v4164_v23 = vmul.f32 0.0078125, %v4127_v13  ;;  %v4305_v6 = vmul.f32 0.0078125, %v4249_v27  ;;  %v4498_v55 = vpack.c.bf16 %v4467_v59, %v4466_v52 }
 0x990   : > { %v7517_v42 = vpop.eup %7516  ;;  %v4227_v50 = vmul.f32 %v10358_v2, %v10358_v2  ;;  %v4432_v26 = vmul.f32 %v10336_v8, %v4396_v1 }
 0x991   : > { %v10365_v51 = vsub.f32 %v10228_v10, %v4164_v23  ;;  %v4337_v0 = vadd.f32 1e-05, %v4305_v6  ;;  %4651 = vmatmul.mubr.bf16.vlgmr.msra.gmra.mxu1 %v4498_v55  ;;  %v4397_v34 = vmul.f32 %v7517_v42, %v10178_v9 }
 0x992   : > { %4284 = vadd.xlane.f32.xlu1 %v4227_v50  ;;  %v4129_v14 = vpop.xlane.xlu1 %4128  ;;  %4660 = vmatprep.mubr.bf16.mxu1 %v11397_v38  ;;  %v4468_v9 = vadd.f32 %v10347_v25, %v4432_v26 }
 0x993   : > { %7524 = vrsqrt.f32 %v4337_v0  ;;  %v4165_v57 = vmul.f32 0.0078125, %v4129_v14  ;;  %v4228_v54 = vmul.f32 %v10365_v51, %v10365_v51  ;;  %v4433_v52 = vmul.f32 %v10336_v8, %v4397_v34 }
 0x994   : > { %v7519_v62 = vpop.eup %7518 }
 0x995   : > { %v10374_v59 = vsub.f32 %v10236_v28, %v4165_v57  ;;  %4286 = vadd.xlane.f32.xlu0 %v4228_v54  ;;  %v4469_v1 = vadd.f32 %v10347_v25, %v4433_v52  ;;  %v4398_v50 = vmul.f32 %v7519_v62, %v10189_v29 }
 0x997   : > { %v4499_v13 = vpack.c.bf16 %v4469_v1, %v4468_v9  ;;  %v4229_v27 = vmul.f32 %v10374_v59, %v10374_v59  ;;  %v4434_v55 = vmul.f32 %v10336_v8, %v4398_v50 }
 0x998   : > { %v7521_v23 = vpop.eup %7520 }
 0x999   : > { %4661 = vmatmul.mubr.bf16.gmra.mxu1 %v4499_v13  ;;  %4288 = vadd.xlane.f32.xlu1 %v4229_v27  ;;  %v4399_v6 = vmul.f32 %v7521_v23, %v10200_v5  ;;  %v4470_v34 = vadd.f32 %v10347_v25, %v4434_v55 }
 0x99a   : > { %4670 = vmatprep.mubr.bf16.mxu1 %v11397_v38 }
 0x99b   : > { %v4435_v42 = vmul.f32 %v10336_v8, %v4399_v6 }
 0x99c   : > { %v7523_v0 = vpop.eup %7522 }
 0x99d   : > { %v4471_v29 = vadd.f32 %v10347_v25, %v4435_v42  ;;  %v4400_v26 = vmul.f32 %v7523_v0, %v10209_v39 }
 0x99f   : > { %v4500_v14 = vpack.c.bf16 %v4471_v29, %v4470_v34  ;;  %v4436_v5 = vmul.f32 %v10336_v8, %v4400_v26 }
 0x9a0   : > { %v7525_v57 = vpop.eup %7524 }
 0x9a1   : > { %4671 = vmatmul.mubr.bf16.gmra.mxu1 %v4500_v14  ;;  %v4401_v54 = vmul.f32 %v7525_v57, %v10220_v36  ;;  %v4472_v62 = vadd.f32 %v10347_v25, %v4436_v5 }
 0x9a2   : > { %4680 = vmatprep.mubr.bf16.mxu1 %v11397_v38 }
 0x9a3   : > { %v4437_v52 = vmul.f32 %v10336_v8, %v4401_v54 }
 0x9a5   : > { %v4473_v9 = vadd.f32 %v10347_v25, %v4437_v52 }
 0x9a7   : > { %v4501_v1 = vpack.c.bf16 %v4473_v9, %v4472_v62 }
 0x9a9   : > { %4681 = vmatmul.mubr.bf16.gmra.mxu1 %v4501_v1 }
 0x9aa   : > { %4690 = vmatprep.mubr.bf16.mxu1 %v11397_v38 }
 0x9b6   : > { %v4251_v39 = vpop.xlane.xlu0 %4250 }
 0x9b7   : > { %v4306_v50 = vmul.f32 0.0078125, %v4251_v39 }
 0x9b9   : > { %v4338_v13 = vadd.f32 1e-05, %v4306_v50 }
 0x9ba   : > { %v4253_v27 = vpop.xlane.xlu1 %4252  ;;  %v4131_v23 = vpop.xlane.xlu0 %4130 }
 0x9bb   : > { %7526 = vrsqrt.f32 %v4338_v13  ;;  %v4307_v36 = vmul.f32 0.0078125, %v4253_v27  ;;  %v4166_v6 = vmul.f32 0.0078125, %v4131_v23 }
 0x9bd   : > { %v4339_v55 = vadd.f32 1e-05, %v4307_v36  ;;  %v10396_v42 = vsub.f32 %v10252_v16, %v4166_v6 }
 0x9be   : > { %v4255_v0 = vpop.xlane.xlu0 %4254  ;;  %v4133_v34 = vpop.xlane.xlu1 %4132 }
 0x9bf   : > { %7528 = vrsqrt.f32 %v4339_v55  ;;  %v4308_v29 = vmul.f32 0.0078125, %v4255_v0  ;;  %v4167_v26 = vmul.f32 0.0078125, %v4133_v34  ;;  %v4230_v14 = vmul.f32 %v10396_v42, %v10396_v42 }
 0x9c1   : > { %v4340_v57 = vadd.f32 1e-05, %v4308_v29  ;;  %v10401_v54 = vsub.f32 %v10261_v22, %v4167_v26  ;;  %4290 = vadd.xlane.f32.xlu0 %v4230_v14 }
 0x9c2   : > { %v4135_v5 = vpop.xlane.xlu0 %4134  ;;  %v4257_v52 = vpop.xlane.xlu1 %4256 }
 0x9c3   : > { %7530 = vrsqrt.f32 %v4340_v57  ;;  %v4168_v62 = vmul.f32 0.0078125, %v4135_v5  ;;  %v4309_v9 = vmul.f32 0.0078125, %v4257_v52  ;;  %v4231_v1 = vmul.f32 %v10401_v54, %v10401_v54 }
 0x9c5   : > { %v10406_v39 = vsub.f32 %v10270_v53, %v4168_v62  ;;  %v4341_v50 = vadd.f32 1e-05, %v4309_v9  ;;  %4292 = vadd.xlane.f32.xlu1 %v4231_v1 }
 0x9c6   : > { %v4259_v13 = vpop.xlane.xlu0 %4258  ;;  %v4137_v27 = vpop.xlane.xlu1 %4136 }
 0x9c7   : > { %7532 = vrsqrt.f32 %v4341_v50  ;;  %v4310_v23 = vmul.f32 0.0078125, %v4259_v13  ;;  %v4169_v36 = vmul.f32 0.0078125, %v4137_v27  ;;  %v4232_v6 = vmul.f32 %v10406_v39, %v10406_v39 }
 0x9c8   : > { %v7527_v55 = vpop.eup %7526 }
 0x9c9   : > { %v4342_v0 = vadd.f32 1e-05, %v4310_v23  ;;  %v10411_v34 = vsub.f32 %v10282_v61, %v4169_v36  ;;  %4294 = vadd.xlane.f32.xlu0 %v4232_v6  ;;  %v4402_v29 = vmul.f32 %v7527_v55, %v10244_v17 }
 0x9ca   : > { %v4263_v26 = vpop.xlane.xlu0 %4262  ;;  %v4261_v14 = vpop.xlane.xlu1 %4260 }
 0x9cb   : > { %7534 = vrsqrt.f32 %v4342_v0  ;;  %v4312_v57 = vmul.f32 0.0078125, %v4263_v26  ;;  %v4311_v5 = vmul.f32 0.0078125, %v4261_v14  ;;  %v4233_v52 = vmul.f32 %v10411_v34, %v10411_v34 }
 0x9cc   : > { %v7529_v62 = vpop.eup %7528  ;;  %v4438_v50 = vmul.f32 %v10336_v8, %v4402_v29 }
 0x9cd   : > { %v4343_v9 = vadd.f32 1e-05, %v4311_v5  ;;  %4296 = vadd.xlane.f32.xlu1 %v4233_v52  ;;  %v4403_v1 = vmul.f32 %v7529_v62, %v10249_v41  ;;  %v4344_v13 = vadd.f32 1e-05, %v4312_v57 }
 0x9ce   : > { %v4265_v27 = vpop.xlane.xlu1 %4264  ;;  %v4267_v23 = vpop.xlane.xlu0 %4266  ;;  %v4474_v0 = vadd.f32 %v10347_v25, %v4438_v50 }
 0x9cf   : > { %v4313_v36 = vmul.f32 0.0078125, %v4265_v27  ;;  %v4439_v17 = vmul.f32 %v10336_v8, %v4403_v1  ;;  %7536 = vrsqrt.f32 %v4343_v9  ;;  %v4314_v5 = vmul.f32 0.0078125, %v4267_v23 }
 0x9d0   : > { %v7531_v6 = vpop.eup %7530  ;;  %7538 = vrsqrt.f32 %v4344_v13 }
 0x9d1   : > { %v4345_v55 = vadd.f32 1e-05, %v4313_v36  ;;  %v4475_v26 = vadd.f32 %v10347_v25, %v4439_v17  ;;  %v4404_v14 = vmul.f32 %v7531_v6, %v10255_v37  ;;  %v4346_v27 = vadd.f32 1e-05, %v4314_v5  ;;  %v7175_v5 = vld [vmem:[%s8301_s9 + $0x38] sm:$0xff]  }
 0x9d2   : > { %v4269_v41 = vpop.xlane.xlu1 %4268  ;;  %v4271_v50 = vpop.xlane.xlu0 %4270 }
 0x9d3   : > { %v4315_v52 = vmul.f32 0.0078125, %v4269_v41  ;;  %v4502_v29 = vpack.c.bf16 %v4475_v26, %v4474_v0  ;;  %7540 = vrsqrt.f32 %v4345_v55  ;;  %v4440_v9 = vmul.f32 %v10336_v8, %v4404_v14  ;;  %v7174_v26 = vld [vmem:[%s8301_s9 + $0x78] sm:$0xff]  }
 0x9d4   : > { %v7533_v57 = vpop.eup %7532  ;;  %v4316_v17 = vmul.f32 0.0078125, %v4271_v50  ;;  %6265 = vmatprep.subr.bf16.mxu0 %v7174_v26 }
 0x9d5   : > { %v4347_v62 = vadd.f32 1e-05, %v4315_v52  ;;  %4691 = vmatmul.mubr.bf16.gmra.mxu1 %v4502_v29  ;;  %v4405_v1 = vmul.f32 %v7533_v57, %v10264_v12  ;;  %v4476_v6 = vadd.f32 %v10347_v25, %v4440_v9  ;;  %6266 = vmatpush3.bf16.msra.mxu0 %v7175_v5  ;;  %v7177_v9 = vld [vmem:[%s8301_s9 + $0x30] sm:$0xff]  }
 0x9d6   : > { %v4273_v36 = vpop.xlane.xlu1 %4272  ;;  %4700 = vmatprep.mubr.bf16.mxu1 %v11397_v38  ;;  %v4348_v52 = vadd.f32 1e-05, %v4316_v17 }
 0x9d7   : > { %v4441_v37 = vmul.f32 %v10336_v8, %v4405_v1  ;;  %7542 = vrsqrt.f32 %v4347_v62  ;;  %v4317_v23 = vmul.f32 0.0078125, %v4273_v36 }
 0x9d8   : > { %v7535_v13 = vpop.eup %7534  ;;  %7544 = vrsqrt.f32 %v4346_v27 }
 0x9d9   : > { %v4477_v55 = vadd.f32 %v10347_v25, %v4441_v37  ;;  %v4406_v12 = vmul.f32 %v7535_v13, %v10273_v4  ;;  %v4349_v14 = vadd.f32 1e-05, %v4317_v23  ;;  %v7176_v4 = vld [vmem:[%s8301_s9 + $0x70] sm:$0xff]   ;;  %v7178_v13 = vld [vmem:[%s8301_s9 + $0x68] sm:$0xff]  }
 0x9da   : > { %6267 = vmatprep.subr.bf16.mxu0 %v7176_v4 }
 0x9db   : > { %v4503_v0 = vpack.c.bf16 %v4477_v55, %v4476_v6  ;;  %v4442_v57 = vmul.f32 %v10336_v8, %v4406_v12  ;;  %7546 = vrsqrt.f32 %v4349_v14  ;;  %6268 = vmatpush3.bf16.msra.mxu0 %v7177_v9  ;;  %v7179_v6 = vld [vmem:[%s8301_s9 + $0x28] sm:$0xff]   ;;  %v7181_v14 = vld [vmem:[%s8301_s9 + $0x20] sm:$0xff]   ;;  %v7183_v9 = vld [vmem:[%s8301_s9 + $0x18] sm:$0xff]  }
 0x9dc   : > { %v7537_v41 = vpop.eup %7536  ;;  %7548 = vrsqrt.f32 %v4348_v52  ;;  %6269 = vmatprep.subr.bf16.mxu0 %v7178_v13 }
 0x9dd   : > { %4701 = vmatmul.mubr.bf16.gmra.mxu1 %v4503_v0  ;;  %v4407_v29 = vmul.f32 %v7537_v41, %v10285_v47  ;;  %v7539_v62 = vpop.eup %7538  ;;  %v4478_v50 = vadd.f32 %v10347_v25, %v4442_v57 }
 0x9de   : > { %4710 = vmatprep.mubr.bf16.mxu1 %v11397_v38  ;;  %v4408_v47 = vmul.f32 %v7539_v62, %v10279_v49  ;;  %v7180_v49 = vld [vmem:[%s8301_s9 + $0x60] sm:$0xff]   ;;  %v7182_v62 = vld [vmem:[%s8301_s9 + $0x58] sm:$0xff]  }
 0x9df   : > { %v4443_v1 = vmul.f32 %v10336_v8, %v4407_v29  ;;  %6270 = vmatpush3.bf16.msra.mxu0 %v7179_v6 }
 0x9e0   : > { %v7541_v27 = vpop.eup %7540  ;;  %v4444_v12 = vmul.f32 %v10336_v8, %v4408_v47  ;;  %6271 = vmatprep.subr.bf16.mxu0 %v7180_v49  ;;  %v7185_v47 = vld [vmem:[%s8301_s9 + $0x10] sm:$0xff]  }
 0x9e1   : > { %v4479_v36 = vadd.f32 %v10347_v25, %v4443_v1  ;;  %v4409_v37 = vmul.f32 %v7541_v27, %v10296_v60 }
 0x9e2   : > { %v4480_v5 = vadd.f32 %v10347_v25, %v4444_v12  ;;  %v7188_v12 = vld [vmem:[%s8301_s9 + $0x40] sm:$0xff]  }
 0x9e3   : > { %v4504_v23 = vpack.c.bf16 %v4479_v36, %v4478_v50  ;;  %v4445_v17 = vmul.f32 %v10336_v8, %v4409_v37  ;;  %6272 = vmatpush3.bf16.msra.mxu0 %v7181_v14 }
 0x9e4   : > { %v7543_v55 = vpop.eup %7542  ;;  %6273 = vmatprep.subr.bf16.mxu0 %v7182_v62 }
 0x9e5   : > { %4711 = vmatmul.mubr.bf16.gmra.mxu1 %v4504_v23  ;;  %v7545_v0 = vpop.eup %7544  ;;  %v4481_v60 = vadd.f32 %v10347_v25, %v4445_v17  ;;  %v4411_v26 = vmul.f32 %v7543_v55, %v10306_v21  ;;  %v7187_v55 = vld [vmem:[%s8301_s9 + $0x8] sm:$0xff]  }
 0x9e6   : > { %4720 = vmatprep.mubr.bf16.mxu1 %v11397_v38  ;;  %v4410_v41 = vmul.f32 %v7545_v0, %v10291_v43  ;;  %v7184_v43 = vld [vmem:[%s8301_s9 + $0x50] sm:$0xff]   ;;  %v7189_v0 = vld [vmem:[%s8301_s9] sm:$0xff]  }
 0x9e7   : > { %v4505_v52 = vpack.c.bf16 %v4481_v60, %v4480_v5  ;;  %v4447_v29 = vmul.f32 %v10336_v8, %v4411_v26  ;;  %6274 = vmatpush3.bf16.msra.mxu0 %v7183_v9 }
 0x9e8   : > { %v7547_v57 = vpop.eup %7546  ;;  %v4446_v1 = vmul.f32 %v10336_v8, %v4410_v41  ;;  %6275 = vmatprep.subr.bf16.mxu0 %v7184_v43 }
 0x9e9   : > { %v7549_v4 = vpop.eup %7548  ;;  %v4483_v21 = vadd.f32 %v10347_v25, %v4447_v29  ;;  %v4413_v27 = vmul.f32 %v7547_v57, %v10311_v19 }
 0x9ea   : > { %v4482_v50 = vadd.f32 %v10347_v25, %v4446_v1  ;;  %v4412_v36 = vmul.f32 %v7549_v4, %v10303_v30  ;;  %v7186_v30 = vld [vmem:[%s8301_s9 + $0x48] sm:$0xff]  }
 0x9eb   : > { %v4449_v13 = vmul.f32 %v10336_v8, %v4413_v27  ;;  %6276 = vmatpush3.bf16.msra.mxu0 %v7185_v47 }
 0x9ec   : > { %v4506_v37 = vpack.c.bf16 %v4483_v21, %v4482_v50  ;;  %v4448_v23 = vmul.f32 %v10336_v8, %v4412_v36  ;;  %6277 = vmatprep.subr.bf16.mxu0 %v7186_v30 }
 0x9ed   : > { %4721 = vmatmul.mubr.bf16.gmra.mxu1 %v4505_v52  ;;  %v4485_v19 = vadd.f32 %v10347_v25, %v4449_v13 }
 0x9ee   : > { %4730 = vmatprep.mubr.bf16.mxu1 %v11397_v38  ;;  %v4484_v17 = vadd.f32 %v10347_v25, %v4448_v23 }
 0x9ef   : > { %6278 = vmatpush3.bf16.msra.mxu0 %v7187_v55 }
 0x9f0   : > { %v4507_v6 = vpack.c.bf16 %v4485_v19, %v4484_v17  ;;  %6279 = vmatprep.subr.bf16.mxu0 %v7188_v12 }
 0x9f3   : > { %6280 = vmatpush3.bf16.msra.mxu0 %v7189_v0 }
 0x9f5   : > { %4731 = vmatmul.mubr.bf16.gmra.mxu1 %v4506_v37 }
 0x9f6   : > { %4740 = vmatprep.mubr.bf16.mxu1 %v11397_v38 }
 0x9fd   : > { %4741 = vmatmul.mubr.bf16.gmra.mxu1 %v4507_v6 }
 0x9fe   : > { %4750 = vmatprep.mubr.bf16.mxu1 %v11397_v38 }
 0xa06   : > { %v4275_v49 = vpop.xlane.xlu0 %4274 }
 0xa07   : > { %v4318_v60 = vmul.f32 0.0078125, %v4275_v49 }
 0xa09   : > { %v4350_v26 = vadd.f32 1e-05, %v4318_v60 }
 0xa0a   : > { %v4277_v14 = vpop.xlane.xlu1 %4276 }
 0xa0b   : > { %7550 = vrsqrt.f32 %v4350_v26  ;;  %v4319_v5 = vmul.f32 0.0078125, %v4277_v14 }
 0xa0d   : > { %v4351_v41 = vadd.f32 1e-05, %v4319_v5 }
 0xa0e   : > { %v4279_v52 = vpop.xlane.xlu0 %4278 }
 0xa0f   : > { %7552 = vrsqrt.f32 %v4351_v41  ;;  %v4320_v29 = vmul.f32 0.0078125, %v4279_v52 }
 0xa11   : > { %v4352_v57 = vadd.f32 1e-05, %v4320_v29 }
 0xa13   : > { %7554 = vrsqrt.f32 %v4352_v57  ;;  %v4281_v62 = vpop.xlane.xlu1 %4280 }
 0xa14   : > { %v4321_v4 = vmul.f32 0.0078125, %v4281_v62 }
 0xa16   : > { %v4353_v1 = vadd.f32 1e-05, %v4321_v4 }
 0xa17   : > { %v4283_v9 = vpop.xlane.xlu0 %4282 }
 0xa18   : > { %v7551_v21 = vpop.eup %7550  ;;  %7556 = vrsqrt.f32 %v4353_v1  ;;  %v4322_v27 = vmul.f32 0.0078125, %v4283_v9 }
 0xa19   : > { %v4414_v43 = vmul.f32 %v7551_v21, %v10320_v48 }
 0xa1a   : > { %v4354_v50 = vadd.f32 1e-05, %v4322_v27 }
 0xa1b   : > { %v4285_v36 = vpop.xlane.xlu1 %4284  ;;  %v4450_v23 = vmul.f32 %v10336_v8, %v4414_v43 }
 0xa1c   : > { %v7553_v47 = vpop.eup %7552  ;;  %7558 = vrsqrt.f32 %v4354_v50  ;;  %v4323_v37 = vmul.f32 0.0078125, %v4285_v36 }
 0xa1d   : > { %v4415_v13 = vmul.f32 %v7553_v47, %v10325_v32  ;;  %v4486_v0 = vadd.f32 %v10347_v25, %v4450_v23 }
 0xa1e   : > { %v4355_v19 = vadd.f32 1e-05, %v4323_v37  ;;  %v4287_v17 = vpop.xlane.xlu0 %4286 }
 0xa1f   : > { %v4324_v6 = vmul.f32 0.0078125, %v4287_v17  ;;  %v4451_v30 = vmul.f32 %v10336_v8, %v4415_v13 }
 0xa20   : > { %v7555_v55 = vpop.eup %7554  ;;  %7560 = vrsqrt.f32 %v4355_v19 }
 0xa21   : > { %v4356_v12 = vadd.f32 1e-05, %v4324_v6  ;;  %v4487_v48 = vadd.f32 %v10347_v25, %v4451_v30  ;;  %v4416_v60 = vmul.f32 %v7555_v55, %v10331_v40  ;;  %v527_v55 = vld [vmem:[%s8285_s13 + $0x8] sm:$0xff] }
 0xa22   : > { %v4289_v49 = vpop.xlane.xlu1 %4288 }
 0xa23   : > { %7562 = vrsqrt.f32 %v4356_v12  ;;  %v4325_v26 = vmul.f32 0.0078125, %v4289_v49  ;;  %v4508_v32 = vpack.c.bf16 %v4487_v48, %v4486_v0  ;;  %v4452_v52 = vmul.f32 %v10336_v8, %v4416_v60  ;;  %v11419_v48 = vld [vmem:[#allocation23_spill] sm:$0xff] }
 0xa24   : > { %v10504_v49 = vrot.slane %v527_v55, %v11419_v48 }
 0xa25   : > { %v7557_v14 = vpop.eup %7556  ;;  %v4357_v5 = vadd.f32 1e-05, %v4325_v26  ;;  %4751 = vmatmul.mubr.bf16.gmra.mxu1 %v4508_v32  ;;  %v4488_v62 = vadd.f32 %v10347_v25, %v4452_v52 }
 0xa26   : > { %4760 = vmatprep.mubr.bf16.mxu1 %v11397_v38  ;;  %v4417_v41 = vmul.f32 %v7557_v14, %v10341_v56 }
 0xa27   : > { %7564 = vrsqrt.f32 %v4357_v5 }
 0xa28   : > { %v4453_v29 = vmul.f32 %v10336_v8, %v4417_v41 }
 0xa29   : > { %v7559_v57 = vpop.eup %7558 }
 0xa2a   : > { %v4489_v40 = vadd.f32 %v10347_v25, %v4453_v29  ;;  %v4418_v4 = vmul.f32 %v7559_v57, %v10351_v31 }
 0xa2c   : > { %v4509_v1 = vpack.c.bf16 %v4489_v40, %v4488_v62  ;;  %v4454_v27 = vmul.f32 %v10336_v8, %v4418_v4 }
 0xa2d   : > { %v7561_v9 = vpop.eup %7560 }
 0xa2e   : > { %4761 = vmatmul.mubr.bf16.gmra.mxu1 %v4509_v1  ;;  %v4419_v21 = vmul.f32 %v7561_v9, %v10358_v2  ;;  %v4490_v36 = vadd.f32 %v10347_v25, %v4454_v27 }
 0xa2f   : > { %4770 = vmatprep.mubr.bf16.mxu1 %v11397_v38 }
 0xa30   : > { %v7563_v56 = vpop.eup %7562  ;;  %v4455_v43 = vmul.f32 %v10336_v8, %v4419_v21 }
 0xa31   : > { %v4420_v50 = vmul.f32 %v7563_v56, %v10365_v51 }
 0xa32   : > { %v4491_v47 = vadd.f32 %v10347_v25, %v4455_v43 }
 0xa33   : > { %v4456_v2 = vmul.f32 %v10336_v8, %v4420_v50 }
 0xa34   : > { %v7565_v31 = vpop.eup %7564  ;;  %v4510_v37 = vpack.c.bf16 %v4491_v47, %v4490_v36 }
 0xa35   : > { %v4421_v13 = vmul.f32 %v7565_v31, %v10374_v59  ;;  %v4492_v19 = vadd.f32 %v10347_v25, %v4456_v2  ;;  %v528_v59 = vld [vmem:[%s8285_s13 + $0x10] sm:$0xff] }
 0xa36   : > { %4771 = vmatmul.mubr.bf16.gmra.mxu1 %v4510_v37  ;;  %v10507_v26 = vrot.slane %v528_v59, %v11419_v48 }
 0xa37   : > { %4780 = vmatprep.mubr.bf16.mxu1 %v11397_v38  ;;  %v4457_v23 = vmul.f32 %v10336_v8, %v4421_v13 }
 0xa39   : > { %v4493_v51 = vadd.f32 %v10347_v25, %v4457_v23 }
 0xa3b   : > { %v4511_v17 = vpack.c.bf16 %v4493_v51, %v4492_v19 }
 0xa3e   : > { %4781 = vmatmul.mubr.bf16.gmra.mxu1 %v4511_v17 }
 0xa3f   : > { %4790 = vmatprep.mubr.bf16.mxu1 %v11397_v38 }
 0xa4a   : > { %v4291_v6 = vpop.xlane.xlu0 %4290 }
 0xa4b   : > { %v4326_v30 = vmul.f32 0.0078125, %v4291_v6 }
 0xa4d   : > { %v4358_v12 = vadd.f32 1e-05, %v4326_v30 }
 0xa4e   : > { %v4293_v0 = vpop.xlane.xlu1 %4292 }
 0xa4f   : > { %7566 = vrsqrt.f32 %v4358_v12  ;;  %v4327_v60 = vmul.f32 0.0078125, %v4293_v0 }
 0xa51   : > { %v4359_v32 = vadd.f32 1e-05, %v4327_v60  ;;  %v4652_v14 = vpop.f32.mrf.mxu1 }
 0xa52   : > { %v10510_v5 = vadd.f32 %v4652_v14, %v10504_v49  ;;  %v4295_v41 = vpop.xlane.xlu0 %4294 }
 0xa53   : > { %7568 = vrsqrt.f32 %v4359_v32  ;;  %v4654_v52 = vpop.f32.mrf.mxu1  ;;  %v4328_v62 = vmul.f32 0.0078125, %v4295_v41 }
 0xa54   : > { %v4811_v29 = vmul.f32 %v10510_v5, %v10510_v5  ;;  %v10515_v57 = vadd.f32 %v4654_v52, %v10507_v26 }
 0xa55   : > { %v4656_v40 = vpop.f32.mrf.mxu1  ;;  %v4360_v31 = vadd.f32 1e-05, %v4328_v62 }
 0xa56   : > { %v4875_v4 = vmul.f32 %v4811_v29, %v10510_v5  ;;  %v4812_v1 = vmul.f32 %v10515_v57, %v10515_v57  ;;  %v10521_v9 = vadd.f32 %v4656_v40, %v10504_v49  ;;  %v4297_v21 = vpop.xlane.xlu1 %4296 }
 0xa57   : > { %v4329_v27 = vmul.f32 0.0078125, %v4297_v21  ;;  %v4658_v56 = vpop.f32.mrf.mxu1  ;;  %7570 = vrsqrt.f32 %v4360_v31 }
 0xa58   : > { %v4939_v43 = vmul.f32 0.044715, %v4875_v4  ;;  %v4876_v50 = vmul.f32 %v4812_v1, %v10515_v57  ;;  %v4813_v36 = vmul.f32 %v10521_v9, %v10521_v9  ;;  %v10527_v47 = vadd.f32 %v4658_v56, %v10507_v26 }
 0xa59   : > { %v4361_v37 = vadd.f32 1e-05, %v4329_v27  ;;  %v4662_v13 = vpop.f32.mrf.mxu1 }
 0xa5a   : > { %v5003_v2 = vadd.f32 %v4939_v43, %v10510_v5  ;;  %v4940_v23 = vmul.f32 0.044715, %v4876_v50  ;;  %v4877_v19 = vmul.f32 %v4813_v36, %v10521_v9  ;;  %v4814_v51 = vmul.f32 %v10527_v47, %v10527_v47 }
 0xa5b   : > { %v10534_v17 = vadd.f32 %v4662_v13, %v10504_v49  ;;  %v4664_v6 = vpop.f32.mrf.mxu1  ;;  %7572 = vrsqrt.f32 %v4361_v37 }
 0xa5c   : > { %v7567_v30 = vpop.eup %7566  ;;  %v5067_v55 = vmul.f32 0.7978846, %v5003_v2  ;;  %v5004_v12 = vadd.f32 %v4940_v23, %v10515_v57  ;;  %v4941_v59 = vmul.f32 0.044715, %v4877_v19  ;;  %v4878_v0 = vmul.f32 %v4814_v51, %v10527_v47 }
 0xa5d   : > { %v4815_v48 = vmul.f32 %v10534_v17, %v10534_v17  ;;  %v10541_v60 = vadd.f32 %v4664_v6, %v10507_v26  ;;  %v4666_v32 = vpop.f32.mrf.mxu1  ;;  %v4422_v14 = vmul.f32 %v7567_v30, %v10396_v42 }
 0xa5e   : > { %v5068_v41 = vmul.f32 0.7978846, %v5004_v12  ;;  %v5005_v52 = vadd.f32 %v4941_v59, %v10521_v9  ;;  %v4942_v29 = vmul.f32 0.044715, %v4878_v0  ;;  %7574 = vtanh.f32 %v5067_v55 }
 0xa5f   : > { %v4879_v62 = vmul.f32 %v4815_v48, %v10534_v17  ;;  %v4816_v40 = vmul.f32 %v10541_v60, %v10541_v60  ;;  %v10549_v4 = vadd.f32 %v4666_v32, %v10504_v49  ;;  %v4668_v1 = vpop.f32.mrf.mxu1  ;;  %v4458_v43 = vmul.f32 %v10336_v8, %v4422_v14 }
 0xa60   : > { %v7569_v21 = vpop.eup %7568  ;;  %v5069_v27 = vmul.f32 0.7978846, %v5005_v52  ;;  %v5006_v56 = vadd.f32 %v4942_v29, %v10527_v47  ;;  %v10553_v42 = vadd.f32 %v4668_v1, %v10507_v26  ;;  %7576 = vtanh.f32 %v5068_v41 }
 0xa61   : > { %v4943_v50 = vmul.f32 0.044715, %v4879_v62  ;;  %v4880_v36 = vmul.f32 %v4816_v40, %v10541_v60  ;;  %v4817_v31 = vmul.f32 %v10549_v4, %v10549_v4  ;;  %v4672_v37 = vpop.f32.mrf.mxu1  ;;  %v4423_v13 = vmul.f32 %v7569_v21, %v10401_v54 }
 0xa62   : > { %v5070_v2 = vmul.f32 0.7978846, %v5006_v56  ;;  %v4818_v23 = vmul.f32 %v10553_v42, %v10553_v42  ;;  %v10563_v19 = vadd.f32 %v4672_v37, %v10504_v49  ;;  %7578 = vtanh.f32 %v5069_v27 }
 0xa63   : > { %v4944_v51 = vmul.f32 0.044715, %v4880_v36  ;;  %v4881_v6 = vmul.f32 %v4817_v31, %v10549_v4  ;;  %v4674_v30 = vpop.f32.mrf.mxu1  ;;  %v4459_v55 = vmul.f32 %v10336_v8, %v4423_v13  ;;  %v5007_v12 = vadd.f32 %v4943_v50, %v10534_v17 }
 0xa64   : > { %v4882_v59 = vmul.f32 %v4818_v23, %v10553_v42  ;;  %v4819_v54 = vmul.f32 %v10563_v19, %v10563_v19  ;;  %v10572_v0 = vadd.f32 %v4674_v30, %v10507_v26  ;;  %7580 = vtanh.f32 %v5070_v2  ;;  %v7571_v30 = vpop.eup %7570 }
 0xa65   : > { %v5008_v48 = vadd.f32 %v4944_v51, %v10541_v60  ;;  %v4945_v32 = vmul.f32 0.044715, %v4881_v6  ;;  %v4676_v14 = vpop.f32.mrf.mxu1  ;;  %v4494_v27 = vadd.f32 %v10347_v25, %v4458_v43  ;;  %v4495_v56 = vadd.f32 %v10347_v25, %v4459_v55 }
 0xa66   : > { %v4946_v41 = vmul.f32 0.044715, %v4882_v59  ;;  %v4883_v52 = vmul.f32 %v4819_v54, %v10563_v19  ;;  %v4820_v29 = vmul.f32 %v10572_v0, %v10572_v0  ;;  %v10579_v62 = vadd.f32 %v4676_v14, %v10504_v49 }
 0xa67   : > { %v5072_v40 = vmul.f32 0.7978846, %v5008_v48  ;;  %v5009_v1 = vadd.f32 %v4945_v32, %v10549_v4  ;;  %v4678_v21 = vpop.f32.mrf.mxu1  ;;  %v5071_v50 = vmul.f32 0.7978846, %v5007_v12  ;;  %v4512_v6 = vpack.c.bf16 %v4495_v56, %v4494_v27 }
 0xa68   : > { %v5010_v36 = vadd.f32 %v4946_v41, %v10553_v42  ;;  %v4884_v31 = vmul.f32 %v4820_v29, %v10572_v0  ;;  %v4821_v37 = vmul.f32 %v10579_v62, %v10579_v62  ;;  %v4947_v2 = vmul.f32 0.044715, %v4883_v52  ;;  %v7573_v12 = vpop.eup %7572 }
 0xa69   : > { %v5073_v13 = vmul.f32 0.7978846, %v5009_v1  ;;  %v10589_v23 = vadd.f32 %v4678_v21, %v10507_v26  ;;  %v4682_v51 = vpop.f32.mrf.mxu1  ;;  %7582 = vtanh.f32 %v5072_v40  ;;  %4791 = vmatmul.mubr.bf16.gmra.mxu1 %v4512_v6 }
 0xa6a   : > { %v5074_v43 = vmul.f32 0.7978846, %v5010_v36  ;;  %v4948_v59 = vmul.f32 0.044715, %v4884_v31  ;;  %v4885_v55 = vmul.f32 %v4821_v37, %v10579_v62  ;;  %v10595_v48 = vadd.f32 %v4682_v51, %v10504_v49  ;;  %4800 = vmatprep.mubr.bf16.mxu1 %v11397_v38 }
 0xa6b   : > { %7584 = vtanh.f32 %v5073_v13  ;;  %v4822_v54 = vmul.f32 %v10589_v23, %v10589_v23  ;;  %v4684_v32 = vpop.f32.mrf.mxu1  ;;  %v7575_v14 = vpop.eup %7574  ;;  %v5011_v27 = vadd.f32 %v4947_v2, %v10563_v19  ;;  %v4424_v2 = vmul.f32 %v7571_v30, %v10406_v39 }
 0xa6c   : > { %7586 = vtanh.f32 %v5074_v43  ;;  %v5012_v41 = vadd.f32 %v4948_v59, %v10572_v0  ;;  %v4949_v52 = vmul.f32 0.044715, %v4885_v55  ;;  %v4823_v40 = vmul.f32 %v10595_v48, %v10595_v48 }
 0xa6d   : > { %v4886_v29 = vmul.f32 %v4822_v54, %v10589_v23  ;;  %v10603_v1 = vadd.f32 %v4684_v32, %v10507_v26  ;;  %v4686_v21 = vpop.f32.mrf.mxu1  ;;  %7588 = vtanh.f32 %v5071_v50  ;;  %v7577_v31 = vpop.eup %7576 }
 0xa6e   : > { %v5076_v56 = vmul.f32 0.7978846, %v5012_v41  ;;  %v10607_v36 = vadd.f32 %v4686_v21, %v10504_v49  ;;  %v5013_v38 = vadd.f32 %v4949_v52, %v10579_v62  ;;  %v4887_v13 = vmul.f32 %v4823_v40, %v10595_v48 }
 0xa6f   : > { %v4950_v37 = vmul.f32 0.044715, %v4886_v29  ;;  %v4824_v51 = vmul.f32 %v10603_v1, %v10603_v1  ;;  %v4688_v6 = vpop.f32.mrf.mxu1  ;;  %v7579_v43 = vpop.eup %7578  ;;  %v5075_v52 = vmul.f32 0.7978846, %v5011_v27  ;;  %v4425_v21 = vmul.f32 %v7573_v12, %v10411_v34 }
 0xa70   : > { %7590 = vtanh.f32 %v5076_v56  ;;  %v4825_v50 = vmul.f32 %v10607_v36, %v10607_v36  ;;  %v5077_v59 = vmul.f32 0.7978846, %v5013_v38  ;;  %v4951_v54 = vmul.f32 0.044715, %v4887_v13 }
 0xa71   : > { %v5014_v55 = vadd.f32 %v4950_v37, %v10589_v23  ;;  %v4888_v32 = vmul.f32 %v4824_v51, %v10603_v1  ;;  %v7581_v41 = vpop.eup %7580  ;;  %v10620_v40 = vadd.f32 %v4688_v6, %v10507_v26  ;;  %v5197_v56 = vadd.f32 1.0, %v7579_v43 }
 0xa72   : > { %v4889_v29 = vmul.f32 %v4825_v50, %v10607_v36  ;;  %v5015_v53 = vadd.f32 %v4951_v54, %v10595_v48  ;;  %7592 = vtanh.f32 %v5077_v59  ;;  %v4460_v37 = vmul.f32 %v10336_v8, %v4424_v2 }
 0xa73   : > { %v5078_v61 = vmul.f32 0.7978846, %v5014_v55  ;;  %v4952_v39 = vmul.f32 0.044715, %v4888_v32  ;;  %v4826_v38 = vmul.f32 %v10620_v40, %v10620_v40  ;;  %v5195_v27 = vadd.f32 1.0, %v7575_v14 }
 0xa74   : > { %v4953_v30 = vmul.f32 0.044715, %v4889_v29  ;;  %v4461_v12 = vmul.f32 %v10336_v8, %v4425_v21  ;;  %v5261_v43 = vmul.f32 0.5, %v5197_v56  ;;  %v5079_v50 = vmul.f32 0.7978846, %v5015_v53 }
 0xa75   : > { %7594 = vtanh.f32 %v5078_v61  ;;  %v5016_v13 = vadd.f32 %v4952_v39, %v10603_v1  ;;  %v4890_v34 = vmul.f32 %v4826_v38, %v10620_v40  ;;  %v4496_v55 = vadd.f32 %v10347_v25, %v4460_v37 }
 0xa76   : > { %7596 = vtanh.f32 %v5075_v52  ;;  %v5017_v51 = vadd.f32 %v4953_v30, %v10607_v36  ;;  %v7583_v6 = vpop.eup %7582  ;;  %v4497_v61 = vadd.f32 %v10347_v25, %v4461_v12  ;;  %v5196_v14 = vadd.f32 1.0, %v7577_v31 }
 0xa77   : > { %v5080_v59 = vmul.f32 0.7978846, %v5016_v13  ;;  %v4954_v2 = vmul.f32 0.044715, %v4890_v34  ;;  %v5198_v52 = vadd.f32 1.0, %v7581_v41  ;;  %v5259_v39 = vmul.f32 0.5, %v5195_v27 }
 0xa78   : > { %v7585_v54 = vpop.eup %7584  ;;  %v5081_v32 = vmul.f32 0.7978846, %v5017_v51  ;;  %v4513_v38 = vpack.c.bf16 %v4497_v61, %v4496_v55  ;;  %v5260_v8 = vmul.f32 0.5, %v5196_v14  ;;  %v5200_v56 = vadd.f32 1.0, %v7583_v6 }
 0xa79   : > { %v7587_v29 = vpop.eup %7586  ;;  %7598 = vtanh.f32 %v5080_v59  ;;  %v5018_v30 = vadd.f32 %v4954_v2, %v10620_v40  ;;  %v5262_v53 = vmul.f32 0.5, %v5198_v52  ;;  %v5325_v37 = vmul.f32 %v5261_v43, %v10521_v9 }
 0xa7a   : > { %v7589_v21 = vpop.eup %7588  ;;  %7600 = vtanh.f32 %v5079_v50  ;;  %v5202_v13 = vadd.f32 1.0, %v7587_v29  ;;  %v5201_v51 = vadd.f32 1.0, %v7585_v54  ;;  %4801 = vmatmul.mubr.bf16.gmra.mxu1 %v4513_v38  ;;  %v5324_v31 = vmul.f32 %v5260_v8, %v10515_v57 }
 0xa7b   : > { %7602 = vtanh.f32 %v5081_v32  ;;  %v5082_v34 = vmul.f32 0.7978846, %v5018_v30  ;;  %v5326_v41 = vmul.f32 %v5262_v53, %v10527_v47  ;;  %v5264_v27 = vmul.f32 0.5, %v5200_v56 }
 0xa7c   : > { %v5266_v12 = vmul.f32 0.5, %v5202_v13  ;;  %v5323_v59 = vmul.f32 %v5259_v39, %v10510_v5  ;;  %v5199_v55 = vadd.f32 1.0, %v7589_v21  ;;  %v5265_v32 = vmul.f32 0.5, %v5201_v51 }
 0xa7d   : > { %v7591_v25 = vpop.eup %7590  ;;  %7604 = vtanh.f32 %v5082_v34  ;;  %v5388_v50 = vpack.c.bf16 %v5326_v41, %v5324_v31  ;;  %v5328_v6 = vmul.f32 %v5264_v27, %v10541_v60 }
 0xa7e   : > { %v5330_v9 = vmul.f32 %v5266_v12, %v10553_v42  ;;  %v5204_v43 = vadd.f32 1.0, %v7591_v25  ;;  %v5387_v54 = vpack.c.bf16 %v5325_v37, %v5323_v59  ;;  %v5263_v14 = vmul.f32 0.5, %v5199_v55 }
 0xa7f   : > { %v7593_v2 = vpop.eup %7592  ;;  %5579 = vmatprep.mubr.bf16.mxu0 %v5388_v50  ;;  %v5329_v52 = vmul.f32 %v5265_v32, %v10549_v4 }
 0xa80   : > { %v5390_v61 = vpack.c.bf16 %v5330_v9, %v5328_v6  ;;  %5580 = vmatmul.mubr.bf16.vlgmr.msra.gmra.mxu0 %v5387_v54  ;;  %v5268_v5 = vmul.f32 0.5, %v5204_v43  ;;  %v5205_v39 = vadd.f32 1.0, %v7593_v2  ;;  %v5327_v42 = vmul.f32 %v5263_v14, %v10534_v17 }
 0xa82   : > { %v7595_v57 = vpop.eup %7594  ;;  %5587 = vmatprep.mubr.bf16.mxu0 %v5390_v61  ;;  %v5332_v8 = vmul.f32 %v5268_v5, %v10572_v0  ;;  %v5269_v56 = vmul.f32 0.5, %v5205_v39  ;;  %v5389_v13 = vpack.c.bf16 %v5329_v52, %v5327_v42 }
 0xa83   : > { %v7597_v47 = vpop.eup %7596  ;;  %v5206_v29 = vadd.f32 1.0, %v7595_v57 }
 0xa84   : > { %v5203_v38 = vadd.f32 1.0, %v7597_v47  ;;  %v5333_v4 = vmul.f32 %v5269_v56, %v10579_v62 }
 0xa85   : > { %v5270_v30 = vmul.f32 0.5, %v5206_v29 }
 0xa86   : > { %v7599_v60 = vpop.eup %7598  ;;  %v5267_v25 = vmul.f32 0.5, %v5203_v38 }
 0xa87   : > { %v5334_v21 = vmul.f32 %v5270_v30, %v10589_v23  ;;  %v7601_v53 = vpop.eup %7600  ;;  %v5208_v37 = vadd.f32 1.0, %v7599_v60 }
 0xa88   : > { %v7603_v51 = vpop.eup %7602  ;;  %5588 = vmatmul.mubr.bf16.gmra.mxu0 %v5389_v13  ;;  %v5331_v12 = vmul.f32 %v5267_v25, %v10563_v19  ;;  %v5207_v0 = vadd.f32 1.0, %v7601_v53 }
 0xa89   : > { %v5392_v34 = vpack.c.bf16 %v5334_v21, %v5332_v8  ;;  %v5209_v41 = vadd.f32 1.0, %v7603_v51  ;;  %v5272_v17 = vmul.f32 0.5, %v5208_v37 }
 0xa8a   : > { %v7605_v31 = vpop.eup %7604  ;;  %v5391_v55 = vpack.c.bf16 %v5333_v4, %v5331_v12  ;;  %v5271_v9 = vmul.f32 0.5, %v5207_v0 }
 0xa8b   : > { %5595 = vmatprep.mubr.bf16.mxu0 %v5392_v34  ;;  %v5210_v27 = vadd.f32 1.0, %v7605_v31  ;;  %v5273_v23 = vmul.f32 0.5, %v5209_v41  ;;  %v5336_v50 = vmul.f32 %v5272_v17, %v10603_v1 }
 0xa8c   : > { %v5335_v32 = vmul.f32 %v5271_v9, %v10595_v48 }
 0xa8d   : > { %v5274_v59 = vmul.f32 0.5, %v5210_v27  ;;  %v5337_v54 = vmul.f32 %v5273_v23, %v10607_v36 }
 0xa8f   : > { %v5338_v6 = vmul.f32 %v5274_v59, %v10620_v40  ;;  %v5393_v61 = vpack.c.bf16 %v5337_v54, %v5335_v32 }
 0xa90   : > { %5596 = vmatmul.mubr.bf16.gmra.mxu0 %v5391_v55 }
 0xa91   : > { %v5394_v43 = vpack.c.bf16 %v5338_v6, %v5336_v50 }
 0xa93   : > { %5603 = vmatprep.mubr.bf16.mxu0 %v5394_v43 }
 0xa95   : > { %v4692_v62 = vpop.f32.mrf.mxu1 }
 0xa96   : > { %v10651_v2 = vadd.f32 %v4692_v62, %v10504_v49 }
 0xa97   : > { %v4694_v19 = vpop.f32.mrf.mxu1 }
 0xa98   : > { %v4827_v57 = vmul.f32 %v10651_v2, %v10651_v2  ;;  %v10656_v1 = vadd.f32 %v4694_v19, %v10507_v26  ;;  %5604 = vmatmul.mubr.bf16.gmra.mxu0 %v5393_v61 }
 0xa99   : > { %v4696_v40 = vpop.f32.mrf.mxu1 }
 0xa9a   : > { %v4891_v14 = vmul.f32 %v4827_v57, %v10651_v2  ;;  %v4828_v36 = vmul.f32 %v10656_v1, %v10656_v1  ;;  %v10662_v48 = vadd.f32 %v4696_v40, %v10504_v49 }
 0xa9b   : > { %v4698_v47 = vpop.f32.mrf.mxu1 }
 0xa9c   : > { %v4955_v29 = vmul.f32 0.044715, %v4891_v14  ;;  %v4829_v5 = vmul.f32 %v10662_v48, %v10662_v48  ;;  %v10667_v52 = vadd.f32 %v4698_v47, %v10507_v26  ;;  %v4892_v39 = vmul.f32 %v4828_v36, %v10656_v1 }
 0xa9d   : > { %v4702_v30 = vpop.f32.mrf.mxu1 }
 0xa9e   : > { %v5019_v60 = vadd.f32 %v4955_v29, %v10651_v2  ;;  %v4893_v42 = vmul.f32 %v4829_v5, %v10662_v48  ;;  %v4830_v38 = vmul.f32 %v10667_v52, %v10667_v52  ;;  %v10675_v8 = vadd.f32 %v4702_v30, %v10504_v49 }
 0xa9f   : > { %v4704_v21 = vpop.f32.mrf.mxu1  ;;  %v4956_v56 = vmul.f32 0.044715, %v4892_v39 }
 0xaa0   : > { %v4957_v53 = vmul.f32 0.044715, %v4893_v42  ;;  %v4831_v13 = vmul.f32 %v10675_v8, %v10675_v8  ;;  %v10680_v37 = vadd.f32 %v4704_v21, %v10507_v26  ;;  %v5083_v34 = vmul.f32 0.7978846, %v5019_v60 }
 0xaa1   : > { %v4706_v51 = vpop.f32.mrf.mxu1  ;;  %v4894_v31 = vmul.f32 %v4830_v38, %v10667_v52  ;;  %v5020_v59 = vadd.f32 %v4956_v56, %v10656_v1 }
 0xaa2   : > { %v5021_v25 = vadd.f32 %v4957_v53, %v10662_v48  ;;  %v4895_v4 = vmul.f32 %v4831_v13, %v10675_v8  ;;  %v4832_v41 = vmul.f32 %v10680_v37, %v10680_v37  ;;  %v10688_v27 = vadd.f32 %v4706_v51, %v10504_v49 }
 0xaa3   : > { %v4708_v17 = vpop.f32.mrf.mxu1  ;;  %7606 = vtanh.f32 %v5083_v34  ;;  %v4958_v50 = vmul.f32 0.044715, %v4894_v31  ;;  %v5084_v57 = vmul.f32 0.7978846, %v5020_v59 }
 0xaa4   : > { %v5085_v12 = vmul.f32 0.7978846, %v5021_v25  ;;  %v10691_v0 = vadd.f32 %v4708_v17, %v10507_v26  ;;  %v4959_v23 = vmul.f32 0.044715, %v4895_v4  ;;  %v4833_v55 = vmul.f32 %v10688_v27, %v10688_v27 }
 0xaa5   : > { %v4896_v6 = vmul.f32 %v4832_v41, %v10680_v37  ;;  %v4712_v43 = vpop.f32.mrf.mxu1  ;;  %v5022_v39 = vadd.f32 %v4958_v50, %v10667_v52 }
 0xaa6   : > { %v4834_v9 = vmul.f32 %v10691_v0, %v10691_v0  ;;  %7608 = vtanh.f32 %v5085_v12  ;;  %v5023_v54 = vadd.f32 %v4959_v23, %v10675_v8  ;;  %v4897_v62 = vmul.f32 %v4833_v55, %v10688_v27 }
 0xaa7   : > { %v10702_v32 = vadd.f32 %v4712_v43, %v10504_v49  ;;  %v4714_v61 = vpop.f32.mrf.mxu1  ;;  %v4960_v47 = vmul.f32 0.044715, %v4896_v6  ;;  %7610 = vtanh.f32 %v5084_v57  ;;  %v5086_v41 = vmul.f32 0.7978846, %v5022_v39 }
 0xaa8   : > { %v4898_v19 = vmul.f32 %v4834_v9, %v10691_v0  ;;  %v4961_v40 = vmul.f32 0.044715, %v4897_v62  ;;  %v5087_v36 = vmul.f32 0.7978846, %v5023_v54  ;;  %v10708_v29 = vadd.f32 %v4714_v61, %v10507_v26 }
 0xaa9   : > { %v4835_v14 = vmul.f32 %v10702_v32, %v10702_v32  ;;  %v4716_v5 = vpop.f32.mrf.mxu1  ;;  %v5024_v34 = vadd.f32 %v4960_v47, %v10680_v37 }
 0xaaa   : > { %v5025_v30 = vadd.f32 %v4961_v40, %v10688_v27  ;;  %v4962_v42 = vmul.f32 0.044715, %v4898_v19  ;;  %v4836_v38 = vmul.f32 %v10708_v29, %v10708_v29  ;;  %v10716_v21 = vadd.f32 %v4716_v5, %v10504_v49 }
 0xaab   : > { %v4899_v60 = vmul.f32 %v4835_v14, %v10702_v32  ;;  %v4718_v53 = vpop.f32.mrf.mxu1  ;;  %7612 = vtanh.f32 %v5087_v36  ;;  %v5088_v62 = vmul.f32 0.7978846, %v5024_v34 }
 0xaac   : > { %v5089_v56 = vmul.f32 0.7978846, %v5025_v30  ;;  %v10719_v51 = vadd.f32 %v4718_v53, %v10507_v26  ;;  %v4900_v25 = vmul.f32 %v4836_v38, %v10708_v29  ;;  %v4837_v31 = vmul.f32 %v10716_v21, %v10716_v21 }
 0xaad   : > { %v4963_v13 = vmul.f32 0.044715, %v4899_v60  ;;  %v4722_v4 = vpop.f32.mrf.mxu1  ;;  %v5026_v59 = vadd.f32 %v4962_v42, %v10691_v0 }
 0xaae   : > { %7614 = vtanh.f32 %v5089_v56  ;;  %v4838_v17 = vmul.f32 %v10719_v51, %v10719_v51  ;;  %v10728_v12 = vadd.f32 %v4722_v4, %v10504_v49  ;;  %v4964_v55 = vmul.f32 0.044715, %v4900_v25 }
 0xaaf   : > { %v5027_v23 = vadd.f32 %v4963_v13, %v10702_v32  ;;  %v4901_v50 = vmul.f32 %v4837_v31, %v10716_v21  ;;  %v4724_v6 = vpop.f32.mrf.mxu1  ;;  %7616 = vtanh.f32 %v5086_v41  ;;  %v5090_v5 = vmul.f32 0.7978846, %v5026_v59 }
 0xab0   : > { %v4902_v9 = vmul.f32 %v4838_v17, %v10719_v51  ;;  %v4839_v43 = vmul.f32 %v10728_v12, %v10728_v12  ;;  %v10737_v54 = vadd.f32 %v4724_v6, %v10507_v26  ;;  %v7607_v57 = vpop.eup %7606  ;;  %v5028_v40 = vadd.f32 %v4964_v55, %v10708_v29 }
 0xab1   : > { %v4965_v19 = vmul.f32 0.044715, %v4901_v50  ;;  %v4726_v61 = vpop.f32.mrf.mxu1  ;;  %v5091_v39 = vmul.f32 0.7978846, %v5027_v23  ;;  %7618 = vtanh.f32 %v5088_v62  ;;  %v5211_v25 = vadd.f32 1.0, %v7607_v57 }
 0xab2   : > { %v4966_v14 = vmul.f32 0.044715, %v4902_v9  ;;  %v4840_v36 = vmul.f32 %v10737_v54, %v10737_v54  ;;  %v4903_v30 = vmul.f32 %v4839_v43, %v10728_v12  ;;  %v10747_v56 = vadd.f32 %v4726_v61, %v10504_v49 }
 0xab3   : > { %v7609_v47 = vpop.eup %7608  ;;  %v4728_v60 = vpop.f32.mrf.mxu1  ;;  %v5029_v42 = vadd.f32 %v4965_v19, %v10716_v21  ;;  %v5092_v4 = vmul.f32 0.7978846, %v5028_v40  ;;  %7620 = vtanh.f32 %v5090_v5 }
 0xab4   : > { %v5030_v38 = vadd.f32 %v4966_v14, %v10719_v51  ;;  %v4904_v53 = vmul.f32 %v4840_v36, %v10737_v54  ;;  %v10750_v13 = vadd.f32 %v4728_v60, %v10507_v26  ;;  %v5213_v31 = vadd.f32 1.0, %v7609_v47  ;;  %v7611_v43 = vpop.eup %7610 }
 0xab5   : > { %v4732_v34 = vpop.f32.mrf.mxu1  ;;  %v4841_v41 = vmul.f32 %v10747_v56, %v10747_v56  ;;  %7622 = vtanh.f32 %v5091_v39  ;;  %v5093_v50 = vmul.f32 0.7978846, %v5029_v42  ;;  %v4967_v9 = vmul.f32 0.044715, %v4903_v30 }
 0xab6   : > { %v4968_v17 = vmul.f32 0.044715, %v4904_v53  ;;  %v4842_v59 = vmul.f32 %v10750_v13, %v10750_v13  ;;  %v10757_v23 = vadd.f32 %v4732_v34, %v10504_v49  ;;  %v5094_v6 = vmul.f32 0.7978846, %v5030_v38 }
 0xab7   : > { %v4734_v55 = vpop.f32.mrf.mxu1  ;;  %v4905_v62 = vmul.f32 %v4841_v41, %v10747_v56  ;;  %v5275_v36 = vmul.f32 0.5, %v5211_v25  ;;  %v5277_v47 = vmul.f32 0.5, %v5213_v31  ;;  %7624 = vtanh.f32 %v5092_v4 }
 0xab8   : > { %v4906_v19 = vmul.f32 %v4842_v59, %v10750_v13  ;;  %v4843_v61 = vmul.f32 %v10757_v23, %v10757_v23  ;;  %v10764_v57 = vadd.f32 %v4734_v55, %v10507_v26  ;;  %v7613_v14 = vpop.eup %7612  ;;  %v5032_v30 = vadd.f32 %v4968_v17, %v10737_v54 }
 0xab9   : > { %v4736_v40 = vpop.f32.mrf.mxu1  ;;  %v4969_v60 = vmul.f32 0.044715, %v4905_v62  ;;  %7626 = vtanh.f32 %v5093_v50  ;;  %v5031_v34 = vadd.f32 %v4967_v9, %v10728_v12  ;;  %v5215_v31 = vadd.f32 1.0, %v7613_v14 }
 0xaba   : > { %v10767_v5 = vadd.f32 %v4736_v40, %v10504_v49  ;;  %v4970_v42 = vmul.f32 0.044715, %v4906_v19  ;;  %v4844_v38 = vmul.f32 %v10764_v57, %v10764_v57  ;;  %v4907_v41 = vmul.f32 %v4843_v61, %v10757_v23 }
 0xabb   : > { %v7615_v39 = vpop.eup %7614  ;;  %v4738_v53 = vpop.f32.mrf.mxu1  ;;  %7628 = vtanh.f32 %v5094_v6  ;;  %v5033_v62 = vadd.f32 %v4969_v60, %v10747_v56  ;;  %v5096_v9 = vmul.f32 0.7978846, %v5032_v30  ;;  %v5212_v14 = vadd.f32 1.0, %v7611_v43 }
 0xabc   : > { %v4845_v25 = vmul.f32 %v10767_v5, %v10767_v5  ;;  %v5034_v4 = vadd.f32 %v4970_v42, %v10750_v13  ;;  %v4908_v17 = vmul.f32 %v4844_v38, %v10764_v57  ;;  %v5217_v55 = vadd.f32 1.0, %v7615_v39  ;;  %v7617_v22 = vpop.eup %7616 }
 0xabd   : > { %v4742_v59 = vpop.f32.mrf.mxu1  ;;  %v10781_v50 = vadd.f32 %v4738_v53, %v10507_v26  ;;  %v5339_v42 = vmul.f32 %v5275_v36, %v10651_v2  ;;  %v4971_v16 = vmul.f32 0.044715, %v4907_v41  ;;  %v5279_v60 = vmul.f32 0.5, %v5215_v31 }
 0xabe   : > { %v4909_v19 = vmul.f32 %v4845_v25, %v10767_v5  ;;  %v4972_v61 = vmul.f32 0.044715, %v4908_v17  ;;  %v10784_v40 = vadd.f32 %v4742_v59, %v10504_v49  ;;  %v5098_v38 = vmul.f32 0.7978846, %v5034_v4  ;;  %v7619_v30 = vpop.eup %7618 }
 0xabf   : > { %v4744_v6 = vpop.f32.mrf.mxu1  ;;  %v4846_v39 = vmul.f32 %v10781_v50, %v10781_v50  ;;  %v5095_v25 = vmul.f32 0.7978846, %v5031_v34  ;;  %v5341_v17 = vmul.f32 %v5277_v47, %v10662_v48  ;;  %v5281_v59 = vmul.f32 0.5, %v5217_v55 }
 0xac0   : > { %v5036_v53 = vadd.f32 %v4972_v61, %v10764_v57  ;;  %v4973_v28 = vmul.f32 0.044715, %v4909_v19  ;;  %v5097_v10 = vmul.f32 0.7978846, %v5033_v62  ;;  %7630 = vtanh.f32 %v5096_v9  ;;  %v7621_v4 = vpop.eup %7620 }
 0xac1   : > { %v4910_v43 = vmul.f32 %v4846_v39, %v10781_v50  ;;  %v4746_v33 = vpop.f32.mrf.mxu1  ;;  %v4847_v36 = vmul.f32 %v10784_v40, %v10784_v40  ;;  %v5214_v41 = vadd.f32 1.0, %v7617_v22  ;;  %7632 = vtanh.f32 %v5098_v38 }
 0xac2   : > { %v5100_v2 = vmul.f32 0.7978846, %v5036_v53  ;;  %v5035_v34 = vadd.f32 %v4971_v16, %v10757_v23  ;;  %v5276_v19 = vmul.f32 0.5, %v5212_v14  ;;  %v7623_v61 = vpop.eup %7622  ;;  %v10796_v48 = vmul.f32 %v5279_v60, %v10675_v8 }
 0xac3   : > { %v4974_v31 = vmul.f32 0.044715, %v4910_v43  ;;  %7634 = vtanh.f32 %v5095_v25  ;;  %v5037_v47 = vadd.f32 %v4973_v28, %v10767_v5  ;;  %v5278_v55 = vmul.f32 0.5, %v5214_v41  ;;  %v4748_v16 = vpop.f32.mrf.mxu1 }
 0xac4   : > { %v10800_v62 = vmul.f32 %v5281_v59, %v10688_v27  ;;  %7636 = vtanh.f32 %v5097_v10  ;;  %v10804_v9 = vadd.f32 %v4744_v6, %v10507_v26  ;;  %v7625_v38 = vpop.eup %7624  ;;  %v4911_v14 = vmul.f32 %v4847_v36, %v10784_v40 }
 0xac5   : > { %v5038_v22 = vadd.f32 %v4974_v31, %v10781_v50  ;;  %7638 = vtanh.f32 %v5100_v2  ;;  %v5340_v8 = vmul.f32 %v5276_v19, %v10656_v1  ;;  %v5342_v39 = vmul.f32 %v5278_v55, %v10667_v52 }
 0xac6   : > { %v5099_v28 = vmul.f32 0.7978846, %v5035_v34  ;;  %v4848_v27 = vmul.f32 %v10804_v9, %v10804_v9  ;;  %v10812_v10 = vadd.f32 %v4746_v33, %v10504_v49  ;;  %v7627_v25 = vpop.eup %7626  ;;  %v5219_v6 = vadd.f32 1.0, %v7623_v61 }
 0xac7   : > { %v5102_v60 = vmul.f32 0.7978846, %v5038_v22  ;;  %v5101_v53 = vmul.f32 0.7978846, %v5037_v47  ;;  %v5396_v59 = vpack.c.bf16 %v5342_v39, %v5340_v8  ;;  %v10815_v43 = vadd.f32 %v4748_v16, %v10507_v26 }
 0xac8   : > { %v7629_v2 = vpop.eup %7628  ;;  %v4912_v1 = vmul.f32 %v4848_v27, %v10804_v9  ;;  %v5395_v52 = vpack.c.bf16 %v5341_v17, %v5339_v42  ;;  %v4849_v36 = vmul.f32 %v10812_v10, %v10812_v10  ;;  %v4975_v41 = vmul.f32 0.044715, %v4911_v14 }
 0xac9   : > { %7640 = vtanh.f32 %v5102_v60  ;;  %5611 = vmatprep.mubr.bf16.mxu0 %v5396_v59  ;;  %v4850_v33 = vmul.f32 %v10815_v43, %v10815_v43  ;;  %v5216_v34 = vadd.f32 1.0, %v7619_v30  ;;  %v5218_v31 = vadd.f32 1.0, %v7621_v4 }
 0xaca   : > { %v5221_v19 = vadd.f32 1.0, %v7627_v25  ;;  %7642 = vtanh.f32 %v5099_v28  ;;  %v4976_v61 = vmul.f32 0.044715, %v4912_v1  ;;  %5612 = vmatmul.mubr.bf16.gmra.mxu0 %v5395_v52  ;;  %v4913_v47 = vmul.f32 %v4849_v36, %v10812_v10 }
 0xacb   : > { %v4914_v55 = vmul.f32 %v4850_v33, %v10815_v43  ;;  %v5280_v22 = vmul.f32 0.5, %v5216_v34  ;;  %v5282_v42 = vmul.f32 0.5, %v5218_v31  ;;  %v5220_v17 = vadd.f32 1.0, %v7625_v38 }
 0xacc   : > { %7644 = vtanh.f32 %v5101_v53  ;;  %v5040_v16 = vadd.f32 %v4976_v61, %v10804_v9  ;;  %v4977_v14 = vmul.f32 0.044715, %v4913_v47  ;;  %v5222_v8 = vadd.f32 1.0, %v7629_v2 }
 0xacd   : > { %v5039_v39 = vadd.f32 %v4975_v41, %v10784_v40  ;;  %v4978_v30 = vmul.f32 0.044715, %v4914_v55  ;;  %v5344_v4 = vmul.f32 %v5280_v22, %v10680_v37  ;;  %v5346_v28 = vmul.f32 %v5282_v42, %v10691_v0  ;;  %v7631_v60 = vpop.eup %7630 }
 0xace   : > { %v5104_v27 = vmul.f32 0.7978846, %v5040_v16  ;;  %v5041_v25 = vadd.f32 %v4977_v14, %v10812_v10  ;;  %v5284_v59 = vmul.f32 0.5, %v5220_v17  ;;  %v5286_v1 = vmul.f32 0.5, %v5222_v8  ;;  %v7633_v52 = vpop.eup %7632 }
 0xacf   : > { %v5285_v38 = vmul.f32 0.5, %v5221_v19  ;;  %v5042_v53 = vadd.f32 %v4978_v30, %v10815_v43  ;;  %v5398_v36 = vpack.c.bf16 %v5346_v28, %v5344_v4  ;;  %v5397_v2 = vpack.c.bf16 %v10800_v62, %v10796_v48 }
 0xad0   : > { %v7635_v41 = vpop.eup %7634  ;;  %7646 = vtanh.f32 %v5104_v27  ;;  %v5105_v33 = vmul.f32 0.7978846, %v5041_v25  ;;  %v5348_v37 = vmul.f32 %v5284_v59, %v10708_v29  ;;  %v5350_v0 = vmul.f32 %v5286_v1, %v10719_v51 }
 0xad1   : > { %v7637_v34 = vpop.eup %7636  ;;  %v5283_v31 = vmul.f32 0.5, %v5219_v6  ;;  %v5106_v61 = vmul.f32 0.7978846, %v5042_v53  ;;  %5619 = vmatprep.mubr.bf16.mxu0 %v5398_v36  ;;  %v5224_v47 = vadd.f32 1.0, %v7631_v60  ;;  %v5103_v19 = vmul.f32 0.7978846, %v5039_v39 }
 0xad2   : > { %v7639_v55 = vpop.eup %7638  ;;  %5620 = vmatmul.mubr.bf16.gmra.mxu0 %v5397_v2  ;;  %v5400_v22 = vpack.c.bf16 %v5350_v0, %v5348_v37  ;;  %v5226_v42 = vadd.f32 1.0, %v7633_v52  ;;  %v5349_v48 = vmul.f32 %v5285_v38, %v10716_v21  ;;  %v5225_v62 = vadd.f32 1.0, %v7637_v34 }
 0xad3   : > { %7648 = vtanh.f32 %v5106_v61  ;;  %v5288_v17 = vmul.f32 0.5, %v5224_v47  ;;  %v5347_v51 = vmul.f32 %v5283_v31, %v10702_v32  ;;  %v5223_v6 = vadd.f32 1.0, %v7635_v41 }
 0xad4   : > { %7650 = vtanh.f32 %v5105_v33  ;;  %5627 = vmatprep.mubr.bf16.mxu0 %v5400_v22  ;;  %v5290_v29 = vmul.f32 0.5, %v5226_v42  ;;  %v5228_v14 = vadd.f32 1.0, %v7639_v55  ;;  %v5289_v28 = vmul.f32 0.5, %v5225_v62 }
 0xad5   : > { %7652 = vtanh.f32 %v5103_v19  ;;  %v5352_v8 = vmul.f32 %v5288_v17, %v10737_v54  ;;  %v5399_v60 = vpack.c.bf16 %v5349_v48, %v5347_v51  ;;  %v5287_v1 = vmul.f32 0.5, %v5223_v6 }
 0xad6   : > { %v7641_v16 = vpop.eup %7640  ;;  %v5354_v39 = vmul.f32 %v5290_v29, %v10750_v13  ;;  %v5292_v59 = vmul.f32 0.5, %v5228_v14  ;;  %v5353_v52 = vmul.f32 %v5289_v28, %v10747_v56 }
 0xad7   : > { %v5230_v30 = vadd.f32 1.0, %v7641_v16  ;;  %v7643_v4 = vpop.eup %7642  ;;  %v5351_v13 = vmul.f32 %v5287_v1, %v10728_v12 }
 0xad8   : > { %v5402_v27 = vpack.c.bf16 %v5354_v39, %v5352_v8  ;;  %v5356_v54 = vmul.f32 %v5292_v59, %v10764_v57  ;;  %v5227_v36 = vadd.f32 1.0, %v7643_v4 }
 0xad9   : > { %v5294_v21 = vmul.f32 0.5, %v5230_v30  ;;  %v7645_v25 = vpop.eup %7644  ;;  %v5401_v0 = vpack.c.bf16 %v5353_v52, %v5351_v13 }
 0xada   : > { %5628 = vmatmul.mubr.bf16.gmra.mxu0 %v5399_v60  ;;  %v5229_v38 = vadd.f32 1.0, %v7645_v25  ;;  %v5291_v47 = vmul.f32 0.5, %v5227_v36 }
 0xadb   : > { %5635 = vmatprep.mubr.bf16.mxu0 %v5402_v27  ;;  %v5358_v32 = vmul.f32 %v5294_v21, %v10781_v50 }
 0xadc   : > { %v5293_v37 = vmul.f32 0.5, %v5229_v38  ;;  %v5355_v29 = vmul.f32 %v5291_v47, %v10757_v23 }
 0xadd   : > { %v7647_v53 = vpop.eup %7646  ;;  %v5404_v41 = vpack.c.bf16 %v5358_v32, %v5356_v54 }
 0xade   : > { %v5232_v2 = vadd.f32 1.0, %v7647_v53  ;;  %v5357_v12 = vmul.f32 %v5293_v37, %v10767_v5 }
 0xae0   : > { %v7649_v33 = vpop.eup %7648  ;;  %v5296_v61 = vmul.f32 0.5, %v5232_v2 }
 0xae1   : > { %v7651_v34 = vpop.eup %7650  ;;  %v5234_v31 = vadd.f32 1.0, %v7649_v33 }
 0xae2   : > { %5636 = vmatmul.mubr.bf16.gmra.mxu0 %v5401_v0  ;;  %v7653_v55 = vpop.eup %7652  ;;  %v5233_v19 = vadd.f32 1.0, %v7651_v34  ;;  %v5360_v17 = vmul.f32 %v5296_v61, %v10804_v9  ;;  %v5403_v9 = vpack.c.bf16 %v5357_v12, %v5355_v29 }
 0xae3   : > { %5643 = vmatprep.mubr.bf16.mxu0 %v5404_v41  ;;  %v5298_v57 = vmul.f32 0.5, %v5234_v31  ;;  %v5231_v16 = vadd.f32 1.0, %v7653_v55 }
 0xae4   : > { %v5297_v39 = vmul.f32 0.5, %v5233_v19 }
 0xae5   : > { %v4752_v50 = vpop.f32.mrf.mxu1  ;;  %v5362_v48 = vmul.f32 %v5298_v57, %v10815_v43  ;;  %v5295_v60 = vmul.f32 0.5, %v5231_v16 }
 0xae6   : > { %v10843_v56 = vadd.f32 %v4752_v50, %v10504_v49  ;;  %v5361_v32 = vmul.f32 %v5297_v39, %v10812_v10 }
 0xae7   : > { %v4754_v22 = vpop.f32.mrf.mxu1  ;;  %v5406_v14 = vpack.c.bf16 %v5362_v48, %v5360_v17  ;;  %v5359_v2 = vmul.f32 %v5295_v60, %v10784_v40 }
 0xae8   : > { %v4851_v42 = vmul.f32 %v10843_v56, %v10843_v56  ;;  %v10851_v62 = vadd.f32 %v4754_v22, %v10507_v26 }
 0xae9   : > { %v4756_v51 = vpop.f32.mrf.mxu1  ;;  %v5405_v34 = vpack.c.bf16 %v5361_v32, %v5359_v2 }
 0xaea   : > { %v4915_v6 = vmul.f32 %v4851_v42, %v10843_v56  ;;  %v4852_v5 = vmul.f32 %v10851_v62, %v10851_v62  ;;  %v10858_v8 = vadd.f32 %v4756_v51, %v10504_v49  ;;  %5644 = vmatmul.mubr.bf16.gmra.mxu0 %v5403_v9 }
 0xaeb   : > { %v4758_v30 = vpop.f32.mrf.mxu1  ;;  %5651 = vmatprep.mubr.bf16.mxu0 %v5406_v14 }
 0xaec   : > { %v4979_v43 = vmul.f32 0.044715, %v4915_v6  ;;  %v4916_v4 = vmul.f32 %v4852_v5, %v10851_v62  ;;  %v4853_v23 = vmul.f32 %v10858_v8, %v10858_v8  ;;  %v10864_v28 = vadd.f32 %v4758_v30, %v10507_v26 }
 0xaee   : > { %v5043_v27 = vadd.f32 %v4979_v43, %v10843_v56  ;;  %v4980_v21 = vmul.f32 0.044715, %v4916_v4  ;;  %v4917_v25 = vmul.f32 %v4853_v23, %v10858_v8  ;;  %v4854_v59 = vmul.f32 %v10864_v28, %v10864_v28  ;;  %v4762_v1 = vpop.f32.mrf.mxu1 }
 0xaef   : > { %v10872_v52 = vadd.f32 %v4762_v1, %v10504_v49 }
 0xaf0   : > { %v5107_v38 = vmul.f32 0.7978846, %v5043_v27  ;;  %v5044_v53 = vadd.f32 %v4980_v21, %v10851_v62  ;;  %v4981_v54 = vmul.f32 0.044715, %v4917_v25  ;;  %v4918_v13 = vmul.f32 %v4854_v59, %v10864_v28  ;;  %v4764_v36 = vpop.f32.mrf.mxu1 }
 0xaf1   : > { %v4855_v41 = vmul.f32 %v10872_v52, %v10872_v52  ;;  %v10880_v33 = vadd.f32 %v4764_v36, %v10507_v26 }
 0xaf2   : > { %v5045_v10 = vadd.f32 %v4981_v54, %v10858_v8  ;;  %v4982_v37 = vmul.f32 0.044715, %v4918_v13  ;;  %v4766_v0 = vpop.f32.mrf.mxu1  ;;  %7654 = vtanh.f32 %v5107_v38  ;;  %v5108_v40 = vmul.f32 0.7978846, %v5044_v53  ;;  %5652 = vmatmul.mubr.bf16.gmra.mxu0 %v5405_v34 }
 0xaf3   : > { %v4919_v31 = vmul.f32 %v4855_v41, %v10872_v52  ;;  %v4856_v61 = vmul.f32 %v10880_v33, %v10880_v33  ;;  %v10887_v47 = vadd.f32 %v4766_v0, %v10504_v49 }
 0xaf4   : > { %v5109_v50 = vmul.f32 0.7978846, %v5045_v10  ;;  %v5046_v55 = vadd.f32 %v4982_v37, %v10864_v28  ;;  %v4768_v57 = vpop.f32.mrf.mxu1 }
 0xaf5   : > { %v4983_v12 = vmul.f32 0.044715, %v4919_v31  ;;  %v4920_v19 = vmul.f32 %v4856_v61, %v10880_v33  ;;  %v4857_v22 = vmul.f32 %v10887_v47, %v10887_v47  ;;  %v10894_v42 = vadd.f32 %v4768_v57, %v10507_v26 }
 0xaf6   : > { %7656 = vtanh.f32 %v5109_v50  ;;  %v5110_v17 = vmul.f32 0.7978846, %v5046_v55  ;;  %v4772_v48 = vpop.f32.mrf.mxu1 }
 0xaf7   : > { %v5047_v29 = vadd.f32 %v4983_v12, %v10872_v52  ;;  %v4984_v16 = vmul.f32 0.044715, %v4920_v19  ;;  %v4921_v51 = vmul.f32 %v4857_v22, %v10887_v47  ;;  %v4858_v6 = vmul.f32 %v10894_v42, %v10894_v42 }
 0xaf8   : > { %7658 = vtanh.f32 %v5108_v40  ;;  %v10901_v14 = vadd.f32 %v4772_v48, %v10504_v49  ;;  %v4774_v5 = vpop.f32.mrf.mxu1 }
 0xaf9   : > { %v5111_v39 = vmul.f32 0.7978846, %v5047_v29  ;;  %v5048_v9 = vadd.f32 %v4984_v16, %v10880_v33  ;;  %v4985_v30 = vmul.f32 0.044715, %v4921_v51  ;;  %v4922_v43 = vmul.f32 %v4858_v6, %v10894_v42 }
 0xafa   : > { %7660 = vtanh.f32 %v5110_v17  ;;  %v4859_v4 = vmul.f32 %v10901_v14, %v10901_v14  ;;  %v10908_v23 = vadd.f32 %v4774_v5, %v10507_v26  ;;  %v4776_v60 = vpop.f32.mrf.mxu1 }
 0xafb   : > { %v5112_v27 = vmul.f32 0.7978846, %v5048_v9  ;;  %v5049_v21 = vadd.f32 %v4985_v30, %v10887_v47  ;;  %v4986_v25 = vmul.f32 0.044715, %v4922_v43  ;;  %v10915_v32 = vadd.f32 %v4776_v60, %v10504_v49 }
 0xafc   : > { %v4923_v59 = vmul.f32 %v4859_v4, %v10901_v14  ;;  %v4860_v1 = vmul.f32 %v10908_v23, %v10908_v23  ;;  %v4778_v38 = vpop.f32.mrf.mxu1  ;;  %7662 = vtanh.f32 %v5111_v39 }
 0xafd   : > { %v5113_v53 = vmul.f32 0.7978846, %v5049_v21  ;;  %v5050_v54 = vadd.f32 %v4986_v25, %v10894_v42  ;;  %v10919_v13 = vadd.f32 %v4778_v38, %v10507_v26  ;;  %7664 = vtanh.f32 %v5112_v27 }
 0xafe   : > { %v4987_v36 = vmul.f32 0.044715, %v4923_v59  ;;  %v4924_v2 = vmul.f32 %v4860_v1, %v10908_v23  ;;  %v4861_v41 = vmul.f32 %v10915_v32, %v10915_v32  ;;  %v4782_v10 = vpop.f32.mrf.mxu1 }
 0xaff   : > { %7666 = vtanh.f32 %v5113_v53  ;;  %v5114_v37 = vmul.f32 0.7978846, %v5050_v54  ;;  %v4862_v0 = vmul.f32 %v10919_v13, %v10919_v13  ;;  %v10927_v34 = vadd.f32 %v4782_v10, %v10504_v49  ;;  %v7655_v55 = vpop.eup %7654 }
 0xb00   : > { %v5051_v31 = vadd.f32 %v4987_v36, %v10901_v14  ;;  %v4988_v61 = vmul.f32 0.044715, %v4924_v2  ;;  %v4925_v40 = vmul.f32 %v4861_v41, %v10915_v32  ;;  %v4784_v50 = vpop.f32.mrf.mxu1  ;;  %v5235_v59 = vadd.f32 1.0, %v7655_v55 }
 0xb01   : > { %7668 = vtanh.f32 %v5114_v37  ;;  %v4926_v57 = vmul.f32 %v4862_v0, %v10919_v13  ;;  %v4863_v12 = vmul.f32 %v10927_v34, %v10927_v34  ;;  %v10935_v19 = vadd.f32 %v4784_v50, %v10507_v26 }
 0xb02   : > { %v5115_v22 = vmul.f32 0.7978846, %v5051_v31  ;;  %v5052_v17 = vadd.f32 %v4988_v61, %v10908_v23  ;;  %v4989_v48 = vmul.f32 0.044715, %v4925_v40  ;;  %v4786_v29 = vpop.f32.mrf.mxu1 }
 0xb03   : > { %v7657_v16 = vpop.eup %7656  ;;  %v4990_v51 = vmul.f32 0.044715, %v4926_v57  ;;  %v4927_v6 = vmul.f32 %v4863_v12, %v10927_v34  ;;  %v4864_v5 = vmul.f32 %v10935_v19, %v10935_v19  ;;  %v10942_v39 = vadd.f32 %v4786_v29, %v10504_v49 }
 0xb04   : > { %v5237_v9 = vadd.f32 1.0, %v7657_v16  ;;  %7670 = vtanh.f32 %v5115_v22  ;;  %v5116_v30 = vmul.f32 0.7978846, %v5052_v17  ;;  %v4788_v43 = vpop.f32.mrf.mxu1  ;;  %v5053_v60 = vadd.f32 %v4989_v48, %v10915_v32 }
 0xb05   : > { %v7659_v4 = vpop.eup %7658  ;;  %v5054_v27 = vadd.f32 %v4990_v51, %v10919_v13  ;;  %v4991_v21 = vmul.f32 0.044715, %v4927_v6  ;;  %v4928_v25 = vmul.f32 %v4864_v5, %v10935_v19  ;;  %v4865_v1 = vmul.f32 %v10942_v39, %v10942_v39 }
 0xb06   : > { %7672 = vtanh.f32 %v5116_v30  ;;  %v10950_v38 = vadd.f32 %v4788_v43, %v10507_v26  ;;  %v5117_v54 = vmul.f32 0.7978846, %v5053_v60  ;;  %v5236_v0 = vadd.f32 1.0, %v7659_v4 }
 0xb07   : > { %v7661_v53 = vpop.eup %7660  ;;  %v5118_v36 = vmul.f32 0.7978846, %v5054_v27  ;;  %v5055_v2 = vadd.f32 %v4991_v21, %v10927_v34  ;;  %v4992_v41 = vmul.f32 0.044715, %v4928_v25  ;;  %v4929_v10 = vmul.f32 %v4865_v1, %v10942_v39 }
 0xb08   : > { %v4866_v37 = vmul.f32 %v10950_v38, %v10950_v38  ;;  %v5301_v31 = vmul.f32 0.5, %v5237_v9  ;;  %7674 = vtanh.f32 %v5117_v54  ;;  %v5238_v57 = vadd.f32 1.0, %v7661_v53 }
 0xb09   : > { %v5056_v61 = vadd.f32 %v4992_v41, %v10935_v19  ;;  %v7663_v40 = vpop.eup %7662  ;;  %7676 = vtanh.f32 %v5118_v36  ;;  %v4993_v50 = vmul.f32 0.044715, %v4929_v10  ;;  %v5299_v22 = vmul.f32 0.5, %v5235_v59 }
 0xb0a   : > { %v4930_v55 = vmul.f32 %v4866_v37, %v10950_v38  ;;  %v7665_v12 = vpop.eup %7664  ;;  %v5119_v17 = vmul.f32 0.7978846, %v5055_v2  ;;  %v5300_v29 = vmul.f32 0.5, %v5236_v0  ;;  %v5302_v5 = vmul.f32 0.5, %v5238_v57 }
 0xb0b   : > { %v5120_v48 = vmul.f32 0.7978846, %v5056_v61  ;;  %v5057_v51 = vadd.f32 %v4993_v50, %v10942_v39  ;;  %v5365_v9 = vmul.f32 %v5301_v31, %v10858_v8  ;;  %v5240_v25 = vadd.f32 1.0, %v7665_v12 }
 0xb0c   : > { %v7667_v16 = vpop.eup %7666  ;;  %v4994_v6 = vmul.f32 0.044715, %v4930_v55  ;;  %v5364_v43 = vmul.f32 %v5300_v29, %v10851_v62  ;;  %v5366_v21 = vmul.f32 %v5302_v5, %v10864_v28  ;;  %v5363_v59 = vmul.f32 %v5299_v22, %v10843_v56 }
 0xb0d   : > { %v5241_v30 = vadd.f32 1.0, %v7667_v16  ;;  %7678 = vtanh.f32 %v5120_v48  ;;  %v5121_v60 = vmul.f32 0.7978846, %v5057_v51  ;;  %v5239_v1 = vadd.f32 1.0, %v7663_v40 }
 0xb0e   : > { %v7669_v4 = vpop.eup %7668  ;;  %v5058_v27 = vadd.f32 %v4994_v6, %v10950_v38  ;;  %7680 = vtanh.f32 %v5119_v17  ;;  %v5408_v36 = vpack.c.bf16 %v5366_v21, %v5364_v43  ;;  %v5304_v8 = vmul.f32 0.5, %v5240_v25 }
 0xb0f   : > { %v5242_v53 = vadd.f32 1.0, %v7669_v4  ;;  %7682 = vtanh.f32 %v5121_v60  ;;  %v5305_v41 = vmul.f32 0.5, %v5241_v30  ;;  %v5407_v10 = vpack.c.bf16 %v5365_v9, %v5363_v59 }
 0xb10   : > { %v5122_v54 = vmul.f32 0.7978846, %v5058_v27  ;;  %5659 = vmatprep.mubr.bf16.mxu0 %v5408_v36  ;;  %v5303_v0 = vmul.f32 0.5, %v5239_v1  ;;  %v5368_v28 = vmul.f32 %v5304_v8, %v10880_v33 }
 0xb11   : > { %v7671_v2 = vpop.eup %7670  ;;  %v5306_v62 = vmul.f32 0.5, %v5242_v53  ;;  %5660 = vmatmul.mubr.bf16.gmra.mxu0 %v5407_v10  ;;  %v5369_v61 = vmul.f32 %v5305_v41, %v10887_v47 }
 0xb12   : > { %7684 = vtanh.f32 %v5122_v54  ;;  %v5367_v57 = vmul.f32 %v5303_v0, %v10872_v52  ;;  %v5243_v12 = vadd.f32 1.0, %v7671_v2 }
 0xb13   : > { %v7673_v37 = vpop.eup %7672  ;;  %v5370_v56 = vmul.f32 %v5306_v62, %v10894_v42 }
 0xb14   : > { %v5244_v31 = vadd.f32 1.0, %v7673_v37  ;;  %v5409_v16 = vpack.c.bf16 %v5369_v61, %v5367_v57  ;;  %v5307_v33 = vmul.f32 0.5, %v5243_v12 }
 0xb15   : > { %v5410_v40 = vpack.c.bf16 %v5370_v56, %v5368_v28  ;;  %v7675_v50 = vpop.eup %7674 }
 0xb16   : > { %v7677_v55 = vpop.eup %7676  ;;  %v5245_v22 = vadd.f32 1.0, %v7675_v50  ;;  %v5308_v48 = vmul.f32 0.5, %v5244_v31  ;;  %v5371_v27 = vmul.f32 %v5307_v33, %v10901_v14 }
 0xb17   : > { %5667 = vmatprep.mubr.bf16.mxu0 %v5410_v40  ;;  %v5246_v17 = vadd.f32 1.0, %v7677_v55 }
 0xb18   : > { %v5309_v29 = vmul.f32 0.5, %v5245_v22  ;;  %v5372_v5 = vmul.f32 %v5308_v48, %v10908_v23 }
 0xb19   : > { %v5310_v6 = vmul.f32 0.5, %v5246_v17  ;;  %5668 = vmatmul.mubr.bf16.gmra.mxu0 %v5409_v16 }
 0xb1a   : > { %v7679_v51 = vpop.eup %7678  ;;  %v5373_v52 = vmul.f32 %v5309_v29, %v10915_v32 }
 0xb1b   : > { %v7681_v42 = vpop.eup %7680  ;;  %v5374_v47 = vmul.f32 %v5310_v6, %v10919_v13  ;;  %v5248_v9 = vadd.f32 1.0, %v7679_v51 }
 0xb1c   : > { %v7683_v30 = vpop.eup %7682  ;;  %v5247_v21 = vadd.f32 1.0, %v7681_v42  ;;  %v5411_v53 = vpack.c.bf16 %v5373_v52, %v5371_v27 }
 0xb1d   : > { %v5249_v43 = vadd.f32 1.0, %v7683_v30  ;;  %v5412_v4 = vpack.c.bf16 %v5374_v47, %v5372_v5  ;;  %v5312_v59 = vmul.f32 0.5, %v5248_v9 }
 0xb1e   : > { %v5311_v36 = vmul.f32 0.5, %v5247_v21 }
 0xb1f   : > { %v7685_v60 = vpop.eup %7684  ;;  %5675 = vmatprep.mubr.bf16.mxu0 %v5412_v4  ;;  %v5313_v1 = vmul.f32 0.5, %v5249_v43  ;;  %v5376_v23 = vmul.f32 %v5312_v59, %v10935_v19 }
 0xb20   : > { %v5250_v25 = vadd.f32 1.0, %v7685_v60  ;;  %v5375_v2 = vmul.f32 %v5311_v36, %v10927_v34 }
 0xb21   : > { %5676 = vmatmul.mubr.bf16.gmra.mxu0 %v5411_v53  ;;  %v5377_v32 = vmul.f32 %v5313_v1, %v10942_v39 }
 0xb22   : > { %v5314_v54 = vmul.f32 0.5, %v5250_v25  ;;  %v5742_v25 = vsub.s32 5, %v11398_v44 }
 0xb23   : > { %v5413_v14 = vpack.c.bf16 %v5377_v32, %v5375_v2 }
 0xb24   : > { %v5378_v13 = vmul.f32 %v5314_v54, %v10950_v38 }
 0xb26   : > { %v5414_v8 = vpack.c.bf16 %v5378_v13, %v5376_v23 }
 0xb28   : > { %5683 = vmatprep.mubr.bf16.mxu0 %v5414_v8 }
 0xb29   : > { %5684 = vmatmul.mubr.bf16.gmra.mxu0 %v5413_v14  ;;  %v4792_v41 = vpop.f32.mrf.mxu1 }
 0xb2a   : > { %v10977_v10 = vadd.f32 %v4792_v41, %v10504_v49  ;;  %v7735_v41 = vld [vmem:[%s8285_s13] sm:$0xff] }
 0xb2b   : > { %v4794_v62 = vpop.f32.mrf.mxu1 }
 0xb2c   : > { %v4867_v37 = vmul.f32 %v10977_v10, %v10977_v10  ;;  %v10982_v19 = vadd.f32 %v4794_v62, %v10507_v26  ;;  %v11030_v62 = vrot.slane %v7735_v41, %v5742_v25 }
 0xb2d   : > { %v4796_v38 = vpop.f32.mrf.mxu1 }
 0xb2e   : > { %v4931_v39 = vmul.f32 %v4867_v37, %v10977_v10  ;;  %v4868_v34 = vmul.f32 %v10982_v19, %v10982_v19  ;;  %v10988_v0 = vadd.f32 %v4796_v38, %v10504_v49 }
 0xb2f   : > { %v4798_v28 = vpop.f32.mrf.mxu1 }
 0xb30   : > { %v4995_v56 = vmul.f32 0.044715, %v4931_v39  ;;  %v4932_v31 = vmul.f32 %v4868_v34, %v10982_v19  ;;  %v4869_v61 = vmul.f32 %v10988_v0, %v10988_v0  ;;  %v10994_v40 = vadd.f32 %v4798_v28, %v10507_v26 }
 0xb32   : > { %v5059_v50 = vadd.f32 %v4995_v56, %v10977_v10  ;;  %v4996_v55 = vmul.f32 0.044715, %v4932_v31  ;;  %v4933_v57 = vmul.f32 %v4869_v61, %v10988_v0  ;;  %v4870_v12 = vmul.f32 %v10994_v40, %v10994_v40 }
 0xb34   : > { %v5123_v22 = vmul.f32 0.7978846, %v5059_v50  ;;  %v5060_v17 = vadd.f32 %v4996_v55, %v10982_v19  ;;  %v4997_v48 = vmul.f32 0.044715, %v4933_v57  ;;  %v4934_v29 = vmul.f32 %v4870_v12, %v10994_v40 }
 0xb36   : > { %v5124_v16 = vmul.f32 0.7978846, %v5060_v17  ;;  %v5061_v51 = vadd.f32 %v4997_v48, %v10988_v0  ;;  %v4998_v6 = vmul.f32 0.044715, %v4934_v29  ;;  %7686 = vtanh.f32 %v5123_v22 }
 0xb38   : > { %7688 = vtanh.f32 %v5124_v16  ;;  %v5125_v33 = vmul.f32 0.7978846, %v5061_v51  ;;  %v5062_v42 = vadd.f32 %v4998_v6, %v10994_v40 }
 0xb3a   : > { %7690 = vtanh.f32 %v5125_v33  ;;  %v5126_v5 = vmul.f32 0.7978846, %v5062_v42  ;;  %v4802_v47 = vpop.f32.mrf.mxu1 }
 0xb3b   : > { %v11005_v9 = vadd.f32 %v4802_v47, %v10504_v49 }
 0xb3c   : > { %7692 = vtanh.f32 %v5126_v5  ;;  %v4804_v30 = vpop.f32.mrf.mxu1 }
 0xb3d   : > { %v4871_v52 = vmul.f32 %v11005_v9, %v11005_v9  ;;  %v11010_v43 = vadd.f32 %v4804_v30, %v10507_v26 }
 0xb3e   : > { %v4806_v4 = vpop.f32.mrf.mxu1 }
 0xb3f   : > { %v4935_v60 = vmul.f32 %v4871_v52, %v11005_v9  ;;  %v4872_v27 = vmul.f32 %v11010_v43, %v11010_v43  ;;  %v11016_v21 = vadd.f32 %v4806_v4, %v10504_v49 }
 0xb40   : > { %v4808_v59 = vpop.f32.mrf.mxu1  ;;  %v6281_v1 = vpop.f32.mrf.mxu0 }
 0xb41   : > { %v4999_v53 = vmul.f32 0.044715, %v4935_v60  ;;  %v4936_v54 = vmul.f32 %v4872_v27, %v11010_v43  ;;  %v4873_v36 = vmul.f32 %v11016_v21, %v11016_v21  ;;  %v11023_v23 = vadd.f32 %v4808_v59, %v10507_v26 }
 0xb42   : > { %v6282_v13 = vpop.f32.mrf.mxu0 }
 0xb43   : > { %v5063_v32 = vadd.f32 %v4999_v53, %v11005_v9  ;;  %v5000_v8 = vmul.f32 0.044715, %v4936_v54  ;;  %v4937_v49 = vmul.f32 %v4873_v36, %v11016_v21  ;;  %v4874_v44 = vmul.f32 %v11023_v23, %v11023_v23  ;;  %v7687_v2 = vpop.eup %7686 }
 0xb44   : > { %v6283_v14 = vadd.f32 %v6282_v13, %v6281_v1  ;;  %v6284_v37 = vpop.f32.mrf.mxu0  ;;  %v5251_v55 = vadd.f32 1.0, %v7687_v2 }
 0xb45   : > { %v7689_v38 = vpop.eup %7688  ;;  %v5127_v39 = vmul.f32 0.7978846, %v5063_v32  ;;  %v5064_v26 = vadd.f32 %v5000_v8, %v11010_v43  ;;  %v5001_v34 = vmul.f32 0.044715, %v4937_v49  ;;  %v4938_v28 = vmul.f32 %v4874_v44, %v11023_v23 }
 0xb46   : > { %v5708_v56 = vadd.f32 %v6283_v14, %v10076_v46  ;;  %v6285_v31 = vpop.f32.mrf.mxu0  ;;  %v5252_v61 = vadd.f32 1.0, %v7689_v38  ;;  %v5315_v52 = vmul.f32 0.5, %v5251_v55 }
 0xb47   : > { %v7691_v50 = vpop.eup %7690  ;;  %v5128_v57 = vmul.f32 0.7978846, %v5064_v26  ;;  %v5065_v12 = vadd.f32 %v5001_v34, %v11016_v21  ;;  %v5002_v22 = vmul.f32 0.044715, %v4938_v28  ;;  %7694 = vtanh.f32 %v5127_v39 }
 0xb48   : > { %v5253_v17 = vadd.f32 1.0, %v7691_v50  ;;  %v5744_v48 = vadd.f32 %v11030_v62, %v5708_v56  ;;  %v6286_v29 = vadd.f32 %v6285_v31, %v6284_v37  ;;  %v6287_v16 = vpop.f32.mrf.mxu0  ;;  %v5316_v30 = vmul.f32 0.5, %v5252_v61 }
 0xb49   : > { %v7693_v51 = vpop.eup %7692  ;;  %7696 = vtanh.f32 %v5128_v57  ;;  %v5129_v6 = vmul.f32 0.7978846, %v5065_v12  ;;  %v5066_v33 = vadd.f32 %v5002_v22, %v11023_v23  ;;  %v5379_v13 = vmul.f32 %v5315_v52, %v10977_v10 }
 0xb4a   : > { %v5317_v46 = vmul.f32 0.5, %v5253_v17  ;;  %5776 = vst [vmem:[#allocation13] sm:$0xff] %v5744_v48  ;;  %v5709_v42 = vadd.f32 %v6286_v29, %v10083_v24  ;;  %v6288_v5 = vpop.f32.mrf.mxu0  ;;  %v5254_v47 = vadd.f32 1.0, %v7693_v51  ;;  %v5380_v24 = vmul.f32 %v5316_v30, %v10982_v19 }
 0xb4b   : > { %7698 = vtanh.f32 %v5129_v6  ;;  %v5130_v4 = vmul.f32 0.7978846, %v5066_v33  ;;  %v6289_v60 = vadd.f32 %v6288_v5, %v6287_v16 }
 0xb4c   : > { %v5745_v27 = vadd.f32 %v11030_v62, %v5709_v42  ;;  %v6290_v25 = vpop.f32.mrf.mxu0  ;;  %v5318_v59 = vmul.f32 0.5, %v5254_v47  ;;  %v5381_v1 = vmul.f32 %v5317_v46, %v10988_v0 }
 0xb4d   : > { %7700 = vtanh.f32 %v5130_v4  ;;  %v5710_v53 = vadd.f32 %v6289_v60, %v10088_v20 }
 0xb4e   : > { %5777 = vst [vmem:[#allocation13 + $0x8] sm:$0xff] %v5745_v27  ;;  %v6291_v54 = vpop.f32.mrf.mxu0  ;;  %v5382_v36 = vmul.f32 %v5318_v59, %v10994_v40  ;;  %v5415_v0 = vpack.c.bf16 %v5381_v1, %v5379_v13 }
 0xb4f   : > { %v5746_v32 = vadd.f32 %v11030_v62, %v5710_v53  ;;  %v6292_v8 = vadd.f32 %v6291_v54, %v6290_v25 }
 0xb50   : > { %v6293_v49 = vpop.f32.mrf.mxu0  ;;  %v5416_v44 = vpack.c.bf16 %v5382_v36, %v5380_v24 }
 0xb51   : > { %5778 = vst [vmem:[#allocation13 + $0x10] sm:$0xff] %v5746_v32  ;;  %v5711_v2 = vadd.f32 %v6292_v8, %v10080_v18 }
 0xb52   : > { %v6294_v14 = vpop.f32.mrf.mxu0  ;;  %5691 = vmatprep.mubr.bf16.mxu0 %v5416_v44 }
 0xb53   : > { %v5747_v20 = vadd.f32 %v11030_v62, %v5711_v2  ;;  %v6295_v41 = vadd.f32 %v6294_v14, %v6293_v49  ;;  %5692 = vmatmul.mubr.bf16.gmra.mxu0 %v5415_v0 }
 0xb54   : > { %v6296_v19 = vpop.f32.mrf.mxu0  ;;  %v7695_v37 = vpop.eup %7694 }
 0xb55   : > { %5779 = vst [vmem:[#allocation13 + $0x18] sm:$0xff] %v5747_v20  ;;  %v5712_v10 = vadd.f32 %v6295_v41, %v10092_v45  ;;  %v5255_v18 = vadd.f32 1.0, %v7695_v37  ;;  %v11420_v20 = vld [vmem:[#allocation51_spill] sm:$0xff] }
 0xb56   : > { %v7697_v40 = vpop.eup %7696  ;;  %v6297_v38 = vpop.f32.mrf.mxu0 }
 0xb57   : > { %v5748_v39 = vadd.f32 %v11030_v62, %v5712_v10  ;;  %v6298_v26 = vadd.f32 %v6297_v38, %v6296_v19  ;;  %v5256_v34 = vadd.f32 1.0, %v7697_v40  ;;  %v5319_v48 = vmul.f32 0.5, %v5255_v18  ;;  %v11421_v40 = vld [vmem:[#allocation24_spill] sm:$0xff] }
 0xb58   : > { %v7699_v28 = vpop.eup %7698  ;;  %v6299_v56 = vpop.f32.mrf.mxu0 }
 0xb59   : > { %v5257_v31 = vadd.f32 1.0, %v7699_v28  ;;  %5780 = vst [vmem:[#allocation13 + $0x20] sm:$0xff] %v5748_v39  ;;  %v5713_v61 = vadd.f32 %v6298_v26, %v10099_v7  ;;  %v5320_v57 = vmul.f32 0.5, %v5256_v34  ;;  %v5383_v47 = vmul.f32 %v5319_v48, %v11005_v9  ;;  %v11422_v28 = vld [vmem:[#allocation26_spill] sm:$0xff]  ;;  %v11424_v48 = vld [vmem:[#allocation36_spill] sm:$0xff] }
 0xb5a   : > { %v7701_v50 = vpop.eup %7700  ;;  %v6300_v55 = vpop.f32.mrf.mxu0 }
 0xb5b   : > { %v5321_v12 = vmul.f32 0.5, %v5257_v31  ;;  %v5749_v22 = vadd.f32 %v11030_v62, %v5713_v61  ;;  %v6301_v45 = vadd.f32 %v6300_v55, %v6299_v56  ;;  %v5258_v17 = vadd.f32 1.0, %v7701_v50  ;;  %v11423_v55 = vld [vmem:[#allocation35_spill] sm:$0xff] }
 0xb5c   : > { %v6302_v29 = vpop.f32.mrf.mxu0  ;;  %v5384_v42 = vmul.f32 %v5320_v57, %v11010_v43 }
 0xb5d   : > { %5781 = vst [vmem:[#allocation13 + $0x28] sm:$0xff] %v5749_v22  ;;  %v5714_v16 = vadd.f32 %v6301_v45, %v10096_v35  ;;  %v5322_v51 = vmul.f32 0.5, %v5258_v17  ;;  %v5385_v6 = vmul.f32 %v5321_v12, %v11016_v21 }
 0xb5e   : > { %v6303_v33 = vpop.f32.mrf.mxu0 }
 0xb5f   : > { %v5750_v46 = vadd.f32 %v11030_v62, %v5714_v16  ;;  %v6304_v7 = vadd.f32 %v6303_v33, %v6302_v29  ;;  %v5386_v5 = vmul.f32 %v5322_v51, %v11023_v23  ;;  %v5417_v4 = vpack.c.bf16 %v5385_v6, %v5383_v47 }
 0xb61   : > { %5782 = vst [vmem:[#allocation13 + $0x30] sm:$0xff] %v5750_v46  ;;  %v5715_v30 = vadd.f32 %v6304_v7, %v10104_v3  ;;  %v5418_v52 = vpack.c.bf16 %v5386_v5, %v5384_v42  ;;  %v11425_v46 = vld [vmem:[#allocation33_spill] sm:$0xff] }
 0xb63   : > { %v5751_v35 = vadd.f32 %v11030_v62, %v5715_v30  ;;  %5699 = vmatprep.mubr.bf16.mxu0 %v5418_v52  ;;  %v11426_v52 = vld [vmem:[#allocation37_spill] sm:$0xff] }
 0xb64   : > { %5700 = vmatmul.mubr.bf16.gmra.mxu0 %v5417_v4 }
 0xb65   : > { %5783 = vst [vmem:[#allocation13 + $0x38] sm:$0xff] %v5751_v35 }
 0xb8a   : > { %v6305_v21 = vpop.f32.mrf.mxu0 }
 0xb8c   : > { %v6306_v60 = vpop.f32.mrf.mxu0 }
 0xb8d   : > { %v6307_v27 = vadd.f32 %v6306_v60, %v6305_v21 }
 0xb8e   : > { %v6308_v25 = vpop.f32.mrf.mxu0 }
 0xb8f   : > { %v5716_v43 = vadd.f32 %v6307_v27, %v10108_v63  ;;  %v11427_v27 = vld [vmem:[#allocation32_spill] sm:$0xff] }
 0xb90   : > { %v6309_v59 = vpop.f32.mrf.mxu0 }
 0xb91   : > { %v5752_v23 = vadd.f32 %v11030_v62, %v5716_v43  ;;  %v6310_v9 = vadd.f32 %v6309_v59, %v6308_v25 }
 0xb92   : > { %v6311_v1 = vpop.f32.mrf.mxu0 }
 0xb93   : > { %5784 = vst [vmem:[#allocation13 + $0x40] sm:$0xff] %v5752_v23  ;;  %v5717_v3 = vadd.f32 %v6310_v9, %v10115_v15 }
 0xb94   : > { %v6312_v53 = vpop.f32.mrf.mxu0 }
 0xb95   : > { %v5753_v54 = vadd.f32 %v11030_v62, %v5717_v3  ;;  %v6313_v24 = vadd.f32 %v6312_v53, %v6311_v1  ;;  %v11428_v3 = vld [vmem:[#allocation34_spill] sm:$0xff] }
 0xb96   : > { %v6314_v36 = vpop.f32.mrf.mxu0 }
 0xb97   : > { %5785 = vst [vmem:[#allocation13 + $0x48] sm:$0xff] %v5753_v54  ;;  %v5718_v13 = vadd.f32 %v6313_v24, %v10112_v58 }
 0xb98   : > { %v6315_v32 = vpop.f32.mrf.mxu0 }
 0xb99   : > { %v5754_v8 = vadd.f32 %v11030_v62, %v5718_v13  ;;  %v6316_v63 = vadd.f32 %v6315_v32, %v6314_v36  ;;  %v11429_v32 = vld [vmem:[#allocation30_spill] sm:$0xff] }
 0xb9a   : > { %v6317_v49 = vpop.f32.mrf.mxu0 }
 0xb9b   : > { %5786 = vst [vmem:[#allocation13 + $0x50] sm:$0xff] %v5754_v8  ;;  %v5719_v44 = vadd.f32 %v6316_v63, %v10120_v11 }
 0xb9c   : > { %v6318_v2 = vpop.f32.mrf.mxu0 }
 0xb9d   : > { %v5755_v0 = vadd.f32 %v11030_v62, %v5719_v44  ;;  %v6319_v15 = vadd.f32 %v6318_v2, %v6317_v49 }
 0xb9e   : > { %v6320_v14 = vpop.f32.mrf.mxu0 }
 0xb9f   : > { %5787 = vst [vmem:[#allocation13 + $0x58] sm:$0xff] %v5755_v0  ;;  %v5720_v41 = vadd.f32 %v6319_v15, %v11420_v20  ;;  %v11430_v0 = vld [vmem:[#allocation27_spill] sm:$0xff] }
 0xba0   : > { %v6321_v19 = vpop.f32.mrf.mxu0 }
 0xba1   : > { %v5756_v37 = vadd.f32 %v11030_v62, %v5720_v41  ;;  %v6322_v58 = vadd.f32 %v6321_v19, %v6320_v14 }
 0xba2   : > { %v6323_v10 = vpop.f32.mrf.mxu0 }
 0xba3   : > { %5788 = vst [vmem:[#allocation13 + $0x60] sm:$0xff] %v5756_v37  ;;  %v5721_v38 = vadd.f32 %v6322_v58, %v11421_v40  ;;  %v11431_v37 = vld [vmem:[#allocation25_spill] sm:$0xff] }
 0xba4   : > { %v6324_v39 = vpop.f32.mrf.mxu0 }
 0xba5   : > { %v5757_v26 = vadd.f32 %v11030_v62, %v5721_v38  ;;  %v6325_v11 = vadd.f32 %v6324_v39, %v6323_v10 }
 0xba6   : > { %v6326_v34 = vpop.f32.mrf.mxu0 }
 0xba7   : > { %5789 = vst [vmem:[#allocation13 + $0x68] sm:$0xff] %v5757_v26  ;;  %v5722_v18 = vadd.f32 %v6325_v11, %v11422_v28  ;;  %v11432_v26 = vld [vmem:[#allocation28_spill] sm:$0xff] }
 0xba8   : > { %v6327_v56 = vpop.f32.mrf.mxu0 }
 0xba9   : > { %v5758_v31 = vadd.f32 %v11030_v62, %v5722_v18  ;;  %v6328_v61 = vadd.f32 %v6327_v56, %v6326_v34 }
 0xbaa   : > { %v6329_v50 = vpop.f32.mrf.mxu0 }
 0xbab   : > { %5790 = vst [vmem:[#allocation13 + $0x70] sm:$0xff] %v5758_v31  ;;  %v5723_v57 = vadd.f32 %v6328_v61, %v11423_v55  ;;  %v11433_v31 = vld [vmem:[#allocation38_spill] sm:$0xff] }
 0xbac   : > { %v6330_v12 = vpop.f32.mrf.mxu0 }
 0xbad   : > { %v5759_v22 = vadd.f32 %v11030_v62, %v5723_v57  ;;  %v6331_v45 = vadd.f32 %v6330_v12, %v6329_v50 }
 0xbae   : > { %v6332_v17 = vpop.f32.mrf.mxu0 }
 0xbaf   : > { %5791 = vst [vmem:[#allocation13 + $0x78] sm:$0xff] %v5759_v22  ;;  %v5724_v29 = vadd.f32 %v6331_v45, %v11424_v48  ;;  %v11434_v22 = vld [vmem:[#allocation54_spill] sm:$0xff] }
 0xbb0   : > { %v6333_v16 = vpop.f32.mrf.mxu0 }
 0xbb1   : > { %v5760_v51 = vadd.f32 %v11030_v62, %v5724_v29  ;;  %v6334_v6 = vadd.f32 %v6333_v16, %v6332_v17  ;;  %v11435_v16 = vld [vmem:[#allocation52_spill] sm:$0xff] }
 0xbb2   : > { %v6335_v33 = vpop.f32.mrf.mxu0 }
 0xbb3   : > { %5792 = vst [vmem:[#allocation13 + $0x80] sm:$0xff] %v5760_v51  ;;  %v5725_v7 = vadd.f32 %v6334_v6, %v11425_v46 }
 0xbb4   : > { %v6336_v42 = vpop.f32.mrf.mxu0 }
 0xbb5   : > { %v5761_v5 = vadd.f32 %v11030_v62, %v5725_v7  ;;  %v6337_v47 = vadd.f32 %v6336_v42, %v6335_v33 }
 0xbb6   : > { %v6338_v30 = vpop.f32.mrf.mxu0 }
 0xbb7   : > { %5793 = vst [vmem:[#allocation13 + $0x88] sm:$0xff] %v5761_v5  ;;  %v5726_v4 = vadd.f32 %v6337_v47, %v11426_v52  ;;  %v11436_v5 = vld [vmem:[#allocation56_spill] sm:$0xff] }
 0xbb8   : > { %v6339_v35 = vpop.f32.mrf.mxu0 }
 0xbb9   : > { %v5762_v21 = vadd.f32 %v11030_v62, %v5726_v4  ;;  %v6340_v60 = vadd.f32 %v6339_v35, %v6338_v30  ;;  %v11437_v35 = vld [vmem:[#allocation59_spill] sm:$0xff] }
 0xbbb   : > { %5794 = vst [vmem:[#allocation13 + $0x90] sm:$0xff] %v5762_v21  ;;  %v5727_v25 = vadd.f32 %v6340_v60, %v11427_v27 }
 0xbbd   : > { %v5763_v43 = vadd.f32 %v11030_v62, %v5727_v25 }
 0xbbf   : > { %5795 = vst [vmem:[#allocation13 + $0x98] sm:$0xff] %v5763_v43 }
 0xbd1   : > { %v6341_v59 = vpop.f32.mrf.mxu0 }
 0xbd3   : > { %v6342_v23 = vpop.f32.mrf.mxu0 }
 0xbd4   : > { %v6343_v9 = vadd.f32 %v6342_v23, %v6341_v59  ;;  %v11438_v23 = vld [vmem:[#allocation47_spill] sm:$0xff] }
 0xbd5   : > { %v6344_v1 = vpop.f32.mrf.mxu0 }
 0xbd6   : > { %v5728_v53 = vadd.f32 %v6343_v9, %v11428_v3 }
 0xbd7   : > { %v6345_v54 = vpop.f32.mrf.mxu0 }
 0xbd8   : > { %v5764_v24 = vadd.f32 %v11030_v62, %v5728_v53  ;;  %v6346_v36 = vadd.f32 %v6345_v54, %v6344_v1  ;;  %v11439_v54 = vld [vmem:[#allocation58_spill] sm:$0xff] }
 0xbd9   : > { %v6347_v13 = vpop.f32.mrf.mxu0 }
 0xbda   : > { %5796 = vst [vmem:[#allocation13 + $0xa0] sm:$0xff] %v5764_v24  ;;  %v5729_v8 = vadd.f32 %v6346_v36, %v11429_v32 }
 0xbdb   : > { %v6348_v63 = vpop.f32.mrf.mxu0 }
 0xbdc   : > { %v5765_v49 = vadd.f32 %v11030_v62, %v5729_v8  ;;  %v6349_v44 = vadd.f32 %v6348_v63, %v6347_v13 }
 0xbdd   : > { %v6350_v2 = vpop.f32.mrf.mxu0 }
 0xbde   : > { %5797 = vst [vmem:[#allocation13 + $0xa8] sm:$0xff] %v5765_v49  ;;  %v5730_v15 = vadd.f32 %v6349_v44, %v11430_v0 }
 0xbdf   : > { %v6351_v14 = vpop.f32.mrf.mxu0 }
 0xbe0   : > { %v5766_v20 = vadd.f32 %v11030_v62, %v5730_v15  ;;  %v6352_v41 = vadd.f32 %v6351_v14, %v6350_v2 }
 0xbe1   : > { %v6353_v19 = vpop.f32.mrf.mxu0 }
 0xbe2   : > { %5798 = vst [vmem:[#allocation13 + $0xb0] sm:$0xff] %v5766_v20  ;;  %v5731_v58 = vadd.f32 %v6352_v41, %v11431_v37 }
 0xbe3   : > { %v6354_v10 = vpop.f32.mrf.mxu0 }
 0xbe4   : > { %v5767_v40 = vadd.f32 %v11030_v62, %v5731_v58  ;;  %v6355_v38 = vadd.f32 %v6354_v10, %v6353_v19 }
 0xbe5   : > { %v6356_v39 = vpop.f32.mrf.mxu0 }
 0xbe6   : > { %5799 = vst [vmem:[#allocation13 + $0xb8] sm:$0xff] %v5767_v40  ;;  %v5732_v11 = vadd.f32 %v6355_v38, %v11432_v26 }
 0xbe7   : > { %v6357_v34 = vpop.f32.mrf.mxu0 }
 0xbe8   : > { %v5768_v28 = vadd.f32 %v11030_v62, %v5732_v11  ;;  %v6358_v18 = vadd.f32 %v6357_v34, %v6356_v39 }
 0xbe9   : > { %v6359_v56 = vpop.f32.mrf.mxu0 }
 0xbea   : > { %5800 = vst [vmem:[#allocation13 + $0xc0] sm:$0xff] %v5768_v28  ;;  %v5733_v61 = vadd.f32 %v6358_v18, %v11433_v31 }
 0xbeb   : > { %v6360_v50 = vpop.f32.mrf.mxu0 }
 0xbec   : > { %v5769_v55 = vadd.f32 %v11030_v62, %v5733_v61  ;;  %v6361_v57 = vadd.f32 %v6360_v50, %v6359_v56 }
 0xbed   : > { %v6362_v12 = vpop.f32.mrf.mxu0 }
 0xbee   : > { %5801 = vst [vmem:[#allocation13 + $0xc8] sm:$0xff] %v5769_v55  ;;  %v5734_v45 = vadd.f32 %v6361_v57, %v11434_v22 }
 0xbef   : > { %v6363_v17 = vpop.f32.mrf.mxu0 }
 0xbf0   : > { %v5770_v48 = vadd.f32 %v11030_v62, %v5734_v45  ;;  %v6364_v29 = vadd.f32 %v6363_v17, %v6362_v12 }
 0xbf2   : > { %5802 = vst [vmem:[#allocation13 + $0xd0] sm:$0xff] %v5770_v48  ;;  %v5735_v51 = vadd.f32 %v6364_v29, %v11435_v16 }
 0xbf4   : > { %v5771_v6 = vadd.f32 %v11030_v62, %v5735_v51 }
 0xbf6   : > { %5803 = vst [vmem:[#allocation13 + $0xd8] sm:$0xff] %v5771_v6 }
 0xc13   : > { %v6365_v33 = vpop.f32.mrf.mxu0 }
 0xc15   : > { %v6366_v46 = vpop.f32.mrf.mxu0 }
 0xc16   : > { %v6367_v7 = vadd.f32 %v6366_v46, %v6365_v33 }
 0xc17   : > { %v6368_v42 = vpop.f32.mrf.mxu0 }
 0xc18   : > { %v5736_v47 = vadd.f32 %v6367_v7, %v11436_v5 }
 0xc19   : > { %v6369_v30 = vpop.f32.mrf.mxu0 }
 0xc1a   : > { %v5772_v52 = vadd.f32 %v11030_v62, %v5736_v47  ;;  %v6370_v4 = vadd.f32 %v6369_v30, %v6368_v42 }
 0xc1c   : > { %5804 = vst [vmem:[#allocation13 + $0xe0] sm:$0xff] %v5772_v52  ;;  %v5737_v21 = vadd.f32 %v6370_v4, %v11437_v35 }
 0xc1e   : > { %v5773_v60 = vadd.f32 %v11030_v62, %v5737_v21 }
 0xc20   : > { %5805 = vst [vmem:[#allocation13 + $0xe8] sm:$0xff] %v5773_v60 }
 0xc24   : > { %v6371_v27 = vpop.f32.mrf.mxu0 }
 0xc26   : > { %v6372_v25 = vpop.f32.mrf.mxu0 }
 0xc27   : > { %v6373_v43 = vadd.f32 %v6372_v25, %v6371_v27 }
 0xc28   : > { %v6374_v59 = vpop.f32.mrf.mxu0 }
 0xc29   : > { %v5738_v9 = vadd.f32 %v6373_v43, %v11438_v23 }
 0xc2a   : > { %v6375_v1 = vpop.f32.mrf.mxu0 }
 0xc2b   : > { %v5774_v3 = vadd.f32 %v11030_v62, %v5738_v9  ;;  %v6376_v53 = vadd.f32 %v6375_v1, %v6374_v59 }
 0xc2d   : > { %5806 = vst [vmem:[#allocation13 + $0xf0] sm:$0xff] %v5774_v3  ;;  %v5739_v24 = vadd.f32 %v6376_v53, %v11439_v54 }
 0xc2f   : > { %v5775_v36 = vadd.f32 %v11030_v62, %v5739_v24 }
 0xc31   : > { %5807 = vst [vmem:[#allocation13 + $0xf8] sm:$0xff] %v5775_v36 }
 0xc32   : > { %7915 = shalt.err (!%p7912_p3)
}
 0xc33   : > { %s7993_s30 = smov 128   ;;  %s7994_s10 = smov 8  }
 0xc34   : > { %6798 = dma.vmem_to_hbm [thread:$0]  (%p6824_p13), %s5815_s17, 4096, %s11139_s6, [#allocation4], %s7993_s30, %s7993_s30, %s7994_s10  }
 0xc35   : > { %7959 = dma.done.wait (%p6824_p13), [#allocation4], 4096  }
 0xc36   : > { %7961 = vsyncadd (%p6824_p13), [#allocation4], 4294963200 }
 0xc37 PF: > { %s11440_s24 = sld [smem:[#allocation20_spill]]  ;;  %s11443_s21 = smov %s7968_s22 }
 0xc38   : > { %s11441_s1 = sld [smem:[#allocation19_spill]] }
 0xc39   : > { %s11442_s23 = sld [smem:[#allocation21_spill]] }
 0xc3d   : > { %p24_p9 = scmp.ge.s32.totalorder %s11440_s24, 4  }
 0xc3e   : > { %s11444_s22 = smov %s11441_s1 }
 0xc3f   :  { %26 = sbr.rel (!%p24_p9) target bundleno = 12 (0xc), region = 138 }
 0xc44   :  { %5830 = vsyncpa [#allocation3], 1 }
 0xc45   :  { %5832 = vsyncpa [#allocation3 + $0x1], 1 }
 0xc46   :  { %5833 = vsyncpa [#allocation6], 1 }
 0xc47   :  { %5835 = vsyncpa [#allocation6 + $0x1], 1 }
 0xc48   :  { %5836 = vsyncpa [#allocation9], 1 }
 0xc49   :  { %5838 = vsyncpa [#allocation9 + $0x1], 1 }
 0xc4a   :  { %5839 = vsyncpa [#allocation12], 1 }
 0xc4b   :  { %5841 = vsyncpa [#allocation12 + $0x1], 1 }
 0xc4c   :  { %5842 = vsyncpa [#allocation4], 1 }
 0xc4d   :  { %5844 = vsyncpa [#allocation4 + $0x1], 1 }

</bundles_post_ra>
